<compile_context>
chip_gen: v7x
topology: tpu7x:2x2x1
jax: 0.10.0
libtpu: 0.0.40
codegen_flags: <defaults>
</compile_context>

<pallas_src>
import functools
import math

import jax
import jax.numpy as jnp
from jax import lax
from jax.experimental import pallas as pl
from jax.experimental.pallas import tpu as pltpu


# ----------------------------------------------------------------------------
# helpers
# ----------------------------------------------------------------------------
def _ceil_to(x, m):
    return ((x + m - 1) // m) * m


# ----------------------------------------------------------------------------
# Kernel 1: fused matmul  out = act((x @ W) * scale + shift)
# ----------------------------------------------------------------------------
def _mm_kernel(x_ref, w_ref, sc_ref, sh_ref, o_ref, *, act):
    y = jnp.dot(x_ref[...].astype(jnp.bfloat16), w_ref[...],
                preferred_element_type=jnp.float32)
    y = y * sc_ref[...] + sh_ref[...]
    if act == 'relu':
        y = jnp.maximum(y, 0.0)
    elif act == 'sigmoid':
        y = 1.0 / (1.0 + jnp.exp(-y))
    elif act == 'hswish':
        y = y * jnp.clip(y + 3.0, 0.0, 6.0) * (1.0 / 6.0)
    elif act == 'softplus':
        y = jnp.maximum(y, 0.0) + jnp.log(1.0 + jnp.exp(-jnp.abs(y)))
    o_ref[...] = y


@functools.lru_cache(maxsize=None)
def _build_mm(M, K, Np, act):
    if M <= 256:
        TM, Mp = M, M
    else:
        TM = 256
        Mp = _ceil_to(M, TM)
    kern = functools.partial(_mm_kernel, act=act)
    call = pl.pallas_call(
        kern,
        out_shape=jax.ShapeDtypeStruct((Mp, Np), jnp.float32),
        grid=(Mp // TM,),
        in_specs=[
            pl.BlockSpec((TM, K), lambda i: (i, 0)),
            pl.BlockSpec((K, Np), lambda i: (0, 0)),
            pl.BlockSpec((1, Np), lambda i: (0, 0)),
            pl.BlockSpec((1, Np), lambda i: (0, 0)),
        ],
        out_specs=pl.BlockSpec((TM, Np), lambda i: (i, 0)),
        compiler_params=pltpu.CompilerParams(
            dimension_semantics=("parallel",)),
    )
    return call, Mp


def pl_matmul_f(x, layer):
    """x: (M, K) f32.  layer: pre-packed weights (see _pack_mm)."""
    M, K = x.shape
    Np = layer['w'].shape[1]
    call, Mp = _build_mm(M, K, Np, layer['act'])
    if Mp != M:
        x = jnp.zeros((Mp, K), x.dtype).at[:M].set(x)
    out = call(x, layer['w'], layer['scale'], layer['shift'])
    return out[:M, :layer['n']]


# ----------------------------------------------------------------------------
# Kernel 2: fused LayerNorm + matmul (MambaLayer norm + in_proj)
# ----------------------------------------------------------------------------
def _ln_mm_kernel(x_ref, g_ref, b_ref, w_ref, o_ref, *, eps):
    x = x_ref[...]
    mean = jnp.mean(x, axis=1, keepdims=True)
    xc = x - mean
    var = jnp.mean(xc * xc, axis=1, keepdims=True)
    xn = xc * lax.rsqrt(var + eps) * g_ref[...] + b_ref[...]
    o_ref[...] = jnp.dot(xn.astype(jnp.bfloat16), w_ref[...],
                         preferred_element_type=jnp.float32)


@functools.lru_cache(maxsize=None)
def _build_ln_mm(M, C, Np, eps):
    if M <= 256:
        TM, Mp = M, M
    else:
        TM = 256
        Mp = _ceil_to(M, TM)
    kern = functools.partial(_ln_mm_kernel, eps=eps)
    call = pl.pallas_call(
        kern,
        out_shape=jax.ShapeDtypeStruct((Mp, Np), jnp.float32),
        grid=(Mp // TM,),
        in_specs=[
            pl.BlockSpec((TM, C), lambda i: (i, 0)),
            pl.BlockSpec((1, C), lambda i: (0, 0)),
            pl.BlockSpec((1, C), lambda i: (0, 0)),
            pl.BlockSpec((C, Np), lambda i: (0, 0)),
        ],
        out_specs=pl.BlockSpec((TM, Np), lambda i: (i, 0)),
        compiler_params=pltpu.CompilerParams(
            dimension_semantics=("parallel",)),
    )
    return call, Mp


def pl_ln_matmul(x, ln_g, ln_b, layer, eps=1e-5):
    M, C = x.shape
    Np = layer['w'].shape[1]
    call, Mp = _build_ln_mm(M, C, Np, float(eps))
    if Mp != M:
        x = jnp.zeros((Mp, C), x.dtype).at[:M].set(x)
    out = call(x, ln_g, ln_b, layer['w'])
    return out[:M, :layer['n']]


# ----------------------------------------------------------------------------
# Kernel 3: causal depthwise conv1d + SiLU (Mamba conv1d)
# ----------------------------------------------------------------------------
def _cconv_kernel(x_ref, w_ref, b_ref, o_ref, *, K, L):
    x = x_ref[...]                                    # (L+K-1, Di)
    acc = jnp.zeros(o_ref.shape, jnp.float32)
    for j in range(K):
        acc = acc + x[j:j + L, :] * w_ref[j:j + 1, :]
    acc = acc + b_ref[...]
    o_ref[...] = acc * (1.0 / (1.0 + jnp.exp(-acc)))  # SiLU fused


@functools.lru_cache(maxsize=None)
def _build_cconv(B, L, Di, K):
    kern = functools.partial(_cconv_kernel, K=K, L=L)
    return pl.pallas_call(
        kern,
        out_shape=jax.ShapeDtypeStruct((B, L, Di), jnp.float32),
        grid=(B,),
        in_specs=[
            pl.BlockSpec((None, L + K - 1, Di), lambda b: (b, 0, 0)),
            pl.BlockSpec((K, Di), lambda b: (0, 0)),
            pl.BlockSpec((1, Di), lambda b: (0, 0)),
        ],
        out_specs=pl.BlockSpec((None, L, Di), lambda b: (b, 0, 0)),
        compiler_params=pltpu.CompilerParams(
            dimension_semantics=("parallel",)),
    )


def pl_causal_conv_silu(x, w, b):
    B, L, Di = x.shape
    K = w.shape[0]
    xp = jnp.pad(x, ((0, 0), (K - 1, 0), (0, 0)))     # causal left-pad
    return _build_cconv(B, L, Di, K)(xp, w, b)


# ----------------------------------------------------------------------------
# Kernel 4: spatial attention: 7x7 (1-channel) conv -> sigmoid -> 1x1 scalar
# ----------------------------------------------------------------------------
def _sa_kernel(x_ref, w_ref, o_ref, *, H, W, K):
    x = x_ref[...]
    acc = jnp.zeros((H, W), jnp.float32)
    for i in range(K):
        for j in range(K):
            acc = acc + x[i:i + H, j:j + W] * w_ref[i * K + j]
    s = 1.0 / (1.0 + jnp.exp(-acc))
    o_ref[...] = s * w_ref[K * K]                     # sa_conv (1x1, no bias)


@functools.lru_cache(maxsize=None)
def _build_sa(N, H, W, K):
    kern = functools.partial(_sa_kernel, H=H, W=W, K=K)
    return pl.pallas_call(
        kern,
        out_shape=jax.ShapeDtypeStruct((N, H, W), jnp.float32),
        grid=(N,),
        in_specs=[
            pl.BlockSpec((None, H + K - 1, W + K - 1), lambda n: (n, 0, 0)),
            pl.BlockSpec(memory_space=pltpu.MemorySpace.SMEM),
        ],
        out_specs=pl.BlockSpec((None, H, W), lambda n: (n, 0, 0)),
        compiler_params=pltpu.CompilerParams(
            dimension_semantics=("parallel",)),
    )


def pl_spatial_attention(xmax, w_flat, K=7):
    N, H, W = xmax.shape
    xp = jnp.pad(xmax, ((0, 0), (K // 2, K // 2), (K // 2, K // 2)))
    return _build_sa(N, H, W, K)(xp, w_flat)


# ----------------------------------------------------------------------------
# Kernel 5: Mamba selective scan with VMEM-resident state
#   h[n,d] <- exp(A[d,n]*delta[d]) * h[n,d] + B[n]*delta[d]*u[d]
#   y[d]   <- sum_n C[n]*h[n,d] ; y = (y + u*D) * silu(z)
# ----------------------------------------------------------------------------
def _scan_kernel(delta_ref, xa_ref, z_ref, bc_ref, at_ref, d_ref, y_ref,
                 h_ref, *, L, Ns, Di):
    h_ref[...] = jnp.zeros_like(h_ref)
    A = at_ref[...]                                   # (Ns, Di), already -exp(A_log)^T
    Dv = d_ref[...]                                   # (1, Di)
    eye = (lax.broadcasted_iota(jnp.int32, (Ns, Ns), 0)
           == lax.broadcasted_iota(jnp.int32, (Ns, Ns), 1)).astype(jnp.float32)

    @pl.loop(0, L)
    def _(t):
        dlt = delta_ref[pl.ds(t, 1), :]               # (1, Di)
        xat = xa_ref[pl.ds(t, 1), :]
        zt = z_ref[pl.ds(t, 1), :]
        bct = bc_ref[pl.ds(t, 1), :]                  # (1, 2*Ns)
        brow = bct[:, :Ns]
        crow = bct[:, Ns:]
        dA = jnp.exp(A * dlt)                         # (Ns, Di)
        du = dlt * xat                                # (1, Di)
        # lane->sublane broadcast of B via diag matmul (keeps lowering simple)
        diag_b = eye * brow                           # (Ns, Ns), diag = B
        dBu = jnp.dot(diag_b, jnp.broadcast_to(du, (Ns, Di)),
                      preferred_element_type=jnp.float32)
        hnew = dA * h_ref[...] + dBu
        h_ref[...] = hnew
        cmat = jnp.broadcast_to(crow, (8, Ns))
        ycore = jnp.dot(cmat, hnew, preferred_element_type=jnp.float32)[0:1, :]
        sz = zt * (1.0 / (1.0 + jnp.exp(-zt)))        # silu(z)
        y_ref[pl.ds(t, 1), :] = (ycore + xat * Dv) * sz


@functools.lru_cache(maxsize=None)
def _build_scan(B, L, Di, Ns):
    kern = functools.partial(_scan_kernel, L=L, Ns=Ns, Di=Di)
    return pl.pallas_call(
        kern,
        out_shape=jax.ShapeDtypeStruct((B, L, Di), jnp.float32),
        grid=(B,),
        in_specs=[
            pl.BlockSpec((None, L, Di), lambda b: (b, 0, 0)),      # delta
            pl.BlockSpec((None, L, Di), lambda b: (b, 0, 0)),      # xa (u)
            pl.BlockSpec((None, L, Di), lambda b: (b, 0, 0)),      # z
            pl.BlockSpec((None, L, 2 * Ns), lambda b: (b, 0, 0)),  # [B,C]
            pl.BlockSpec((Ns, Di), lambda b: (0, 0)),              # A^T (neg)
            pl.BlockSpec((1, Di), lambda b: (0, 0)),               # D
        ],
        out_specs=pl.BlockSpec((None, L, Di), lambda b: (b, 0, 0)),
        scratch_shapes=[pltpu.VMEM((Ns, Di), jnp.float32)],
        compiler_params=pltpu.CompilerParams(
            dimension_semantics=("parallel",)),
    )


def pl_selective_scan(delta, xa, z, bc, At, Dvec):
    B, L, Di = delta.shape
    Ns = At.shape[0]
    return _build_scan(B, L, Di, Ns)(delta, xa, z, bc, At, Dvec)


# ----------------------------------------------------------------------------
# Weight packing (done ONCE at parameter construction time)
# ----------------------------------------------------------------------------
def _pack_mm(w_oi, bias=None, bn=None, act='none', k_pad=None,
             keep_padded=False):
    """w_oi: torch-style (out, in).  Returns pre-transposed / pre-padded bf16
    weight plus a fused per-channel scale/shift (bias + folded BatchNorm)."""
    w = jnp.asarray(w_oi, jnp.float32).T              # (K, N)
    K, N = w.shape
    Kp = K if k_pad is None else max(K, k_pad)
    Np = max(128, _ceil_to(N, 128))
    wp = jnp.zeros((Kp, Np), jnp.float32).at[:K, :N].set(w).astype(jnp.bfloat16)
    scale = jnp.ones((N,), jnp.float32)
    shift = jnp.zeros((N,), jnp.float32) if bias is None \
        else jnp.asarray(bias, jnp.float32)
    if bn is not None:
        s = bn['weight'] / jnp.sqrt(bn['running_var'] + 1e-5)
        shift = shift * s + bn['bias'] - bn['running_mean'] * s
        scale = scale * s
    scp = jnp.zeros((1, Np), jnp.float32).at[0, :N].set(scale)
    shp = jnp.zeros((1, Np), jnp.float32).at[0, :N].set(shift)
    return {'w': wp, 'scale': scp, 'shift': shp, 'act': act,
            'n': Np if keep_padded else N}


def _pack_w(w_oi):
    w = jnp.asarray(w_oi, jnp.float32).T
    K, N = w.shape
    Np = max(128, _ceil_to(N, 128))
    wp = jnp.zeros((K, Np), jnp.float32).at[:K, :N].set(w).astype(jnp.bfloat16)
    return {'w': wp, 'n': N}


# ----------------------------------------------------------------------------
# Module forward passes
# ----------------------------------------------------------------------------
def attention_block(p, x):
    """Attention = x * W(x) * H(x) * ChannelAttention(x).  x: (N,H,W,C)."""
    N, H, W, C = x.shape
    # W branch: pool over H -> (N,1,W,C)
    yw = pl_matmul_f(jnp.mean(x, axis=1).reshape(N * W, C), p['w_conv1'])
    yw = pl_matmul_f(yw, p['w_conv2']).reshape(N, 1, W, C)
    # H branch: pool over W -> (N,H,1,C)
    yh = pl_matmul_f(jnp.mean(x, axis=2).reshape(N * H, C), p['h_conv1'])
    yh = pl_matmul_f(yh, p['h_conv2']).reshape(N, H, 1, C)
    # channel attention: global avg pool -> (N,1,1,C)
    yc = pl_matmul_f(jnp.mean(x, axis=(1, 2)), p['ca_fc1'])
    yc = pl_matmul_f(yc, p['ca_fc2']).reshape(N, 1, 1, C)
    return x * yw * yh * yc


def mamba_layer_forward(p, x_nhwc):
    """MambaLayer: LayerNorm over C, then Mamba over the L = H*W sequence."""
    N, H, W, C = x_nhwc.shape
    L = H * W
    Di, Ns = p['d_inner'], p['d_state']
    M = N * L

    # LayerNorm + in_proj fused (no bias)
    xz = pl_ln_matmul(x_nhwc.reshape(M, C), p['ln_g'], p['ln_b'], p['in_proj'])
    xz = xz.reshape(N, L, 2 * Di)
    xi, z = xz[..., :Di], xz[..., Di:]

    # causal depthwise conv1d + SiLU
    xa = pl_causal_conv_silu(xi, p['conv_w'], p['conv_b'])        # (N, L, Di)
    xa2d = xa.reshape(M, Di)

    # x_proj (B, C part) and dt_proj folded with x_proj's dt rows (+softplus)
    bc = pl_matmul_f(xa2d, p['x_proj_bc']).reshape(N, L, 2 * Ns)
    delta = pl_matmul_f(xa2d, p['dt_full']).reshape(N, L, Di)

    # selective scan (VMEM-resident state)
    y = pl_selective_scan(delta, xa, z, bc, p['At'], p['D'])      # (N, L, Di)

    out = pl_matmul_f(y.reshape(M, Di), p['out_proj'])            # (M, C)
    return out.reshape(N, H, W, C)


def mffm_forward(params, r, d):
    to_nhwc = lambda t: jnp.transpose(jnp.asarray(t, jnp.float32), (0, 2, 3, 1))
    to_nchw = lambda t: jnp.transpose(t, (0, 3, 1, 2))
    r = to_nhwc(r)
    d = to_nhwc(d)
    N, H, W, Cr = r.shape
    Cd = d.shape[-1]

    out_r = attention_block(params['r_att'], r)
    d_att = attention_block(params['d_att'], d)
    rd = jnp.concatenate([out_r, d_att], axis=-1)

    # SpatialAttention (channel max -> 7x7 conv -> sigmoid) then sa_conv (1x1)
    sa = pl_spatial_attention(jnp.max(rd, axis=-1), params['sa_w'])[..., None]

    out_r = out_r * sa + r
    rd = rd * sa

    out = pl_matmul_f(rd.reshape(N * H * W, Cr + Cd),
                      params['conv']).reshape(N, H, W, 64)
    # br1 = BN + ReLU (BN folded to scale/shift; elementwise stays in XLA)
    br1 = jnp.maximum(out * params['br1_scale'] + params['br1_shift'], 0.0)
    # br2 = MambaLayer + GELU
    # TODO(synk): exact-erf GELU kept in XLA instead of fusing into out_proj.
    br2 = jax.nn.gelu(mamba_layer_forward(params['mamba'], out),
                      approximate=False)
    cat = jnp.concatenate([out, br1, br2], axis=-1)
    outf = pl_matmul_f(cat.reshape(N * H * W, 64 * 3),
                       params['conv_end']).reshape(N, H, W, 64)
    return to_nchw(out_r), to_nchw(outf)


# ----------------------------------------------------------------------------
# deterministic parameter construction
# ----------------------------------------------------------------------------
class ParamGen:
    def __init__(self, seed=1):
        self.key = jax.random.PRNGKey(seed)

    def normal(self, shape, scale=0.1):
        self.key, sub = jax.random.split(self.key)
        return scale * jax.random.normal(sub, shape, jnp.float32)


def make_bn(g, c):
    return {'weight': 1.0 + g.normal((c,), 0.05),
            'bias': g.normal((c,), 0.05),
            'running_mean': g.normal((c,), 0.05),
            'running_var': 1.0 + jnp.abs(g.normal((c,), 0.05))}


def make_attention(g, dim):
    mip_hw = max(8, dim // 32)
    mip_ca = min(8, dim // 16)

    def hw_branch():
        bn = make_bn(g, mip_hw)
        c1 = _pack_mm(g.normal((mip_hw, dim)), g.normal((mip_hw,), 0.05),
                      bn, 'hswish', keep_padded=True)
        c2 = _pack_mm(g.normal((dim, mip_hw)), g.normal((dim,), 0.05),
                      None, 'sigmoid', k_pad=128)
        return c1, c2

    w1, w2 = hw_branch()
    h1, h2 = hw_branch()
    return {
        'w_conv1': w1, 'w_conv2': w2,
        'h_conv1': h1, 'h_conv2': h2,
        'ca_fc1': _pack_mm(g.normal((mip_ca, dim)), None, None, 'relu',
                           keep_padded=True),
        'ca_fc2': _pack_mm(g.normal((dim, mip_ca)), None, None, 'sigmoid',
                           k_pad=128),
    }


def make_mamba_params(g, d_model, d_state=16, d_conv=4, expand=2):
    Di = expand * d_model
    dt_rank = math.ceil(d_model / 16)
    A = jnp.tile(jnp.arange(1, d_state + 1, dtype=jnp.float32), (Di, 1))
    x_proj_w = g.normal((dt_rank + 2 * d_state, Di))          # (out, in)
    dt_proj_w = g.normal((Di, dt_rank))
    dt_proj_b = g.normal((Di,), 0.05)
    # fold dt_proj o x_proj[:dt_rank]  into one (Di -> Di) linear map
    w_dt_full = dt_proj_w @ x_proj_w[:dt_rank, :]
    return {
        'd_inner': Di, 'd_state': d_state, 'dt_rank': dt_rank, 'd_conv': d_conv,
        'ln_g': jnp.ones((1, d_model), jnp.float32),
        'ln_b': jnp.zeros((1, d_model), jnp.float32),
        'in_proj': _pack_w(g.normal((2 * Di, d_model))),
        'conv_w': g.normal((d_conv, Di)),
        'conv_b': g.normal((1, Di), 0.05),
        'x_proj_bc': _pack_mm(x_proj_w[dt_rank:, :], None, None, 'none'),
        'dt_full': _pack_mm(w_dt_full, dt_proj_b, None, 'softplus'),
        'out_proj': _pack_mm(g.normal((d_model, Di)), None, None, 'none'),
        'At': -A.T,                                           # (Ns, Di)
        'D': jnp.ones((1, Di), jnp.float32),
    }


def make_mffm(g, dim_r, dim_d):
    bn64 = make_bn(g, 64)
    s = bn64['weight'] / jnp.sqrt(bn64['running_var'] + 1e-5)
    return {
        'r_att': make_attention(g, dim_r),
        'd_att': make_attention(g, dim_d),
        # 49 taps of the 7x7 SpatialAttention conv + the sa_conv 1x1 scalar
        'sa_w': jnp.concatenate([g.normal((49,), 0.05), g.normal((1,), 0.5)]),
        'conv': _pack_mm(g.normal((64, dim_r + dim_d)),
                         g.normal((64,), 0.05), None, 'none'),
        'br1_scale': s,
        'br1_shift': bn64['bias'] - bn64['running_mean'] * s,
        'mamba': make_mamba_params(g, 64),
        'conv_end': _pack_mm(g.normal((64, 64 * 3)),
                             g.normal((64,), 0.05), None, 'none'),
    }


# ----------------------------------------------------------------------------
# main
# ----------------------------------------------------------------------------
if __name__ == "__main__":
    dim_r, dim_d = 64, 64
    Hs = Ws = 16

    key = jax.random.PRNGKey(0)
    kr, kd = jax.random.split(key)
    r = jax.random.normal(kr, (2, dim_r, Hs, Ws), jnp.float32)
    d = jax.random.normal(kd, (2, dim_d, Hs, Ws), jnp.float32)

    g = ParamGen(seed=1)
    params = make_mffm(g, dim_r, dim_d)

    fwd = jax.jit(lambda rr, dd: mffm_forward(params, rr, dd))
    out_r, out = jax.block_until_ready(fwd(r, d))

    assert out_r.shape == (2, dim_r, Hs, Ws)
    assert out.shape == (2, 64, Hs, Ws)
    assert bool(jnp.all(jnp.isfinite(out_r)))
    assert bool(jnp.all(jnp.isfinite(out)))

    print("KERNEL_OK")
</pallas_src>

<mosaic_0001>
module attributes {stable_mosaic.version = 11 : i64} {
  func.func @_mm_kernel(%arg0: i32, %arg1: memref<2x64xf32, #tpu.memory_space<vmem>>, %arg2: memref<64x128xbf16, #tpu.memory_space<vmem>>, %arg3: memref<1x128xf32, #tpu.memory_space<vmem>>, %arg4: memref<1x128xf32, #tpu.memory_space<vmem>>, %arg5: memref<2x128xf32, #tpu.memory_space<vmem>>) attributes {dimension_semantics = [#tpu.dimension_semantics<parallel>], iteration_bounds = array<i64: 1>, scalar_prefetch = 0 : i64, scratch_operands = 0 : i64, tpu.core_type = #tpu.core_type<tc>, window_params = [{transform_indices = @transform_0, window_bounds = array<i64: 2, 64>}, {pipeline_mode = #tpu.pipeline_mode<synchronous>, transform_indices = @transform_1, window_bounds = array<i64: 64, 128>}, {pipeline_mode = #tpu.pipeline_mode<synchronous>, transform_indices = @transform_2, window_bounds = array<i64: 1, 128>}, {pipeline_mode = #tpu.pipeline_mode<synchronous>, transform_indices = @transform_3, window_bounds = array<i64: 1, 128>}, {transform_indices = @transform_4, window_bounds = array<i64: 2, 128>}]} {
    %c0 = arith.constant 0 : index
    %c0_0 = arith.constant 0 : index
    %0 = vector.load %arg1[%c0, %c0_0] : memref<2x64xf32, #tpu.memory_space<vmem>>, vector<2x64xf32>
    %1 = arith.truncf %0 : vector<2x64xf32> to vector<2x64xbf16>
    %c0_1 = arith.constant 0 : index
    %c0_2 = arith.constant 0 : index
    %2 = vector.load %arg2[%c0_1, %c0_2] : memref<64x128xbf16, #tpu.memory_space<vmem>>, vector<64x128xbf16>
    %cst = arith.constant dense<0.000000e+00> : vector<2x128xf32>
    %3 = tpu.matmul %1, %2, %cst {dimension_numbers = #tpu.dot_dimension_numbers<[1], [0], [0], [1], [0, 0, 1, 1], [], []>} : vector<2x64xbf16>, vector<64x128xbf16>, vector<2x128xf32> -> vector<2x128xf32>
    %c0_3 = arith.constant 0 : index
    %c0_4 = arith.constant 0 : index
    %4 = vector.load %arg3[%c0_3, %c0_4] : memref<1x128xf32, #tpu.memory_space<vmem>>, vector<1x128xf32>
    %5 = vector.broadcast %4 : vector<1x128xf32> to vector<2x128xf32>
    %6 = arith.mulf %3, %5 : vector<2x128xf32>
    %c0_5 = arith.constant 0 : index
    %c0_6 = arith.constant 0 : index
    %7 = vector.load %arg4[%c0_5, %c0_6] : memref<1x128xf32, #tpu.memory_space<vmem>>, vector<1x128xf32>
    %8 = vector.broadcast %7 : vector<1x128xf32> to vector<2x128xf32>
    %9 = arith.addf %6, %8 : vector<2x128xf32>
    %cst_7 = arith.constant 0.000000e+00 : f32
    %10 = vector.broadcast %cst_7 : f32 to vector<2x128xf32>
    %11 = arith.maximumf %9, %10 : vector<2x128xf32>
    %c0_8 = arith.constant 0 : index
    %c0_9 = arith.constant 0 : index
    %12 = vector.load %arg5[%c0_8, %c0_9] : memref<2x128xf32, #tpu.memory_space<vmem>>, vector<2x128xf32>
    tpu.vector_store %arg5[%c0_8, %c0_9], %11 {strides = array<i32>} : memref<2x128xf32, #tpu.memory_space<vmem>>, vector<2x128xf32>,
    return
  }
  func.func @transform_0(%arg0: i32) -> (i32, i32) {
    %c0_i32 = arith.constant 0 : i32
    %c0_i32_0 = arith.constant 0 : i32
    return %arg0, %c0_i32 : i32, i32
  }
  func.func @transform_1(%arg0: i32) -> (i32, i32) {
    %c0_i32 = arith.constant 0 : i32
    %c0_i32_0 = arith.constant 0 : i32
    %c0_i32_1 = arith.constant 0 : i32
    return %c0_i32, %c0_i32_0 : i32, i32
  }
  func.func @transform_2(%arg0: i32) -> (i32, i32) {
    %c0_i32 = arith.constant 0 : i32
    %c0_i32_0 = arith.constant 0 : i32
    %c0_i32_1 = arith.constant 0 : i32
    return %c0_i32, %c0_i32_0 : i32, i32
  }
  func.func @transform_3(%arg0: i32) -> (i32, i32) {
    %c0_i32 = arith.constant 0 : i32
    %c0_i32_0 = arith.constant 0 : i32
    %c0_i32_1 = arith.constant 0 : i32
    return %c0_i32, %c0_i32_0 : i32, i32
  }
  func.func @transform_4(%arg0: i32) -> (i32, i32) {
    %c0_i32 = arith.constant 0 : i32
    %c0_i32_0 = arith.constant 0 : i32
    return %arg0, %c0_i32 : i32, i32
  }
}

module attributes {stable_mosaic.version = 11 : i64} {
  func.func @_mm_kernel(%arg0: i32, %arg1: memref<2x128xf32, #tpu.memory_space<vmem>>, %arg2: memref<128x128xbf16, #tpu.memory_space<vmem>>, %arg3: memref<1x128xf32, #tpu.memory_space<vmem>>, %arg4: memref<1x128xf32, #tpu.memory_space<vmem>>, %arg5: memref<2x128xf32, #tpu.memory_space<vmem>>) attributes {dimension_semantics = [#tpu.dimension_semantics<parallel>], iteration_bounds = array<i64: 1>, scalar_prefetch = 0 : i64, scratch_operands = 0 : i64, tpu.core_type = #tpu.core_type<tc>, window_params = [{transform_indices = @transform_0, window_bounds = array<i64: 2, 128>}, {pipeline_mode = #tpu.pipeline_mode<synchronous>, transform_indices = @transform_1, window_bounds = array<i64: 128, 128>}, {pipeline_mode = #tpu.pipeline_mode<synchronous>, transform_indices = @transform_2, window_bounds = array<i64: 1, 128>}, {pipeline_mode = #tpu.pipeline_mode<synchronous>, transform_indices = @transform_3, window_bounds = array<i64: 1, 128>}, {transform_indices = @transform_4, window_bounds = array<i64: 2, 128>}]} {
    %c0 = arith.constant 0 : index
    %c0_0 = arith.constant 0 : index
    %0 = vector.load %arg1[%c0, %c0_0] : memref<2x128xf32, #tpu.memory_space<vmem>>, vector<2x128xf32>
    %1 = arith.truncf %0 : vector<2x128xf32> to vector<2x128xbf16>
    %c0_1 = arith.constant 0 : index
    %c0_2 = arith.constant 0 : index
    %2 = vector.load %arg2[%c0_1, %c0_2] : memref<128x128xbf16, #tpu.memory_space<vmem>>, vector<128x128xbf16>
    %cst = arith.constant dense<0.000000e+00> : vector<2x128xf32>
    %3 = tpu.matmul %1, %2, %cst {dimension_numbers = #tpu.dot_dimension_numbers<[1], [0], [0], [1], [0, 0, 1, 1], [], []>} : vector<2x128xbf16>, vector<128x128xbf16>, vector<2x128xf32> -> vector<2x128xf32>
    %c0_3 = arith.constant 0 : index
    %c0_4 = arith.constant 0 : index
    %4 = vector.load %arg3[%c0_3, %c0_4] : memref<1x128xf32, #tpu.memory_space<vmem>>, vector<1x128xf32>
    %5 = vector.broadcast %4 : vector<1x128xf32> to vector<2x128xf32>
    %6 = arith.mulf %3, %5 : vector<2x128xf32>
    %c0_5 = arith.constant 0 : index
    %c0_6 = arith.constant 0 : index
    %7 = vector.load %arg4[%c0_5, %c0_6] : memref<1x128xf32, #tpu.memory_space<vmem>>, vector<1x128xf32>
    %8 = vector.broadcast %7 : vector<1x128xf32> to vector<2x128xf32>
    %9 = arith.addf %6, %8 : vector<2x128xf32>
    %cst_7 = arith.constant 0.000000e+00 : f32
    %10 = vector.broadcast %cst_7 : f32 to vector<2x128xf32>
    %11 = arith.subf %10, %9 : vector<2x128xf32>
    %12 = math.exp %11 : vector<2x128xf32>
    %cst_8 = arith.constant 1.000000e+00 : f32
    %13 = vector.broadcast %cst_8 : f32 to vector<2x128xf32>
    %14 = arith.addf %13, %12 : vector<2x128xf32>
    %cst_9 = arith.constant 1.000000e+00 : f32
    %15 = vector.broadcast %cst_9 : f32 to vector<2x128xf32>
    %16 = arith.divf %15, %14 : vector<2x128xf32>
    %c0_10 = arith.constant 0 : index
    %c0_11 = arith.constant 0 : index
    %17 = vector.load %arg5[%c0_10, %c0_11] : memref<2x128xf32, #tpu.memory_space<vmem>>, vector<2x128xf32>
    tpu.vector_store %arg5[%c0_10, %c0_11], %16 {strides = array<i32>} : memref<2x128xf32, #tpu.memory_space<vmem>>, vector<2x128xf32>,
    return
  }
  func.func @transform_0(%arg0: i32) -> (i32, i32) {
    %c0_i32 = arith.constant 0 : i32
    %c0_i32_0 = arith.constant 0 : i32
    return %arg0, %c0_i32 : i32, i32
  }
  func.func @transform_1(%arg0: i32) -> (i32, i32) {
    %c0_i32 = arith.constant 0 : i32
    %c0_i32_0 = arith.constant 0 : i32
    %c0_i32_1 = arith.constant 0 : i32
    return %c0_i32, %c0_i32_0 : i32, i32
  }
  func.func @transform_2(%arg0: i32) -> (i32, i32) {
    %c0_i32 = arith.constant 0 : i32
    %c0_i32_0 = arith.constant 0 : i32
    %c0_i32_1 = arith.constant 0 : i32
    return %c0_i32, %c0_i32_0 : i32, i32
  }
  func.func @transform_3(%arg0: i32) -> (i32, i32) {
    %c0_i32 = arith.constant 0 : i32
    %c0_i32_0 = arith.constant 0 : i32
    %c0_i32_1 = arith.constant 0 : i32
    return %c0_i32, %c0_i32_0 : i32, i32
  }
  func.func @transform_4(%arg0: i32) -> (i32, i32) {
    %c0_i32 = arith.constant 0 : i32
    %c0_i32_0 = arith.constant 0 : i32
    return %arg0, %c0_i32 : i32, i32
  }
}

module attributes {stable_mosaic.version = 11 : i64} {
  func.func @_mm_kernel(%arg0: i32, %arg1: memref<32x64xf32, #tpu.memory_space<vmem>>, %arg2: memref<64x128xbf16, #tpu.memory_space<vmem>>, %arg3: memref<1x128xf32, #tpu.memory_space<vmem>>, %arg4: memref<1x128xf32, #tpu.memory_space<vmem>>, %arg5: memref<32x128xf32, #tpu.memory_space<vmem>>) attributes {dimension_semantics = [#tpu.dimension_semantics<parallel>], iteration_bounds = array<i64: 1>, scalar_prefetch = 0 : i64, scratch_operands = 0 : i64, tpu.core_type = #tpu.core_type<tc>, window_params = [{transform_indices = @transform_0, window_bounds = array<i64: 32, 64>}, {pipeline_mode = #tpu.pipeline_mode<synchronous>, transform_indices = @transform_1, window_bounds = array<i64: 64, 128>}, {pipeline_mode = #tpu.pipeline_mode<synchronous>, transform_indices = @transform_2, window_bounds = array<i64: 1, 128>}, {pipeline_mode = #tpu.pipeline_mode<synchronous>, transform_indices = @transform_3, window_bounds = array<i64: 1, 128>}, {transform_indices = @transform_4, window_bounds = array<i64: 32, 128>}]} {
    %c0 = arith.constant 0 : index
    %c0_0 = arith.constant 0 : index
    %0 = vector.load %arg1[%c0, %c0_0] : memref<32x64xf32, #tpu.memory_space<vmem>>, vector<32x64xf32>
    %1 = arith.truncf %0 : vector<32x64xf32> to vector<32x64xbf16>
    %c0_1 = arith.constant 0 : index
    %c0_2 = arith.constant 0 : index
    %2 = vector.load %arg2[%c0_1, %c0_2] : memref<64x128xbf16, #tpu.memory_space<vmem>>, vector<64x128xbf16>
    %cst = arith.constant dense<0.000000e+00> : vector<32x128xf32>
    %3 = tpu.matmul %1, %2, %cst {dimension_numbers = #tpu.dot_dimension_numbers<[1], [0], [0], [1], [0, 0, 1, 1], [], []>} : vector<32x64xbf16>, vector<64x128xbf16>, vector<32x128xf32> -> vector<32x128xf32>
    %c0_3 = arith.constant 0 : index
    %c0_4 = arith.constant 0 : index
    %4 = vector.load %arg3[%c0_3, %c0_4] : memref<1x128xf32, #tpu.memory_space<vmem>>, vector<1x128xf32>
    %5 = vector.broadcast %4 : vector<1x128xf32> to vector<32x128xf32>
    %6 = arith.mulf %3, %5 : vector<32x128xf32>
    %c0_5 = arith.constant 0 : index
    %c0_6 = arith.constant 0 : index
    %7 = vector.load %arg4[%c0_5, %c0_6] : memref<1x128xf32, #tpu.memory_space<vmem>>, vector<1x128xf32>
    %8 = vector.broadcast %7 : vector<1x128xf32> to vector<32x128xf32>
    %9 = arith.addf %6, %8 : vector<32x128xf32>
    %cst_7 = arith.constant 3.000000e+00 : f32
    %10 = vector.broadcast %cst_7 : f32 to vector<32x128xf32>
    %11 = arith.addf %9, %10 : vector<32x128xf32>
    %cst_8 = arith.constant 0.000000e+00 : f32
    %cst_9 = arith.constant 6.000000e+00 : f32
    %12 = vector.broadcast %cst_8 : f32 to vector<32x128xf32>
    %13 = arith.maximumf %12, %11 : vector<32x128xf32>
    %14 = vector.broadcast %cst_9 : f32 to vector<32x128xf32>
    %15 = arith.minimumf %14, %13 : vector<32x128xf32>
    %16 = arith.mulf %9, %15 : vector<32x128xf32>
    %cst_10 = arith.constant 0.166666672 : f32
    %17 = vector.broadcast %cst_10 : f32 to vector<32x128xf32>
    %18 = arith.mulf %16, %17 : vector<32x128xf32>
    %c0_11 = arith.constant 0 : index
    %c0_12 = arith.constant 0 : index
    %19 = vector.load %arg5[%c0_11, %c0_12] : memref<32x128xf32, #tpu.memory_space<vmem>>, vector<32x128xf32>
    tpu.vector_store %arg5[%c0_11, %c0_12], %18 {strides = array<i32>} : memref<32x128xf32, #tpu.memory_space<vmem>>, vector<32x128xf32>,
    return
  }
  func.func @transform_0(%arg0: i32) -> (i32, i32) {
    %c0_i32 = arith.constant 0 : i32
    %c0_i32_0 = arith.constant 0 : i32
    return %arg0, %c0_i32 : i32, i32
  }
  func.func @transform_1(%arg0: i32) -> (i32, i32) {
    %c0_i32 = arith.constant 0 : i32
    %c0_i32_0 = arith.constant 0 : i32
    %c0_i32_1 = arith.constant 0 : i32
    return %c0_i32, %c0_i32_0 : i32, i32
  }
  func.func @transform_2(%arg0: i32) -> (i32, i32) {
    %c0_i32 = arith.constant 0 : i32
    %c0_i32_0 = arith.constant 0 : i32
    %c0_i32_1 = arith.constant 0 : i32
    return %c0_i32, %c0_i32_0 : i32, i32
  }
  func.func @transform_3(%arg0: i32) -> (i32, i32) {
    %c0_i32 = arith.constant 0 : i32
    %c0_i32_0 = arith.constant 0 : i32
    %c0_i32_1 = arith.constant 0 : i32
    return %c0_i32, %c0_i32_0 : i32, i32
  }
  func.func @transform_4(%arg0: i32) -> (i32, i32) {
    %c0_i32 = arith.constant 0 : i32
    %c0_i32_0 = arith.constant 0 : i32
    return %arg0, %c0_i32 : i32, i32
  }
}

module attributes {stable_mosaic.version = 11 : i64} {
  func.func @_mm_kernel(%arg0: i32, %arg1: memref<32x128xf32, #tpu.memory_space<vmem>>, %arg2: memref<128x128xbf16, #tpu.memory_space<vmem>>, %arg3: memref<1x128xf32, #tpu.memory_space<vmem>>, %arg4: memref<1x128xf32, #tpu.memory_space<vmem>>, %arg5: memref<32x128xf32, #tpu.memory_space<vmem>>) attributes {dimension_semantics = [#tpu.dimension_semantics<parallel>], iteration_bounds = array<i64: 1>, scalar_prefetch = 0 : i64, scratch_operands = 0 : i64, tpu.core_type = #tpu.core_type<tc>, window_params = [{transform_indices = @transform_0, window_bounds = array<i64: 32, 128>}, {pipeline_mode = #tpu.pipeline_mode<synchronous>, transform_indices = @transform_1, window_bounds = array<i64: 128, 128>}, {pipeline_mode = #tpu.pipeline_mode<synchronous>, transform_indices = @transform_2, window_bounds = array<i64: 1, 128>}, {pipeline_mode = #tpu.pipeline_mode<synchronous>, transform_indices = @transform_3, window_bounds = array<i64: 1, 128>}, {transform_indices = @transform_4, window_bounds = array<i64: 32, 128>}]} {
    %c0 = arith.constant 0 : index
    %c0_0 = arith.constant 0 : index
    %0 = vector.load %arg1[%c0, %c0_0] : memref<32x128xf32, #tpu.memory_space<vmem>>, vector<32x128xf32>
    %1 = arith.truncf %0 : vector<32x128xf32> to vector<32x128xbf16>
    %c0_1 = arith.constant 0 : index
    %c0_2 = arith.constant 0 : index
    %2 = vector.load %arg2[%c0_1, %c0_2] : memref<128x128xbf16, #tpu.memory_space<vmem>>, vector<128x128xbf16>
    %cst = arith.constant dense<0.000000e+00> : vector<32x128xf32>
    %3 = tpu.matmul %1, %2, %cst {dimension_numbers = #tpu.dot_dimension_numbers<[1], [0], [0], [1], [0, 0, 1, 1], [], []>} : vector<32x128xbf16>, vector<128x128xbf16>, vector<32x128xf32> -> vector<32x128xf32>
    %c0_3 = arith.constant 0 : index
    %c0_4 = arith.constant 0 : index
    %4 = vector.load %arg3[%c0_3, %c0_4] : memref<1x128xf32, #tpu.memory_space<vmem>>, vector<1x128xf32>
    %5 = vector.broadcast %4 : vector<1x128xf32> to vector<32x128xf32>
    %6 = arith.mulf %3, %5 : vector<32x128xf32>
    %c0_5 = arith.constant 0 : index
    %c0_6 = arith.constant 0 : index
    %7 = vector.load %arg4[%c0_5, %c0_6] : memref<1x128xf32, #tpu.memory_space<vmem>>, vector<1x128xf32>
    %8 = vector.broadcast %7 : vector<1x128xf32> to vector<32x128xf32>
    %9 = arith.addf %6, %8 : vector<32x128xf32>
    %cst_7 = arith.constant 0.000000e+00 : f32
    %10 = vector.broadcast %cst_7 : f32 to vector<32x128xf32>
    %11 = arith.subf %10, %9 : vector<32x128xf32>
    %12 = math.exp %11 : vector<32x128xf32>
    %cst_8 = arith.constant 1.000000e+00 : f32
    %13 = vector.broadcast %cst_8 : f32 to vector<32x128xf32>
    %14 = arith.addf %13, %12 : vector<32x128xf32>
    %cst_9 = arith.constant 1.000000e+00 : f32
    %15 = vector.broadcast %cst_9 : f32 to vector<32x128xf32>
    %16 = arith.divf %15, %14 : vector<32x128xf32>
    %c0_10 = arith.constant 0 : index
    %c0_11 = arith.constant 0 : index
    %17 = vector.load %arg5[%c0_10, %c0_11] : memref<32x128xf32, #tpu.memory_space<vmem>>, vector<32x128xf32>
    tpu.vector_store %arg5[%c0_10, %c0_11], %16 {strides = array<i32>} : memref<32x128xf32, #tpu.memory_space<vmem>>, vector<32x128xf32>,
    return
  }
  func.func @transform_0(%arg0: i32) -> (i32, i32) {
    %c0_i32 = arith.constant 0 : i32
    %c0_i32_0 = arith.constant 0 : i32
    return %arg0, %c0_i32 : i32, i32
  }
  func.func @transform_1(%arg0: i32) -> (i32, i32) {
    %c0_i32 = arith.constant 0 : i32
    %c0_i32_0 = arith.constant 0 : i32
    %c0_i32_1 = arith.constant 0 : i32
    return %c0_i32, %c0_i32_0 : i32, i32
  }
  func.func @transform_2(%arg0: i32) -> (i32, i32) {
    %c0_i32 = arith.constant 0 : i32
    %c0_i32_0 = arith.constant 0 : i32
    %c0_i32_1 = arith.constant 0 : i32
    return %c0_i32, %c0_i32_0 : i32, i32
  }
  func.func @transform_3(%arg0: i32) -> (i32, i32) {
    %c0_i32 = arith.constant 0 : i32
    %c0_i32_0 = arith.constant 0 : i32
    %c0_i32_1 = arith.constant 0 : i32
    return %c0_i32, %c0_i32_0 : i32, i32
  }
  func.func @transform_4(%arg0: i32) -> (i32, i32) {
    %c0_i32 = arith.constant 0 : i32
    %c0_i32_0 = arith.constant 0 : i32
    return %arg0, %c0_i32 : i32, i32
  }
}

module attributes {stable_mosaic.version = 11 : i64} {
  func.func @_sa_kernel(%arg0: i32, %arg1: memref<1x22x22xf32, #tpu.memory_space<vmem>>, %arg2: memref<50xf32, #tpu.memory_space<smem>>, %arg3: memref<1x16x16xf32, #tpu.memory_space<vmem>>) attributes {dimension_semantics = [#tpu.dimension_semantics<parallel>], iteration_bounds = array<i64: 2>, scalar_prefetch = 0 : i64, scratch_operands = 0 : i64, tpu.core_type = #tpu.core_type<tc>, window_params = [{transform_indices = @transform_0, window_bounds = array<i64: 1, 22, 22>}, {transform_indices = @transform_1, window_bounds = array<i64: 50>}, {transform_indices = @transform_2, window_bounds = array<i64: 1, 16, 16>}]} {
    %c0 = arith.constant 0 : index
    %c0_0 = arith.constant 0 : index
    %c0_1 = arith.constant 0 : index
    %0 = vector.load %arg1[%c0, %c0_0, %c0_1] : memref<1x22x22xf32, #tpu.memory_space<vmem>>, vector<1x22x22xf32>
    %1 = vector.shape_cast %0 : vector<1x22x22xf32> to vector<22x22xf32>
    %cst = arith.constant 0.000000e+00 : f32
    %2 = vector.broadcast %cst : f32 to vector<16x16xf32>
    %3 = vector.extract_strided_slice %1 {offsets = [0, 0], sizes = [16, 16], strides = [1, 1]} : vector<22x22xf32> to vector<16x16xf32>
    %c0_2 = arith.constant 0 : index
    %4 = memref.load %arg2[%c0_2] : memref<50xf32, #tpu.memory_space<smem>>
    %5 = vector.broadcast %4 : f32 to vector<16x16xf32>
    %6 = arith.mulf %3, %5 : vector<16x16xf32>
    %7 = arith.addf %2, %6 : vector<16x16xf32>
    %8 = vector.extract_strided_slice %1 {offsets = [0, 1], sizes = [16, 16], strides = [1, 1]} : vector<22x22xf32> to vector<16x16xf32>
    %c1 = arith.constant 1 : index
    %9 = memref.load %arg2[%c1] : memref<50xf32, #tpu.memory_space<smem>>
    %10 = vector.broadcast %9 : f32 to vector<16x16xf32>
    %11 = arith.mulf %8, %10 : vector<16x16xf32>
    %12 = arith.addf %7, %11 : vector<16x16xf32>
    %13 = vector.extract_strided_slice %1 {offsets = [0, 2], sizes = [16, 16], strides = [1, 1]} : vector<22x22xf32> to vector<16x16xf32>
    %c2 = arith.constant 2 : index
    %14 = memref.load %arg2[%c2] : memref<50xf32, #tpu.memory_space<smem>>
    %15 = vector.broadcast %14 : f32 to vector<16x16xf32>
    %16 = arith.mulf %13, %15 : vector<16x16xf32>
    %17 = arith.addf %12, %16 : vector<16x16xf32>
    %18 = vector.extract_strided_slice %1 {offsets = [0, 3], sizes = [16, 16], strides = [1, 1]} : vector<22x22xf32> to vector<16x16xf32>
    %c3 = arith.constant 3 : index
    %19 = memref.load %arg2[%c3] : memref<50xf32, #tpu.memory_space<smem>>
    %20 = vector.broadcast %19 : f32 to vector<16x16xf32>
    %21 = arith.mulf %18, %20 : vector<16x16xf32>
    %22 = arith.addf %17, %21 : vector<16x16xf32>
    %23 = vector.extract_strided_slice %1 {offsets = [0, 4], sizes = [16, 16], strides = [1, 1]} : vector<22x22xf32> to vector<16x16xf32>
    %c4 = arith.constant 4 : index
    %24 = memref.load %arg2[%c4] : memref<50xf32, #tpu.memory_space<smem>>
    %25 = vector.broadcast %24 : f32 to vector<16x16xf32>
    %26 = arith.mulf %23, %25 : vector<16x16xf32>
    %27 = arith.addf %22, %26 : vector<16x16xf32>
    %28 = vector.extract_strided_slice %1 {offsets = [0, 5], sizes = [16, 16], strides = [1, 1]} : vector<22x22xf32> to vector<16x16xf32>
    %c5 = arith.constant 5 : index
    %29 = memref.load %arg2[%c5] : memref<50xf32, #tpu.memory_space<smem>>
    %30 = vector.broadcast %29 : f32 to vector<16x16xf32>
    %31 = arith.mulf %28, %30 : vector<16x16xf32>
    %32 = arith.addf %27, %31 : vector<16x16xf32>
    %33 = vector.extract_strided_slice %1 {offsets = [0, 6], sizes = [16, 16], strides = [1, 1]} : vector<22x22xf32> to vector<16x16xf32>
    %c6 = arith.constant 6 : index
    %34 = memref.load %arg2[%c6] : memref<50xf32, #tpu.memory_space<smem>>
    %35 = vector.broadcast %34 : f32 to vector<16x16xf32>
    %36 = arith.mulf %33, %35 : vector<16x16xf32>
    %37 = arith.addf %32, %36 : vector<16x16xf32>
    %38 = vector.extract_strided_slice %1 {offsets = [1, 0], sizes = [16, 16], strides = [1, 1]} : vector<22x22xf32> to vector<16x16xf32>
    %c7 = arith.constant 7 : index
    %39 = memref.load %arg2[%c7] : memref<50xf32, #tpu.memory_space<smem>>
    %40 = vector.broadcast %39 : f32 to vector<16x16xf32>
    %41 = arith.mulf %38, %40 : vector<16x16xf32>
    %42 = arith.addf %37, %41 : vector<16x16xf32>
    %43 = vector.extract_strided_slice %1 {offsets = [1, 1], sizes = [16, 16], strides = [1, 1]} : vector<22x22xf32> to vector<16x16xf32>
    %c8 = arith.constant 8 : index
    %44 = memref.load %arg2[%c8] : memref<50xf32, #tpu.memory_space<smem>>
    %45 = vector.broadcast %44 : f32 to vector<16x16xf32>
    %46 = arith.mulf %43, %45 : vector<16x16xf32>
    %47 = arith.addf %42, %46 : vector<16x16xf32>
    %48 = vector.extract_strided_slice %1 {offsets = [1, 2], sizes = [16, 16], strides = [1, 1]} : vector<22x22xf32> to vector<16x16xf32>
    %c9 = arith.constant 9 : index
    %49 = memref.load %arg2[%c9] : memref<50xf32, #tpu.memory_space<smem>>
    %50 = vector.broadcast %49 : f32 to vector<16x16xf32>
    %51 = arith.mulf %48, %50 : vector<16x16xf32>
    %52 = arith.addf %47, %51 : vector<16x16xf32>
    %53 = vector.extract_strided_slice %1 {offsets = [1, 3], sizes = [16, 16], strides = [1, 1]} : vector<22x22xf32> to vector<16x16xf32>
    %c10 = arith.constant 10 : index
    %54 = memref.load %arg2[%c10] : memref<50xf32, #tpu.memory_space<smem>>
    %55 = vector.broadcast %54 : f32 to vector<16x16xf32>
    %56 = arith.mulf %53, %55 : vector<16x16xf32>
    %57 = arith.addf %52, %56 : vector<16x16xf32>
    %58 = vector.extract_strided_slice %1 {offsets = [1, 4], sizes = [16, 16], strides = [1, 1]} : vector<22x22xf32> to vector<16x16xf32>
    %c11 = arith.constant 11 : index
    %59 = memref.load %arg2[%c11] : memref<50xf32, #tpu.memory_space<smem>>
    %60 = vector.broadcast %59 : f32 to vector<16x16xf32>
    %61 = arith.mulf %58, %60 : vector<16x16xf32>
    %62 = arith.addf %57, %61 : vector<16x16xf32>
    %63 = vector.extract_strided_slice %1 {offsets = [1, 5], sizes = [16, 16], strides = [1, 1]} : vector<22x22xf32> to vector<16x16xf32>
    %c12 = arith.constant 12 : index
    %64 = memref.load %arg2[%c12] : memref<50xf32, #tpu.memory_space<smem>>
    %65 = vector.broadcast %64 : f32 to vector<16x16xf32>
    %66 = arith.mulf %63, %65 : vector<16x16xf32>
    %67 = arith.addf %62, %66 : vector<16x16xf32>
    %68 = vector.extract_strided_slice %1 {offsets = [1, 6], sizes = [16, 16], strides = [1, 1]} : vector<22x22xf32> to vector<16x16xf32>
    %c13 = arith.constant 13 : index
    %69 = memref.load %arg2[%c13] : memref<50xf32, #tpu.memory_space<smem>>
    %70 = vector.broadcast %69 : f32 to vector<16x16xf32>
    %71 = arith.mulf %68, %70 : vector<16x16xf32>
    %72 = arith.addf %67, %71 : vector<16x16xf32>
    %73 = vector.extract_strided_slice %1 {offsets = [2, 0], sizes = [16, 16], strides = [1, 1]} : vector<22x22xf32> to vector<16x16xf32>
    %c14 = arith.constant 14 : index
    %74 = memref.load %arg2[%c14] : memref<50xf32, #tpu.memory_space<smem>>
    %75 = vector.broadcast %74 : f32 to vector<16x16xf32>
    %76 = arith.mulf %73, %75 : vector<16x16xf32>
    %77 = arith.addf %72, %76 : vector<16x16xf32>
    %78 = vector.extract_strided_slice %1 {offsets = [2, 1], sizes = [16, 16], strides = [1, 1]} : vector<22x22xf32> to vector<16x16xf32>
    %c15 = arith.constant 15 : index
    %79 = memref.load %arg2[%c15] : memref<50xf32, #tpu.memory_space<smem>>
    %80 = vector.broadcast %79 : f32 to vector<16x16xf32>
    %81 = arith.mulf %78, %80 : vector<16x16xf32>
    %82 = arith.addf %77, %81 : vector<16x16xf32>
    %83 = vector.extract_strided_slice %1 {offsets = [2, 2], sizes = [16, 16], strides = [1, 1]} : vector<22x22xf32> to vector<16x16xf32>
    %c16 = arith.constant 16 : index
    %84 = memref.load %arg2[%c16] : memref<50xf32, #tpu.memory_space<smem>>
    %85 = vector.broadcast %84 : f32 to vector<16x16xf32>
    %86 = arith.mulf %83, %85 : vector<16x16xf32>
    %87 = arith.addf %82, %86 : vector<16x16xf32>
    %88 = vector.extract_strided_slice %1 {offsets = [2, 3], sizes = [16, 16], strides = [1, 1]} : vector<22x22xf32> to vector<16x16xf32>
    %c17 = arith.constant 17 : index
    %89 = memref.load %arg2[%c17] : memref<50xf32, #tpu.memory_space<smem>>
    %90 = vector.broadcast %89 : f32 to vector<16x16xf32>
    %91 = arith.mulf %88, %90 : vector<16x16xf32>
    %92 = arith.addf %87, %91 : vector<16x16xf32>
    %93 = vector.extract_strided_slice %1 {offsets = [2, 4], sizes = [16, 16], strides = [1, 1]} : vector<22x22xf32> to vector<16x16xf32>
    %c18 = arith.constant 18 : index
    %94 = memref.load %arg2[%c18] : memref<50xf32, #tpu.memory_space<smem>>
    %95 = vector.broadcast %94 : f32 to vector<16x16xf32>
    %96 = arith.mulf %93, %95 : vector<16x16xf32>
    %97 = arith.addf %92, %96 : vector<16x16xf32>
    %98 = vector.extract_strided_slice %1 {offsets = [2, 5], sizes = [16, 16], strides = [1, 1]} : vector<22x22xf32> to vector<16x16xf32>
    %c19 = arith.constant 19 : index
    %99 = memref.load %arg2[%c19] : memref<50xf32, #tpu.memory_space<smem>>
    %100 = vector.broadcast %99 : f32 to vector<16x16xf32>
    %101 = arith.mulf %98, %100 : vector<16x16xf32>
    %102 = arith.addf %97, %101 : vector<16x16xf32>
    %103 = vector.extract_strided_slice %1 {offsets = [2, 6], sizes = [16, 16], strides = [1, 1]} : vector<22x22xf32> to vector<16x16xf32>
    %c20 = arith.constant 20 : index
    %104 = memref.load %arg2[%c20] : memref<50xf32, #tpu.memory_space<smem>>
    %105 = vector.broadcast %104 : f32 to vector<16x16xf32>
    %106 = arith.mulf %103, %105 : vector<16x16xf32>
    %107 = arith.addf %102, %106 : vector<16x16xf32>
    %108 = vector.extract_strided_slice %1 {offsets = [3, 0], sizes = [16, 16], strides = [1, 1]} : vector<22x22xf32> to vector<16x16xf32>
    %c21 = arith.constant 21 : index
    %109 = memref.load %arg2[%c21] : memref<50xf32, #tpu.memory_space<smem>>
    %110 = vector.broadcast %109 : f32 to vector<16x16xf32>
    %111 = arith.mulf %108, %110 : vector<16x16xf32>
    %112 = arith.addf %107, %111 : vector<16x16xf32>
    %113 = vector.extract_strided_slice %1 {offsets = [3, 1], sizes = [16, 16], strides = [1, 1]} : vector<22x22xf32> to vector<16x16xf32>
    %c22 = arith.constant 22 : index
    %114 = memref.load %arg2[%c22] : memref<50xf32, #tpu.memory_space<smem>>
    %115 = vector.broadcast %114 : f32 to vector<16x16xf32>
    %116 = arith.mulf %113, %115 : vector<16x16xf32>
    %117 = arith.addf %112, %116 : vector<16x16xf32>
    %118 = vector.extract_strided_slice %1 {offsets = [3, 2], sizes = [16, 16], strides = [1, 1]} : vector<22x22xf32> to vector<16x16xf32>
    %c23 = arith.constant 23 : index
    %119 = memref.load %arg2[%c23] : memref<50xf32, #tpu.memory_space<smem>>
    %120 = vector.broadcast %119 : f32 to vector<16x16xf32>
    %121 = arith.mulf %118, %120 : vector<16x16xf32>
    %122 = arith.addf %117, %121 : vector<16x16xf32>
    %123 = vector.extract_strided_slice %1 {offsets = [3, 3], sizes = [16, 16], strides = [1, 1]} : vector<22x22xf32> to vector<16x16xf32>
    %c24 = arith.constant 24 : index
    %124 = memref.load %arg2[%c24] : memref<50xf32, #tpu.memory_space<smem>>
    %125 = vector.broadcast %124 : f32 to vector<16x16xf32>
    %126 = arith.mulf %123, %125 : vector<16x16xf32>
    %127 = arith.addf %122, %126 : vector<16x16xf32>
    %128 = vector.extract_strided_slice %1 {offsets = [3, 4], sizes = [16, 16], strides = [1, 1]} : vector<22x22xf32> to vector<16x16xf32>
    %c25 = arith.constant 25 : index
    %129 = memref.load %arg2[%c25] : memref<50xf32, #tpu.memory_space<smem>>
    %130 = vector.broadcast %129 : f32 to vector<16x16xf32>
    %131 = arith.mulf %128, %130 : vector<16x16xf32>
    %132 = arith.addf %127, %131 : vector<16x16xf32>
    %133 = vector.extract_strided_slice %1 {offsets = [3, 5], sizes = [16, 16], strides = [1, 1]} : vector<22x22xf32> to vector<16x16xf32>
    %c26 = arith.constant 26 : index
    %134 = memref.load %arg2[%c26] : memref<50xf32, #tpu.memory_space<smem>>
    %135 = vector.broadcast %134 : f32 to vector<16x16xf32>
    %136 = arith.mulf %133, %135 : vector<16x16xf32>
    %137 = arith.addf %132, %136 : vector<16x16xf32>
    %138 = vector.extract_strided_slice %1 {offsets = [3, 6], sizes = [16, 16], strides = [1, 1]} : vector<22x22xf32> to vector<16x16xf32>
    %c27 = arith.constant 27 : index
    %139 = memref.load %arg2[%c27] : memref<50xf32, #tpu.memory_space<smem>>
    %140 = vector.broadcast %139 : f32 to vector<16x16xf32>
    %141 = arith.mulf %138, %140 : vector<16x16xf32>
    %142 = arith.addf %137, %141 : vector<16x16xf32>
    %143 = vector.extract_strided_slice %1 {offsets = [4, 0], sizes = [16, 16], strides = [1, 1]} : vector<22x22xf32> to vector<16x16xf32>
    %c28 = arith.constant 28 : index
    %144 = memref.load %arg2[%c28] : memref<50xf32, #tpu.memory_space<smem>>
    %145 = vector.broadcast %144 : f32 to vector<16x16xf32>
    %146 = arith.mulf %143, %145 : vector<16x16xf32>
    %147 = arith.addf %142, %146 : vector<16x16xf32>
    %148 = vector.extract_strided_slice %1 {offsets = [4, 1], sizes = [16, 16], strides = [1, 1]} : vector<22x22xf32> to vector<16x16xf32>
    %c29 = arith.constant 29 : index
    %149 = memref.load %arg2[%c29] : memref<50xf32, #tpu.memory_space<smem>>
    %150 = vector.broadcast %149 : f32 to vector<16x16xf32>
    %151 = arith.mulf %148, %150 : vector<16x16xf32>
    %152 = arith.addf %147, %151 : vector<16x16xf32>
    %153 = vector.extract_strided_slice %1 {offsets = [4, 2], sizes = [16, 16], strides = [1, 1]} : vector<22x22xf32> to vector<16x16xf32>
    %c30 = arith.constant 30 : index
    %154 = memref.load %arg2[%c30] : memref<50xf32, #tpu.memory_space<smem>>
    %155 = vector.broadcast %154 : f32 to vector<16x16xf32>
    %156 = arith.mulf %153, %155 : vector<16x16xf32>
    %157 = arith.addf %152, %156 : vector<16x16xf32>
    %158 = vector.extract_strided_slice %1 {offsets = [4, 3], sizes = [16, 16], strides = [1, 1]} : vector<22x22xf32> to vector<16x16xf32>
    %c31 = arith.constant 31 : index
    %159 = memref.load %arg2[%c31] : memref<50xf32, #tpu.memory_space<smem>>
    %160 = vector.broadcast %159 : f32 to vector<16x16xf32>
    %161 = arith.mulf %158, %160 : vector<16x16xf32>
    %162 = arith.addf %157, %161 : vector<16x16xf32>
    %163 = vector.extract_strided_slice %1 {offsets = [4, 4], sizes = [16, 16], strides = [1, 1]} : vector<22x22xf32> to vector<16x16xf32>
    %c32 = arith.constant 32 : index
    %164 = memref.load %arg2[%c32] : memref<50xf32, #tpu.memory_space<smem>>
    %165 = vector.broadcast %164 : f32 to vector<16x16xf32>
    %166 = arith.mulf %163, %165 : vector<16x16xf32>
    %167 = arith.addf %162, %166 : vector<16x16xf32>
    %168 = vector.extract_strided_slice %1 {offsets = [4, 5], sizes = [16, 16], strides = [1, 1]} : vector<22x22xf32> to vector<16x16xf32>
    %c33 = arith.constant 33 : index
    %169 = memref.load %arg2[%c33] : memref<50xf32, #tpu.memory_space<smem>>
    %170 = vector.broadcast %169 : f32 to vector<16x16xf32>
    %171 = arith.mulf %168, %170 : vector<16x16xf32>
    %172 = arith.addf %167, %171 : vector<16x16xf32>
    %173 = vector.extract_strided_slice %1 {offsets = [4, 6], sizes = [16, 16], strides = [1, 1]} : vector<22x22xf32> to vector<16x16xf32>
    %c34 = arith.constant 34 : index
    %174 = memref.load %arg2[%c34] : memref<50xf32, #tpu.memory_space<smem>>
    %175 = vector.broadcast %174 : f32 to vector<16x16xf32>
    %176 = arith.mulf %173, %175 : vector<16x16xf32>
    %177 = arith.addf %172, %176 : vector<16x16xf32>
    %178 = vector.extract_strided_slice %1 {offsets = [5, 0], sizes = [16, 16], strides = [1, 1]} : vector<22x22xf32> to vector<16x16xf32>
    %c35 = arith.constant 35 : index
    %179 = memref.load %arg2[%c35] : memref<50xf32, #tpu.memory_space<smem>>
    %180 = vector.broadcast %179 : f32 to vector<16x16xf32>
    %181 = arith.mulf %178, %180 : vector<16x16xf32>
    %182 = arith.addf %177, %181 : vector<16x16xf32>
    %183 = vector.extract_strided_slice %1 {offsets = [5, 1], sizes = [16, 16], strides = [1, 1]} : vector<22x22xf32> to vector<16x16xf32>
    %c36 = arith.constant 36 : index
    %184 = memref.load %arg2[%c36] : memref<50xf32, #tpu.memory_space<smem>>
    %185 = vector.broadcast %184 : f32 to vector<16x16xf32>
    %186 = arith.mulf %183, %185 : vector<16x16xf32>
    %187 = arith.addf %182, %186 : vector<16x16xf32>
    %188 = vector.extract_strided_slice %1 {offsets = [5, 2], sizes = [16, 16], strides = [1, 1]} : vector<22x22xf32> to vector<16x16xf32>
    %c37 = arith.constant 37 : index
    %189 = memref.load %arg2[%c37] : memref<50xf32, #tpu.memory_space<smem>>
    %190 = vector.broadcast %189 : f32 to vector<16x16xf32>
    %191 = arith.mulf %188, %190 : vector<16x16xf32>
    %192 = arith.addf %187, %191 : vector<16x16xf32>
    %193 = vector.extract_strided_slice %1 {offsets = [5, 3], sizes = [16, 16], strides = [1, 1]} : vector<22x22xf32> to vector<16x16xf32>
    %c38 = arith.constant 38 : index
    %194 = memref.load %arg2[%c38] : memref<50xf32, #tpu.memory_space<smem>>
    %195 = vector.broadcast %194 : f32 to vector<16x16xf32>
    %196 = arith.mulf %193, %195 : vector<16x16xf32>
    %197 = arith.addf %192, %196 : vector<16x16xf32>
    %198 = vector.extract_strided_slice %1 {offsets = [5, 4], sizes = [16, 16], strides = [1, 1]} : vector<22x22xf32> to vector<16x16xf32>
    %c39 = arith.constant 39 : index
    %199 = memref.load %arg2[%c39] : memref<50xf32, #tpu.memory_space<smem>>
    %200 = vector.broadcast %199 : f32 to vector<16x16xf32>
    %201 = arith.mulf %198, %200 : vector<16x16xf32>
    %202 = arith.addf %197, %201 : vector<16x16xf32>
    %203 = vector.extract_strided_slice %1 {offsets = [5, 5], sizes = [16, 16], strides = [1, 1]} : vector<22x22xf32> to vector<16x16xf32>
    %c40 = arith.constant 40 : index
    %204 = memref.load %arg2[%c40] : memref<50xf32, #tpu.memory_space<smem>>
    %205 = vector.broadcast %204 : f32 to vector<16x16xf32>
    %206 = arith.mulf %203, %205 : vector<16x16xf32>
    %207 = arith.addf %202, %206 : vector<16x16xf32>
    %208 = vector.extract_strided_slice %1 {offsets = [5, 6], sizes = [16, 16], strides = [1, 1]} : vector<22x22xf32> to vector<16x16xf32>
    %c41 = arith.constant 41 : index
    %209 = memref.load %arg2[%c41] : memref<50xf32, #tpu.memory_space<smem>>
    %210 = vector.broadcast %209 : f32 to vector<16x16xf32>
    %211 = arith.mulf %208, %210 : vector<16x16xf32>
    %212 = arith.addf %207, %211 : vector<16x16xf32>
    %213 = vector.extract_strided_slice %1 {offsets = [6, 0], sizes = [16, 16], strides = [1, 1]} : vector<22x22xf32> to vector<16x16xf32>
    %c42 = arith.constant 42 : index
    %214 = memref.load %arg2[%c42] : memref<50xf32, #tpu.memory_space<smem>>
    %215 = vector.broadcast %214 : f32 to vector<16x16xf32>
    %216 = arith.mulf %213, %215 : vector<16x16xf32>
    %217 = arith.addf %212, %216 : vector<16x16xf32>
    %218 = vector.extract_strided_slice %1 {offsets = [6, 1], sizes = [16, 16], strides = [1, 1]} : vector<22x22xf32> to vector<16x16xf32>
    %c43 = arith.constant 43 : index
    %219 = memref.load %arg2[%c43] : memref<50xf32, #tpu.memory_space<smem>>
    %220 = vector.broadcast %219 : f32 to vector<16x16xf32>
    %221 = arith.mulf %218, %220 : vector<16x16xf32>
    %222 = arith.addf %217, %221 : vector<16x16xf32>
    %223 = vector.extract_strided_slice %1 {offsets = [6, 2], sizes = [16, 16], strides = [1, 1]} : vector<22x22xf32> to vector<16x16xf32>
    %c44 = arith.constant 44 : index
    %224 = memref.load %arg2[%c44] : memref<50xf32, #tpu.memory_space<smem>>
    %225 = vector.broadcast %224 : f32 to vector<16x16xf32>
    %226 = arith.mulf %223, %225 : vector<16x16xf32>
    %227 = arith.addf %222, %226 : vector<16x16xf32>
    %228 = vector.extract_strided_slice %1 {offsets = [6, 3], sizes = [16, 16], strides = [1, 1]} : vector<22x22xf32> to vector<16x16xf32>
    %c45 = arith.constant 45 : index
    %229 = memref.load %arg2[%c45] : memref<50xf32, #tpu.memory_space<smem>>
    %230 = vector.broadcast %229 : f32 to vector<16x16xf32>
    %231 = arith.mulf %228, %230 : vector<16x16xf32>
    %232 = arith.addf %227, %231 : vector<16x16xf32>
    %233 = vector.extract_strided_slice %1 {offsets = [6, 4], sizes = [16, 16], strides = [1, 1]} : vector<22x22xf32> to vector<16x16xf32>
    %c46 = arith.constant 46 : index
    %234 = memref.load %arg2[%c46] : memref<50xf32, #tpu.memory_space<smem>>
    %235 = vector.broadcast %234 : f32 to vector<16x16xf32>
    %236 = arith.mulf %233, %235 : vector<16x16xf32>
    %237 = arith.addf %232, %236 : vector<16x16xf32>
    %238 = vector.extract_strided_slice %1 {offsets = [6, 5], sizes = [16, 16], strides = [1, 1]} : vector<22x22xf32> to vector<16x16xf32>
    %c47 = arith.constant 47 : index
    %239 = memref.load %arg2[%c47] : memref<50xf32, #tpu.memory_space<smem>>
    %240 = vector.broadcast %239 : f32 to vector<16x16xf32>
    %241 = arith.mulf %238, %240 : vector<16x16xf32>
    %242 = arith.addf %237, %241 : vector<16x16xf32>
    %243 = vector.extract_strided_slice %1 {offsets = [6, 6], sizes = [16, 16], strides = [1, 1]} : vector<22x22xf32> to vector<16x16xf32>
    %c48 = arith.constant 48 : index
    %244 = memref.load %arg2[%c48] : memref<50xf32, #tpu.memory_space<smem>>
    %245 = vector.broadcast %244 : f32 to vector<16x16xf32>
    %246 = arith.mulf %243, %245 : vector<16x16xf32>
    %247 = arith.addf %242, %246 : vector<16x16xf32>
    %cst_3 = arith.constant 0.000000e+00 : f32
    %248 = vector.broadcast %cst_3 : f32 to vector<16x16xf32>
    %249 = arith.subf %248, %247 : vector<16x16xf32>
    %250 = math.exp %249 : vector<16x16xf32>
    %cst_4 = arith.constant 1.000000e+00 : f32
    %251 = vector.broadcast %cst_4 : f32 to vector<16x16xf32>
    %252 = arith.addf %251, %250 : vector<16x16xf32>
    %cst_5 = arith.constant 1.000000e+00 : f32
    %253 = vector.broadcast %cst_5 : f32 to vector<16x16xf32>
    %254 = arith.divf %253, %252 : vector<16x16xf32>
    %c49 = arith.constant 49 : index
    %255 = memref.load %arg2[%c49] : memref<50xf32, #tpu.memory_space<smem>>
    %256 = vector.broadcast %255 : f32 to vector<16x16xf32>
    %257 = arith.mulf %254, %256 : vector<16x16xf32>
    %c0_6 = arith.constant 0 : index
    %c0_7 = arith.constant 0 : index
    %c0_8 = arith.constant 0 : index
    %258 = vector.load %arg3[%c0_6, %c0_7, %c0_8] : memref<1x16x16xf32, #tpu.memory_space<vmem>>, vector<1x16x16xf32>
    %259 = vector.shape_cast %258 : vector<1x16x16xf32> to vector<16x16xf32>
    %260 = vector.shape_cast %257 : vector<16x16xf32> to vector<1x16x16xf32>
    tpu.vector_store %arg3[%c0_6, %c0_7, %c0_8], %260 {strides = array<i32>} : memref<1x16x16xf32, #tpu.memory_space<vmem>>, vector<1x16x16xf32>,
    return
  }
  func.func @transform_0(%arg0: i32) -> (i32, i32, i32) {
    %c0_i32 = arith.constant 0 : i32
    %c0_i32_0 = arith.constant 0 : i32
    %c0_i32_1 = arith.constant 0 : i32
    return %arg0, %c0_i32, %c0_i32_0 : i32, i32, i32
  }
  func.func @transform_1(%arg0: i32) -> i32 {
    %c0_i32 = arith.constant 0 : i32
    %c0_i32_0 = arith.constant 0 : i32
    return %c0_i32 : i32
  }
  func.func @transform_2(%arg0: i32) -> (i32, i32, i32) {
    %c0_i32 = arith.constant 0 : i32
    %c0_i32_0 = arith.constant 0 : i32
    %c0_i32_1 = arith.constant 0 : i32
    return %arg0, %c0_i32, %c0_i32_0 : i32, i32, i32
  }
}

module attributes {stable_mosaic.version = 11 : i64} {
  func.func @_mm_kernel(%arg0: i32, %arg1: memref<256x128xf32, #tpu.memory_space<vmem>>, %arg2: memref<128x128xbf16, #tpu.memory_space<vmem>>, %arg3: memref<1x128xf32, #tpu.memory_space<vmem>>, %arg4: memref<1x128xf32, #tpu.memory_space<vmem>>, %arg5: memref<256x128xf32, #tpu.memory_space<vmem>>) attributes {dimension_semantics = [#tpu.dimension_semantics<parallel>], iteration_bounds = array<i64: 2>, scalar_prefetch = 0 : i64, scratch_operands = 0 : i64, tpu.core_type = #tpu.core_type<tc>, window_params = [{transform_indices = @transform_0, window_bounds = array<i64: 256, 128>}, {pipeline_mode = #tpu.pipeline_mode<synchronous>, transform_indices = @transform_1, window_bounds = array<i64: 128, 128>}, {pipeline_mode = #tpu.pipeline_mode<synchronous>, transform_indices = @transform_2, window_bounds = array<i64: 1, 128>}, {pipeline_mode = #tpu.pipeline_mode<synchronous>, transform_indices = @transform_3, window_bounds = array<i64: 1, 128>}, {transform_indices = @transform_4, window_bounds = array<i64: 256, 128>}]} {
    %c0 = arith.constant 0 : index
    %c0_0 = arith.constant 0 : index
    %0 = vector.load %arg1[%c0, %c0_0] : memref<256x128xf32, #tpu.memory_space<vmem>>, vector<256x128xf32>
    %1 = arith.truncf %0 : vector<256x128xf32> to vector<256x128xbf16>
    %c0_1 = arith.constant 0 : index
    %c0_2 = arith.constant 0 : index
    %2 = vector.load %arg2[%c0_1, %c0_2] : memref<128x128xbf16, #tpu.memory_space<vmem>>, vector<128x128xbf16>
    %cst = arith.constant dense<0.000000e+00> : vector<256x128xf32>
    %3 = tpu.matmul %1, %2, %cst {dimension_numbers = #tpu.dot_dimension_numbers<[1], [0], [0], [1], [0, 0, 1, 1], [], []>} : vector<256x128xbf16>, vector<128x128xbf16>, vector<256x128xf32> -> vector<256x128xf32>
    %c0_3 = arith.constant 0 : index
    %c0_4 = arith.constant 0 : index
    %4 = vector.load %arg3[%c0_3, %c0_4] : memref<1x128xf32, #tpu.memory_space<vmem>>, vector<1x128xf32>
    %5 = vector.broadcast %4 : vector<1x128xf32> to vector<256x128xf32>
    %6 = arith.mulf %3, %5 : vector<256x128xf32>
    %c0_5 = arith.constant 0 : index
    %c0_6 = arith.constant 0 : index
    %7 = vector.load %arg4[%c0_5, %c0_6] : memref<1x128xf32, #tpu.memory_space<vmem>>, vector<1x128xf32>
    %8 = vector.broadcast %7 : vector<1x128xf32> to vector<256x128xf32>
    %9 = arith.addf %6, %8 : vector<256x128xf32>
    %c0_7 = arith.constant 0 : index
    %c0_8 = arith.constant 0 : index
    %10 = vector.load %arg5[%c0_7, %c0_8] : memref<256x128xf32, #tpu.memory_space<vmem>>, vector<256x128xf32>
    tpu.vector_store %arg5[%c0_7, %c0_8], %9 {strides = array<i32>} : memref<256x128xf32, #tpu.memory_space<vmem>>, vector<256x128xf32>,
    return
  }
  func.func @transform_0(%arg0: i32) -> (i32, i32) {
    %c0_i32 = arith.constant 0 : i32
    %c0_i32_0 = arith.constant 0 : i32
    return %arg0, %c0_i32 : i32, i32
  }
  func.func @transform_1(%arg0: i32) -> (i32, i32) {
    %c0_i32 = arith.constant 0 : i32
    %c0_i32_0 = arith.constant 0 : i32
    %c0_i32_1 = arith.constant 0 : i32
    return %c0_i32, %c0_i32_0 : i32, i32
  }
  func.func @transform_2(%arg0: i32) -> (i32, i32) {
    %c0_i32 = arith.constant 0 : i32
    %c0_i32_0 = arith.constant 0 : i32
    %c0_i32_1 = arith.constant 0 : i32
    return %c0_i32, %c0_i32_0 : i32, i32
  }
  func.func @transform_3(%arg0: i32) -> (i32, i32) {
    %c0_i32 = arith.constant 0 : i32
    %c0_i32_0 = arith.constant 0 : i32
    %c0_i32_1 = arith.constant 0 : i32
    return %c0_i32, %c0_i32_0 : i32, i32
  }
  func.func @transform_4(%arg0: i32) -> (i32, i32) {
    %c0_i32 = arith.constant 0 : i32
    %c0_i32_0 = arith.constant 0 : i32
    return %arg0, %c0_i32 : i32, i32
  }
}

module attributes {stable_mosaic.version = 11 : i64} {
  func.func @_ln_mm_kernel(%arg0: i32, %arg1: memref<256x64xf32, #tpu.memory_space<vmem>>, %arg2: memref<1x64xf32, #tpu.memory_space<vmem>>, %arg3: memref<1x64xf32, #tpu.memory_space<vmem>>, %arg4: memref<64x256xbf16, #tpu.memory_space<vmem>>, %arg5: memref<256x256xf32, #tpu.memory_space<vmem>>) attributes {dimension_semantics = [#tpu.dimension_semantics<parallel>], iteration_bounds = array<i64: 2>, scalar_prefetch = 0 : i64, scratch_operands = 0 : i64, tpu.core_type = #tpu.core_type<tc>, window_params = [{transform_indices = @transform_0, window_bounds = array<i64: 256, 64>}, {pipeline_mode = #tpu.pipeline_mode<synchronous>, transform_indices = @transform_1, window_bounds = array<i64: 1, 64>}, {pipeline_mode = #tpu.pipeline_mode<synchronous>, transform_indices = @transform_2, window_bounds = array<i64: 1, 64>}, {pipeline_mode = #tpu.pipeline_mode<synchronous>, transform_indices = @transform_3, window_bounds = array<i64: 64, 256>}, {transform_indices = @transform_4, window_bounds = array<i64: 256, 256>}]} {
    %c0 = arith.constant 0 : index
    %c0_0 = arith.constant 0 : index
    %0 = vector.load %arg1[%c0, %c0_0] : memref<256x64xf32, #tpu.memory_space<vmem>>, vector<256x64xf32>
    %cst = arith.constant dense<0.000000e+00> : vector<256xf32>
    %1 = vector.multi_reduction <add>, %0, %cst [1] : vector<256x64xf32> to vector<256xf32>
    %2 = vector.shape_cast %1 : vector<256xf32> to vector<256x1xf32>
    %cst_1 = arith.constant 6.400000e+01 : f32
    %3 = vector.broadcast %cst_1 : f32 to vector<256x1xf32>
    %4 = arith.divf %2, %3 : vector<256x1xf32>
    %5 = vector.broadcast %4 : vector<256x1xf32> to vector<256x64xf32>
    %6 = arith.subf %0, %5 : vector<256x64xf32>
    %7 = arith.mulf %6, %6 : vector<256x64xf32>
    %cst_2 = arith.constant dense<0.000000e+00> : vector<256xf32>
    %8 = vector.multi_reduction <add>, %7, %cst_2 [1] : vector<256x64xf32> to vector<256xf32>
    %9 = vector.shape_cast %8 : vector<256xf32> to vector<256x1xf32>
    %cst_3 = arith.constant 6.400000e+01 : f32
    %10 = vector.broadcast %cst_3 : f32 to vector<256x1xf32>
    %11 = arith.divf %9, %10 : vector<256x1xf32>
    %cst_4 = arith.constant 9.99999974E-6 : f32
    %12 = vector.broadcast %cst_4 : f32 to vector<256x1xf32>
    %13 = arith.addf %11, %12 : vector<256x1xf32>
    %14 = math.rsqrt %13 : vector<256x1xf32>
    %15 = vector.broadcast %14 : vector<256x1xf32> to vector<256x64xf32>
    %16 = arith.mulf %6, %15 : vector<256x64xf32>
    %c0_5 = arith.constant 0 : index
    %c0_6 = arith.constant 0 : index
    %17 = vector.load %arg2[%c0_5, %c0_6] : memref<1x64xf32, #tpu.memory_space<vmem>>, vector<1x64xf32>
    %18 = vector.broadcast %17 : vector<1x64xf32> to vector<256x64xf32>
    %19 = arith.mulf %16, %18 : vector<256x64xf32>
    %c0_7 = arith.constant 0 : index
    %c0_8 = arith.constant 0 : index
    %20 = vector.load %arg3[%c0_7, %c0_8] : memref<1x64xf32, #tpu.memory_space<vmem>>, vector<1x64xf32>
    %21 = vector.broadcast %20 : vector<1x64xf32> to vector<256x64xf32>
    %22 = arith.addf %19, %21 : vector<256x64xf32>
    %23 = arith.truncf %22 : vector<256x64xf32> to vector<256x64xbf16>
    %c0_9 = arith.constant 0 : index
    %c0_10 = arith.constant 0 : index
    %24 = vector.load %arg4[%c0_9, %c0_10] : memref<64x256xbf16, #tpu.memory_space<vmem>>, vector<64x256xbf16>
    %cst_11 = arith.constant dense<0.000000e+00> : vector<256x256xf32>
    %25 = tpu.matmul %23, %24, %cst_11 {dimension_numbers = #tpu.dot_dimension_numbers<[1], [0], [0], [1], [0, 0, 1, 1], [], []>} : vector<256x64xbf16>, vector<64x256xbf16>, vector<256x256xf32> -> vector<256x256xf32>
    %c0_12 = arith.constant 0 : index
    %c0_13 = arith.constant 0 : index
    %26 = vector.load %arg5[%c0_12, %c0_13] : memref<256x256xf32, #tpu.memory_space<vmem>>, vector<256x256xf32>
    tpu.vector_store %arg5[%c0_12, %c0_13], %25 {strides = array<i32>} : memref<256x256xf32, #tpu.memory_space<vmem>>, vector<256x256xf32>,
    return
  }
  func.func @transform_0(%arg0: i32) -> (i32, i32) {
    %c0_i32 = arith.constant 0 : i32
    %c0_i32_0 = arith.constant 0 : i32
    return %arg0, %c0_i32 : i32, i32
  }
  func.func @transform_1(%arg0: i32) -> (i32, i32) {
    %c0_i32 = arith.constant 0 : i32
    %c0_i32_0 = arith.constant 0 : i32
    %c0_i32_1 = arith.constant 0 : i32
    return %c0_i32, %c0_i32_0 : i32, i32
  }
  func.func @transform_2(%arg0: i32) -> (i32, i32) {
    %c0_i32 = arith.constant 0 : i32
    %c0_i32_0 = arith.constant 0 : i32
    %c0_i32_1 = arith.constant 0 : i32
    return %c0_i32, %c0_i32_0 : i32, i32
  }
  func.func @transform_3(%arg0: i32) -> (i32, i32) {
    %c0_i32 = arith.constant 0 : i32
    %c0_i32_0 = arith.constant 0 : i32
    %c0_i32_1 = arith.constant 0 : i32
    return %c0_i32, %c0_i32_0 : i32, i32
  }
  func.func @transform_4(%arg0: i32) -> (i32, i32) {
    %c0_i32 = arith.constant 0 : i32
    %c0_i32_0 = arith.constant 0 : i32
    return %arg0, %c0_i32 : i32, i32
  }
}

module attributes {stable_mosaic.version = 11 : i64} {
  func.func @_mm_kernel(%arg0: i32, %arg1: memref<256x128xf32, #tpu.memory_space<vmem>>, %arg2: memref<128x128xbf16, #tpu.memory_space<vmem>>, %arg3: memref<1x128xf32, #tpu.memory_space<vmem>>, %arg4: memref<1x128xf32, #tpu.memory_space<vmem>>, %arg5: memref<256x128xf32, #tpu.memory_space<vmem>>) attributes {dimension_semantics = [#tpu.dimension_semantics<parallel>], iteration_bounds = array<i64: 2>, scalar_prefetch = 0 : i64, scratch_operands = 0 : i64, tpu.core_type = #tpu.core_type<tc>, window_params = [{transform_indices = @transform_0, window_bounds = array<i64: 256, 128>}, {pipeline_mode = #tpu.pipeline_mode<synchronous>, transform_indices = @transform_1, window_bounds = array<i64: 128, 128>}, {pipeline_mode = #tpu.pipeline_mode<synchronous>, transform_indices = @transform_2, window_bounds = array<i64: 1, 128>}, {pipeline_mode = #tpu.pipeline_mode<synchronous>, transform_indices = @transform_3, window_bounds = array<i64: 1, 128>}, {transform_indices = @transform_4, window_bounds = array<i64: 256, 128>}]} {
    %c0 = arith.constant 0 : index
    %c0_0 = arith.constant 0 : index
    %0 = vector.load %arg1[%c0, %c0_0] : memref<256x128xf32, #tpu.memory_space<vmem>>, vector<256x128xf32>
    %1 = arith.truncf %0 : vector<256x128xf32> to vector<256x128xbf16>
    %c0_1 = arith.constant 0 : index
    %c0_2 = arith.constant 0 : index
    %2 = vector.load %arg2[%c0_1, %c0_2] : memref<128x128xbf16, #tpu.memory_space<vmem>>, vector<128x128xbf16>
    %cst = arith.constant dense<0.000000e+00> : vector<256x128xf32>
    %3 = tpu.matmul %1, %2, %cst {dimension_numbers = #tpu.dot_dimension_numbers<[1], [0], [0], [1], [0, 0, 1, 1], [], []>} : vector<256x128xbf16>, vector<128x128xbf16>, vector<256x128xf32> -> vector<256x128xf32>
    %c0_3 = arith.constant 0 : index
    %c0_4 = arith.constant 0 : index
    %4 = vector.load %arg3[%c0_3, %c0_4] : memref<1x128xf32, #tpu.memory_space<vmem>>, vector<1x128xf32>
    %5 = vector.broadcast %4 : vector<1x128xf32> to vector<256x128xf32>
    %6 = arith.mulf %3, %5 : vector<256x128xf32>
    %c0_5 = arith.constant 0 : index
    %c0_6 = arith.constant 0 : index
    %7 = vector.load %arg4[%c0_5, %c0_6] : memref<1x128xf32, #tpu.memory_space<vmem>>, vector<1x128xf32>
    %8 = vector.broadcast %7 : vector<1x128xf32> to vector<256x128xf32>
    %9 = arith.addf %6, %8 : vector<256x128xf32>
    %cst_7 = arith.constant 0.000000e+00 : f32
    %10 = vector.broadcast %cst_7 : f32 to vector<256x128xf32>
    %11 = arith.maximumf %9, %10 : vector<256x128xf32>
    %12 = math.absf %9 : vector<256x128xf32>
    %cst_8 = arith.constant 0.000000e+00 : f32
    %13 = vector.broadcast %cst_8 : f32 to vector<256x128xf32>
    %14 = arith.subf %13, %12 : vector<256x128xf32>
    %15 = math.exp %14 : vector<256x128xf32>
    %cst_9 = arith.constant 1.000000e+00 : f32
    %16 = vector.broadcast %cst_9 : f32 to vector<256x128xf32>
    %17 = arith.addf %16, %15 : vector<256x128xf32>
    %18 = math.log %17 : vector<256x128xf32>
    %19 = arith.addf %11, %18 : vector<256x128xf32>
    %c0_10 = arith.constant 0 : index
    %c0_11 = arith.constant 0 : index
    %20 = vector.load %arg5[%c0_10, %c0_11] : memref<256x128xf32, #tpu.memory_space<vmem>>, vector<256x128xf32>
    tpu.vector_store %arg5[%c0_10, %c0_11], %19 {strides = array<i32>} : memref<256x128xf32, #tpu.memory_space<vmem>>, vector<256x128xf32>,
    return
  }
  func.func @transform_0(%arg0: i32) -> (i32, i32) {
    %c0_i32 = arith.constant 0 : i32
    %c0_i32_0 = arith.constant 0 : i32
    return %arg0, %c0_i32 : i32, i32
  }
  func.func @transform_1(%arg0: i32) -> (i32, i32) {
    %c0_i32 = arith.constant 0 : i32
    %c0_i32_0 = arith.constant 0 : i32
    %c0_i32_1 = arith.constant 0 : i32
    return %c0_i32, %c0_i32_0 : i32, i32
  }
  func.func @transform_2(%arg0: i32) -> (i32, i32) {
    %c0_i32 = arith.constant 0 : i32
    %c0_i32_0 = arith.constant 0 : i32
    %c0_i32_1 = arith.constant 0 : i32
    return %c0_i32, %c0_i32_0 : i32, i32
  }
  func.func @transform_3(%arg0: i32) -> (i32, i32) {
    %c0_i32 = arith.constant 0 : i32
    %c0_i32_0 = arith.constant 0 : i32
    %c0_i32_1 = arith.constant 0 : i32
    return %c0_i32, %c0_i32_0 : i32, i32
  }
  func.func @transform_4(%arg0: i32) -> (i32, i32) {
    %c0_i32 = arith.constant 0 : i32
    %c0_i32_0 = arith.constant 0 : i32
    return %arg0, %c0_i32 : i32, i32
  }
}

module attributes {stable_mosaic.version = 11 : i64} {
  func.func @_cconv_kernel(%arg0: i32, %arg1: memref<1x259x128xf32, #tpu.memory_space<vmem>>, %arg2: memref<4x128xf32, #tpu.memory_space<vmem>>, %arg3: memref<1x128xf32, #tpu.memory_space<vmem>>, %arg4: memref<1x256x128xf32, #tpu.memory_space<vmem>>) attributes {dimension_semantics = [#tpu.dimension_semantics<parallel>], iteration_bounds = array<i64: 2>, scalar_prefetch = 0 : i64, scratch_operands = 0 : i64, tpu.core_type = #tpu.core_type<tc>, window_params = [{transform_indices = @transform_0, window_bounds = array<i64: 1, 259, 128>}, {pipeline_mode = #tpu.pipeline_mode<synchronous>, transform_indices = @transform_1, window_bounds = array<i64: 4, 128>}, {pipeline_mode = #tpu.pipeline_mode<synchronous>, transform_indices = @transform_2, window_bounds = array<i64: 1, 128>}, {transform_indices = @transform_3, window_bounds = array<i64: 1, 256, 128>}]} {
    %c0 = arith.constant 0 : index
    %c0_0 = arith.constant 0 : index
    %c0_1 = arith.constant 0 : index
    %0 = vector.load %arg1[%c0, %c0_0, %c0_1] : memref<1x259x128xf32, #tpu.memory_space<vmem>>, vector<1x259x128xf32>
    %1 = vector.shape_cast %0 : vector<1x259x128xf32> to vector<259x128xf32>
    %cst = arith.constant 0.000000e+00 : f32
    %2 = vector.broadcast %cst : f32 to vector<256x128xf32>
    %3 = vector.extract_strided_slice %1 {offsets = [0, 0], sizes = [256, 128], strides = [1, 1]} : vector<259x128xf32> to vector<256x128xf32>
    %c0_2 = arith.constant 0 : index
    %c0_3 = arith.constant 0 : index
    %4 = vector.load %arg2[%c0_2, %c0_3] : memref<4x128xf32, #tpu.memory_space<vmem>>, vector<1x128xf32>
    %5 = vector.broadcast %4 : vector<1x128xf32> to vector<256x128xf32>
    %6 = arith.mulf %3, %5 : vector<256x128xf32>
    %7 = arith.addf %2, %6 : vector<256x128xf32>
    %8 = vector.extract_strided_slice %1 {offsets = [1, 0], sizes = [256, 128], strides = [1, 1]} : vector<259x128xf32> to vector<256x128xf32>
    %c1 = arith.constant 1 : index
    %c0_4 = arith.constant 0 : index
    %9 = vector.load %arg2[%c1, %c0_4] : memref<4x128xf32, #tpu.memory_space<vmem>>, vector<1x128xf32>
    %10 = vector.broadcast %9 : vector<1x128xf32> to vector<256x128xf32>
    %11 = arith.mulf %8, %10 : vector<256x128xf32>
    %12 = arith.addf %7, %11 : vector<256x128xf32>
    %13 = vector.extract_strided_slice %1 {offsets = [2, 0], sizes = [256, 128], strides = [1, 1]} : vector<259x128xf32> to vector<256x128xf32>
    %c2 = arith.constant 2 : index
    %c0_5 = arith.constant 0 : index
    %14 = vector.load %arg2[%c2, %c0_5] : memref<4x128xf32, #tpu.memory_space<vmem>>, vector<1x128xf32>
    %15 = vector.broadcast %14 : vector<1x128xf32> to vector<256x128xf32>
    %16 = arith.mulf %13, %15 : vector<256x128xf32>
    %17 = arith.addf %12, %16 : vector<256x128xf32>
    %18 = vector.extract_strided_slice %1 {offsets = [3, 0], sizes = [256, 128], strides = [1, 1]} : vector<259x128xf32> to vector<256x128xf32>
    %c3 = arith.constant 3 : index
    %c0_6 = arith.constant 0 : index
    %19 = vector.load %arg2[%c3, %c0_6] : memref<4x128xf32, #tpu.memory_space<vmem>>, vector<1x128xf32>
    %20 = vector.broadcast %19 : vector<1x128xf32> to vector<256x128xf32>
    %21 = arith.mulf %18, %20 : vector<256x128xf32>
    %22 = arith.addf %17, %21 : vector<256x128xf32>
    %c0_7 = arith.constant 0 : index
    %c0_8 = arith.constant 0 : index
    %23 = vector.load %arg3[%c0_7, %c0_8] : memref<1x128xf32, #tpu.memory_space<vmem>>, vector<1x128xf32>
    %24 = vector.broadcast %23 : vector<1x128xf32> to vector<256x128xf32>
    %25 = arith.addf %22, %24 : vector<256x128xf32>
    %cst_9 = arith.constant 0.000000e+00 : f32
    %26 = vector.broadcast %cst_9 : f32 to vector<256x128xf32>
    %27 = arith.subf %26, %25 : vector<256x128xf32>
    %28 = math.exp %27 : vector<256x128xf32>
    %cst_10 = arith.constant 1.000000e+00 : f32
    %29 = vector.broadcast %cst_10 : f32 to vector<256x128xf32>
    %30 = arith.addf %29, %28 : vector<256x128xf32>
    %cst_11 = arith.constant 1.000000e+00 : f32
    %31 = vector.broadcast %cst_11 : f32 to vector<256x128xf32>
    %32 = arith.divf %31, %30 : vector<256x128xf32>
    %33 = arith.mulf %25, %32 : vector<256x128xf32>
    %c0_12 = arith.constant 0 : index
    %c0_13 = arith.constant 0 : index
    %c0_14 = arith.constant 0 : index
    %34 = vector.load %arg4[%c0_12, %c0_13, %c0_14] : memref<1x256x128xf32, #tpu.memory_space<vmem>>, vector<1x256x128xf32>
    %35 = vector.shape_cast %34 : vector<1x256x128xf32> to vector<256x128xf32>
    %36 = vector.shape_cast %33 : vector<256x128xf32> to vector<1x256x128xf32>
    tpu.vector_store %arg4[%c0_12, %c0_13, %c0_14], %36 {strides = array<i32>} : memref<1x256x128xf32, #tpu.memory_space<vmem>>, vector<1x256x128xf32>,
    return
  }
  func.func @transform_0(%arg0: i32) -> (i32, i32, i32) {
    %c0_i32 = arith.constant 0 : i32
    %c0_i32_0 = arith.constant 0 : i32
    %c0_i32_1 = arith.constant 0 : i32
    return %arg0, %c0_i32, %c0_i32_0 : i32, i32, i32
  }
  func.func @transform_1(%arg0: i32) -> (i32, i32) {
    %c0_i32 = arith.constant 0 : i32
    %c0_i32_0 = arith.constant 0 : i32
    %c0_i32_1 = arith.constant 0 : i32
    return %c0_i32, %c0_i32_0 : i32, i32
  }
  func.func @transform_2(%arg0: i32) -> (i32, i32) {
    %c0_i32 = arith.constant 0 : i32
    %c0_i32_0 = arith.constant 0 : i32
    %c0_i32_1 = arith.constant 0 : i32
    return %c0_i32, %c0_i32_0 : i32, i32
  }
  func.func @transform_3(%arg0: i32) -> (i32, i32, i32) {
    %c0_i32 = arith.constant 0 : i32
    %c0_i32_0 = arith.constant 0 : i32
    %c0_i32_1 = arith.constant 0 : i32
    return %arg0, %c0_i32, %c0_i32_0 : i32, i32, i32
  }
}

module attributes {stable_mosaic.version = 11 : i64} {
  func.func @_scan_kernel(%arg0: i32, %arg1: memref<1x256x128xf32, #tpu.memory_space<vmem>>, %arg2: memref<1x256x128xf32, #tpu.memory_space<vmem>>, %arg3: memref<1x256x128xf32, #tpu.memory_space<vmem>>, %arg4: memref<1x256x32xf32, #tpu.memory_space<vmem>>, %arg5: memref<16x128xf32, #tpu.memory_space<vmem>>, %arg6: memref<1x128xf32, #tpu.memory_space<vmem>>, %arg7: memref<1x256x128xf32, #tpu.memory_space<vmem>>, %arg8: memref<16x128xf32, #tpu.memory_space<vmem>>) attributes {dimension_semantics = [#tpu.dimension_semantics<parallel>], iteration_bounds = array<i64: 2>, scalar_prefetch = 0 : i64, scratch_operands = 1 : i64, tpu.core_type = #tpu.core_type<tc>, window_params = [{transform_indices = @transform_0, window_bounds = array<i64: 1, 256, 128>}, {transform_indices = @transform_1, window_bounds = array<i64: 1, 256, 128>}, {transform_indices = @transform_2, window_bounds = array<i64: 1, 256, 128>}, {transform_indices = @transform_3, window_bounds = array<i64: 1, 256, 32>}, {pipeline_mode = #tpu.pipeline_mode<synchronous>, transform_indices = @transform_4, window_bounds = array<i64: 16, 128>}, {pipeline_mode = #tpu.pipeline_mode<synchronous>, transform_indices = @transform_5, window_bounds = array<i64: 1, 128>}, {transform_indices = @transform_6, window_bounds = array<i64: 1, 256, 128>}]} {
    %cst = arith.constant 0.000000e+00 : f32
    %0 = vector.broadcast %cst : f32 to vector<16x128xf32>
    %c0 = arith.constant 0 : index
    %c0_0 = arith.constant 0 : index
    %1 = vector.load %arg8[%c0, %c0_0] : memref<16x128xf32, #tpu.memory_space<vmem>>, vector<16x128xf32>
    tpu.vector_store %arg8[%c0, %c0_0], %0 {strides = array<i32>} : memref<16x128xf32, #tpu.memory_space<vmem>>, vector<16x128xf32>,
    %c0_1 = arith.constant 0 : index
    %c0_2 = arith.constant 0 : index
    %2 = vector.load %arg5[%c0_1, %c0_2] : memref<16x128xf32, #tpu.memory_space<vmem>>, vector<16x128xf32>
    %c0_3 = arith.constant 0 : index
    %c0_4 = arith.constant 0 : index
    %3 = vector.load %arg6[%c0_3, %c0_4] : memref<1x128xf32, #tpu.memory_space<vmem>>, vector<1x128xf32>
    %4 = tpu.iota {dimensions = array<i32: 0>} : vector<16x16xi32>
    %5 = tpu.iota {dimensions = array<i32: 1>} : vector<16x16xi32>
    %6 = arith.cmpi eq, %4, %5 : vector<16x16xi32>
    %7 = arith.extui %6 : vector<16x16xi1> to vector<16x16xi32>
    %8 = arith.sitofp %7 : vector<16x16xi32> to vector<16x16xf32>
    %c0_i32 = arith.constant 0 : i32
    %c256_i32 = arith.constant 256 : i32
    %9 = arith.addi %c0_i32, %c256_i32 : i32
    %c1_i32 = arith.constant 1 : i32
    scf.for %arg9 = %c0_i32 to %9 step %c1_i32  : i32 {
      %c1_i32_6 = arith.constant 1 : i32
      %10 = arith.muli %arg9, %c1_i32_6 : i32
      %c0_i32_7 = arith.constant 0 : i32
      %11 = arith.addi %c0_i32_7, %10 : i32
      %c0_8 = arith.constant 0 : index
      %12 = arith.index_cast %11 : i32 to index
      %c0_9 = arith.constant 0 : index
      %13 = vector.load %arg1[%c0_8, %12, %c0_9] : memref<1x256x128xf32, #tpu.memory_space<vmem>>, vector<1x1x128xf32>
      %14 = vector.shape_cast %13 : vector<1x1x128xf32> to vector<1x128xf32>
      %c0_10 = arith.constant 0 : index
      %15 = arith.index_cast %11 : i32 to index
      %c0_11 = arith.constant 0 : index
      %16 = vector.load %arg2[%c0_10, %15, %c0_11] : memref<1x256x128xf32, #tpu.memory_space<vmem>>, vector<1x1x128xf32>
      %17 = vector.shape_cast %16 : vector<1x1x128xf32> to vector<1x128xf32>
      %c0_12 = arith.constant 0 : index
      %18 = arith.index_cast %11 : i32 to index
      %c0_13 = arith.constant 0 : index
      %19 = vector.load %arg3[%c0_12, %18, %c0_13] : memref<1x256x128xf32, #tpu.memory_space<vmem>>, vector<1x1x128xf32>
      %20 = vector.shape_cast %19 : vector<1x1x128xf32> to vector<1x128xf32>
      %c0_14 = arith.constant 0 : index
      %21 = arith.index_cast %11 : i32 to index
      %c0_15 = arith.constant 0 : index
      %22 = vector.load %arg4[%c0_14, %21, %c0_15] : memref<1x256x32xf32, #tpu.memory_space<vmem>>, vector<1x1x32xf32>
      %23 = vector.shape_cast %22 : vector<1x1x32xf32> to vector<1x32xf32>
      %24 = vector.extract_strided_slice %23 {offsets = [0, 0], sizes = [1, 16], strides = [1, 1]} : vector<1x32xf32> to vector<1x16xf32>
      %25 = vector.extract_strided_slice %23 {offsets = [0, 16], sizes = [1, 16], strides = [1, 1]} : vector<1x32xf32> to vector<1x16xf32>
      %26 = vector.broadcast %14 : vector<1x128xf32> to vector<16x128xf32>
      %27 = arith.mulf %2, %26 : vector<16x128xf32>
      %28 = math.exp %27 : vector<16x128xf32>
      %29 = arith.mulf %14, %17 : vector<1x128xf32>
      %30 = vector.broadcast %24 : vector<1x16xf32> to vector<16x16xf32>
      %31 = arith.mulf %8, %30 : vector<16x16xf32>
      %32 = vector.shape_cast %29 : vector<1x128xf32> to vector<1x128xf32>
      %33 = vector.broadcast %32 : vector<1x128xf32> to vector<16x128xf32>
      %cst_16 = arith.constant dense<0.000000e+00> : vector<16x128xf32>
      %34 = tpu.matmul %31, %33, %cst_16 {dimension_numbers = #tpu.dot_dimension_numbers<[1], [0], [0], [1], [0, 0, 1, 1], [], []>} : vector<16x16xf32>, vector<16x128xf32>, vector<16x128xf32> -> vector<16x128xf32>
      %c0_17 = arith.constant 0 : index
      %c0_18 = arith.constant 0 : index
      %35 = vector.load %arg8[%c0_17, %c0_18] : memref<16x128xf32, #tpu.memory_space<vmem>>, vector<16x128xf32>
      %36 = arith.mulf %28, %35 : vector<16x128xf32>
      %37 = arith.addf %36, %34 : vector<16x128xf32>
      %c0_19 = arith.constant 0 : index
      %c0_20 = arith.constant 0 : index
      %38 = vector.load %arg8[%c0_19, %c0_20] : memref<16x128xf32, #tpu.memory_space<vmem>>, vector<16x128xf32>
      tpu.vector_store %arg8[%c0_19, %c0_20], %37 {strides = array<i32>} : memref<16x128xf32, #tpu.memory_space<vmem>>, vector<16x128xf32>,
      %39 = vector.shape_cast %25 : vector<1x16xf32> to vector<1x16xf32>
      %40 = vector.broadcast %39 : vector<1x16xf32> to vector<8x16xf32>
      %cst_21 = arith.constant dense<0.000000e+00> : vector<8x128xf32>
      %41 = tpu.matmul %40, %37, %cst_21 {dimension_numbers = #tpu.dot_dimension_numbers<[1], [0], [0], [1], [0, 0, 1, 1], [], []>} : vector<8x16xf32>, vector<16x128xf32>, vector<8x128xf32> -> vector<8x128xf32>
      %42 = vector.extract_strided_slice %41 {offsets = [0, 0], sizes = [1, 128], strides = [1, 1]} : vector<8x128xf32> to vector<1x128xf32>
      %cst_22 = arith.constant 0.000000e+00 : f32
      %43 = vector.broadcast %cst_22 : f32 to vector<1x128xf32>
      %44 = arith.subf %43, %20 : vector<1x128xf32>
      %45 = math.exp %44 : vector<1x128xf32>
      %cst_23 = arith.constant 1.000000e+00 : f32
      %46 = vector.broadcast %cst_23 : f32 to vector<1x128xf32>
      %47 = arith.addf %46, %45 : vector<1x128xf32>
      %cst_24 = arith.constant 1.000000e+00 : f32
      %48 = vector.broadcast %cst_24 : f32 to vector<1x128xf32>
      %49 = arith.divf %48, %47 : vector<1x128xf32>
      %50 = arith.mulf %20, %49 : vector<1x128xf32>
      %51 = arith.mulf %17, %3 : vector<1x128xf32>
      %52 = arith.addf %42, %51 : vector<1x128xf32>
      %53 = arith.mulf %52, %50 : vector<1x128xf32>
      %c0_25 = arith.constant 0 : index
      %54 = arith.index_cast %11 : i32 to index
      %c0_26 = arith.constant 0 : index
      %55 = vector.load %arg7[%c0_25, %54, %c0_26] : memref<1x256x128xf32, #tpu.memory_space<vmem>>, vector<1x1x128xf32>
      %56 = vector.shape_cast %55 : vector<1x1x128xf32> to vector<1x128xf32>
      %57 = vector.shape_cast %53 : vector<1x128xf32> to vector<1x1x128xf32>
      tpu.vector_store %arg7[%c0_25, %54, %c0_26], %57 {strides = array<i32>} : memref<1x256x128xf32, #tpu.memory_space<vmem>>, vector<1x1x128xf32>,
    }
    %c256_i32_5 = arith.constant 256 : i32
    return
  }
  func.func @transform_0(%arg0: i32) -> (i32, i32, i32) {
    %c0_i32 = arith.constant 0 : i32
    %c0_i32_0 = arith.constant 0 : i32
    %c0_i32_1 = arith.constant 0 : i32
    return %arg0, %c0_i32, %c0_i32_0 : i32, i32, i32
  }
  func.func @transform_1(%arg0: i32) -> (i32, i32, i32) {
    %c0_i32 = arith.constant 0 : i32
    %c0_i32_0 = arith.constant 0 : i32
    %c0_i32_1 = arith.constant 0 : i32
    return %arg0, %c0_i32, %c0_i32_0 : i32, i32, i32
  }
  func.func @transform_2(%arg0: i32) -> (i32, i32, i32) {
    %c0_i32 = arith.constant 0 : i32
    %c0_i32_0 = arith.constant 0 : i32
    %c0_i32_1 = arith.constant 0 : i32
    return %arg0, %c0_i32, %c0_i32_0 : i32, i32, i32
  }
  func.func @transform_3(%arg0: i32) -> (i32, i32, i32) {
    %c0_i32 = arith.constant 0 : i32
    %c0_i32_0 = arith.constant 0 : i32
    %c0_i32_1 = arith.constant 0 : i32
    return %arg0, %c0_i32, %c0_i32_0 : i32, i32, i32
  }
  func.func @transform_4(%arg0: i32) -> (i32, i32) {
    %c0_i32 = arith.constant 0 : i32
    %c0_i32_0 = arith.constant 0 : i32
    %c0_i32_1 = arith.constant 0 : i32
    return %c0_i32, %c0_i32_0 : i32, i32
  }
  func.func @transform_5(%arg0: i32) -> (i32, i32) {
    %c0_i32 = arith.constant 0 : i32
    %c0_i32_0 = arith.constant 0 : i32
    %c0_i32_1 = arith.constant 0 : i32
    return %c0_i32, %c0_i32_0 : i32, i32
  }
  func.func @transform_6(%arg0: i32) -> (i32, i32, i32) {
    %c0_i32 = arith.constant 0 : i32
    %c0_i32_0 = arith.constant 0 : i32
    %c0_i32_1 = arith.constant 0 : i32
    return %arg0, %c0_i32, %c0_i32_0 : i32, i32, i32
  }
}

module attributes {stable_mosaic.version = 11 : i64} {
  func.func @_mm_kernel(%arg0: i32, %arg1: memref<256x192xf32, #tpu.memory_space<vmem>>, %arg2: memref<192x128xbf16, #tpu.memory_space<vmem>>, %arg3: memref<1x128xf32, #tpu.memory_space<vmem>>, %arg4: memref<1x128xf32, #tpu.memory_space<vmem>>, %arg5: memref<256x128xf32, #tpu.memory_space<vmem>>) attributes {dimension_semantics = [#tpu.dimension_semantics<parallel>], iteration_bounds = array<i64: 2>, scalar_prefetch = 0 : i64, scratch_operands = 0 : i64, tpu.core_type = #tpu.core_type<tc>, window_params = [{transform_indices = @transform_0, window_bounds = array<i64: 256, 192>}, {pipeline_mode = #tpu.pipeline_mode<synchronous>, transform_indices = @transform_1, window_bounds = array<i64: 192, 128>}, {pipeline_mode = #tpu.pipeline_mode<synchronous>, transform_indices = @transform_2, window_bounds = array<i64: 1, 128>}, {pipeline_mode = #tpu.pipeline_mode<synchronous>, transform_indices = @transform_3, window_bounds = array<i64: 1, 128>}, {transform_indices = @transform_4, window_bounds = array<i64: 256, 128>}]} {
    %c0 = arith.constant 0 : index
    %c0_0 = arith.constant 0 : index
    %0 = vector.load %arg1[%c0, %c0_0] : memref<256x192xf32, #tpu.memory_space<vmem>>, vector<256x192xf32>
    %1 = arith.truncf %0 : vector<256x192xf32> to vector<256x192xbf16>
    %c0_1 = arith.constant 0 : index
    %c0_2 = arith.constant 0 : index
    %2 = vector.load %arg2[%c0_1, %c0_2] : memref<192x128xbf16, #tpu.memory_space<vmem>>, vector<192x128xbf16>
    %cst = arith.constant dense<0.000000e+00> : vector<256x128xf32>
    %3 = tpu.matmul %1, %2, %cst {dimension_numbers = #tpu.dot_dimension_numbers<[1], [0], [0], [1], [0, 0, 1, 1], [], []>} : vector<256x192xbf16>, vector<192x128xbf16>, vector<256x128xf32> -> vector<256x128xf32>
    %c0_3 = arith.constant 0 : index
    %c0_4 = arith.constant 0 : index
    %4 = vector.load %arg3[%c0_3, %c0_4] : memref<1x128xf32, #tpu.memory_space<vmem>>, vector<1x128xf32>
    %5 = vector.broadcast %4 : vector<1x128xf32> to vector<256x128xf32>
    %6 = arith.mulf %3, %5 : vector<256x128xf32>
    %c0_5 = arith.constant 0 : index
    %c0_6 = arith.constant 0 : index
    %7 = vector.load %arg4[%c0_5, %c0_6] : memref<1x128xf32, #tpu.memory_space<vmem>>, vector<1x128xf32>
    %8 = vector.broadcast %7 : vector<1x128xf32> to vector<256x128xf32>
    %9 = arith.addf %6, %8 : vector<256x128xf32>
    %c0_7 = arith.constant 0 : index
    %c0_8 = arith.constant 0 : index
    %10 = vector.load %arg5[%c0_7, %c0_8] : memref<256x128xf32, #tpu.memory_space<vmem>>, vector<256x128xf32>
    tpu.vector_store %arg5[%c0_7, %c0_8], %9 {strides = array<i32>} : memref<256x128xf32, #tpu.memory_space<vmem>>, vector<256x128xf32>,
    return
  }
  func.func @transform_0(%arg0: i32) -> (i32, i32) {
    %c0_i32 = arith.constant 0 : i32
    %c0_i32_0 = arith.constant 0 : i32
    return %arg0, %c0_i32 : i32, i32
  }
  func.func @transform_1(%arg0: i32) -> (i32, i32) {
    %c0_i32 = arith.constant 0 : i32
    %c0_i32_0 = arith.constant 0 : i32
    %c0_i32_1 = arith.constant 0 : i32
    return %c0_i32, %c0_i32_0 : i32, i32
  }
  func.func @transform_2(%arg0: i32) -> (i32, i32) {
    %c0_i32 = arith.constant 0 : i32
    %c0_i32_0 = arith.constant 0 : i32
    %c0_i32_1 = arith.constant 0 : i32
    return %c0_i32, %c0_i32_0 : i32, i32
  }
  func.func @transform_3(%arg0: i32) -> (i32, i32) {
    %c0_i32 = arith.constant 0 : i32
    %c0_i32_0 = arith.constant 0 : i32
    %c0_i32_1 = arith.constant 0 : i32
    return %c0_i32, %c0_i32_0 : i32, i32
  }
  func.func @transform_4(%arg0: i32) -> (i32, i32) {
    %c0_i32 = arith.constant 0 : i32
    %c0_i32_0 = arith.constant 0 : i32
    return %arg0, %c0_i32 : i32, i32
  }
}

</mosaic_0001>

<bundles_post_ra>
// kernel: _lambda_.25
= control target key start
LH: loop header
LB: loop body
LE: loop exit
PB: predicated region body
PF: predicated region fallthrough
CT: control target
= control target key end

     0   :  { %v148_v0 = vmov 0.0   ;;  %vm149_vm0 = vmmov 0   ;;  %vm52_vm1 = vcmask 523264   ;;  %s199_s1 = inlined_call_operand.vmem [shape: bf16[64,128], index: 1, kind: input, shape index: {}]   ;;  %s200_s0 = inlined_call_operand.vmem [shape: f32[2,64], index: 0, kind: input, shape index: {}]   ;;  %s201_s2 = inlined_call_operand.vmem [shape: f32[1,128], index: 2, kind: input, shape index: {}]   ;;  %s202_s3 = inlined_call_operand.vmem [shape: f32[1,128], index: 3, kind: input, shape index: {}]   ;;  %s203_s4 = inlined_call_operand.vmem [shape: f32[2,128], index: 4, kind: output, shape index: {}]  }
   0x1   :  { %130 = vmatprep.subr.bf16.mxu0 %v148_v0  ;;  %v144_v1 = vld [vmem:[%s199_s1] sm:$0xff]   ;;  %138 = vmatprep.mubr.msk.bf16.mxu0 %vm149_vm0, %v148_v0  ;;  %v145_v2 = vld [vmem:[%s199_s1 + $0x8] sm:$0xff]   ;;  %v146_v3 = vld [vmem:[%s199_s1 + $0x10] sm:$0xff]  }
   0x2   :  { %131 = vmatpush3.bf16.msra.mxu0 %v144_v1  ;;  %v147_v4 = vld [vmem:[%s199_s1 + $0x18] sm:$0xff]   ;;  %v18_v5 = vld [vmem:[%s200_s0] sm:$0x3] }
   0x3   :  { %132 = vmatprep.subr.bf16.mxu0 %v148_v0  ;;  %v19_v6 = vpack.c.bf16 %v18_v5, %v18_v5  ;;  %v123_v7 = vld [vmem:[%s201_s2] ss:$0 sm:$0xff] }
   0x4   :  { %v124_v9 = vld [vmem:[%s202_s3] ss:$0 sm:$0xff] }
   0x6   :  { %133 = vmatpush3.bf16.msra.mxu0 %v145_v2 }
   0x7   :  { %134 = vmatprep.subr.bf16.mxu0 %v148_v0 }
   0xa   :  { %135 = vmatpush3.bf16.msra.mxu0 %v146_v3 }
   0xb   :  { %136 = vmatprep.subr.bf16.mxu0 %v148_v0 }
   0xe   :  { %137 = vmatpush3.bf16.msra.mxu0 %v147_v4 }
  0x11   :  { %139 = vmatmul.mubr.msk.bf16.vlgmr.msra.gmra.mrb[0].mxu0 %vm52_vm1, %v19_v6 }
  0xe4   :  { %v90_v8 = vpop.f32.mrb[0].mxu0 }
  0xe5   :  { %v103_v10 = vmul.f32 %v123_v7, %v90_v8  ;;  %v140_v11 = vpop.f32.mrb[1].mxu0 }
  0xe6   :  { %v93_v12 = vpop.f32.mrb[2].mxu0 }
  0xe7   :  { %v111_v13 = vadd.f32 %v124_v9, %v103_v10  ;;  %v141_v14 = vpop.f32.mrb[3].mxu0 }
  0xe9   :  { %v112_v15 = vmax.f32 %v111_v13, 0.0 }
  0xeb   :  { %113 = vst [vmem:[%s203_s4] sm:$0x3] %v112_v15 }

// kernel: _lambda_.26
= control target key start
LH: loop header
LB: loop body
LE: loop exit
PB: predicated region body
PF: predicated region fallthrough
CT: control target
= control target key end

     0   :  { %v204_v0 = vmov 0.0   ;;  %vm205_vm0 = vmmov 0   ;;  %s267_s1 = inlined_call_operand.vmem [shape: bf16[128,128], index: 1, kind: input, shape index: {}]   ;;  %s268_s0 = inlined_call_operand.vmem [shape: f32[2,128], index: 0, kind: input, shape index: {}]   ;;  %s269_s2 = inlined_call_operand.vmem [shape: f32[1,128], index: 2, kind: input, shape index: {}]   ;;  %s270_s3 = inlined_call_operand.vmem [shape: f32[1,128], index: 3, kind: input, shape index: {}]   ;;  %s271_s4 = inlined_call_operand.vmem [shape: f32[2,128], index: 4, kind: output, shape index: {}]  }
   0x1   :  { %170 = vmatprep.subr.bf16.mxu0 %v204_v0  ;;  %v192_v1 = vld [vmem:[%s267_s1] sm:$0xff]   ;;  %186 = vmatprep.mubr.msk.bf16.mxu0 %vm205_vm0, %v204_v0  ;;  %v193_v2 = vld [vmem:[%s267_s1 + $0x8] sm:$0xff]   ;;  %v194_v3 = vld [vmem:[%s267_s1 + $0x10] sm:$0xff]  }
   0x2   :  { %171 = vmatpush3.bf16.msra.mxu0 %v192_v1  ;;  %v195_v4 = vld [vmem:[%s267_s1 + $0x18] sm:$0xff]   ;;  %v196_v5 = vld [vmem:[%s267_s1 + $0x20] sm:$0xff]   ;;  %v197_v6 = vld [vmem:[%s267_s1 + $0x28] sm:$0xff]  }
   0x3   :  { %172 = vmatprep.subr.bf16.mxu0 %v204_v0  ;;  %v198_v7 = vld [vmem:[%s267_s1 + $0x30] sm:$0xff]   ;;  %v199_v8 = vld [vmem:[%s267_s1 + $0x38] sm:$0xff]   ;;  %v18_v9 = vld [vmem:[%s268_s0] sm:$0x3] }
   0x4   :  { %v19_v10 = vpack.c.bf16 %v18_v9, %v18_v9  ;;  %v159_v11 = vld [vmem:[%s269_s2] ss:$0 sm:$0xff] }
   0x5   :  { %v160_v13 = vld [vmem:[%s270_s3] ss:$0 sm:$0xff] }
   0x6   :  { %173 = vmatpush3.bf16.msra.mxu0 %v193_v2 }
   0x7   :  { %174 = vmatprep.subr.bf16.mxu0 %v204_v0 }
   0xa   :  { %175 = vmatpush3.bf16.msra.mxu0 %v194_v3 }
   0xb   :  { %176 = vmatprep.subr.bf16.mxu0 %v204_v0 }
   0xe   :  { %177 = vmatpush3.bf16.msra.mxu0 %v195_v4 }
   0xf   :  { %178 = vmatprep.subr.bf16.mxu0 %v204_v0 }
  0x12   :  { %179 = vmatpush3.bf16.msra.mxu0 %v196_v5 }
  0x13   :  { %180 = vmatprep.subr.bf16.mxu0 %v204_v0 }
  0x16   :  { %181 = vmatpush3.bf16.msra.mxu0 %v197_v6 }
  0x17   :  { %182 = vmatprep.subr.bf16.mxu0 %v204_v0 }
  0x1a   :  { %183 = vmatpush3.bf16.msra.mxu0 %v198_v7 }
  0x1b   :  { %184 = vmatprep.subr.bf16.mxu0 %v204_v0 }
  0x1e   :  { %185 = vmatpush3.bf16.msra.mxu0 %v199_v8 }
  0x21   :  { %187 = vmatmul.mubr.bf16.vlgmr.msra.gmra.mrb[0].mxu0 %v19_v10 }
  0xf4   :  { %v118_v12 = vpop.f32.mrb[0].mxu0 }
  0xf5   :  { %v131_v14 = vmul.f32 %v159_v11, %v118_v12  ;;  %v188_v15 = vpop.f32.mrb[1].mxu0 }
  0xf6   :  { %v121_v16 = vpop.f32.mrb[2].mxu0 }
  0xf7   :  { %v139_v17 = vadd.f32 %v160_v13, %v131_v14  ;;  %v189_v18 = vpop.f32.mrb[3].mxu0 }
  0xf9   :  { %v140_v19 = vsub.f32 0.0, %v139_v17 }
  0xfb   :  { %v141_v20 = vmul.f32 1.442695, %v140_v19 }
  0xfd   :  { %200 = vpow2.f32 %v141_v20 }
 0x107   :  { %v201_v21 = vpop.eup %200 }
 0x108   :  { %v143_v22 = vadd.f32 1.0, %v201_v21 }
 0x10a   :  { %202 = vrcp.f32 %v143_v22 }
 0x114   :  { %v203_v23 = vpop.eup %202 }
 0x115   :  { %146 = vst [vmem:[%s271_s4] sm:$0x3] %v203_v23 }

// kernel: _lambda_.21
= control target key start
LH: loop header
LB: loop body
LE: loop exit
PB: predicated region body
PF: predicated region fallthrough
CT: control target
= control target key end

     0   :  { %vm56_vm0 = vcmask 523264   ;;  %s259_s1 = inlined_call_operand.vmem [shape: bf16[64,128], index: 1, kind: input, shape index: {}]   ;;  %s260_s0 = inlined_call_operand.vmem [shape: f32[32,64], index: 0, kind: input, shape index: {}]   ;;  %s261_s2 = inlined_call_operand.vmem [shape: f32[1,128], index: 2, kind: input, shape index: {}]   ;;  %s262_s3 = inlined_call_operand.vmem [shape: f32[1,128], index: 3, kind: input, shape index: {}]   ;;  %s263_s4 = inlined_call_operand.vmem [shape: f32[32,128], index: 4, kind: output, shape index: {}]  }
   0x1   :  { %v188_v0 = vld [vmem:[%s259_s1] sm:$0xff]   ;;  %v189_v1 = vld [vmem:[%s259_s1 + $0x8] sm:$0xff]   ;;  %v190_v2 = vld [vmem:[%s259_s1 + $0x10] sm:$0xff]  }
   0x2   :  { %176 = vmatprep.subr.bf16.mxu0 %v188_v0  ;;  %v18_v3 = vld [vmem:[%s260_s0] sm:$0xff]  ;;  %v19_v4 = vld [vmem:[%s260_s0 + $0x8] sm:$0xff]  ;;  %v191_v6 = vld [vmem:[%s259_s1 + $0x18] sm:$0xff]  }
   0x3   :  { %177 = vmatpush3.bf16.msra.mxu0 %v188_v0  ;;  %v22_v5 = vpack.c.bf16 %v19_v4, %v18_v3  ;;  %v20_v7 = vld [vmem:[%s260_s0 + $0x10] sm:$0xff]  ;;  %v21_v8 = vld [vmem:[%s260_s0 + $0x18] sm:$0xff]  ;;  %v168_v10 = vld [vmem:[%s261_s2] ss:$0 sm:$0xff] }
   0x4   :  { %178 = vmatprep.subr.bf16.mxu0 %v189_v1  ;;  %v23_v9 = vpack.c.bf16 %v21_v8, %v20_v7  ;;  %v169_v12 = vld [vmem:[%s262_s3] ss:$0 sm:$0xff] }
   0x5   :  { %184 = vmatprep.mubr.msk.bf16.mxu0 %vm56_vm0, %v22_v5 }
   0x7   :  { %179 = vmatpush3.bf16.msra.mxu0 %v189_v1 }
   0x8   :  { %180 = vmatprep.subr.bf16.mxu0 %v190_v2 }
   0xb   :  { %181 = vmatpush3.bf16.msra.mxu0 %v190_v2 }
   0xc   :  { %182 = vmatprep.subr.bf16.mxu0 %v191_v6 }
   0xf   :  { %183 = vmatpush3.bf16.msra.mxu0 %v191_v6 }
  0x12   :  { %185 = vmatmul.mubr.msk.bf16.vlgmr.msra.gmra.mrb[0].mxu0 %vm56_vm0, %v23_v9 }
  0xe5   :  { %v186_v11 = vpop.f32.mrb[0].mxu0 }
  0xe6   :  { %v121_v13 = vmul.f32 %v186_v11, %v168_v10  ;;  %v97_v14 = vpop.f32.mrb[1].mxu0 }
  0xe7   :  { %v119_v15 = vmul.f32 %v168_v10, %v97_v14  ;;  %v187_v16 = vpop.f32.mrb[2].mxu0 }
  0xe8   :  { %v132_v17 = vadd.f32 %v169_v12, %v121_v13  ;;  %v122_v18 = vmul.f32 %v187_v16, %v168_v10  ;;  %v100_v19 = vpop.f32.mrb[3].mxu0 }
  0xe9   :  { %v130_v20 = vadd.f32 %v169_v12, %v119_v15  ;;  %v120_v21 = vmul.f32 %v168_v10, %v100_v19 }
  0xea   :  { %v136_v22 = vadd.f32 3.0, %v132_v17  ;;  %v133_v23 = vadd.f32 %v169_v12, %v122_v18 }
  0xeb   :  { %v134_v24 = vadd.f32 3.0, %v130_v20  ;;  %v131_v25 = vadd.f32 %v169_v12, %v120_v21 }
  0xec   :  { %v140_v26 = vmax.f32 %v136_v22, 0.0  ;;  %v137_v27 = vadd.f32 3.0, %v133_v23 }
  0xed   :  { %v138_v28 = vmax.f32 %v134_v24, 0.0  ;;  %v135_v29 = vadd.f32 3.0, %v131_v25 }
  0xee   :  { %v144_v30 = vmin.f32 %v140_v26, 6.0  ;;  %v141_v31 = vmax.f32 %v137_v27, 0.0 }
  0xef   :  { %v142_v32 = vmin.f32 %v138_v28, 6.0  ;;  %v139_v33 = vmax.f32 %v135_v29, 0.0 }
  0xf0   :  { %v148_v34 = vmul.f32 %v144_v30, %v132_v17  ;;  %v145_v35 = vmin.f32 %v141_v31, 6.0 }
  0xf1   :  { %v146_v36 = vmul.f32 %v142_v32, %v130_v20  ;;  %v143_v37 = vmin.f32 %v139_v33, 6.0 }
  0xf2   :  { %v152_v38 = vmul.f32 0.16666667, %v148_v34  ;;  %v149_v39 = vmul.f32 %v145_v35, %v133_v23 }
  0xf3   :  { %v150_v40 = vmul.f32 0.16666667, %v146_v36  ;;  %v147_v41 = vmul.f32 %v143_v37, %v131_v25 }
  0xf4   :  { %156 = vst [vmem:[%s263_s4 + $0x10] sm:$0xff] %v152_v38  ;;  %v153_v42 = vmul.f32 0.16666667, %v149_v39 }
  0xf5   :  { %154 = vst [vmem:[%s263_s4] sm:$0xff] %v150_v40  ;;  %v151_v43 = vmul.f32 0.16666667, %v147_v41 }
  0xf6   :  { %157 = vst [vmem:[%s263_s4 + $0x18] sm:$0xff] %v153_v42 }
  0xf7   :  { %155 = vst [vmem:[%s263_s4 + $0x8] sm:$0xff] %v151_v43 }

// kernel: _lambda_.22
= control target key start
LH: loop header
LB: loop body
LE: loop exit
PB: predicated region body
PF: predicated region fallthrough
CT: control target
= control target key end

     0   :  { %s334_s1 = inlined_call_operand.vmem [shape: bf16[128,128], index: 1, kind: input, shape index: {}]   ;;  %s335_s0 = inlined_call_operand.vmem [shape: f32[32,128], index: 0, kind: input, shape index: {}]   ;;  %s336_s2 = inlined_call_operand.vmem [shape: f32[1,128], index: 2, kind: input, shape index: {}]   ;;  %s337_s3 = inlined_call_operand.vmem [shape: f32[1,128], index: 3, kind: input, shape index: {}]   ;;  %s338_s4 = inlined_call_operand.vmem [shape: f32[32,128], index: 4, kind: output, shape index: {}]  }
   0x1   :  { %v231_v0 = vld [vmem:[%s334_s1] sm:$0xff]   ;;  %v232_v1 = vld [vmem:[%s334_s1 + $0x8] sm:$0xff]   ;;  %v233_v2 = vld [vmem:[%s334_s1 + $0x10] sm:$0xff]  }
   0x2   :  { %211 = vmatprep.subr.bf16.mxu0 %v231_v0  ;;  %v234_v3 = vld [vmem:[%s334_s1 + $0x18] sm:$0xff]   ;;  %v18_v4 = vld [vmem:[%s335_s0] sm:$0xff]  ;;  %v19_v5 = vld [vmem:[%s335_s0 + $0x8] sm:$0xff] }
   0x3   :  { %212 = vmatpush3.bf16.msra.mxu0 %v231_v0  ;;  %v22_v6 = vpack.c.bf16 %v19_v5, %v18_v4  ;;  %v235_v7 = vld [vmem:[%s334_s1 + $0x20] sm:$0xff]   ;;  %v236_v8 = vld [vmem:[%s334_s1 + $0x28] sm:$0xff]   ;;  %v237_v9 = vld [vmem:[%s334_s1 + $0x30] sm:$0xff]  }
   0x4   :  { %213 = vmatprep.subr.bf16.mxu0 %v232_v1  ;;  %v238_v10 = vld [vmem:[%s334_s1 + $0x38] sm:$0xff]   ;;  %v20_v11 = vld [vmem:[%s335_s0 + $0x10] sm:$0xff]  ;;  %v199_v14 = vld [vmem:[%s336_s2] ss:$0 sm:$0xff] }
   0x5   :  { %227 = vmatprep.mubr.bf16.mxu0 %v22_v6  ;;  %v21_v12 = vld [vmem:[%s335_s0 + $0x18] sm:$0xff]  ;;  %v200_v16 = vld [vmem:[%s337_s3] ss:$0 sm:$0xff] }
   0x6   :  { %v23_v13 = vpack.c.bf16 %v21_v12, %v20_v11 }
   0x7   :  { %214 = vmatpush3.bf16.msra.mxu0 %v232_v1 }
   0x8   :  { %215 = vmatprep.subr.bf16.mxu0 %v233_v2 }
   0xb   :  { %216 = vmatpush3.bf16.msra.mxu0 %v233_v2 }
   0xc   :  { %217 = vmatprep.subr.bf16.mxu0 %v234_v3 }
   0xf   :  { %218 = vmatpush3.bf16.msra.mxu0 %v234_v3 }
  0x10   :  { %219 = vmatprep.subr.bf16.mxu0 %v235_v7 }
  0x13   :  { %220 = vmatpush3.bf16.msra.mxu0 %v235_v7 }
  0x14   :  { %221 = vmatprep.subr.bf16.mxu0 %v236_v8 }
  0x17   :  { %222 = vmatpush3.bf16.msra.mxu0 %v236_v8 }
  0x18   :  { %223 = vmatprep.subr.bf16.mxu0 %v237_v9 }
  0x1b   :  { %224 = vmatpush3.bf16.msra.mxu0 %v237_v9 }
  0x1c   :  { %225 = vmatprep.subr.bf16.mxu0 %v238_v10 }
  0x1f   :  { %226 = vmatpush3.bf16.msra.mxu0 %v238_v10 }
  0x22   :  { %228 = vmatmul.mubr.bf16.vlgmr.msra.gmra.mrb[0].mxu0 %v23_v13 }
  0xf5   :  { %v229_v15 = vpop.f32.mrb[0].mxu0 }
  0xf6   :  { %v146_v17 = vmul.f32 %v229_v15, %v199_v14  ;;  %v122_v18 = vpop.f32.mrb[1].mxu0 }
  0xf7   :  { %v144_v19 = vmul.f32 %v199_v14, %v122_v18  ;;  %v230_v20 = vpop.f32.mrb[2].mxu0 }
  0xf8   :  { %v157_v21 = vadd.f32 %v200_v16, %v146_v17  ;;  %v147_v22 = vmul.f32 %v230_v20, %v199_v14  ;;  %v125_v23 = vpop.f32.mrb[3].mxu0 }
  0xf9   :  { %v155_v24 = vadd.f32 %v200_v16, %v144_v19  ;;  %v145_v25 = vmul.f32 %v199_v14, %v125_v23 }
  0xfa   :  { %v161_v26 = vsub.f32 0.0, %v157_v21  ;;  %v158_v27 = vadd.f32 %v200_v16, %v147_v22 }
  0xfb   :  { %v159_v28 = vsub.f32 0.0, %v155_v24  ;;  %v156_v29 = vadd.f32 %v200_v16, %v145_v25 }
  0xfc   :  { %v167_v30 = vmul.f32 1.442695, %v161_v26  ;;  %v162_v31 = vsub.f32 0.0, %v158_v27 }
  0xfd   :  { %v163_v32 = vmul.f32 1.442695, %v159_v28  ;;  %v160_v33 = vsub.f32 0.0, %v156_v29 }
  0xfe   :  { %239 = vpow2.f32 %v167_v30  ;;  %v169_v34 = vmul.f32 1.442695, %v162_v31 }
  0xff   :  { %241 = vpow2.f32 %v163_v32  ;;  %v165_v35 = vmul.f32 1.442695, %v160_v33 }
 0x100   :  { %243 = vpow2.f32 %v169_v34 }
 0x101   :  { %245 = vpow2.f32 %v165_v35 }
 0x108   :  { %v240_v36 = vpop.eup %239 }
 0x109   :  { %v242_v37 = vpop.eup %241  ;;  %v173_v38 = vadd.f32 1.0, %v240_v36 }
 0x10a   :  { %v244_v39 = vpop.eup %243  ;;  %v171_v40 = vadd.f32 1.0, %v242_v37 }
 0x10b   :  { %v246_v41 = vpop.eup %245  ;;  %247 = vrcp.f32 %v173_v38  ;;  %v174_v42 = vadd.f32 1.0, %v244_v39 }
 0x10c   :  { %249 = vrcp.f32 %v171_v40  ;;  %v172_v43 = vadd.f32 1.0, %v246_v41 }
 0x10d   :  { %251 = vrcp.f32 %v174_v42 }
 0x10e   :  { %253 = vrcp.f32 %v172_v43 }
 0x115   :  { %v248_v44 = vpop.eup %247 }
 0x116   :  { %v250_v45 = vpop.eup %249  ;;  %185 = vst [vmem:[%s338_s4 + $0x10] sm:$0xff] %v248_v44 }
 0x117   :  { %v252_v46 = vpop.eup %251  ;;  %183 = vst [vmem:[%s338_s4] sm:$0xff] %v250_v45 }
 0x118   :  { %v254_v47 = vpop.eup %253  ;;  %186 = vst [vmem:[%s338_s4 + $0x18] sm:$0xff] %v252_v46 }
 0x119   :  { %184 = vst [vmem:[%s338_s4 + $0x8] sm:$0xff] %v254_v47 }

// kernel: _lambda_.34
= control target key start
LH: loop header
LB: loop body
LE: loop exit
PB: predicated region body
PF: predicated region fallthrough
CT: control target
= control target key end

     0   :  { %s799_s15 = smov 0   ;;  %s989_s0 = inlined_call_operand.vmem [shape: f32[512,128], index: 0, kind: input, shape index: {}]   ;;  %s990_s1 = inlined_call_operand.vmem [shape: bf16[128,128], index: 1, kind: input, shape index: {}]   ;;  %s991_s2 = inlined_call_operand.vmem [shape: f32[1,128], index: 2, kind: input, shape index: {}]   ;;  %s992_s3 = inlined_call_operand.vmem [shape: f32[1,128], index: 3, kind: input, shape index: {}]   ;;  %s993_s4 = inlined_call_operand.vmem [shape: f32[512,128], index: 4, kind: output, shape index: {}]  }
   0x1 LB: > { %s641_s16 = sadd.s32 4294967295, %s772_s15   ;;  %p645_p0 = scmp.ge.s32.totalorder %s772_s15, 1  ;;  %s772_s15 = sphi %s799_s15, %s14_s15  }
   0x2   : > { %p163_p1 = scmp.lt.s32.totalorder %s772_s15, 3 }
   0x4   : > { %p164_p2 = pnand %p645_p0, %p163_p1 }
   0x5   : > { %v758_v0 = vld [vmem:[%s990_s1] sm:$0xff] (!%p164_p2)   ;;  %s646_s19 = sshll.u32 (!%p164_p2), %s641_s16, 5  ;;  %v759_v1 = vld [vmem:[%s990_s1 + $0x8] sm:$0xff] (!%p164_p2)   ;;  %v760_v2 = vld [vmem:[%s990_s1 + $0x10] sm:$0xff] (!%p164_p2)  }
   0x6   : > { %167 = sbr.rel (%p164_p2) target bundleno = 283 (0x11b), region = 36  ;;  %p190_p3 = scmp.lt.s32.totalorder (!%p164_p2), %s646_s19, 63  ;;  %686 = vmatprep.subr.bf16.mxu0 (!%p164_p2), %v758_v0  ;;  %734 = vmatprep.subr.bf16.mxu1 (!%p164_p2), %v758_v0  ;;  %v761_v3 = vld [vmem:[%s990_s1 + $0x18] sm:$0xff] (!%p164_p2)   ;;  %v762_v10 = vld [vmem:[%s990_s1 + $0x20] sm:$0xff] (!%p164_p2)   ;;  %v763_v11 = vld [vmem:[%s990_s1 + $0x28] sm:$0xff] (!%p164_p2)  }
   0x7   : > { %687 = vmatpush3.bf16.msra.mxu0 (!%p164_p2), %v758_v0  ;;  %742 = vmatpush3.bf16.msra.mxu1 (!%p164_p2), %v758_v0  ;;  %v764_v12 = vld [vmem:[%s990_s1 + $0x30] sm:$0xff] (!%p164_p2)   ;;  %v765_v13 = vld [vmem:[%s990_s1 + $0x38] sm:$0xff] (!%p164_p2)   ;;  %v876_v56 = vld [vmem:[%s991_s2] ss:$0 sm:$0xff] (!%p164_p2) }
   0x8   : > { %688 = vmatprep.subr.bf16.mxu0 (!%p164_p2), %v759_v1  ;;  %735 = vmatprep.subr.bf16.mxu1 (!%p164_p2), %v759_v1  ;;  %v881_v58 = vld [vmem:[%s992_s3] ss:$0 sm:$0xff] (!%p164_p2) }
   0xb   : > { %689 = vmatpush3.bf16.msra.mxu0 (!%p164_p2), %v759_v1  ;;  %743 = vmatpush3.bf16.msra.mxu1 (!%p164_p2), %v759_v1 }
   0xc   : > { %690 = vmatprep.subr.bf16.mxu0 (!%p164_p2), %v760_v2  ;;  %736 = vmatprep.subr.bf16.mxu1 (!%p164_p2), %v760_v2 }
   0xd   : > { %s995_s19 = smov (!%p190_p3, %s646_s19), 63 }
   0xe   : > { %s647_s24 = sshll.u32 %s995_s19, 3 }
   0xf   : > { %s824_s27 = scalar_lea.vmem %s989_s0, %s647_s24  ;;  %691 = vmatpush3.bf16.msra.mxu0 %v760_v2  ;;  %744 = vmatpush3.bf16.msra.mxu1 %v760_v2  ;;  %s890_s20 = scalar_lea.vmem %s993_s4, %s647_s24 }
  0x10   : > { %v202_v4 = vld [vmem:[%s824_s27] sm:$0xff]  ;;  %v203_v5 = vld [vmem:[%s824_s27 + $0x8] sm:$0xff]  ;;  %692 = vmatprep.subr.bf16.mxu0 %v761_v3  ;;  %737 = vmatprep.subr.bf16.mxu1 %v761_v3  ;;  %v204_v14 = vld [vmem:[%s824_s27 + $0x10] sm:$0xff] }
  0x11   : > { %v218_v6 = vld [vmem:[%s824_s27 + $0x80] sm:$0xff]  ;;  %v234_v7 = vpack.c.bf16 %v203_v5, %v202_v4  ;;  %v219_v8 = vld [vmem:[%s824_s27 + $0x88] sm:$0xff]  ;;  %v205_v15 = vld [vmem:[%s824_s27 + $0x18] sm:$0xff] }
  0x12   : > { %v242_v9 = vpack.c.bf16 %v219_v8, %v218_v6  ;;  %v220_v16 = vld [vmem:[%s824_s27 + $0x90] sm:$0xff]  ;;  %v221_v17 = vld [vmem:[%s824_s27 + $0x98] sm:$0xff]  ;;  %v206_v18 = vld [vmem:[%s824_s27 + $0x20] sm:$0xff]  ;;  %v235_v22 = vpack.c.bf16 %v205_v15, %v204_v14 }
  0x13   : > { %702 = vmatprep.mubr.bf16.mxu0 %v234_v7  ;;  %693 = vmatpush3.bf16.msra.mxu0 %v761_v3  ;;  %v207_v19 = vld [vmem:[%s824_s27 + $0x28] sm:$0xff]  ;;  %v222_v20 = vld [vmem:[%s824_s27 + $0xa0] sm:$0xff]  ;;  %v243_v23 = vpack.c.bf16 %v221_v17, %v220_v16  ;;  %v208_v26 = vld [vmem:[%s824_s27 + $0x30] sm:$0xff] }
  0x14   : > { %718 = vmatprep.mubr.bf16.mxu1 %v242_v9  ;;  %745 = vmatpush3.bf16.msra.mxu1 %v761_v3  ;;  %v223_v21 = vld [vmem:[%s824_s27 + $0xa8] sm:$0xff]  ;;  %v236_v24 = vpack.c.bf16 %v207_v19, %v206_v18  ;;  %v209_v27 = vld [vmem:[%s824_s27 + $0x38] sm:$0xff]  ;;  %v224_v28 = vld [vmem:[%s824_s27 + $0xb0] sm:$0xff] }
  0x15   : > { %694 = vmatprep.subr.bf16.mxu0 %v762_v10  ;;  %738 = vmatprep.subr.bf16.mxu1 %v762_v10  ;;  %v244_v25 = vpack.c.bf16 %v223_v21, %v222_v20  ;;  %v225_v29 = vld [vmem:[%s824_s27 + $0xb8] sm:$0xff]  ;;  %v210_v30 = vld [vmem:[%s824_s27 + $0x40] sm:$0xff]  ;;  %v211_v31 = vld [vmem:[%s824_s27 + $0x48] sm:$0xff]  ;;  %v237_v34 = vpack.c.bf16 %v209_v27, %v208_v26 }
  0x16   : > { %v226_v32 = vld [vmem:[%s824_s27 + $0xc0] sm:$0xff]  ;;  %v227_v33 = vld [vmem:[%s824_s27 + $0xc8] sm:$0xff]  ;;  %v245_v35 = vpack.c.bf16 %v225_v29, %v224_v28  ;;  %v238_v36 = vpack.c.bf16 %v211_v31, %v210_v30  ;;  %v212_v38 = vld [vmem:[%s824_s27 + $0x50] sm:$0xff] }
  0x17   : > { %695 = vmatpush3.bf16.msra.mxu0 %v762_v10  ;;  %v246_v37 = vpack.c.bf16 %v227_v33, %v226_v32  ;;  %v213_v39 = vld [vmem:[%s824_s27 + $0x58] sm:$0xff]  ;;  %v228_v40 = vld [vmem:[%s824_s27 + $0xd0] sm:$0xff]  ;;  %v214_v42 = vld [vmem:[%s824_s27 + $0x60] sm:$0xff] }
  0x18   : > { %746 = vmatpush3.bf16.msra.mxu1 %v762_v10  ;;  %696 = vmatprep.subr.bf16.mxu0 %v763_v11  ;;  %v229_v41 = vld [vmem:[%s824_s27 + $0xd8] sm:$0xff]  ;;  %v215_v43 = vld [vmem:[%s824_s27 + $0x68] sm:$0xff]  ;;  %v230_v44 = vld [vmem:[%s824_s27 + $0xe0] sm:$0xff]  ;;  %v239_v46 = vpack.c.bf16 %v213_v39, %v212_v38 }
  0x19   : > { %739 = vmatprep.subr.bf16.mxu1 %v763_v11  ;;  %v231_v45 = vld [vmem:[%s824_s27 + $0xe8] sm:$0xff]  ;;  %v247_v47 = vpack.c.bf16 %v229_v41, %v228_v40  ;;  %v240_v48 = vpack.c.bf16 %v215_v43, %v214_v42  ;;  %v216_v50 = vld [vmem:[%s824_s27 + $0x70] sm:$0xff]  ;;  %v217_v51 = vld [vmem:[%s824_s27 + $0x78] sm:$0xff] }
  0x1a   : > { %v248_v49 = vpack.c.bf16 %v231_v45, %v230_v44  ;;  %v232_v52 = vld [vmem:[%s824_s27 + $0xf0] sm:$0xff]  ;;  %v233_v53 = vld [vmem:[%s824_s27 + $0xf8] sm:$0xff]  ;;  %v241_v54 = vpack.c.bf16 %v217_v51, %v216_v50 }
  0x1b   : > { %697 = vmatpush3.bf16.msra.mxu0 %v763_v11  ;;  %v249_v55 = vpack.c.bf16 %v233_v53, %v232_v52 }
  0x1c   : > { %747 = vmatpush3.bf16.msra.mxu1 %v763_v11  ;;  %698 = vmatprep.subr.bf16.mxu0 %v764_v12 }
  0x1d   : > { %740 = vmatprep.subr.bf16.mxu1 %v764_v12 }
  0x1f   : > { %699 = vmatpush3.bf16.msra.mxu0 %v764_v12 }
  0x20   : > { %748 = vmatpush3.bf16.msra.mxu1 %v764_v12  ;;  %700 = vmatprep.subr.bf16.mxu0 %v765_v13 }
  0x21   : > { %741 = vmatprep.subr.bf16.mxu1 %v765_v13 }
  0x23   : > { %701 = vmatpush3.bf16.msra.mxu0 %v765_v13 }
  0x24   : > { %749 = vmatpush3.bf16.msra.mxu1 %v765_v13 }
  0x26   : > { %703 = vmatmul.mubr.bf16.vlgmr.msra.gmra.mrb[0].mxu0 %v235_v22 }
  0x27   : > { %719 = vmatmul.mubr.bf16.vlgmr.msra.gmra.mrb[0].mxu1 %v243_v23  ;;  %706 = vmatprep.mubr.bf16.mxu0 %v236_v24 }
  0x28   : > { %722 = vmatprep.mubr.bf16.mxu1 %v244_v25 }
  0x2e   : > { %707 = vmatmul.mubr.bf16.gmra.mrb[4].mxu0 %v237_v34 }
  0x2f   : > { %723 = vmatmul.mubr.bf16.gmra.mrb[4].mxu1 %v245_v35  ;;  %710 = vmatprep.mubr.bf16.mxu0 %v238_v36 }
  0x30   : > { %726 = vmatprep.mubr.bf16.mxu1 %v246_v37 }
  0x36   : > { %711 = vmatmul.mubr.bf16.gmra.mrb[8].mxu0 %v239_v46 }
  0x37   : > { %727 = vmatmul.mubr.bf16.gmra.mrb[8].mxu1 %v247_v47  ;;  %714 = vmatprep.mubr.bf16.mxu0 %v240_v48 }
  0x38   : > { %730 = vmatprep.mubr.bf16.mxu1 %v248_v49 }
  0x3e   : > { %715 = vmatmul.mubr.bf16.gmra.mrb[12].mxu0 %v241_v54 }
  0x3f   : > { %731 = vmatmul.mubr.bf16.gmra.mrb[12].mxu1 %v249_v55 }
  0xf9   : > { %v704_v57 = vpop.f32.mrb[0].mxu0 }
  0xfa   : > { %v720_v59 = vpop.f32.mrb[0].mxu1  ;;  %v484_v60 = vmul.f32 %v704_v57, %v876_v56  ;;  %v348_v62 = vpop.f32.mrb[1].mxu0 }
  0xfb   : > { %v500_v61 = vmul.f32 %v720_v59, %v876_v56  ;;  %v412_v63 = vpop.f32.mrb[1].mxu1  ;;  %v482_v0 = vmul.f32 %v876_v56, %v348_v62  ;;  %v705_v2 = vpop.f32.mrb[2].mxu0 }
  0xfc   : > { %v498_v1 = vmul.f32 %v876_v56, %v412_v63  ;;  %v721_v3 = vpop.f32.mrb[2].mxu1  ;;  %v523_v4 = vadd.f32 %v881_v58, %v484_v60  ;;  %v485_v6 = vmul.f32 %v705_v2, %v876_v56  ;;  %v351_v8 = vpop.f32.mrb[3].mxu0 }
  0xfd   : > { %v539_v5 = vadd.f32 %v881_v58, %v500_v61  ;;  %v501_v7 = vmul.f32 %v721_v3, %v876_v56  ;;  %v415_v9 = vpop.f32.mrb[3].mxu1  ;;  %v521_v10 = vadd.f32 %v881_v58, %v482_v0  ;;  %v483_v12 = vmul.f32 %v876_v56, %v351_v8 }
  0xfe   : > { %v537_v11 = vadd.f32 %v881_v58, %v498_v1  ;;  %v499_v13 = vmul.f32 %v876_v56, %v415_v9  ;;  %555 = vst [vmem:[%s890_s20 + $0x10] sm:$0xff] %v523_v4  ;;  %v524_v14 = vadd.f32 %v881_v58, %v485_v6 }
  0xff   : > { %571 = vst [vmem:[%s890_s20 + $0x90] sm:$0xff] %v539_v5  ;;  %v540_v15 = vadd.f32 %v881_v58, %v501_v7  ;;  %553 = vst [vmem:[%s890_s20] sm:$0xff] %v521_v10  ;;  %v522_v16 = vadd.f32 %v881_v58, %v483_v12 }
 0x100   : > { %569 = vst [vmem:[%s890_s20 + $0x80] sm:$0xff] %v537_v11  ;;  %v538_v17 = vadd.f32 %v881_v58, %v499_v13  ;;  %556 = vst [vmem:[%s890_s20 + $0x18] sm:$0xff] %v524_v14 }
 0x101   : > { %572 = vst [vmem:[%s890_s20 + $0x98] sm:$0xff] %v540_v15  ;;  %554 = vst [vmem:[%s890_s20 + $0x8] sm:$0xff] %v522_v16  ;;  %v708_v18 = vpop.f32.mrb[4].mxu0 }
 0x102   : > { %570 = vst [vmem:[%s890_s20 + $0x88] sm:$0xff] %v538_v17  ;;  %v724_v19 = vpop.f32.mrb[4].mxu1  ;;  %v488_v20 = vmul.f32 %v708_v18, %v876_v56  ;;  %v364_v22 = vpop.f32.mrb[5].mxu0 }
 0x103   : > { %v504_v21 = vmul.f32 %v724_v19, %v876_v56  ;;  %v428_v23 = vpop.f32.mrb[5].mxu1  ;;  %v486_v24 = vmul.f32 %v876_v56, %v364_v22  ;;  %v709_v26 = vpop.f32.mrb[6].mxu0 }
 0x104   : > { %v502_v25 = vmul.f32 %v876_v56, %v428_v23  ;;  %v725_v27 = vpop.f32.mrb[6].mxu1  ;;  %v527_v28 = vadd.f32 %v881_v58, %v488_v20  ;;  %v489_v30 = vmul.f32 %v709_v26, %v876_v56  ;;  %v367_v32 = vpop.f32.mrb[7].mxu0 }
 0x105   : > { %v543_v29 = vadd.f32 %v881_v58, %v504_v21  ;;  %v505_v31 = vmul.f32 %v725_v27, %v876_v56  ;;  %v431_v33 = vpop.f32.mrb[7].mxu1  ;;  %v525_v34 = vadd.f32 %v881_v58, %v486_v24  ;;  %v487_v36 = vmul.f32 %v876_v56, %v367_v32 }
 0x106   : > { %v541_v35 = vadd.f32 %v881_v58, %v502_v25  ;;  %v503_v37 = vmul.f32 %v876_v56, %v431_v33  ;;  %559 = vst [vmem:[%s890_s20 + $0x30] sm:$0xff] %v527_v28  ;;  %v528_v38 = vadd.f32 %v881_v58, %v489_v30 }
 0x107   : > { %575 = vst [vmem:[%s890_s20 + $0xb0] sm:$0xff] %v543_v29  ;;  %v544_v39 = vadd.f32 %v881_v58, %v505_v31  ;;  %557 = vst [vmem:[%s890_s20 + $0x20] sm:$0xff] %v525_v34  ;;  %v526_v40 = vadd.f32 %v881_v58, %v487_v36 }
 0x108   : > { %573 = vst [vmem:[%s890_s20 + $0xa0] sm:$0xff] %v541_v35  ;;  %v542_v41 = vadd.f32 %v881_v58, %v503_v37  ;;  %560 = vst [vmem:[%s890_s20 + $0x38] sm:$0xff] %v528_v38 }
 0x109   : > { %576 = vst [vmem:[%s890_s20 + $0xb8] sm:$0xff] %v544_v39  ;;  %558 = vst [vmem:[%s890_s20 + $0x28] sm:$0xff] %v526_v40  ;;  %v712_v42 = vpop.f32.mrb[8].mxu0 }
 0x10a   : > { %574 = vst [vmem:[%s890_s20 + $0xa8] sm:$0xff] %v542_v41  ;;  %v728_v43 = vpop.f32.mrb[8].mxu1  ;;  %v492_v44 = vmul.f32 %v712_v42, %v876_v56  ;;  %v380_v46 = vpop.f32.mrb[9].mxu0 }
 0x10b   : > { %v508_v45 = vmul.f32 %v728_v43, %v876_v56  ;;  %v444_v47 = vpop.f32.mrb[9].mxu1  ;;  %v490_v48 = vmul.f32 %v876_v56, %v380_v46  ;;  %v713_v50 = vpop.f32.mrb[10].mxu0 }
 0x10c   : > { %v506_v49 = vmul.f32 %v876_v56, %v444_v47  ;;  %v729_v51 = vpop.f32.mrb[10].mxu1  ;;  %v531_v52 = vadd.f32 %v881_v58, %v492_v44  ;;  %v493_v54 = vmul.f32 %v713_v50, %v876_v56  ;;  %v383_v57 = vpop.f32.mrb[11].mxu0 }
 0x10d   : > { %v547_v53 = vadd.f32 %v881_v58, %v508_v45  ;;  %v509_v55 = vmul.f32 %v729_v51, %v876_v56  ;;  %v447_v59 = vpop.f32.mrb[11].mxu1  ;;  %v529_v60 = vadd.f32 %v881_v58, %v490_v48  ;;  %v491_v62 = vmul.f32 %v876_v56, %v383_v57 }
 0x10e   : > { %v545_v61 = vadd.f32 %v881_v58, %v506_v49  ;;  %v507_v63 = vmul.f32 %v876_v56, %v447_v59  ;;  %563 = vst [vmem:[%s890_s20 + $0x50] sm:$0xff] %v531_v52  ;;  %v532_v0 = vadd.f32 %v881_v58, %v493_v54 }
 0x10f   : > { %579 = vst [vmem:[%s890_s20 + $0xd0] sm:$0xff] %v547_v53  ;;  %v548_v1 = vadd.f32 %v881_v58, %v509_v55  ;;  %561 = vst [vmem:[%s890_s20 + $0x40] sm:$0xff] %v529_v60  ;;  %v530_v2 = vadd.f32 %v881_v58, %v491_v62 }
 0x110   : > { %577 = vst [vmem:[%s890_s20 + $0xc0] sm:$0xff] %v545_v61  ;;  %v546_v3 = vadd.f32 %v881_v58, %v507_v63  ;;  %564 = vst [vmem:[%s890_s20 + $0x58] sm:$0xff] %v532_v0 }
 0x111   : > { %580 = vst [vmem:[%s890_s20 + $0xd8] sm:$0xff] %v548_v1  ;;  %562 = vst [vmem:[%s890_s20 + $0x48] sm:$0xff] %v530_v2  ;;  %v716_v4 = vpop.f32.mrb[12].mxu0 }
 0x112   : > { %578 = vst [vmem:[%s890_s20 + $0xc8] sm:$0xff] %v546_v3  ;;  %v732_v5 = vpop.f32.mrb[12].mxu1  ;;  %v496_v6 = vmul.f32 %v716_v4, %v876_v56  ;;  %v396_v8 = vpop.f32.mrb[13].mxu0 }
 0x113   : > { %v512_v7 = vmul.f32 %v732_v5, %v876_v56  ;;  %v460_v9 = vpop.f32.mrb[13].mxu1  ;;  %v494_v10 = vmul.f32 %v876_v56, %v396_v8  ;;  %v717_v12 = vpop.f32.mrb[14].mxu0 }
 0x114   : > { %v510_v11 = vmul.f32 %v876_v56, %v460_v9  ;;  %v733_v13 = vpop.f32.mrb[14].mxu1  ;;  %v535_v14 = vadd.f32 %v881_v58, %v496_v6  ;;  %v497_v16 = vmul.f32 %v717_v12, %v876_v56  ;;  %v399_v18 = vpop.f32.mrb[15].mxu0 }
 0x115   : > { %v551_v15 = vadd.f32 %v881_v58, %v512_v7  ;;  %v513_v17 = vmul.f32 %v733_v13, %v876_v56  ;;  %v463_v19 = vpop.f32.mrb[15].mxu1  ;;  %v533_v20 = vadd.f32 %v881_v58, %v494_v10  ;;  %v495_v22 = vmul.f32 %v876_v56, %v399_v18 }
 0x116   : > { %v549_v21 = vadd.f32 %v881_v58, %v510_v11  ;;  %v511_v23 = vmul.f32 %v876_v56, %v463_v19  ;;  %567 = vst [vmem:[%s890_s20 + $0x70] sm:$0xff] %v535_v14  ;;  %v536_v24 = vadd.f32 %v881_v58, %v497_v16 }
 0x117   : > { %583 = vst [vmem:[%s890_s20 + $0xf0] sm:$0xff] %v551_v15  ;;  %v552_v25 = vadd.f32 %v881_v58, %v513_v17  ;;  %565 = vst [vmem:[%s890_s20 + $0x60] sm:$0xff] %v533_v20  ;;  %v534_v26 = vadd.f32 %v881_v58, %v495_v22 }
 0x118   : > { %581 = vst [vmem:[%s890_s20 + $0xe0] sm:$0xff] %v549_v21  ;;  %v550_v27 = vadd.f32 %v881_v58, %v511_v23  ;;  %568 = vst [vmem:[%s890_s20 + $0x78] sm:$0xff] %v536_v24 }
 0x119   : > { %584 = vst [vmem:[%s890_s20 + $0xf8] sm:$0xff] %v552_v25  ;;  %566 = vst [vmem:[%s890_s20 + $0x68] sm:$0xff] %v534_v26 }
 0x11a   : > { %582 = vst [vmem:[%s890_s20 + $0xe8] sm:$0xff] %v550_v27 }
 0x11b PF: > { %s14_s15 = sadd.s32 1, %s772_s15  }
 0x11c   : > { %p11_p4 = scmp.ge.s32.totalorder %s14_s15, 4  }
 0x11e   :  { %13 = sbr.rel (!%p11_p4) target bundleno = 1 (0x1), region = 66 }

// kernel: _lambda_.33
= control target key start
LH: loop header
LB: loop body
LE: loop exit
PB: predicated region body
PF: predicated region fallthrough
CT: control target
= control target key end

     0   :  { %7 = vsyncpa [#allocation3], 0  ;;  %s1349_s9 = smov 0   ;;  %s1739_s0 = inlined_call_operand.vmem [shape: f32[2,22,22], index: 0, kind: input, shape index: {}]   ;;  %s1740_s1 = inlined_call_operand.vmem [shape: f32[50], index: 1, kind: input, shape index: {}]   ;;  %s1741_s2 = inlined_call_operand.vmem [shape: f32[2,16,16], index: 2, kind: output, shape index: {}]  }
   0x1 LB: > { %s1201_s10 = sadd.s32 4294967295, %s1325_s9   ;;  %p1203_p0 = scmp.ge.s32.totalorder %s1325_s9, 1  ;;  %s1325_s9 = sphi %s1349_s9, %s13_s9  }
   0x2   : > { %p91_p1 = scmp.lt.s32.totalorder %s1325_s9, 3  ;;  %s104_s13 = sshll.u32 %s1740_s1, 4  ;;  %s105_s13 = int_to_ptr.vmem [resolvable:$true] %s104_s13 }
   0x3   : > { %p1272_p3 = scmp.eq.s32.totalorder %s1201_s10, 0  ;;  %s1300_s15 = scalar_lea.vmem %s105_s13, 16 }
   0x4   : > { %p1360_p2 = pnand %p1203_p0, %p91_p1  ;;  %p1301_p6 = scmp.ne.s32.totalorder %s105_s13, %s1300_s15 }
   0x5   : > { %p1308_p10 = scmp.lt.s32.totalorder %s105_s13, %s105_s13  ;;  %p1309_p11 = scmp.lt.s32.totalorder %s1300_s15, %s1300_s15 }
   0x6   : > { %p1268_p4 = pneg %p1360_p2 }
   0x7   : > { %p1310_p12 = por %p1309_p11, %p1308_p10 }
   0x8   : > { %p1269_p5 = pnand %p1272_p3, %p1268_p4 }
   0xa   : > { %p1302_p7 = pneg %p1269_p5 }
   0xc   : > { %p1303_p8 = pnand %p1302_p7, %p1301_p6 }
   0xe   : > { %p1304_p9 = pneg %p1303_p8 }
  0x10   : > { %p1311_p13 = pnand %p1310_p12, %p1304_p9 }
  0x12   : > { %1314 = shalt.err (!%p1311_p13)
}
  0x13   : > { %s1327_s16 = smov [#allocation2]   ;;  %125 = sbr.rel (%p1360_p2) target bundleno = 351 (0x15f), region = 28 }
  0x14   : > { %1271 = dma.vmem_to_smem (!%p1269_p5), %s105_s13, 16, %s1327_s16, [#allocation3]  }
  0x1a   : > { %1320 = dma.done.wait (%p1272_p3), [#allocation3], 16  }
  0x1b   : > { %1322 = vsyncadd (%p1272_p3), [#allocation3], 4294967280 }
  0x1c   : > { %131 = sfence }
  0x1d   : > { %p148_p0 = scmp.lt.s32.totalorder %s1201_s10, 1  ;;  %s1212_s17 = sld [smem:[#allocation2 + $0x2]]  ;;  %vm259_vm0 = vcmask 1046528   ;;  %vm403_vm1 = vcmask 1045504   ;;  %vm547_vm2 = vcmask 1044480   ;;  %vm691_vm3 = vcmask 1043456  }
  0x1e   : > { %s1211_s18 = sld [smem:[#allocation2 + $0x1]]  ;;  %s1213_s19 = sld [smem:[#allocation2 + $0x3]]  ;;  %vm835_vm4 = vcmask 1042432   ;;  %vm979_vm5 = vcmask 1041408   ;;  %vm1131_vm6 = vcmask 130048  }
  0x1f   : > { %s1744_s10 = smov (!%p148_p0, %s1201_s10), 1  ;;  %s1214_s24 = sld [smem:[#allocation2 + $0x4]] }
  0x20   : > { %s1263_s20 = smul.u32 24, %s1744_s10  ;;  %s1328_s25 = smov 126  }
  0x21   : > { %s1329_s26 = smov 127   ;;  %s1215_s27 = sld [smem:[#allocation2 + $0x5]] }
  0x22   : > { %s1377_s23 = scalar_lea.vmem %s1739_s0, %s1263_s20  ;;  %s1218_s28 = sld [smem:[#allocation2 + $0x8]] }
  0x23   : > { %v182_v0 = vstv %s1212_s17  ;;  %v1380_v1 = vld [vmem:[%s1377_s23] sm:$0xff]  ;;  %v1383_v2 = vld [vmem:[%s1377_s23 + $0x8] sm:$0xff]  ;;  %s1216_s29 = sld [smem:[#allocation2 + $0x6]]  ;;  %s1219_s30 = sld [smem:[#allocation2 + $0x9]]  ;;  %v1400_v15 = vld [vmem:[%s1377_s23 + $0x10] sm:$0x3f] }
  0x24   : > { %v168_v3 = vstv %s1211_s18  ;;  %v183_v4 = vmul.f32 %v182_v0, %v1380_v1  ;;  %v184_v6 = vmul.f32 %v182_v0, %v1383_v2  ;;  %v196_v8 = vstv %s1213_s19  ;;  %s1330_s3 = smov 125   ;;  %s1220_s4 = sld [smem:[#allocation2 + $0xa]] }
  0x25   : > { %v169_v5 = vmul.f32 %v168_v3, %v1380_v1  ;;  %v170_v7 = vmul.f32 %v168_v3, %v1383_v2  ;;  %v198_v9 = vmul.f32 %v196_v8, %v1383_v2  ;;  %v197_v10 = vmul.f32 %v196_v8, %v1380_v1  ;;  %s1331_s5 = smov 124   ;;  %s1221_s6 = sld [smem:[#allocation2 + $0xb]] }
  0x26   : > { %187 = vrot.lane.b32.xlu1 %v183_v4, %s1328_s25  ;;  %v210_v11 = vstv %s1214_s24  ;;  %s1332_s7 = smov 123   ;;  %s1222_s8 = sld [smem:[#allocation2 + $0xc]] }
  0x27   : > { %173 = vrot.lane.b32.xlu0 %v169_v5, %s1329_s26  ;;  %v212_v12 = vmul.f32 %v210_v11, %v1383_v2  ;;  %v211_v13 = vmul.f32 %v210_v11, %v1380_v1  ;;  %v224_v14 = vstv %s1215_s27  ;;  %s1333_s11 = smov 122   ;;  %s1223_s12 = sld [smem:[#allocation2 + $0xd]] }
  0x28   : > { %v270_v16 = vstv %s1218_s28  ;;  %v226_v17 = vmul.f32 %v224_v14, %v1383_v2  ;;  %v225_v18 = vmul.f32 %v224_v14, %v1380_v1  ;;  %s1225_s13 = sld [smem:[#allocation2 + $0xf]]  ;;  %s1226_s14 = sld [smem:[#allocation2 + $0x10]] }
  0x29   : > { %v238_v19 = vstv %s1216_s29  ;;  %v272_v20 = vmul.f32 %v270_v16, %v1383_v2  ;;  %v273_v21 = vmul.f32 %v270_v16, %v1400_v15  ;;  %v271_v22 = vmul.f32 %v270_v16, %v1380_v1  ;;  %s1227_s15 = sld [smem:[#allocation2 + $0x11]]  ;;  %s1228_s16 = sld [smem:[#allocation2 + $0x12]] }
  0x2a   : > { %189 = vrot.lane.b32.xlu1 %v184_v6, %s1328_s25  ;;  %v291_v23 = vstv %s1219_s30  ;;  %v240_v24 = vmul.f32 %v238_v19, %v1383_v2  ;;  %v239_v25 = vmul.f32 %v238_v19, %v1380_v1  ;;  %v312_v29 = vstv %s1220_s4  ;;  %s1229_s17 = sld [smem:[#allocation2 + $0x13]]  ;;  %s1230_s18 = sld [smem:[#allocation2 + $0x14]] }
  0x2b   : > { %175 = vrot.lane.b32.xlu0 %v170_v7, %s1329_s26  ;;  %v293_v26 = vmul.f32 %v291_v23, %v1383_v2  ;;  %v294_v27 = vmul.f32 %v291_v23, %v1400_v15  ;;  %v292_v28 = vmul.f32 %v291_v23, %v1380_v1  ;;  %v278_v30 = vrot.slane %v272_v20, 1  ;;  %s1232_s19 = sld [smem:[#allocation2 + $0x16]]  ;;  %s1233_s20 = sld [smem:[#allocation2 + $0x17]] }
  0x2c   : > { %v280_v31 = vrot.slane %v273_v21, 1  ;;  %v277_v32 = vrot.slane %v271_v22, 1  ;;  %v314_v33 = vmul.f32 %v312_v29, %v1383_v2  ;;  %v315_v34 = vmul.f32 %v312_v29, %v1400_v15  ;;  %s1234_s21 = sld [smem:[#allocation2 + $0x18]]  ;;  %s1235_s22 = sld [smem:[#allocation2 + $0x19]] }
  0x2d   : > { %v299_v35 = vrot.slane %v293_v26, 1  ;;  %v301_v36 = vrot.slane %v294_v27, 1  ;;  %v298_v37 = vrot.slane %v292_v28, 1  ;;  %v313_v40 = vmul.f32 %v312_v29, %v1380_v1  ;;  %s1236_s24 = sld [smem:[#allocation2 + $0x1a]]  ;;  %s1237_s27 = sld [smem:[#allocation2 + $0x1b]] }
  0x2e   : > { %203 = vrot.lane.b32.xlu1 %v198_v9, %s1330_s3  ;;  %v281_v38 = vsel %vm259_vm0, %v278_v30, %v280_v31  ;;  %v279_v39 = vsel %vm259_vm0, %v277_v32, %v278_v30  ;;  %v333_v41 = vstv %s1221_s6  ;;  %v320_v42 = vrot.slane %v314_v33, 1  ;;  %s1239_s28 = sld [smem:[#allocation2 + $0x1d]]  ;;  %s1240_s29 = sld [smem:[#allocation2 + $0x1e]] }
  0x2f   : > { %201 = vrot.lane.b32.xlu0 %v197_v10, %s1330_s3  ;;  %v322_v43 = vrot.slane %v315_v34, 1  ;;  %v335_v44 = vmul.f32 %v333_v41, %v1383_v2  ;;  %v336_v45 = vmul.f32 %v333_v41, %v1400_v15  ;;  %v334_v46 = vmul.f32 %v333_v41, %v1380_v1  ;;  %s1241_s30 = sld [smem:[#allocation2 + $0x1f]]  ;;  %s1242_s4 = sld [smem:[#allocation2 + $0x20]] }
  0x30   : > { %v302_v47 = vsel %vm259_vm0, %v299_v35, %v301_v36  ;;  %v300_v48 = vsel %vm259_vm0, %v298_v37, %v299_v35  ;;  %v319_v49 = vrot.slane %v313_v40, 1  ;;  %v354_v50 = vstv %s1222_s8  ;;  %s1243_s6 = sld [smem:[#allocation2 + $0x21]]  ;;  %s1244_s8 = sld [smem:[#allocation2 + $0x22]] }
  0x31   : > { %v323_v51 = vsel %vm259_vm0, %v320_v42, %v322_v43  ;;  %v341_v52 = vrot.slane %v335_v44, 1  ;;  %v343_v53 = vrot.slane %v336_v45, 1  ;;  %v340_v54 = vrot.slane %v334_v46, 1 }
  0x32   : > { %217 = vrot.lane.b32.xlu1 %v212_v12, %s1331_s5  ;;  %v375_v55 = vstv %s1223_s12  ;;  %v321_v56 = vsel %vm259_vm0, %v319_v49, %v320_v42  ;;  %v356_v57 = vmul.f32 %v354_v50, %v1383_v2  ;;  %v357_v58 = vmul.f32 %v354_v50, %v1400_v15  ;;  %s1246_s12 = sld [smem:[#allocation2 + $0x24]] }
  0x33   : > { %215 = vrot.lane.b32.xlu0 %v211_v13, %s1331_s5  ;;  %v355_v59 = vmul.f32 %v354_v50, %v1380_v1  ;;  %v377_v60 = vmul.f32 %v375_v55, %v1383_v2  ;;  %v378_v61 = vmul.f32 %v375_v55, %v1400_v15  ;;  %v344_v62 = vsel %vm259_vm0, %v341_v52, %v343_v53 }
  0x34   : > { %v342_v63 = vsel %vm259_vm0, %v340_v54, %v341_v52  ;;  %v376_v0 = vmul.f32 %v375_v55, %v1380_v1  ;;  %v362_v3 = vrot.slane %v356_v57, 1  ;;  %v364_v4 = vrot.slane %v357_v58, 1 }
  0x35   : > { %v361_v5 = vrot.slane %v355_v59, 1  ;;  %v414_v6 = vstv %s1225_s13  ;;  %v383_v7 = vrot.slane %v377_v60, 1  ;;  %v385_v8 = vrot.slane %v378_v61, 1  ;;  %s1558_s13 = sld [smem:[#allocation2]] }
  0x36   : > { %231 = vrot.lane.b32.xlu1 %v226_v17, %s1332_s7  ;;  %v382_v9 = vrot.slane %v376_v0, 1  ;;  %v416_v10 = vmul.f32 %v414_v6, %v1383_v2  ;;  %v417_v11 = vmul.f32 %v414_v6, %v1400_v15  ;;  %v435_v12 = vstv %s1226_s14  ;;  %s1247_s14 = sld [smem:[#allocation2 + $0x25]] }
  0x37   : > { %229 = vrot.lane.b32.xlu0 %v225_v18, %s1332_s7  ;;  %v365_v13 = vsel %vm259_vm0, %v362_v3, %v364_v4  ;;  %v363_v14 = vsel %vm259_vm0, %v361_v5, %v362_v3  ;;  %v415_v16 = vmul.f32 %v414_v6, %v1380_v1  ;;  %v437_v17 = vmul.f32 %v435_v12, %v1383_v2 }
  0x38   : > { %v386_v18 = vsel %vm259_vm0, %v383_v7, %v385_v8  ;;  %v384_v19 = vsel %vm259_vm0, %v382_v9, %v383_v7  ;;  %v422_v20 = vrot.slane %v416_v10, 2  ;;  %v424_v21 = vrot.slane %v417_v11, 2 }
  0x39   : > { %v421_v22 = vrot.slane %v415_v16, 2  ;;  %v438_v23 = vmul.f32 %v435_v12, %v1400_v15  ;;  %v443_v26 = vrot.slane %v437_v17, 2  ;;  %v477_v30 = vstv %s1228_s16  ;;  %s1580_s16 = sld [smem:[#allocation2 + $0x27]] }
  0x3a   : > { %245 = vrot.lane.b32.xlu1 %v240_v24, %s1333_s11  ;;  %v436_v24 = vmul.f32 %v435_v12, %v1380_v1  ;;  %v425_v27 = vsel %vm403_vm1, %v422_v20, %v424_v21  ;;  %v479_v35 = vmul.f32 %v477_v30, %v1383_v2  ;;  %v480_v36 = vmul.f32 %v477_v30, %v1400_v15 }
  0x3b   : > { %243 = vrot.lane.b32.xlu0 %v239_v25, %s1333_s11  ;;  %v456_v25 = vstv %s1227_s15  ;;  %v423_v31 = vsel %vm403_vm1, %v421_v22, %v422_v20  ;;  %v445_v32 = vrot.slane %v438_v23, 2  ;;  %v498_v43 = vstv %s1229_s17  ;;  %s1248_s15 = sld [smem:[#allocation2 + $0x26]]  ;;  %s1585_s17 = sld [smem:[#allocation2 + $0x28]] }
  0x3c   : > { %v458_v28 = vmul.f32 %v456_v25, %v1383_v2  ;;  %v459_v29 = vmul.f32 %v456_v25, %v1400_v15  ;;  %v442_v33 = vrot.slane %v436_v24, 2  ;;  %v457_v34 = vmul.f32 %v456_v25, %v1380_v1 }
  0x3d   : > { %v446_v40 = vsel %vm403_vm1, %v443_v26, %v445_v32  ;;  %v485_v44 = vrot.slane %v479_v35, 2  ;;  %v487_v45 = vrot.slane %v480_v36, 2  ;;  %v500_v50 = vmul.f32 %v498_v43, %v1383_v2 }
  0x3e   : > { %284 = vrot.lane.b32.xlu1 %v281_v38, %s1329_s26  ;;  %v464_v37 = vrot.slane %v458_v28, 2  ;;  %v466_v38 = vrot.slane %v459_v29, 2  ;;  %v444_v41 = vsel %vm403_vm1, %v442_v33, %v443_v26  ;;  %v463_v42 = vrot.slane %v457_v34, 2 }
  0x3f   : > { %282 = vrot.lane.b32.xlu0 %v279_v39, %s1329_s26  ;;  %v478_v39 = vmul.f32 %v477_v30, %v1380_v1  ;;  %v499_v52 = vmul.f32 %v498_v43, %v1380_v1  ;;  %v488_v53 = vsel %vm403_vm1, %v485_v44, %v487_v45  ;;  %v558_v57 = vstv %s1232_s19  ;;  %s1603_s19 = sld [smem:[#allocation2 + $0x29]] }
  0x40   : > { %v467_v46 = vsel %vm403_vm1, %v464_v37, %v466_v38  ;;  %v465_v49 = vsel %vm403_vm1, %v463_v42, %v464_v37  ;;  %v506_v58 = vrot.slane %v500_v50, 2  ;;  %v561_v3 = vmul.f32 %v558_v57, %v1400_v15 }
  0x41   : > { %v505_v60 = vrot.slane %v499_v52, 2  ;;  %v579_v4 = vstv %s1233_s20  ;;  %v559_v8 = vmul.f32 %v558_v57, %v1380_v1  ;;  %v642_v32 = vstv %s1236_s24  ;;  %s1607_s20 = sld [smem:[#allocation2 + $0x2b]]  ;;  %s1646_s24 = sld [smem:[#allocation2 + $0x2e]] }
  0x42   : > { %305 = vrot.lane.b32.xlu1 %v302_v47, %s1328_s25  ;;  %v484_v47 = vrot.slane %v478_v39, 2  ;;  %v581_v11 = vmul.f32 %v579_v4, %v1383_v2  ;;  %v582_v12 = vmul.f32 %v579_v4, %v1400_v15  ;;  %v568_v16 = vrot.slane %v561_v3, 3 }
  0x43   : > { %303 = vrot.lane.b32.xlu0 %v300_v48, %s1328_s25  ;;  %v519_v48 = vstv %s1230_s18  ;;  %v507_v6 = vsel %vm403_vm1, %v505_v60, %v506_v58  ;;  %v565_v17 = vrot.slane %v559_v8, 3  ;;  %v644_v37 = vmul.f32 %v642_v32, %v1383_v2  ;;  %s1594_s18 = sld [smem:[#allocation2 + $0x7]] }
  0x44   : > { %v486_v54 = vsel %vm403_vm1, %v484_v47, %v485_v44  ;;  %v521_v55 = vmul.f32 %v519_v48, %v1383_v2  ;;  %v520_v61 = vmul.f32 %v519_v48, %v1380_v1  ;;  %v587_v20 = vrot.slane %v581_v11, 3 }
  0x45   : > { %v589_v21 = vrot.slane %v582_v12, 3  ;;  %v643_v45 = vmul.f32 %v642_v32, %v1380_v1  ;;  %v650_v47 = vrot.slane %v644_v37, 3 }
  0x46   : > { %326 = vrot.lane.b32.xlu1 %v323_v51, %s1330_s3  ;;  %v501_v51 = vmul.f32 %v498_v43, %v1400_v15  ;;  %v526_v7 = vrot.slane %v520_v61, 2 }
  0x47   : > { %324 = vrot.lane.b32.xlu0 %v321_v56, %s1330_s3  ;;  %v522_v56 = vmul.f32 %v519_v48, %v1400_v15  ;;  %v590_v29 = vsel %vm547_vm2, %v587_v20, %v589_v21 }
  0x48   : > { %v508_v59 = vrot.slane %v501_v51, 2 }
  0x49   : > { %v529_v0 = vrot.slane %v522_v56, 2 }
  0x4a   : > { %347 = vrot.lane.b32.xlu1 %v344_v62, %s1331_s5  ;;  %v560_v62 = vmul.f32 %v558_v57, %v1383_v2  ;;  %v509_v5 = vsel %vm403_vm1, %v506_v58, %v508_v59 }
  0x4b   : > { %345 = vrot.lane.b32.xlu0 %v342_v63, %s1331_s5  ;;  %v527_v63 = vrot.slane %v521_v55, 2 }
  0x4c   : > { %v566_v9 = vrot.slane %v560_v62, 3 }
  0x4d   : > { %v530_v10 = vsel %vm403_vm1, %v527_v63, %v529_v0 }
  0x4e   : > { %368 = vrot.lane.b32.xlu1 %v365_v13, %s1332_s7  ;;  %v600_v13 = vstv %s1234_s21  ;;  %v569_v24 = vsel %vm547_vm2, %v566_v9, %v568_v16  ;;  %v567_v25 = vsel %vm547_vm2, %v565_v17, %v566_v9  ;;  %v765_v16 = vstv %s1242_s4  ;;  %s1622_s21 = sld [smem:[#allocation2 + $0x2c]] }
  0x4f   : > { %366 = vrot.lane.b32.xlu0 %v363_v14, %s1332_s7  ;;  %v528_v14 = vsel %vm403_vm1, %v526_v7, %v527_v63  ;;  %v603_v22 = vmul.f32 %v600_v13, %v1400_v15  ;;  %v601_v23 = vmul.f32 %v600_v13, %v1380_v1  ;;  %v723_v63 = vstv %s1240_s29  ;;  %s1224_s29 = sld [smem:[#allocation2 + $0xe]] }
  0x50   : > { %v726_v9 = vmul.f32 %v723_v63, %v1400_v15 }
  0x51   : > { %v610_v30 = vrot.slane %v603_v22, 3  ;;  %v767_v22 = vmul.f32 %v765_v16, %v1383_v2 }
  0x52   : > { %389 = vrot.lane.b32.xlu1 %v386_v18, %s1333_s11  ;;  %v580_v18 = vmul.f32 %v579_v4, %v1380_v1  ;;  %v733_v17 = vrot.slane %v726_v9, 4 }
  0x53   : > { %387 = vrot.lane.b32.xlu0 %v384_v19, %s1333_s11  ;;  %v602_v19 = vmul.f32 %v600_v13, %v1383_v2 }
  0x54   : > { %v586_v26 = vrot.slane %v580_v18, 3 }
  0x55   : > { %v608_v28 = vrot.slane %v602_v19, 3 }
  0x56   : > { %428 = vrot.lane.b32.xlu1 %v425_v27, %s1329_s26  ;;  %v621_v27 = vstv %s1235_s22  ;;  %v588_v33 = vsel %vm547_vm2, %v586_v26, %v587_v20  ;;  %s1637_s22 = sld [smem:[#allocation2 + $0x2d]] }
  0x57   : > { %426 = vrot.lane.b32.xlu0 %v423_v31, %s1329_s26  ;;  %v607_v31 = vrot.slane %v601_v23, 3  ;;  %v623_v34 = vmul.f32 %v621_v27, %v1383_v2  ;;  %v624_v35 = vmul.f32 %v621_v27, %v1400_v15  ;;  %v622_v36 = vmul.f32 %v621_v27, %v1380_v1 }
  0x58   : > { %v611_v38 = vsel %vm547_vm2, %v608_v28, %v610_v30  ;;  %v768_v23 = vmul.f32 %v765_v16, %v1400_v15 }
  0x59   : > { %v609_v39 = vsel %vm547_vm2, %v607_v31, %v608_v28  ;;  %v629_v42 = vrot.slane %v623_v34, 3  ;;  %v631_v43 = vrot.slane %v624_v35, 3  ;;  %v628_v44 = vrot.slane %v622_v36, 3 }
  0x5a   : > { %449 = vrot.lane.b32.xlu1 %v446_v40, %s1328_s25  ;;  %v645_v40 = vmul.f32 %v642_v32, %v1400_v15  ;;  %v773_v32 = vrot.slane %v767_v22, 4 }
  0x5b   : > { %447 = vrot.lane.b32.xlu0 %v444_v41, %s1328_s25  ;;  %v663_v41 = vstv %s1237_s27  ;;  %v632_v51 = vsel %vm547_vm2, %v629_v42, %v631_v43  ;;  %v630_v52 = vsel %vm547_vm2, %v628_v44, %v629_v42  ;;  %s1257_s27 = sld [smem:[#allocation2 + $0x2f]] }
  0x5c   : > { %v652_v48 = vrot.slane %v645_v40, 3  ;;  %v666_v50 = vmul.f32 %v663_v41, %v1400_v15 }
  0x5e   : > { %470 = vrot.lane.b32.xlu1 %v467_v46, %s1330_s3  ;;  %v702_v46 = vstv %s1239_s28  ;;  %v653_v56 = vsel %vm547_vm2, %v650_v47, %v652_v48  ;;  %v673_v61 = vrot.slane %v666_v50, 3  ;;  %s1258_s28 = sld [smem:[#allocation2 + $0x30]] }
  0x5f   : > { %468 = vrot.lane.b32.xlu0 %v465_v49, %s1330_s3  ;;  %v665_v49 = vmul.f32 %v663_v41, %v1383_v2  ;;  %v704_v55 = vmul.f32 %v702_v46, %v1383_v2  ;;  %v705_v58 = vmul.f32 %v702_v46, %v1400_v15  ;;  %v703_v59 = vmul.f32 %v702_v46, %v1380_v1 }
  0x61   : > { %v671_v57 = vrot.slane %v665_v49, 3  ;;  %v710_v0 = vrot.slane %v704_v55, 4  ;;  %v712_v3 = vrot.slane %v705_v58, 4  ;;  %v709_v4 = vrot.slane %v703_v59, 4 }
  0x62   : > { %491 = vrot.lane.b32.xlu1 %v488_v53, %s1331_s5  ;;  %v649_v53 = vrot.slane %v643_v45, 3  ;;  %v162_v49 = vstv %s1558_s13 }
  0x63   : > { %489 = vrot.lane.b32.xlu0 %v486_v54, %s1331_s5  ;;  %v664_v54 = vmul.f32 %v663_v41, %v1380_v1  ;;  %v674_v7 = vsel %vm547_vm2, %v671_v57, %v673_v61  ;;  %v713_v12 = vsel %vm691_vm3, %v710_v0, %v712_v3  ;;  %v711_v13 = vsel %vm691_vm3, %v709_v4, %v710_v0 }
  0x64   : > { %v651_v60 = vsel %vm547_vm2, %v649_v53, %v650_v47  ;;  %v846_v47 = vstv %s1246_s12  ;;  %v867_v53 = vstv %s1247_s14  ;;  %v163_v58 = vmul.f32 %v162_v49, %v1380_v1 }
  0x65   : > { %v670_v62 = vrot.slane %v664_v54, 3  ;;  %v869_v59 = vmul.f32 %v867_v53, %v1383_v2 }
  0x66   : > { %512 = vrot.lane.b32.xlu1 %v509_v5, %s1332_s7  ;;  %v725_v5 = vmul.f32 %v723_v63, %v1383_v2 }
  0x67   : > { %510 = vrot.lane.b32.xlu0 %v507_v6, %s1332_s7  ;;  %v744_v6 = vstv %s1241_s30  ;;  %v672_v8 = vsel %vm547_vm2, %v670_v62, %v671_v57  ;;  %v847_v57 = vmul.f32 %v846_v47, %v1380_v1 }
  0x68   : > { %v746_v11 = vmul.f32 %v744_v6, %v1383_v2  ;;  %v747_v19 = vmul.f32 %v744_v6, %v1400_v15  ;;  %v745_v20 = vmul.f32 %v744_v6, %v1380_v1 }
  0x69   : > { %v853_v4 = vrot.slane %v847_v57, 5  ;;  %v990_v57 = vstv %s1607_s20 }
  0x6a   : > { %533 = vrot.lane.b32.xlu1 %v530_v10, %s1333_s11  ;;  %v724_v10 = vmul.f32 %v723_v63, %v1380_v1  ;;  %v752_v21 = vrot.slane %v746_v11, 4  ;;  %v754_v28 = vrot.slane %v747_v19, 4  ;;  %v888_v63 = vstv %s1248_s15 }
  0x6b   : > { %531 = vrot.lane.b32.xlu0 %v528_v14, %s1333_s11  ;;  %v731_v14 = vrot.slane %v725_v5, 4  ;;  %v868_v5 = vmul.f32 %v867_v53, %v1380_v1 }
  0x6c   : > { %v730_v18 = vrot.slane %v724_v10, 4  ;;  %v755_v36 = vsel %vm691_vm3, %v752_v21, %v754_v28  ;;  %v875_v10 = vrot.slane %v869_v59, 5 }
  0x6d   : > { %v734_v26 = vsel %vm691_vm3, %v731_v14, %v733_v17  ;;  %v874_v19 = vrot.slane %v868_v5, 5 }
  0x6e   : > { %572 = vrot.lane.b32.xlu1 %v569_v24, %s1329_s26  ;;  %v766_v24 = vmul.f32 %v765_v16, %v1380_v1  ;;  %v732_v27 = vsel %vm691_vm3, %v730_v18, %v731_v14  ;;  %v891_v14 = vmul.f32 %v888_v63, %v1400_v15  ;;  %v889_v16 = vmul.f32 %v888_v63, %v1380_v1 }
  0x6f   : > { %570 = vrot.lane.b32.xlu0 %v567_v25, %s1329_s26  ;;  %v786_v25 = vstv %s1243_s6 }
  0x70   : > { %v788_v30 = vmul.f32 %v786_v25, %v1383_v2  ;;  %v789_v31 = vmul.f32 %v786_v25, %v1400_v15  ;;  %v772_v34 = vrot.slane %v766_v24, 4  ;;  %v787_v35 = vmul.f32 %v786_v25, %v1380_v1 }
  0x71   : > { %v930_v25 = vstv %s1585_s17  ;;  %v895_v28 = vrot.slane %v889_v16, 5 }
  0x72   : > { %593 = vrot.lane.b32.xlu1 %v590_v29, %s1328_s25  ;;  %v751_v29 = vrot.slane %v745_v20, 4  ;;  %v796_v40 = vrot.slane %v789_v31, 4  ;;  %v774_v42 = vsel %vm691_vm3, %v772_v34, %v773_v32  ;;  %v793_v43 = vrot.slane %v787_v35, 4 }
  0x73   : > { %591 = vrot.lane.b32.xlu0 %v588_v33, %s1328_s25  ;;  %v775_v33 = vrot.slane %v768_v23, 4  ;;  %v909_v20 = vstv %s1580_s16  ;;  %v876_v31 = vsel %vm835_vm4, %v874_v19, %v875_v10 }
  0x74   : > { %v753_v37 = vsel %vm691_vm3, %v751_v29, %v752_v21  ;;  %v911_v29 = vmul.f32 %v909_v20, %v1383_v2 }
  0x75   : > { %v776_v41 = vsel %vm691_vm3, %v773_v32, %v775_v33  ;;  %v912_v32 = vmul.f32 %v909_v20, %v1400_v15  ;;  %v910_v33 = vmul.f32 %v909_v20, %v1380_v1 }
  0x76   : > { %614 = vrot.lane.b32.xlu1 %v611_v38, %s1330_s3  ;;  %v807_v38 = vstv %s1244_s8 }
  0x77   : > { %612 = vrot.lane.b32.xlu0 %v609_v39, %s1330_s3  ;;  %v794_v39 = vrot.slane %v788_v30, 4  ;;  %v809_v44 = vmul.f32 %v807_v38, %v1383_v2  ;;  %v810_v45 = vmul.f32 %v807_v38, %v1400_v15  ;;  %v808_v46 = vmul.f32 %v807_v38, %v1380_v1 }
  0x79   : > { %v797_v48 = vsel %vm691_vm3, %v794_v39, %v796_v40  ;;  %v795_v50 = vsel %vm691_vm3, %v793_v43, %v794_v39  ;;  %v815_v54 = vrot.slane %v809_v44, 4  ;;  %v817_v55 = vrot.slane %v810_v45, 4 }
  0x7a   : > { %635 = vrot.lane.b32.xlu1 %v632_v51, %s1331_s5  ;;  %v848_v51 = vmul.f32 %v846_v47, %v1383_v2  ;;  %v252_v39 = vstv %s1594_s18  ;;  %v933_v40 = vmul.f32 %v930_v25, %v1400_v15  ;;  %v917_v43 = vrot.slane %v911_v29, 5 }
  0x7b   : > { %633 = vrot.lane.b32.xlu0 %v630_v52, %s1331_s5  ;;  %v849_v52 = vmul.f32 %v846_v47, %v1400_v15  ;;  %v818_v0 = vsel %vm691_vm3, %v815_v54, %v817_v55  ;;  %v919_v44 = vrot.slane %v912_v32, 5  ;;  %v916_v45 = vrot.slane %v910_v33, 5 }
  0x7c   : > { %v854_v61 = vrot.slane %v848_v51, 5  ;;  %v951_v47 = vstv %s1603_s19  ;;  %v255_v51 = vmul.f32 %v252_v39, %v1400_v15 }
  0x7d   : > { %v856_v62 = vrot.slane %v849_v52, 5  ;;  %v253_v52 = vmul.f32 %v252_v39, %v1380_v1  ;;  %v954_v59 = vmul.f32 %v951_v47, %v1400_v15 }
  0x7e   : > { %656 = vrot.lane.b32.xlu1 %v653_v56, %s1332_s7  ;;  %v814_v56 = vrot.slane %v808_v46, 4  ;;  %v855_v18 = vsel %vm835_vm4, %v853_v4, %v854_v61  ;;  %v931_v46 = vmul.f32 %v930_v25, %v1380_v1  ;;  %v263_v5 = vrot.slane %v255_v51, 1 }
  0x7f   : > { %654 = vrot.lane.b32.xlu0 %v651_v60, %s1332_s7  ;;  %v870_v60 = vmul.f32 %v867_v53, %v1400_v15 }
  0x80   : > { %v816_v3 = vsel %vm691_vm3, %v814_v56, %v815_v54  ;;  %v940_v56 = vrot.slane %v933_v40, 5 }
  0x81   : > { %v877_v11 = vrot.slane %v870_v60, 5  ;;  %v920_v60 = vsel %vm835_vm4, %v917_v43, %v919_v44 }
  0x82   : > { %677 = vrot.lane.b32.xlu1 %v674_v7, %s1333_s11 }
  0x83   : > { %675 = vrot.lane.b32.xlu0 %v672_v8, %s1333_s11  ;;  %v164_v8 = vmul.f32 %v162_v49, %v1383_v2  ;;  %v878_v24 = vsel %vm835_vm4, %v875_v10, %v877_v11  ;;  %v961_v11 = vrot.slane %v954_v59, 5 }
  0x86   : > { %716 = vrot.lane.b32.xlu1 %v713_v12, %s1329_s26  ;;  %v890_v12 = vmul.f32 %v888_v63, %v1383_v2  ;;  %v952_v63 = vmul.f32 %v951_v47, %v1380_v1 }
  0x87   : > { %714 = vrot.lane.b32.xlu0 %v711_v13, %s1329_s26  ;;  %v857_v13 = vsel %vm835_vm4, %v854_v61, %v856_v62  ;;  %v918_v61 = vsel %vm835_vm4, %v916_v45, %v917_v43  ;;  %v937_v62 = vrot.slane %v931_v46, 5 }
  0x8a   : > { %737 = vrot.lane.b32.xlu1 %v734_v26, %s1328_s25  ;;  %v896_v26 = vrot.slane %v890_v12, 5  ;;  %v991_v12 = vmul.f32 %v990_v57, %v1380_v1 }
  0x8b   : > { %735 = vrot.lane.b32.xlu0 %v732_v27, %s1328_s25  ;;  %v898_v27 = vrot.slane %v891_v14, 5 }
  0x8c   : > { %v997_v29 = vrot.slane %v991_v12, 6 }
  0x8e   : > { %758 = vrot.lane.b32.xlu1 %v755_v36, %s1330_s3  ;;  %v932_v36 = vmul.f32 %v930_v25, %v1383_v2 }
  0x8f   : > { %756 = vrot.lane.b32.xlu0 %v753_v37, %s1330_s3 }
  0x90   : > { %v938_v53 = vrot.slane %v932_v36, 5 }
  0x92   : > { %779 = vrot.lane.b32.xlu1 %v776_v41, %s1331_s5  ;;  %v899_v41 = vsel %vm835_vm4, %v896_v26, %v898_v27 }
  0x93   : > { %777 = vrot.lane.b32.xlu0 %v774_v42, %s1331_s5  ;;  %v897_v42 = vsel %vm835_vm4, %v895_v28, %v896_v26 }
  0x96   : > { %800 = vrot.lane.b32.xlu1 %v797_v48, %s1332_s7 }
  0x97   : > { %798 = vrot.lane.b32.xlu0 %v795_v50, %s1332_s7  ;;  %v254_v50 = vmul.f32 %v252_v39, %v1383_v2 }
  0x98   : > { %v188_v6 = vpop.permute.xlu1 %187 }
  0x99   : > { %v174_v7 = vpop.permute.xlu0 %173  ;;  %v261_v4 = vrot.slane %v254_v50, 1 }
  0x9a   : > { %v179_v9 = vadd.f32 %v174_v7, %v163_v58  ;;  %821 = vrot.lane.b32.xlu1 %v818_v0, %s1333_s11  ;;  %v953_v58 = vmul.f32 %v951_v47, %v1383_v2  ;;  %v992_v7 = vmul.f32 %v990_v57, %v1383_v2 }
  0x9b   : > { %819 = vrot.lane.b32.xlu0 %v816_v3, %s1333_s11  ;;  %v264_v19 = vsel %vm259_vm0, %v261_v4, %v263_v5 }
  0x9c   : > { %v193_v17 = vadd.f32 %v188_v6, %v179_v9  ;;  %v190_v21 = vpop.permute.xlu1 %189  ;;  %v260_v6 = vrot.slane %v253_v52, 1  ;;  %v993_v9 = vmul.f32 %v990_v57, %v1400_v15  ;;  %v959_v10 = vrot.slane %v953_v58, 5 }
  0x9d   : > { %v176_v22 = vpop.permute.xlu0 %175  ;;  %v1074_v57 = vstv %s1257_s27 }
  0x9e   : > { %v180_v23 = vadd.f32 %v176_v22, %v164_v8  ;;  %860 = vrot.lane.b32.xlu1 %v857_v13, %s1329_s26  ;;  %v941_v8 = vsel %vm835_vm4, %v938_v53, %v940_v56  ;;  %v1011_v13 = vstv %s1622_s21  ;;  %v1000_v26 = vrot.slane %v993_v9, 6 }
  0x9f   : > { %858 = vrot.lane.b32.xlu0 %v855_v18, %s1329_s26  ;;  %v958_v18 = vrot.slane %v952_v63, 5  ;;  %v1013_v27 = vmul.f32 %v1011_v13, %v1383_v2  ;;  %v962_v28 = vsel %vm835_vm4, %v959_v10, %v961_v11  ;;  %v1077_v63 = vmul.f32 %v1074_v57, %v1400_v15 }
  0xa0   : > { %v194_v30 = vadd.f32 %v190_v21, %v180_v23  ;;  %v204_v34 = vpop.permute.xlu1 %203  ;;  %v262_v21 = vsel %vm259_vm0, %v260_v6, %v261_v4  ;;  %v998_v23 = vrot.slane %v992_v7, 6  ;;  %v1095_v6 = vstv %s1258_s28 }
  0xa1   : > { %v202_v35 = vpop.permute.xlu0 %201  ;;  %v1097_v12 = vmul.f32 %v1095_v6, %v1383_v2 }
  0xa2   : > { %v208_v37 = vadd.f32 %v204_v34, %v194_v30  ;;  %v207_v38 = vadd.f32 %v202_v35, %v193_v17  ;;  %881 = vrot.lane.b32.xlu1 %v878_v24, %s1328_s25  ;;  %v939_v17 = vsel %vm835_vm4, %v937_v62, %v938_v53  ;;  %v1014_v30 = vmul.f32 %v1011_v13, %v1400_v15 }
  0xa3   : > { %879 = vrot.lane.b32.xlu0 %v876_v31, %s1328_s25  ;;  %v1012_v31 = vmul.f32 %v1011_v13, %v1380_v1  ;;  %v960_v34 = vsel %vm835_vm4, %v958_v18, %v959_v10  ;;  %v1032_v35 = vstv %s1637_s22  ;;  %v1001_v43 = vsel %vm979_vm5, %v998_v23, %v1000_v26 }
  0xa4   : > { %v218_v48 = vpop.permute.xlu1 %217  ;;  %v1021_v39 = vrot.slane %v1014_v30, 6  ;;  %v999_v44 = vsel %vm979_vm5, %v997_v29, %v998_v23  ;;  %v1035_v45 = vmul.f32 %v1032_v35, %v1400_v15  ;;  %v1033_v46 = vmul.f32 %v1032_v35, %v1380_v1 }
  0xa5   : > { %v216_v49 = vpop.permute.xlu0 %215  ;;  %v222_v54 = vadd.f32 %v218_v48, %v208_v37  ;;  %v1018_v40 = vrot.slane %v1012_v31, 6  ;;  %v1076_v62 = vmul.f32 %v1074_v57, %v1383_v2  ;;  %v1084_v10 = vrot.slane %v1077_v63, 6  ;;  %v1696_v31 = vld [vmem:[%s1377_s23 + $0x8] sm:$0xff]  ;;  %v1711_v63 = vld [vmem:[%s1377_s23 + $0x10] sm:$0x3f] }
  0xa6   : > { %v221_v55 = vadd.f32 %v216_v49, %v207_v38  ;;  %902 = vrot.lane.b32.xlu1 %v899_v41, %s1330_s3  ;;  %v1019_v38 = vrot.slane %v1013_v27, 6  ;;  %v1034_v41 = vmul.f32 %v1032_v35, %v1383_v2 }
  0xa7   : > { %900 = vrot.lane.b32.xlu0 %v897_v42, %s1330_s3  ;;  %v1053_v42 = vstv %s1646_s24  ;;  %v1082_v9 = vrot.slane %v1076_v62, 6 }
  0xa8   : > { %v232_v0 = vpop.permute.xlu1 %231  ;;  %v1055_v49 = vmul.f32 %v1053_v42, %v1383_v2  ;;  %v1022_v50 = vsel %vm979_vm5, %v1019_v38, %v1021_v39  ;;  %v1020_v51 = vsel %vm979_vm5, %v1018_v40, %v1019_v38  ;;  %v1040_v52 = vrot.slane %v1034_v41, 6 }
  0xa9   : > { %v230_v3 = vpop.permute.xlu0 %229  ;;  %v236_v14 = vadd.f32 %v232_v0, %v222_v54  ;;  %v1056_v53 = vmul.f32 %v1053_v42, %v1400_v15  ;;  %v1042_v54 = vrot.slane %v1035_v45, 6  ;;  %v1054_v56 = vmul.f32 %v1053_v42, %v1380_v1 }
  0xaa   : > { %923 = vrot.lane.b32.xlu1 %v920_v60, %s1331_s5  ;;  %v235_v16 = vadd.f32 %v230_v3, %v221_v55  ;;  %v1039_v55 = vrot.slane %v1033_v46, 6  ;;  %v1061_v60 = vrot.slane %v1055_v49, 6  ;;  %v1075_v0 = vmul.f32 %v1074_v57, %v1380_v1 }
  0xab   : > { %921 = vrot.lane.b32.xlu0 %v918_v61, %s1331_s5  ;;  %v1063_v61 = vrot.slane %v1056_v53, 6  ;;  %v1043_v3 = vsel %vm979_vm5, %v1040_v52, %v1042_v54  ;;  %v1060_v5 = vrot.slane %v1054_v56, 6  ;;  %v1085_v2 = vsel %vm979_vm5, %v1082_v9, %v1084_v10 }
  0xac   : > { %v246_v20 = vpop.permute.xlu1 %245  ;;  %v1041_v4 = vsel %vm979_vm5, %v1039_v55, %v1040_v52  ;;  %v1081_v11 = vrot.slane %v1075_v0, 6 }
  0xad   : > { %v244_v22 = vpop.permute.xlu0 %243  ;;  %v250_v24 = vadd.f32 %v246_v20, %v236_v14  ;;  %v1064_v1 = vsel %vm979_vm5, %v1061_v60, %v1063_v61  ;;  %v1062_v13 = vsel %vm979_vm5, %v1060_v5, %v1061_v60  ;;  %v1098_v14 = vmul.f32 %v1095_v6, %v1400_v15 }
  0xae   : > { %v249_v25 = vadd.f32 %v244_v22, %v235_v16  ;;  %944 = vrot.lane.b32.xlu1 %v941_v8, %s1332_s7  ;;  %v1688_v16 = vld [vmem:[%s1377_s23] sm:$0xff]  ;;  %v396_v22 = vstv %s1224_s29  ;;  %v1083_v23 = vsel %vm979_vm5, %v1081_v11, %v1082_v9  ;;  %s1238_s23 = sld [smem:[#allocation2 + $0x1c]] }
  0xaf   : > { %942 = vrot.lane.b32.xlu0 %v939_v17, %s1332_s7  ;;  %v268_v32 = vadd.f32 %v264_v19, %v250_v24  ;;  %v1096_v17 = vmul.f32 %v1688_v16, %v1095_v6  ;;  %v1103_v24 = vrot.slane %v1097_v12, 6  ;;  %v1105_v27 = vrot.slane %v1098_v14, 6 }
  0xb0   : > { %v267_v33 = vadd.f32 %v262_v21, %v249_v25  ;;  %v285_v36 = vpop.permute.xlu1 %284 }
  0xb1   : > { %v283_v37 = vpop.permute.xlu0 %282  ;;  %v289_v20 = vadd.f32 %v285_v36, %v268_v32  ;;  %v398_v32 = vmul.f32 %v1696_v31, %v396_v22  ;;  %v1106_v39 = vsel %vm979_vm5, %v1103_v24, %v1105_v27 }
  0xb2   : > { %965 = vrot.lane.b32.xlu1 %v962_v28, %s1333_s11  ;;  %v288_v21 = vadd.f32 %v283_v37, %v267_v33  ;;  %v1102_v28 = vrot.slane %v1096_v17, 6  ;;  %v399_v33 = vmul.f32 %v396_v22, %v1400_v15 }
  0xb3   : > { %963 = vrot.lane.b32.xlu0 %v960_v34, %s1333_s11  ;;  %v397_v34 = vmul.f32 %v1688_v16, %v396_v22  ;;  %v405_v41 = vrot.slane %v398_v32, 2 }
  0xb4   : > { %v306_v47 = vpop.permute.xlu1 %305  ;;  %v1104_v40 = vsel %vm979_vm5, %v1102_v28, %v1103_v24  ;;  %v407_v42 = vrot.slane %v399_v33, 2  ;;  %v684_v32 = vstv %s1238_s23 }
  0xb5   : > { %v304_v48 = vpop.permute.xlu0 %303  ;;  %v310_v25 = vadd.f32 %v306_v47, %v289_v20 }
  0xb6   : > { %1004 = vrot.lane.b32.xlu1 %v1001_v43, %s1329_s26  ;;  %v309_v26 = vadd.f32 %v304_v48, %v288_v21  ;;  %v408_v49 = vsel %vm403_vm1, %v405_v41, %v407_v42 }
  0xb7   : > { %1002 = vrot.lane.b32.xlu0 %v999_v44, %s1329_s26  ;;  %v404_v44 = vrot.slane %v397_v34, 2  ;;  %s1245_s26 = sld [smem:[#allocation2 + $0x23]] }
  0xb8   : > { %v327_v58 = vpop.permute.xlu1 %326 }
  0xb9   : > { %v325_v59 = vpop.permute.xlu0 %324  ;;  %v331_v35 = vadd.f32 %v327_v58, %v310_v25 }
  0xba   : > { %1025 = vrot.lane.b32.xlu1 %v1022_v50, %s1328_s25  ;;  %v330_v36 = vadd.f32 %v325_v59, %v309_v26  ;;  %v406_v50 = vsel %vm403_vm1, %v404_v44, %v405_v41 }
  0xbb   : > { %1023 = vrot.lane.b32.xlu0 %v1020_v51, %s1328_s25  ;;  %s1231_s25 = sld [smem:[#allocation2 + $0x15]] }
  0xbc   : > { %v348_v7 = vpop.permute.xlu1 %347 }
  0xbd   : > { %v346_v8 = vpop.permute.xlu0 %345  ;;  %v352_v37 = vadd.f32 %v348_v7, %v331_v35 }
  0xbe   : > { %1046 = vrot.lane.b32.xlu1 %v1043_v3, %s1330_s3  ;;  %v351_v38 = vadd.f32 %v346_v8, %v330_v36 }
  0xbf   : > { %1044 = vrot.lane.b32.xlu0 %v1041_v4, %s1330_s3  ;;  %s1252_s3 = sld [smem:[#allocation2 + $0x2a]] }
  0xc0   : > { %v369_v18 = vpop.permute.xlu1 %368 }
  0xc1   : > { %v367_v19 = vpop.permute.xlu0 %366  ;;  %v373_v15 = vadd.f32 %v369_v18, %v352_v37  ;;  %v540_v57 = vstv %s1231_s25  ;;  %v686_v37 = vmul.f32 %v1696_v31, %v684_v32 }
  0xc2   : > { %1067 = vrot.lane.b32.xlu1 %v1064_v1, %s1331_s5  ;;  %v372_v46 = vadd.f32 %v367_v19, %v351_v38  ;;  %v542_v62 = vmul.f32 %v1696_v31, %v540_v57  ;;  %v543_v0 = vmul.f32 %v1711_v63, %v540_v57  ;;  %v541_v3 = vmul.f32 %v1688_v16, %v540_v57 }
  0xc3   : > { %1065 = vrot.lane.b32.xlu0 %v1062_v13, %s1331_s5  ;;  %v687_v38 = vmul.f32 %v1711_v63, %v684_v32  ;;  %s1259_s5 = sld [smem:[#allocation2 + $0x31]] }
  0xc4   : > { %v390_v29 = vpop.permute.xlu1 %389  ;;  %v549_v10 = vrot.slane %v542_v62, 3  ;;  %v551_v11 = vrot.slane %v543_v0, 3  ;;  %v548_v12 = vrot.slane %v541_v3, 3 }
  0xc5   : > { %v388_v30 = vpop.permute.xlu0 %387  ;;  %v394_v47 = vadd.f32 %v390_v29, %v373_v15  ;;  %v693_v15 = vrot.slane %v686_v37, 4 }
  0xc6   : > { %1088 = vrot.lane.b32.xlu1 %v1085_v2, %s1332_s7  ;;  %v393_v48 = vadd.f32 %v388_v30, %v372_v46  ;;  %v552_v20 = vsel %vm547_vm2, %v549_v10, %v551_v11  ;;  %v550_v21 = vsel %vm547_vm2, %v548_v12, %v549_v10  ;;  %v695_v46 = vrot.slane %v687_v38, 4 }
  0xc7   : > { %1086 = vrot.lane.b32.xlu0 %v1083_v23, %s1332_s7  ;;  %v412_v53 = vadd.f32 %v408_v49, %v394_v47  ;;  %s1262_s7 = sshll.u32 %s1744_s10, 4 }
  0xc8   : > { %v429_v43 = vpop.permute.xlu1 %428  ;;  %v411_v54 = vadd.f32 %v406_v50, %v393_v48  ;;  %s157_s4 = scalar_lea.vmem %s1741_s2, %s1262_s7 }
  0xc9   : > { %v427_v45 = vpop.permute.xlu0 %426  ;;  %v433_v58 = vadd.f32 %v429_v43, %v412_v53 }
  0xca   : > { %1109 = vrot.lane.b32.xlu1 %v1106_v39, %s1333_s11  ;;  %v432_v59 = vadd.f32 %v427_v45, %v411_v54  ;;  %v685_v39 = vmul.f32 %v1688_v16, %v684_v32  ;;  %v696_v54 = vsel %vm691_vm3, %v693_v15, %v695_v46 }
  0xcb   : > { %1107 = vrot.lane.b32.xlu0 %v1104_v40, %s1333_s11 }
  0xcc   : > { %v450_v51 = vpop.permute.xlu1 %449  ;;  %v692_v47 = vrot.slane %v685_v39, 4 }
  0xcd   : > { %v448_v52 = vpop.permute.xlu0 %447  ;;  %v454_v4 = vadd.f32 %v450_v51, %v433_v58 }
  0xce   : > { %v453_v5 = vadd.f32 %v448_v52, %v432_v59 }
  0xd0   : > { %v471_v55 = vpop.permute.xlu1 %470 }
  0xd1   : > { %v469_v56 = vpop.permute.xlu0 %468  ;;  %v475_v6 = vadd.f32 %v471_v55, %v454_v4  ;;  %v694_v55 = vsel %vm691_vm3, %v692_v47, %v693_v15 }
  0xd2   : > { %v474_v7 = vadd.f32 %v469_v56, %v453_v5  ;;  %v828_v5 = vstv %s1245_s26 }
  0xd3   : > { %v830_v10 = vmul.f32 %v1696_v31, %v828_v5  ;;  %v831_v11 = vmul.f32 %v1711_v63, %v828_v5  ;;  %v829_v12 = vmul.f32 %v1688_v16, %v828_v5 }
  0xd4   : > { %v492_v60 = vpop.permute.xlu1 %491 }
  0xd5   : > { %v490_v61 = vpop.permute.xlu0 %489  ;;  %v496_v1 = vadd.f32 %v492_v60, %v475_v6 }
  0xd6   : > { %v495_v13 = vadd.f32 %v490_v61, %v474_v7 }
  0xd8   : > { %v513_v8 = vpop.permute.xlu1 %512 }
  0xd9   : > { %v511_v9 = vpop.permute.xlu0 %510  ;;  %v517_v14 = vadd.f32 %v513_v8, %v496_v1 }
  0xda   : > { %v516_v17 = vadd.f32 %v511_v9, %v495_v13 }
  0xdc   : > { %v534_v18 = vpop.permute.xlu1 %533 }
  0xdd   : > { %v532_v19 = vpop.permute.xlu0 %531  ;;  %v538_v22 = vadd.f32 %v534_v18, %v517_v14 }
  0xde   : > { %v537_v2 = vadd.f32 %v532_v19, %v516_v17 }
  0xdf   : > { %v556_v23 = vadd.f32 %v552_v20, %v538_v22  ;;  %v837_v20 = vrot.slane %v830_v10, 5  ;;  %v836_v22 = vrot.slane %v829_v12, 5 }
  0xe0   : > { %v555_v24 = vadd.f32 %v550_v21, %v537_v2  ;;  %v573_v25 = vpop.permute.xlu1 %572  ;;  %v839_v21 = vrot.slane %v831_v11, 5 }
  0xe1   : > { %v571_v26 = vpop.permute.xlu0 %570  ;;  %v577_v33 = vadd.f32 %v573_v25, %v556_v23 }
  0xe2   : > { %v576_v34 = vadd.f32 %v571_v26, %v555_v24 }
  0xe4   : > { %v594_v27 = vpop.permute.xlu1 %593 }
  0xe5   : > { %v592_v28 = vpop.permute.xlu0 %591  ;;  %v598_v40 = vadd.f32 %v594_v27, %v577_v33 }
  0xe6   : > { %v597_v41 = vadd.f32 %v592_v28, %v576_v34  ;;  %v840_v28 = vsel %vm835_vm4, %v837_v20, %v839_v21 }
  0xe8   : > { %v615_v29 = vpop.permute.xlu1 %614 }
  0xe9   : > { %v613_v30 = vpop.permute.xlu0 %612  ;;  %v619_v42 = vadd.f32 %v615_v29, %v598_v40  ;;  %v838_v29 = vsel %vm835_vm4, %v836_v22, %v837_v20 }
  0xea   : > { %v618_v43 = vadd.f32 %v613_v30, %v597_v41  ;;  %v972_v41 = vstv %s1252_s3 }
  0xeb   : > { %v974_v15 = vmul.f32 %v1696_v31, %v972_v41  ;;  %v975_v46 = vmul.f32 %v1711_v63, %v972_v41  ;;  %v973_v47 = vmul.f32 %v1688_v16, %v972_v41 }
  0xec   : > { %v636_v35 = vpop.permute.xlu1 %635 }
  0xed   : > { %v634_v36 = vpop.permute.xlu0 %633  ;;  %v640_v48 = vadd.f32 %v636_v35, %v619_v42 }
  0xee   : > { %v639_v49 = vadd.f32 %v634_v36, %v618_v43 }
  0xf0   : > { %v657_v44 = vpop.permute.xlu1 %656 }
  0xf1   : > { %v655_v45 = vpop.permute.xlu0 %654  ;;  %v661_v50 = vadd.f32 %v657_v44, %v640_v48 }
  0xf2   : > { %v660_v51 = vadd.f32 %v655_v45, %v639_v49 }
  0xf4   : > { %v678_v52 = vpop.permute.xlu1 %677 }
  0xf5   : > { %v676_v53 = vpop.permute.xlu0 %675  ;;  %v682_v56 = vadd.f32 %v678_v52, %v661_v50 }
  0xf6   : > { %v681_v57 = vadd.f32 %v676_v53, %v660_v51 }
  0xf7   : > { %v700_v58 = vadd.f32 %v696_v54, %v682_v56  ;;  %v981_v54 = vrot.slane %v974_v15, 6  ;;  %v980_v56 = vrot.slane %v973_v47, 6 }
  0xf8   : > { %v699_v59 = vadd.f32 %v694_v55, %v681_v57  ;;  %v717_v60 = vpop.permute.xlu1 %716  ;;  %v983_v55 = vrot.slane %v975_v46, 6 }
  0xf9   : > { %v715_v61 = vpop.permute.xlu0 %714  ;;  %v721_v6 = vadd.f32 %v717_v60, %v700_v58  ;;  %v982_v63 = vsel %vm979_vm5, %v980_v56, %v981_v54 }
  0xfa   : > { %v720_v7 = vadd.f32 %v715_v61, %v699_v59  ;;  %v984_v31 = vsel %vm979_vm5, %v981_v54, %v983_v55 }
  0xfc   : > { %v738_v62 = vpop.permute.xlu1 %737 }
  0xfd   : > { %v736_v0 = vpop.permute.xlu0 %735  ;;  %v742_v1 = vadd.f32 %v738_v62, %v721_v6 }
  0xfe   : > { %v741_v13 = vadd.f32 %v736_v0, %v720_v7 }
 0x100   : > { %v759_v3 = vpop.permute.xlu1 %758 }
 0x101   : > { %v757_v4 = vpop.permute.xlu0 %756  ;;  %v763_v14 = vadd.f32 %v759_v3, %v742_v1 }
 0x102   : > { %v762_v17 = vadd.f32 %v757_v4, %v741_v13 }
 0x104   : > { %v780_v8 = vpop.permute.xlu1 %779 }
 0x105   : > { %v778_v9 = vpop.permute.xlu0 %777  ;;  %v784_v2 = vadd.f32 %v780_v8, %v763_v14 }
 0x106   : > { %v783_v23 = vadd.f32 %v778_v9, %v762_v17 }
 0x108   : > { %v801_v18 = vpop.permute.xlu1 %800 }
 0x109   : > { %v799_v19 = vpop.permute.xlu0 %798  ;;  %v805_v24 = vadd.f32 %v801_v18, %v784_v2 }
 0x10a   : > { %v804_v25 = vadd.f32 %v799_v19, %v783_v23 }
 0x10c   : > { %v822_v26 = vpop.permute.xlu1 %821 }
 0x10d   : > { %v820_v27 = vpop.permute.xlu0 %819  ;;  %v826_v30 = vadd.f32 %v822_v26, %v805_v24 }
 0x10e   : > { %v825_v32 = vadd.f32 %v820_v27, %v804_v25 }
 0x10f   : > { %v844_v33 = vadd.f32 %v840_v28, %v826_v30 }
 0x110   : > { %v843_v34 = vadd.f32 %v838_v29, %v825_v32  ;;  %v861_v35 = vpop.permute.xlu1 %860 }
 0x111   : > { %v859_v36 = vpop.permute.xlu0 %858  ;;  %v865_v42 = vadd.f32 %v861_v35, %v844_v33 }
 0x112   : > { %v864_v43 = vadd.f32 %v859_v36, %v843_v34 }
 0x114   : > { %v882_v37 = vpop.permute.xlu1 %881 }
 0x115   : > { %v880_v38 = vpop.permute.xlu0 %879  ;;  %v886_v48 = vadd.f32 %v882_v37, %v865_v42 }
 0x116   : > { %v885_v49 = vadd.f32 %v880_v38, %v864_v43  ;;  %v1128_v38 = vstv %s1259_s5 }
 0x118   : > { %v903_v39 = vpop.permute.xlu1 %902 }
 0x119   : > { %v901_v40 = vpop.permute.xlu0 %900  ;;  %v907_v50 = vadd.f32 %v903_v39, %v886_v48 }
 0x11a   : > { %v906_v51 = vadd.f32 %v901_v40, %v885_v49 }
 0x11c   : > { %v924_v44 = vpop.permute.xlu1 %923 }
 0x11d   : > { %v922_v45 = vpop.permute.xlu0 %921  ;;  %v928_v57 = vadd.f32 %v924_v44, %v907_v50 }
 0x11e   : > { %v927_v58 = vadd.f32 %v922_v45, %v906_v51 }
 0x120   : > { %v945_v52 = vpop.permute.xlu1 %944 }
 0x121   : > { %v943_v53 = vpop.permute.xlu0 %942  ;;  %v949_v59 = vadd.f32 %v945_v52, %v928_v57 }
 0x122   : > { %v948_v60 = vadd.f32 %v943_v53, %v927_v58 }
 0x124   : > { %v966_v61 = vpop.permute.xlu1 %965 }
 0x125   : > { %v964_v62 = vpop.permute.xlu0 %963  ;;  %v970_v16 = vadd.f32 %v966_v61, %v949_v59 }
 0x126   : > { %v969_v0 = vadd.f32 %v964_v62, %v948_v60 }
 0x127   : > { %v988_v3 = vadd.f32 %v984_v31, %v970_v16 }
 0x128   : > { %v987_v4 = vadd.f32 %v982_v63, %v969_v0  ;;  %v1005_v5 = vpop.permute.xlu1 %1004 }
 0x129   : > { %v1003_v6 = vpop.permute.xlu0 %1002  ;;  %v1009_v11 = vadd.f32 %v1005_v5, %v988_v3 }
 0x12a   : > { %v1008_v12 = vadd.f32 %v1003_v6, %v987_v4 }
 0x12c   : > { %v1026_v7 = vpop.permute.xlu1 %1025 }
 0x12d   : > { %v1024_v8 = vpop.permute.xlu0 %1023  ;;  %v1030_v14 = vadd.f32 %v1026_v7, %v1009_v11 }
 0x12e   : > { %v1029_v17 = vadd.f32 %v1024_v8, %v1008_v12 }
 0x130   : > { %v1047_v9 = vpop.permute.xlu1 %1046 }
 0x131   : > { %v1045_v10 = vpop.permute.xlu0 %1044  ;;  %v1051_v18 = vadd.f32 %v1047_v9, %v1030_v14 }
 0x132   : > { %v1050_v19 = vadd.f32 %v1045_v10, %v1029_v17 }
 0x134   : > { %v1068_v1 = vpop.permute.xlu1 %1067 }
 0x135   : > { %v1066_v13 = vpop.permute.xlu0 %1065  ;;  %v1072_v22 = vadd.f32 %v1068_v1, %v1051_v18 }
 0x136   : > { %v1071_v2 = vadd.f32 %v1066_v13, %v1050_v19 }
 0x138   : > { %v1089_v20 = vpop.permute.xlu1 %1088 }
 0x139   : > { %v1087_v21 = vpop.permute.xlu0 %1086  ;;  %v1093_v23 = vadd.f32 %v1089_v20, %v1072_v22 }
 0x13a   : > { %v1092_v24 = vadd.f32 %v1087_v21, %v1071_v2 }
 0x13c   : > { %v1110_v25 = vpop.permute.xlu1 %1109 }
 0x13d   : > { %v1108_v26 = vpop.permute.xlu0 %1107  ;;  %v1114_v27 = vadd.f32 %v1110_v25, %v1093_v23 }
 0x13e   : > { %v1113_v28 = vadd.f32 %v1108_v26, %v1092_v24 }
 0x13f   : > { %v1116_v29 = vsub.f32 0.0, %v1114_v27 }
 0x140   : > { %v1115_v30 = vsub.f32 0.0, %v1113_v28 }
 0x141   : > { %v1119_v32 = vmul.f32 1.442695, %v1116_v29 }
 0x142   : > { %v1117_v33 = vmul.f32 1.442695, %v1115_v30 }
 0x143   : > { %1289 = vpow2.f32 %v1119_v32 }
 0x144   : > { %1291 = vpow2.f32 %v1117_v33 }
 0x14d   : > { %v1290_v34 = vpop.eup %1289 }
 0x14e   : > { %v1292_v35 = vpop.eup %1291  ;;  %v1122_v36 = vadd.f32 1.0, %v1290_v34 }
 0x14f   : > { %v1121_v37 = vadd.f32 1.0, %v1292_v35 }
 0x150   : > { %1293 = vrcp.f32 %v1122_v36 }
 0x151   : > { %1295 = vrcp.f32 %v1121_v37 }
 0x15a   : > { %v1294_v39 = vpop.eup %1293 }
 0x15b   : > { %v1296_v40 = vpop.eup %1295  ;;  %v1130_v41 = vmul.f32 %v1294_v39, %v1128_v38 }
 0x15c   : > { %v1129_v42 = vmul.f32 %v1296_v40, %v1128_v38 }
 0x15d   : > { %1133 = vst.msk [vmem:[%s157_s4 + $0x8] sm:$0xff] %vm1131_vm6, %v1130_v41 }
 0x15e   : > { %1132 = vst.msk [vmem:[%s157_s4] sm:$0xff] %vm1131_vm6, %v1129_v42 }
 0x15f PF: > { %s13_s9 = sadd.s32 1, %s1325_s9  }
 0x160   : > { %p10_p1 = scmp.ge.s32.totalorder %s13_s9, 4  }
 0x162   :  { %12 = sbr.rel (!%p10_p1) target bundleno = 1 (0x1), region = 63 }
 0x169   :  { %1155 = vsyncpa [#allocation3], 1 }
 0x16a   :  { %1157 = vsyncpa [#allocation3 + $0x1], 1 }

// kernel: _lambda_.35
= control target key start
LH: loop header
LB: loop body
LE: loop exit
PB: predicated region body
PF: predicated region fallthrough
CT: control target
= control target key end

     0   :  { %s1325_s15 = smov 0   ;;  %s1928_s0 = inlined_call_operand.vmem [shape: f32[512,64], index: 0, kind: input, shape index: {}]   ;;  %s1929_s1 = inlined_call_operand.vmem [shape: f32[1,64], index: 1, kind: input, shape index: {}]   ;;  %s1930_s2 = inlined_call_operand.vmem [shape: f32[1,64], index: 2, kind: input, shape index: {}]   ;;  %s1931_s3 = inlined_call_operand.vmem [shape: bf16[64,256], index: 3, kind: input, shape index: {}]   ;;  %s1932_s4 = inlined_call_operand.vmem [shape: f32[512,256], index: 4, kind: output, shape index: {}]  }
   0x1 LB: > { %s1159_s16 = sadd.s32 4294967295, %s1297_s15   ;;  %p1163_p0 = scmp.ge.s32.totalorder %s1297_s15, 1  ;;  %s1297_s15 = sphi %s1325_s15, %s14_s15  }
   0x2   : > { %p163_p1 = scmp.lt.s32.totalorder %s1297_s15, 3 }
   0x4   : > { %p164_p2 = pnand %p1163_p0, %p163_p1 }
   0x5   : > { %s1164_s17 = sshll.u32 (!%p164_p2), %s1159_s16, 5  ;;  %vm236_vm0 = vcmask (!%p164_p2), 523264  }
   0x6   : > { %167 = sbr.rel (%p164_p2) target bundleno = 612 (0x264), region = 36  ;;  %p191_p3 = scmp.lt.s32.totalorder (!%p164_p2), %s1164_s17, 63 }
   0xd   : > { %s1934_s17 = smov (!%p191_p3, %s1164_s17), 63 }
   0xe   : > { %s1165_s18 = sshll.u32 %s1934_s17, 3 }
   0xf   : > { %s1339_s21 = scalar_lea.vmem %s1928_s0, %s1165_s18  ;;  %s1197_s18 = sshll.u32 %s1934_s17, 4 }
  0x10   : > { %v1342_v0 = vld [vmem:[%s1339_s21] sm:$0xff]  ;;  %v1348_v2 = vld [vmem:[%s1339_s21 + $0x8] sm:$0xff]  ;;  %v1362_v8 = vld [vmem:[%s1339_s21 + $0x10] sm:$0xff] }
  0x11   : > { %v1345_v1 = vld [vmem:[%s1339_s21 + $0x80] sm:$0xff]  ;;  %v237_v3 = vsel %vm236_vm0, %v1342_v0, 0.0  ;;  %v1355_v5 = vld [vmem:[%s1339_s21 + $0x88] sm:$0xff]  ;;  %v240_v6 = vsel %vm236_vm0, %v1348_v2, 0.0  ;;  %v1365_v9 = vld [vmem:[%s1339_s21 + $0x18] sm:$0xff]  ;;  %v243_v10 = vsel %vm236_vm0, %v1362_v8, 0.0 }
  0x12   : > { %v285_v4 = vsel %vm236_vm0, %v1345_v1, 0.0  ;;  %238 = vadd.xlane.f32.xlu0 %v237_v3  ;;  %v288_v7 = vsel %vm236_vm0, %v1355_v5, 0.0  ;;  %v246_v11 = vsel %vm236_vm0, %v1365_v9, 0.0  ;;  %v1372_v12 = vld [vmem:[%s1339_s21 + $0x90] sm:$0xff]  ;;  %v1375_v13 = vld [vmem:[%s1339_s21 + $0x98] sm:$0xff]  ;;  %v1382_v16 = vld [vmem:[%s1339_s21 + $0x20] sm:$0xff] }
  0x13   : > { %286 = vadd.xlane.f32.xlu1 %v285_v4  ;;  %v291_v14 = vsel %vm236_vm0, %v1372_v12, 0.0  ;;  %v294_v15 = vsel %vm236_vm0, %v1375_v13, 0.0  ;;  %v1385_v17 = vld [vmem:[%s1339_s21 + $0x28] sm:$0xff]  ;;  %v249_v18 = vsel %vm236_vm0, %v1382_v16, 0.0  ;;  %v1392_v20 = vld [vmem:[%s1339_s21 + $0xa0] sm:$0xff]  ;;  %v1402_v24 = vld [vmem:[%s1339_s21 + $0x30] sm:$0xff] }
  0x14   : > { %v252_v19 = vsel %vm236_vm0, %v1385_v17, 0.0  ;;  %v1395_v21 = vld [vmem:[%s1339_s21 + $0xa8] sm:$0xff]  ;;  %v297_v22 = vsel %vm236_vm0, %v1392_v20, 0.0  ;;  %v1405_v25 = vld [vmem:[%s1339_s21 + $0x38] sm:$0xff]  ;;  %v255_v26 = vsel %vm236_vm0, %v1402_v24, 0.0  ;;  %v1412_v28 = vld [vmem:[%s1339_s21 + $0xb0] sm:$0xff] }
  0x15   : > { %v300_v23 = vsel %vm236_vm0, %v1395_v21, 0.0  ;;  %v258_v27 = vsel %vm236_vm0, %v1405_v25, 0.0  ;;  %v1415_v29 = vld [vmem:[%s1339_s21 + $0xb8] sm:$0xff]  ;;  %v303_v30 = vsel %vm236_vm0, %v1412_v28, 0.0  ;;  %v1422_v32 = vld [vmem:[%s1339_s21 + $0x40] sm:$0xff]  ;;  %v1425_v33 = vld [vmem:[%s1339_s21 + $0x48] sm:$0xff] }
  0x16   : > { %241 = vadd.xlane.f32.xlu0 %v240_v6  ;;  %v306_v31 = vsel %vm236_vm0, %v1415_v29, 0.0  ;;  %v261_v34 = vsel %vm236_vm0, %v1422_v32, 0.0  ;;  %v264_v35 = vsel %vm236_vm0, %v1425_v33, 0.0  ;;  %v1432_v36 = vld [vmem:[%s1339_s21 + $0xc0] sm:$0xff]  ;;  %v1435_v37 = vld [vmem:[%s1339_s21 + $0xc8] sm:$0xff]  ;;  %v1442_v40 = vld [vmem:[%s1339_s21 + $0x50] sm:$0xff] }
  0x17   : > { %289 = vadd.xlane.f32.xlu1 %v288_v7  ;;  %v309_v38 = vsel %vm236_vm0, %v1432_v36, 0.0  ;;  %v312_v39 = vsel %vm236_vm0, %v1435_v37, 0.0  ;;  %v1445_v41 = vld [vmem:[%s1339_s21 + $0x58] sm:$0xff]  ;;  %v267_v42 = vsel %vm236_vm0, %v1442_v40, 0.0  ;;  %v1452_v44 = vld [vmem:[%s1339_s21 + $0xd0] sm:$0xff]  ;;  %v1462_v48 = vld [vmem:[%s1339_s21 + $0x60] sm:$0xff] }
  0x18   : > { %v270_v43 = vsel %vm236_vm0, %v1445_v41, 0.0  ;;  %v1455_v45 = vld [vmem:[%s1339_s21 + $0xd8] sm:$0xff]  ;;  %v315_v46 = vsel %vm236_vm0, %v1452_v44, 0.0  ;;  %v1465_v49 = vld [vmem:[%s1339_s21 + $0x68] sm:$0xff]  ;;  %v273_v50 = vsel %vm236_vm0, %v1462_v48, 0.0  ;;  %v1472_v52 = vld [vmem:[%s1339_s21 + $0xe0] sm:$0xff] }
  0x19   : > { %v318_v47 = vsel %vm236_vm0, %v1455_v45, 0.0  ;;  %v276_v51 = vsel %vm236_vm0, %v1465_v49, 0.0  ;;  %v1475_v53 = vld [vmem:[%s1339_s21 + $0xe8] sm:$0xff]  ;;  %v321_v54 = vsel %vm236_vm0, %v1472_v52, 0.0  ;;  %v1482_v56 = vld [vmem:[%s1339_s21 + $0x70] sm:$0xff]  ;;  %v1485_v57 = vld [vmem:[%s1339_s21 + $0x78] sm:$0xff] }
  0x1a   : > { %244 = vadd.xlane.f32.xlu0 %v243_v10  ;;  %v324_v55 = vsel %vm236_vm0, %v1475_v53, 0.0  ;;  %v279_v58 = vsel %vm236_vm0, %v1482_v56, 0.0  ;;  %v282_v59 = vsel %vm236_vm0, %v1485_v57, 0.0  ;;  %v1492_v60 = vld [vmem:[%s1339_s21 + $0xf0] sm:$0xff]  ;;  %v1495_v61 = vld [vmem:[%s1339_s21 + $0xf8] sm:$0xff]  ;;  %s1859_s21 = scalar_lea.vmem %s1932_s4, %s1197_s18 }
  0x1b   : > { %247 = vadd.xlane.f32.xlu1 %v246_v11  ;;  %v327_v62 = vsel %vm236_vm0, %v1492_v60, 0.0  ;;  %v330_v63 = vsel %vm236_vm0, %v1495_v61, 0.0 }
  0x1e   : > { %292 = vadd.xlane.f32.xlu0 %v291_v14 }
  0x1f   : > { %295 = vadd.xlane.f32.xlu1 %v294_v15 }
  0x22   : > { %250 = vadd.xlane.f32.xlu0 %v249_v18 }
  0x23   : > { %253 = vadd.xlane.f32.xlu1 %v252_v19 }
  0x26   : > { %298 = vadd.xlane.f32.xlu0 %v297_v22 }
  0x27   : > { %301 = vadd.xlane.f32.xlu1 %v300_v23 }
  0x2a   : > { %256 = vadd.xlane.f32.xlu0 %v255_v26 }
  0x2b   : > { %259 = vadd.xlane.f32.xlu1 %v258_v27 }
  0x2e   : > { %304 = vadd.xlane.f32.xlu0 %v303_v30 }
  0x2f   : > { %307 = vadd.xlane.f32.xlu1 %v306_v31 }
  0x32   : > { %262 = vadd.xlane.f32.xlu0 %v261_v34 }
  0x33   : > { %265 = vadd.xlane.f32.xlu1 %v264_v35 }
  0x36   : > { %310 = vadd.xlane.f32.xlu0 %v309_v38 }
  0x37   : > { %313 = vadd.xlane.f32.xlu1 %v312_v39 }
  0x3a   : > { %268 = vadd.xlane.f32.xlu0 %v267_v42 }
  0x3b   : > { %271 = vadd.xlane.f32.xlu1 %v270_v43 }
  0x3e   : > { %316 = vadd.xlane.f32.xlu0 %v315_v46 }
  0x3f   : > { %319 = vadd.xlane.f32.xlu1 %v318_v47 }
  0x42   : > { %274 = vadd.xlane.f32.xlu0 %v273_v50 }
  0x43   : > { %277 = vadd.xlane.f32.xlu1 %v276_v51 }
  0x46   : > { %322 = vadd.xlane.f32.xlu0 %v321_v54 }
  0x47   : > { %325 = vadd.xlane.f32.xlu1 %v324_v55 }
  0x4a   : > { %280 = vadd.xlane.f32.xlu0 %v279_v58 }
  0x4b   : > { %283 = vadd.xlane.f32.xlu1 %v282_v59 }
  0x4e   : > { %328 = vadd.xlane.f32.xlu0 %v327_v62 }
  0x4f   : > { %331 = vadd.xlane.f32.xlu1 %v330_v63 }
  0x9f   : > { %v239_v3 = vpop.xlane.xlu0 %238 }
  0xa0   : > { %v287_v4 = vpop.xlane.xlu1 %286  ;;  %v334_v6 = vmul.f32 0.015625, %v239_v3 }
  0xa1   : > { %v350_v7 = vmul.f32 0.015625, %v287_v4 }
  0xa2   : > { %v1502_v10 = vsub.f32 %v1342_v0, %v334_v6 }
  0xa3   : > { %v1505_v11 = vsub.f32 %v1345_v1, %v350_v7  ;;  %v242_v14 = vpop.xlane.xlu0 %241 }
  0xa4   : > { %v290_v15 = vpop.xlane.xlu1 %289  ;;  %v335_v18 = vmul.f32 0.015625, %v242_v14  ;;  %v398_v22 = vmul.f32 %v1502_v10, %v1502_v10 }
  0xa5   : > { %v351_v19 = vmul.f32 0.015625, %v290_v15  ;;  %v414_v23 = vmul.f32 %v1505_v11, %v1505_v11 }
  0xa6   : > { %v1512_v26 = vsub.f32 %v1348_v2, %v335_v18  ;;  %v430_v0 = vsel %vm236_vm0, %v398_v22, 0.0 }
  0xa7   : > { %v1515_v27 = vsub.f32 %v1355_v5, %v351_v19  ;;  %431 = vadd.xlane.f32.xlu0 %v430_v0  ;;  %v245_v1 = vpop.xlane.xlu0 %244  ;;  %v478_v31 = vsel %vm236_vm0, %v414_v23, 0.0 }
  0xa8   : > { %v248_v30 = vpop.xlane.xlu1 %247  ;;  %v336_v34 = vmul.f32 0.015625, %v245_v1  ;;  %v399_v38 = vmul.f32 %v1512_v26, %v1512_v26 }
  0xa9   : > { %v337_v35 = vmul.f32 0.015625, %v248_v30  ;;  %v415_v39 = vmul.f32 %v1515_v27, %v1515_v27 }
  0xaa   : > { %v1524_v2 = vsub.f32 %v1362_v8, %v336_v34  ;;  %v433_v42 = vsel %vm236_vm0, %v399_v38, 0.0 }
  0xab   : > { %v1527_v5 = vsub.f32 %v1365_v9, %v337_v35  ;;  %479 = vadd.xlane.f32.xlu0 %v478_v31  ;;  %434 = vadd.xlane.f32.xlu1 %v433_v42  ;;  %v293_v43 = vpop.xlane.xlu0 %292  ;;  %v481_v47 = vsel %vm236_vm0, %v415_v39, 0.0 }
  0xac   : > { %v296_v46 = vpop.xlane.xlu1 %295  ;;  %v352_v50 = vmul.f32 0.015625, %v293_v43  ;;  %v400_v54 = vmul.f32 %v1524_v2, %v1524_v2 }
  0xad   : > { %v353_v51 = vmul.f32 0.015625, %v296_v46  ;;  %v401_v8 = vmul.f32 %v1527_v5, %v1527_v5 }
  0xae   : > { %v1536_v55 = vsub.f32 %v1372_v12, %v352_v50  ;;  %v436_v58 = vsel %vm236_vm0, %v400_v54, 0.0 }
  0xaf   : > { %v1539_v9 = vsub.f32 %v1375_v13, %v353_v51  ;;  %482 = vadd.xlane.f32.xlu1 %v481_v47  ;;  %437 = vadd.xlane.f32.xlu0 %v436_v58  ;;  %v251_v59 = vpop.xlane.xlu0 %250  ;;  %v439_v63 = vsel %vm236_vm0, %v401_v8, 0.0 }
  0xb0   : > { %v254_v62 = vpop.xlane.xlu1 %253  ;;  %v338_v3 = vmul.f32 0.015625, %v251_v59  ;;  %v416_v6 = vmul.f32 %v1536_v55, %v1536_v55 }
  0xb1   : > { %v339_v4 = vmul.f32 0.015625, %v254_v62  ;;  %v417_v12 = vmul.f32 %v1539_v9, %v1539_v9 }
  0xb2   : > { %v1548_v7 = vsub.f32 %v1382_v16, %v338_v3  ;;  %v484_v14 = vsel %vm236_vm0, %v416_v6, 0.0  ;;  %v1215_v6 = vld [vmem:[%s1931_s3 + $0x4] ss:$8 sps:$4 sm:$0xff]  }
  0xb3   : > { %v1551_v13 = vsub.f32 %v1385_v17, %v339_v4  ;;  %440 = vadd.xlane.f32.xlu1 %v439_v63  ;;  %485 = vadd.xlane.f32.xlu0 %v484_v14  ;;  %v299_v15 = vpop.xlane.xlu0 %298  ;;  %v487_v19 = vsel %vm236_vm0, %v417_v12, 0.0 }
  0xb4   : > { %v302_v18 = vpop.xlane.xlu1 %301  ;;  %v354_v22 = vmul.f32 0.015625, %v299_v15  ;;  %v402_v0 = vmul.f32 %v1548_v7, %v1548_v7  ;;  %v1217_v15 = vld [vmem:[%s1931_s3] ss:$8 sps:$4 sm:$0xff]   ;;  %844 = vmatprep.subr.bf16.mxu0 %v1215_v6  ;;  %1198 = vmatprep.subr.bf16.mxu1 %v1215_v6  ;;  %v1224_v6 = vld [vmem:[%s1931_s3 + $0x34] ss:$8 sps:$4 sm:$0xff]  }
  0xb5   : > { %v355_v23 = vmul.f32 0.015625, %v302_v18  ;;  %v403_v16 = vmul.f32 %v1551_v13, %v1551_v13  ;;  %845 = vmatpush1.bf16.msra.mxu0 %v1217_v15  ;;  %1202 = vmatpush1.bf16.msra.mxu1 %v1217_v15 }
  0xb6   : > { %v1560_v1 = vsub.f32 %v1392_v20, %v354_v22  ;;  %v442_v30 = vsel %vm236_vm0, %v402_v0, 0.0 }
  0xb7   : > { %v1563_v17 = vsub.f32 %v1395_v21, %v355_v23  ;;  %488 = vadd.xlane.f32.xlu1 %v487_v19  ;;  %443 = vadd.xlane.f32.xlu0 %v442_v30  ;;  %v257_v31 = vpop.xlane.xlu0 %256  ;;  %v445_v35 = vsel %vm236_vm0, %v403_v16, 0.0  ;;  %v1218_v30 = vld [vmem:[%s1931_s3 + $0x14] ss:$8 sps:$4 sm:$0xff]  }
  0xb8   : > { %v260_v34 = vpop.xlane.xlu1 %259  ;;  %v340_v38 = vmul.f32 0.015625, %v257_v31  ;;  %v418_v42 = vmul.f32 %v1560_v1, %v1560_v1  ;;  %846 = vmatprep.subr.bf16.mxu0 %v1218_v30  ;;  %1199 = vmatprep.subr.bf16.mxu1 %v1218_v30 }
  0xb9   : > { %v341_v39 = vmul.f32 0.015625, %v260_v34  ;;  %v419_v20 = vmul.f32 %v1563_v17, %v1563_v17 }
  0xba   : > { %v1572_v43 = vsub.f32 %v1402_v24, %v340_v38  ;;  %v490_v46 = vsel %vm236_vm0, %v418_v42, 0.0 }
  0xbb   : > { %v1575_v21 = vsub.f32 %v1405_v25, %v341_v39  ;;  %446 = vadd.xlane.f32.xlu1 %v445_v35  ;;  %491 = vadd.xlane.f32.xlu0 %v490_v46  ;;  %v305_v47 = vpop.xlane.xlu0 %304  ;;  %v493_v51 = vsel %vm236_vm0, %v419_v20, 0.0  ;;  %v1220_v35 = vld [vmem:[%s1931_s3 + $0x10] ss:$8 sps:$4 sm:$0xff]  }
  0xbc   : > { %v308_v50 = vpop.xlane.xlu1 %307  ;;  %v356_v54 = vmul.f32 0.015625, %v305_v47  ;;  %v404_v58 = vmul.f32 %v1572_v43, %v1572_v43  ;;  %847 = vmatpush1.bf16.msra.mxu0 %v1220_v35  ;;  %1203 = vmatpush1.bf16.msra.mxu1 %v1220_v35 }
  0xbd   : > { %v357_v8 = vmul.f32 0.015625, %v308_v50  ;;  %v405_v24 = vmul.f32 %v1575_v21, %v1575_v21  ;;  %v1221_v50 = vld [vmem:[%s1931_s3 + $0x24] ss:$8 sps:$4 sm:$0xff]  }
  0xbe   : > { %v1584_v59 = vsub.f32 %v1412_v28, %v356_v54  ;;  %v448_v62 = vsel %vm236_vm0, %v404_v58, 0.0  ;;  %848 = vmatprep.subr.bf16.mxu0 %v1221_v50  ;;  %1200 = vmatprep.subr.bf16.mxu1 %v1221_v50 }
  0xbf   : > { %v1587_v25 = vsub.f32 %v1415_v29, %v357_v8  ;;  %494 = vadd.xlane.f32.xlu1 %v493_v51  ;;  %449 = vadd.xlane.f32.xlu0 %v448_v62  ;;  %v263_v63 = vpop.xlane.xlu0 %262  ;;  %v451_v4 = vsel %vm236_vm0, %v405_v24, 0.0  ;;  %v1223_v8 = vld [vmem:[%s1931_s3 + $0x20] ss:$8 sps:$4 sm:$0xff]  }
  0xc0   : > { %v266_v3 = vpop.xlane.xlu1 %265  ;;  %v342_v12 = vmul.f32 0.015625, %v263_v63  ;;  %v420_v28 = vmul.f32 %v1584_v59, %v1584_v59  ;;  %849 = vmatpush1.bf16.msra.mxu0 %v1223_v8  ;;  %1204 = vmatpush1.bf16.msra.mxu1 %v1223_v8 }
  0xc1   : > { %v343_v14 = vmul.f32 0.015625, %v266_v3  ;;  %v421_v29 = vmul.f32 %v1587_v25, %v1587_v25  ;;  %850 = vmatprep.subr.bf16.mxu0 %v1224_v6  ;;  %1201 = vmatprep.subr.bf16.mxu1 %v1224_v6 }
  0xc2   : > { %v1602_v18 = vsub.f32 %v1422_v32, %v342_v12  ;;  %v496_v22 = vsel %vm236_vm0, %v420_v28, 0.0  ;;  %v1226_v28 = vld [vmem:[%s1931_s3 + $0x30] ss:$8 sps:$4 sm:$0xff]  }
  0xc3   : > { %v1605_v19 = vsub.f32 %v1425_v33, %v343_v14  ;;  %452 = vadd.xlane.f32.xlu1 %v451_v4  ;;  %497 = vadd.xlane.f32.xlu0 %v496_v22  ;;  %v311_v23 = vpop.xlane.xlu0 %310  ;;  %v499_v16 = vsel %vm236_vm0, %v421_v29, 0.0 }
  0xc4   : > { %v314_v0 = vpop.xlane.xlu1 %313  ;;  %v358_v31 = vmul.f32 0.015625, %v311_v23  ;;  %v406_v33 = vmul.f32 %v1602_v18, %v1602_v18  ;;  %851 = vmatpush1.bf16.msra.mxu0 %v1226_v28  ;;  %1205 = vmatpush1.bf16.msra.mxu1 %v1226_v28 }
  0xc5   : > { %v359_v32 = vmul.f32 0.015625, %v314_v0  ;;  %v407_v34 = vmul.f32 %v1605_v19, %v1605_v19 }
  0xc6   : > { %v1620_v38 = vsub.f32 %v1432_v36, %v358_v31  ;;  %v454_v42 = vsel %vm236_vm0, %v406_v33, 0.0 }
  0xc7   : > { %v1623_v39 = vsub.f32 %v1435_v37, %v359_v32  ;;  %500 = vadd.xlane.f32.xlu1 %v499_v16  ;;  %455 = vadd.xlane.f32.xlu0 %v454_v42  ;;  %v269_v20 = vpop.xlane.xlu0 %268  ;;  %v457_v47 = vsel %vm236_vm0, %v407_v34, 0.0 }
  0xc8   : > { %v272_v46 = vpop.xlane.xlu1 %271  ;;  %v344_v51 = vmul.f32 0.015625, %v269_v20  ;;  %v422_v37 = vmul.f32 %v1620_v38, %v1620_v38 }
  0xc9   : > { %v345_v36 = vmul.f32 0.015625, %v272_v46  ;;  %v423_v54 = vmul.f32 %v1623_v39, %v1623_v39 }
  0xca   : > { %v1638_v58 = vsub.f32 %v1442_v40, %v344_v51  ;;  %v502_v62 = vsel %vm236_vm0, %v422_v37, 0.0 }
  0xcb   : > { %v1641_v24 = vsub.f32 %v1445_v41, %v345_v36  ;;  %458 = vadd.xlane.f32.xlu1 %v457_v47  ;;  %503 = vadd.xlane.f32.xlu0 %v502_v62  ;;  %v317_v63 = vpop.xlane.xlu0 %316  ;;  %v505_v4 = vsel %vm236_vm0, %v423_v54, 0.0 }
  0xcc   : > { %v320_v3 = vpop.xlane.xlu1 %319  ;;  %v360_v12 = vmul.f32 0.015625, %v317_v63  ;;  %v408_v41 = vmul.f32 %v1638_v58, %v1638_v58 }
  0xcd   : > { %v361_v40 = vmul.f32 0.015625, %v320_v3  ;;  %v409_v14 = vmul.f32 %v1641_v24, %v1641_v24 }
  0xce   : > { %v1656_v29 = vsub.f32 %v1452_v44, %v360_v12  ;;  %v460_v22 = vsel %vm236_vm0, %v408_v41, 0.0 }
  0xcf   : > { %v1659_v15 = vsub.f32 %v1455_v45, %v361_v40  ;;  %506 = vadd.xlane.f32.xlu1 %v505_v4  ;;  %461 = vadd.xlane.f32.xlu0 %v460_v22  ;;  %v275_v23 = vpop.xlane.xlu0 %274  ;;  %v463_v16 = vsel %vm236_vm0, %v409_v14, 0.0  ;;  %v1299_v45 = vmov 0  }
  0xd0   : > { %v278_v0 = vpop.xlane.xlu1 %277  ;;  %v346_v30 = vmul.f32 0.015625, %v275_v23  ;;  %v424_v32 = vmul.f32 %v1656_v29, %v1656_v29  ;;  %876 = vmatprep.mubr.bf16.mxu0 %v1299_v45  ;;  %956 = vmatprep.mubr.bf16.mxu1 %v1299_v45 }
  0xd1   : > { %v347_v31 = vmul.f32 0.015625, %v278_v0  ;;  %v425_v44 = vmul.f32 %v1659_v15, %v1659_v15 }
  0xd2   : > { %v1670_v33 = vsub.f32 %v1462_v48, %v346_v30  ;;  %v508_v35 = vsel %vm236_vm0, %v424_v32, 0.0 }
  0xd3   : > { %v1673_v34 = vsub.f32 %v1465_v49, %v347_v31  ;;  %464 = vadd.xlane.f32.xlu1 %v463_v16  ;;  %509 = vadd.xlane.f32.xlu0 %v508_v35  ;;  %v323_v42 = vpop.xlane.xlu0 %322  ;;  %v511_v46 = vsel %vm236_vm0, %v425_v44, 0.0 }
  0xd4   : > { %v326_v20 = vpop.xlane.xlu1 %325  ;;  %v362_v47 = vmul.f32 0.015625, %v323_v42  ;;  %v410_v51 = vmul.f32 %v1670_v33, %v1670_v33 }
  0xd5   : > { %v363_v50 = vmul.f32 0.015625, %v326_v20  ;;  %v411_v48 = vmul.f32 %v1673_v34, %v1673_v34 }
  0xd6   : > { %v1682_v36 = vsub.f32 %v1472_v52, %v362_v47  ;;  %v466_v37 = vsel %vm236_vm0, %v410_v51, 0.0 }
  0xd7   : > { %v1685_v49 = vsub.f32 %v1475_v53, %v363_v50  ;;  %512 = vadd.xlane.f32.xlu1 %v511_v46  ;;  %467 = vadd.xlane.f32.xlu0 %v466_v37  ;;  %v281_v54 = vpop.xlane.xlu0 %280  ;;  %v469_v62 = vsel %vm236_vm0, %v411_v48, 0.0 }
  0xd8   : > { %v284_v8 = vpop.xlane.xlu1 %283  ;;  %v348_v63 = vmul.f32 0.015625, %v281_v54  ;;  %v426_v4 = vmul.f32 %v1682_v36, %v1682_v36 }
  0xd9   : > { %v349_v3 = vmul.f32 0.015625, %v284_v8  ;;  %v427_v52 = vmul.f32 %v1685_v49, %v1685_v49 }
  0xda   : > { %v1694_v6 = vsub.f32 %v1482_v56, %v348_v63  ;;  %v514_v12 = vsel %vm236_vm0, %v426_v4, 0.0 }
  0xdb   : > { %v1697_v53 = vsub.f32 %v1485_v57, %v349_v3  ;;  %470 = vadd.xlane.f32.xlu1 %v469_v62  ;;  %515 = vadd.xlane.f32.xlu0 %v514_v12  ;;  %v329_v40 = vpop.xlane.xlu0 %328  ;;  %v517_v14 = vsel %vm236_vm0, %v427_v52, 0.0 }
  0xdc   : > { %v332_v41 = vpop.xlane.xlu1 %331  ;;  %v364_v28 = vmul.f32 0.015625, %v329_v40  ;;  %v412_v23 = vmul.f32 %v1694_v6, %v1694_v6 }
  0xdd   : > { %v365_v22 = vmul.f32 0.015625, %v332_v41  ;;  %v413_v56 = vmul.f32 %v1697_v53, %v1697_v53 }
  0xde   : > { %v1706_v0 = vsub.f32 %v1492_v60, %v364_v28  ;;  %v472_v16 = vsel %vm236_vm0, %v412_v23, 0.0 }
  0xdf   : > { %v1709_v57 = vsub.f32 %v1495_v61, %v365_v22  ;;  %518 = vadd.xlane.f32.xlu1 %v517_v14  ;;  %473 = vadd.xlane.f32.xlu0 %v472_v16  ;;  %v475_v30 = vsel %vm236_vm0, %v413_v56, 0.0 }
  0xe0   : > { %v428_v31 = vmul.f32 %v1706_v0, %v1706_v0 }
  0xe1   : > { %v429_v32 = vmul.f32 %v1709_v57, %v1709_v57 }
  0xe2   : > { %v520_v44 = vsel %vm236_vm0, %v428_v31, 0.0  ;;  %v1723_v31 = vld [vmem:[%s1929_s1] ss:$0 sm:$0xff] }
  0xe3   : > { %476 = vadd.xlane.f32.xlu1 %v475_v30  ;;  %521 = vadd.xlane.f32.xlu0 %v520_v44  ;;  %v523_v60 = vsel %vm236_vm0, %v429_v32, 0.0 }
  0xe7   : > { %524 = vadd.xlane.f32.xlu1 %v523_v60 }
 0x134   : > { %v432_v61 = vpop.xlane.xlu0 %431 }
 0x135   : > { %v526_v35 = vmul.f32 0.015625, %v432_v61 }
 0x137   : > { %v558_v42 = vadd.f32 1e-05, %v526_v35 }
 0x138   : > { %v435_v20 = vpop.xlane.xlu1 %434  ;;  %v480_v46 = vpop.xlane.xlu0 %479 }
 0x139   : > { %1227 = vrsqrt.f32 %v558_v42  ;;  %v527_v47 = vmul.f32 0.015625, %v435_v20  ;;  %v542_v50 = vmul.f32 0.015625, %v480_v46 }
 0x13b   : > { %v559_v51 = vadd.f32 1e-05, %v527_v47  ;;  %v574_v48 = vadd.f32 1e-05, %v542_v50 }
 0x13c   : > { %v483_v37 = vpop.xlane.xlu1 %482  ;;  %v438_v54 = vpop.xlane.xlu0 %437 }
 0x13d   : > { %1229 = vrsqrt.f32 %v559_v51  ;;  %v543_v8 = vmul.f32 0.015625, %v483_v37  ;;  %v528_v62 = vmul.f32 0.015625, %v438_v54  ;;  %v1731_v51 = vld [vmem:[%s1930_s2] ss:$0 sm:$0xff] }
 0x13e   : > { %1231 = vrsqrt.f32 %v574_v48 }
 0x13f   : > { %v575_v63 = vadd.f32 1e-05, %v543_v8  ;;  %v560_v3 = vadd.f32 1e-05, %v528_v62 }
 0x140   : > { %v441_v4 = vpop.xlane.xlu1 %440  ;;  %v486_v52 = vpop.xlane.xlu0 %485 }
 0x141   : > { %1233 = vrsqrt.f32 %v575_v63  ;;  %v529_v12 = vmul.f32 0.015625, %v441_v4  ;;  %v544_v40 = vmul.f32 0.015625, %v486_v52 }
 0x142   : > { %1235 = vrsqrt.f32 %v560_v3 }
 0x143   : > { %v1228_v41 = vpop.eup %1227  ;;  %v561_v14 = vadd.f32 1e-05, %v529_v12  ;;  %v576_v28 = vadd.f32 1e-05, %v544_v40 }
 0x144   : > { %v622_v22 = vmul.f32 %v1228_v41, %v1502_v10  ;;  %v489_v23 = vpop.xlane.xlu1 %488  ;;  %v444_v56 = vpop.xlane.xlu0 %443 }
 0x145   : > { %1237 = vrsqrt.f32 %v561_v14  ;;  %v545_v16 = vmul.f32 0.015625, %v489_v23  ;;  %v530_v30 = vmul.f32 0.015625, %v444_v56 }
 0x146   : > { %1239 = vrsqrt.f32 %v576_v28  ;;  %v661_v10 = vmul.f32 %v1723_v31, %v622_v22 }
 0x147   : > { %v1230_v32 = vpop.eup %1229  ;;  %v577_v44 = vadd.f32 1e-05, %v545_v16  ;;  %v562_v60 = vadd.f32 1e-05, %v530_v30 }
 0x148   : > { %v1232_v61 = vpop.eup %1231  ;;  %v623_v35 = vmul.f32 %v1230_v32, %v1512_v26  ;;  %v447_v42 = vpop.xlane.xlu1 %446 }
 0x149   : > { %v492_v20 = vpop.xlane.xlu0 %491  ;;  %v638_v46 = vmul.f32 %v1232_v61, %v1505_v11  ;;  %1241 = vrsqrt.f32 %v577_v44  ;;  %v531_v47 = vmul.f32 0.015625, %v447_v42  ;;  %v700_v11 = vadd.f32 %v1731_v51, %v661_v10 }
 0x14a   : > { %v546_v50 = vmul.f32 0.015625, %v492_v20  ;;  %1243 = vrsqrt.f32 %v562_v60  ;;  %v662_v48 = vmul.f32 %v1723_v31, %v623_v35 }
 0x14b   : > { %v1234_v37 = vpop.eup %1233  ;;  %v563_v54 = vadd.f32 1e-05, %v531_v47  ;;  %v677_v52 = vmul.f32 %v1723_v31, %v638_v46 }
 0x14c   : > { %v578_v26 = vadd.f32 1e-05, %v546_v50  ;;  %v1236_v8 = vpop.eup %1235  ;;  %v639_v62 = vmul.f32 %v1234_v37, %v1515_v27  ;;  %v495_v63 = vpop.xlane.xlu1 %494  ;;  %v701_v4 = vadd.f32 %v1731_v51, %v662_v48 }
 0x14d   : > { %v450_v3 = vpop.xlane.xlu0 %449  ;;  %v624_v12 = vmul.f32 %v1236_v8, %v1524_v2  ;;  %1245 = vrsqrt.f32 %v563_v54  ;;  %v547_v40 = vmul.f32 0.015625, %v495_v63  ;;  %v716_v44 = vadd.f32 %v1731_v51, %v677_v52 }
 0x14e   : > { %v532_v41 = vmul.f32 0.015625, %v450_v3  ;;  %1247 = vrsqrt.f32 %v578_v26  ;;  %v732_v14 = vpack.c.bf16 %v701_v4, %v700_v11  ;;  %v678_v28 = vmul.f32 %v1723_v31, %v639_v62 }
 0x14f   : > { %v1238_v22 = vpop.eup %1237  ;;  %v579_v23 = vadd.f32 1e-05, %v547_v40  ;;  %v663_v60 = vmul.f32 %v1723_v31, %v624_v12 }
 0x150   : > { %v564_v27 = vadd.f32 1e-05, %v532_v41  ;;  %v1240_v56 = vpop.eup %1239  ;;  %v625_v16 = vmul.f32 %v1238_v22, %v1527_v5  ;;  %v453_v30 = vpop.xlane.xlu1 %452  ;;  %1179 = vmatmul.mubr.msk.bf16.vlgmr.msra.gmra.mrb[0].mxu0 %vm236_vm0, %v732_v14  ;;  %v717_v2 = vadd.f32 %v1731_v51, %v678_v28 }
 0x151   : > { %v498_v32 = vpop.xlane.xlu0 %497  ;;  %v640_v61 = vmul.f32 %v1240_v56, %v1536_v55  ;;  %1249 = vrsqrt.f32 %v579_v23  ;;  %v533_v35 = vmul.f32 0.015625, %v453_v30  ;;  %886 = vmatprep.mubr.bf16.mxu0 %v1299_v45  ;;  %v702_v55 = vadd.f32 %v1731_v51, %v663_v60 }
 0x152   : > { %v548_v42 = vmul.f32 0.015625, %v498_v32  ;;  %1251 = vrsqrt.f32 %v564_v27  ;;  %v740_v20 = vpack.c.bf16 %v717_v2, %v716_v44  ;;  %v664_v5 = vmul.f32 %v1723_v31, %v625_v16 }
 0x153   : > { %v1242_v10 = vpop.eup %1241  ;;  %v565_v46 = vadd.f32 1e-05, %v533_v35  ;;  %v679_v8 = vmul.f32 %v1723_v31, %v640_v61 }
 0x154   : > { %v580_v47 = vadd.f32 1e-05, %v548_v42  ;;  %v1244_v50 = vpop.eup %1243  ;;  %v641_v48 = vmul.f32 %v1242_v10, %v1539_v9  ;;  %v501_v37 = vpop.xlane.xlu1 %500  ;;  %1187 = vmatmul.mubr.msk.bf16.vlgmr.msra.gmra.mrb[0].mxu1 %vm236_vm0, %v740_v20  ;;  %v703_v26 = vadd.f32 %v1731_v51, %v664_v5 }
 0x155   : > { %v456_v54 = vpop.xlane.xlu0 %455  ;;  %v626_v62 = vmul.f32 %v1244_v50, %v1548_v7  ;;  %1253 = vrsqrt.f32 %v565_v46  ;;  %v549_v63 = vmul.f32 0.015625, %v501_v37  ;;  %966 = vmatprep.mubr.bf16.mxu1 %v1299_v45  ;;  %v718_v7 = vadd.f32 %v1731_v51, %v679_v8 }
 0x156   : > { %v534_v3 = vmul.f32 0.015625, %v456_v54  ;;  %1255 = vrsqrt.f32 %v580_v47  ;;  %v733_v11 = vpack.c.bf16 %v703_v26, %v702_v55  ;;  %v680_v9 = vmul.f32 %v1723_v31, %v641_v48 }
 0x157   : > { %v1246_v4 = vpop.eup %1245  ;;  %v581_v52 = vadd.f32 1e-05, %v549_v63  ;;  %v665_v23 = vmul.f32 %v1723_v31, %v626_v62 }
 0x158   : > { %v566_v12 = vadd.f32 1e-05, %v534_v3  ;;  %v1248_v40 = vpop.eup %1247  ;;  %v627_v41 = vmul.f32 %v1246_v4, %v1551_v13  ;;  %v459_v14 = vpop.xlane.xlu1 %458  ;;  %1180 = vmatmul.mubr.msk.bf16.gmra.mrb[4].mxu0 %vm236_vm0, %v733_v11  ;;  %v719_v22 = vadd.f32 %v1731_v51, %v680_v9 }
 0x159   : > { %v504_v28 = vpop.xlane.xlu0 %503  ;;  %v642_v27 = vmul.f32 %v1248_v40, %v1560_v1  ;;  %1257 = vrsqrt.f32 %v581_v52  ;;  %v535_v56 = vmul.f32 0.015625, %v459_v14  ;;  %896 = vmatprep.mubr.bf16.mxu0 %v1299_v45  ;;  %v704_v1 = vadd.f32 %v1731_v51, %v665_v23 }
 0x15a   : > { %v550_v16 = vmul.f32 0.015625, %v504_v28  ;;  %1259 = vrsqrt.f32 %v566_v12  ;;  %v741_v30 = vpack.c.bf16 %v719_v22, %v718_v7  ;;  %v666_v13 = vmul.f32 %v1723_v31, %v627_v41 }
 0x15b   : > { %v1250_v32 = vpop.eup %1249  ;;  %v567_v44 = vadd.f32 1e-05, %v535_v56  ;;  %v681_v5 = vmul.f32 %v1723_v31, %v642_v27 }
 0x15c   : > { %v582_v2 = vadd.f32 1e-05, %v550_v16  ;;  %v1252_v60 = vpop.eup %1251  ;;  %v643_v61 = vmul.f32 %v1250_v32, %v1563_v17  ;;  %v507_v35 = vpop.xlane.xlu1 %506  ;;  %1188 = vmatmul.mubr.msk.bf16.gmra.mrb[4].mxu1 %vm236_vm0, %v741_v30  ;;  %v705_v20 = vadd.f32 %v1731_v51, %v666_v13 }
 0x15d   : > { %v462_v42 = vpop.xlane.xlu0 %461  ;;  %v628_v10 = vmul.f32 %v1252_v60, %v1572_v43  ;;  %1261 = vrsqrt.f32 %v567_v44  ;;  %v551_v46 = vmul.f32 0.015625, %v507_v35  ;;  %976 = vmatprep.mubr.bf16.mxu1 %v1299_v45  ;;  %v720_v43 = vadd.f32 %v1731_v51, %v681_v5 }
 0x15e   : > { %v536_v47 = vmul.f32 0.015625, %v462_v42  ;;  %1263 = vrsqrt.f32 %v582_v2  ;;  %v734_v50 = vpack.c.bf16 %v705_v20, %v704_v1  ;;  %v682_v17 = vmul.f32 %v1723_v31, %v643_v61 }
 0x15f   : > { %v1254_v48 = vpop.eup %1253  ;;  %v583_v37 = vadd.f32 1e-05, %v551_v46  ;;  %v667_v3 = vmul.f32 %v1723_v31, %v628_v10 }
 0x160   : > { %v568_v54 = vadd.f32 1e-05, %v536_v47  ;;  %v1256_v55 = vpop.eup %1255  ;;  %v629_v26 = vmul.f32 %v1254_v48, %v1575_v21  ;;  %v465_v8 = vpop.xlane.xlu1 %464  ;;  %1181 = vmatmul.mubr.msk.bf16.gmra.mrb[8].mxu0 %vm236_vm0, %v734_v50  ;;  %v721_v63 = vadd.f32 %v1731_v51, %v682_v17 }
 0x161   : > { %v510_v62 = vpop.xlane.xlu0 %509  ;;  %v644_v11 = vmul.f32 %v1256_v55, %v1584_v59  ;;  %1265 = vrsqrt.f32 %v583_v37  ;;  %v537_v9 = vmul.f32 0.015625, %v465_v8  ;;  %906 = vmatprep.mubr.bf16.mxu0 %v1299_v45  ;;  %v706_v59 = vadd.f32 %v1731_v51, %v667_v3 }
 0x162   : > { %v552_v4 = vmul.f32 0.015625, %v510_v62  ;;  %1267 = vrsqrt.f32 %v568_v54  ;;  %v742_v52 = vpack.c.bf16 %v721_v63, %v720_v43  ;;  %v668_v21 = vmul.f32 %v1723_v31, %v629_v26 }
 0x163   : > { %v1258_v12 = vpop.eup %1257  ;;  %v569_v40 = vadd.f32 1e-05, %v537_v9  ;;  %v683_v27 = vmul.f32 %v1723_v31, %v644_v11 }
 0x164   : > { %v584_v41 = vadd.f32 1e-05, %v552_v4  ;;  %v1260_v14 = vpop.eup %1259  ;;  %v645_v28 = vmul.f32 %v1258_v12, %v1587_v25  ;;  %v513_v7 = vpop.xlane.xlu1 %512  ;;  %1189 = vmatmul.mubr.msk.bf16.gmra.mrb[8].mxu1 %vm236_vm0, %v742_v52  ;;  %v707_v23 = vadd.f32 %v1731_v51, %v668_v21 }
 0x165   : > { %v468_v22 = vpop.xlane.xlu0 %467  ;;  %v630_v56 = vmul.f32 %v1260_v14, %v1602_v18  ;;  %1269 = vrsqrt.f32 %v569_v40  ;;  %v553_v16 = vmul.f32 0.015625, %v513_v7  ;;  %986 = vmatprep.mubr.bf16.mxu1 %v1299_v45  ;;  %v722_v18 = vadd.f32 %v1731_v51, %v683_v27 }
 0x166   : > { %v538_v30 = vmul.f32 0.015625, %v468_v22  ;;  %1271 = vrsqrt.f32 %v584_v41  ;;  %v735_v13 = vpack.c.bf16 %v707_v23, %v706_v59  ;;  %v684_v25 = vmul.f32 %v1723_v31, %v645_v28 }
 0x167   : > { %v1262_v32 = vpop.eup %1261  ;;  %v585_v44 = vadd.f32 1e-05, %v553_v16  ;;  %v669_v20 = vmul.f32 %v1723_v31, %v630_v56 }
 0x168   : > { %v570_v2 = vadd.f32 1e-05, %v538_v30  ;;  %v1264_v60 = vpop.eup %1263  ;;  %v631_v61 = vmul.f32 %v1262_v32, %v1605_v19  ;;  %v471_v35 = vpop.xlane.xlu1 %470  ;;  %1182 = vmatmul.mubr.msk.bf16.gmra.mrb[12].mxu0 %vm236_vm0, %v735_v13  ;;  %v723_v1 = vadd.f32 %v1731_v51, %v684_v25 }
 0x169   : > { %v516_v42 = vpop.xlane.xlu0 %515  ;;  %v646_v5 = vmul.f32 %v1264_v60, %v1620_v38  ;;  %1273 = vrsqrt.f32 %v585_v44  ;;  %v539_v10 = vmul.f32 0.015625, %v471_v35  ;;  %916 = vmatprep.mubr.bf16.mxu0 %v1299_v45  ;;  %v708_v38 = vadd.f32 %v1731_v51, %v669_v20 }
 0x16a   : > { %v554_v46 = vmul.f32 0.015625, %v516_v42  ;;  %1275 = vrsqrt.f32 %v570_v2  ;;  %v743_v47 = vpack.c.bf16 %v723_v1, %v722_v18  ;;  %v670_v19 = vmul.f32 %v1723_v31, %v631_v61 }
 0x16b   : > { %v1266_v50 = vpop.eup %1265  ;;  %v571_v17 = vadd.f32 1e-05, %v539_v10  ;;  %v685_v62 = vmul.f32 %v1723_v31, %v646_v5 }
 0x16c   : > { %v586_v48 = vadd.f32 1e-05, %v554_v46  ;;  %v1268_v37 = vpop.eup %1267  ;;  %v647_v54 = vmul.f32 %v1266_v50, %v1623_v39  ;;  %v519_v55 = vpop.xlane.xlu1 %518  ;;  %1190 = vmatmul.mubr.msk.bf16.gmra.mrb[12].mxu1 %vm236_vm0, %v743_v47  ;;  %v709_v8 = vadd.f32 %v1731_v51, %v670_v19 }
 0x16d   : > { %v474_v26 = vpop.xlane.xlu0 %473  ;;  %v632_v43 = vmul.f32 %v1268_v37, %v1638_v58  ;;  %1277 = vrsqrt.f32 %v571_v17  ;;  %v555_v63 = vmul.f32 0.015625, %v519_v55  ;;  %996 = vmatprep.mubr.bf16.mxu1 %v1299_v45  ;;  %v724_v58 = vadd.f32 %v1731_v51, %v685_v62 }
 0x16e   : > { %v540_v3 = vmul.f32 0.015625, %v474_v26  ;;  %1279 = vrsqrt.f32 %v586_v48  ;;  %v736_v11 = vpack.c.bf16 %v709_v8, %v708_v38  ;;  %v686_v39 = vmul.f32 %v1723_v31, %v647_v54 }
 0x16f   : > { %v1270_v9 = vpop.eup %1269  ;;  %v587_v4 = vadd.f32 1e-05, %v555_v63  ;;  %v671_v28 = vmul.f32 %v1723_v31, %v632_v43 }
 0x170   : > { %v572_v52 = vadd.f32 1e-05, %v540_v3  ;;  %v1272_v21 = vpop.eup %1271  ;;  %v633_v12 = vmul.f32 %v1270_v9, %v1641_v24  ;;  %v477_v40 = vpop.xlane.xlu1 %476  ;;  %1183 = vmatmul.mubr.msk.bf16.gmra.mrb[16].mxu0 %vm236_vm0, %v736_v11  ;;  %v725_v14 = vadd.f32 %v1731_v51, %v686_v39 }
 0x171   : > { %v522_v41 = vpop.xlane.xlu0 %521  ;;  %v648_v7 = vmul.f32 %v1272_v21, %v1656_v29  ;;  %1281 = vrsqrt.f32 %v587_v4  ;;  %v541_v22 = vmul.f32 0.015625, %v477_v40  ;;  %926 = vmatprep.mubr.bf16.mxu0 %v1299_v45  ;;  %v710_v29 = vadd.f32 %v1731_v51, %v671_v28 }
 0x172   : > { %v556_v59 = vmul.f32 0.015625, %v522_v41  ;;  %1283 = vrsqrt.f32 %v572_v52  ;;  %v744_v23 = vpack.c.bf16 %v725_v14, %v724_v58  ;;  %v672_v24 = vmul.f32 %v1723_v31, %v633_v12 }
 0x173   : > { %v1274_v27 = vpop.eup %1273  ;;  %v573_v56 = vadd.f32 1e-05, %v541_v22  ;;  %v687_v44 = vmul.f32 %v1723_v31, %v648_v7 }
 0x174   : > { %v588_v16 = vadd.f32 1e-05, %v556_v59  ;;  %v1276_v30 = vpop.eup %1275  ;;  %v649_v13 = vmul.f32 %v1274_v27, %v1659_v15  ;;  %v525_v25 = vpop.xlane.xlu1 %524  ;;  %1191 = vmatmul.mubr.msk.bf16.gmra.mrb[16].mxu1 %vm236_vm0, %v744_v23  ;;  %v711_v32 = vadd.f32 %v1731_v51, %v672_v24 }
 0x175   : > { %v634_v2 = vmul.f32 %v1276_v30, %v1670_v33  ;;  %1285 = vrsqrt.f32 %v573_v56  ;;  %v557_v60 = vmul.f32 0.015625, %v525_v25  ;;  %1006 = vmatprep.mubr.bf16.mxu1 %v1299_v45  ;;  %v726_v20 = vadd.f32 %v1731_v51, %v687_v44 }
 0x176   : > { %1287 = vrsqrt.f32 %v588_v16  ;;  %v737_v61 = vpack.c.bf16 %v711_v32, %v710_v29  ;;  %v688_v35 = vmul.f32 %v1723_v31, %v649_v13 }
 0x177   : > { %v1278_v15 = vpop.eup %1277  ;;  %v589_v42 = vadd.f32 1e-05, %v557_v60  ;;  %v673_v33 = vmul.f32 %v1723_v31, %v634_v2 }
 0x178   : > { %v1280_v18 = vpop.eup %1279  ;;  %v635_v1 = vmul.f32 %v1278_v15, %v1673_v34  ;;  %1184 = vmatmul.mubr.msk.bf16.gmra.mrb[20].mxu0 %vm236_vm0, %v737_v61  ;;  %v727_v5 = vadd.f32 %v1731_v51, %v688_v35 }
 0x179   : > { %v650_v10 = vmul.f32 %v1280_v18, %v1682_v36  ;;  %1289 = vrsqrt.f32 %v589_v42  ;;  %936 = vmatprep.mubr.bf16.mxu0 %v1299_v45  ;;  %v712_v17 = vadd.f32 %v1731_v51, %v673_v33 }
 0x17a   : > { %v745_v46 = vpack.c.bf16 %v727_v5, %v726_v20  ;;  %v674_v47 = vmul.f32 %v1723_v31, %v635_v1 }
 0x17b   : > { %v1282_v19 = vpop.eup %1281  ;;  %v689_v37 = vmul.f32 %v1723_v31, %v650_v10 }
 0x17c   : > { %v1284_v50 = vpop.eup %1283  ;;  %v651_v34 = vmul.f32 %v1282_v19, %v1685_v49  ;;  %1192 = vmatmul.mubr.msk.bf16.gmra.mrb[20].mxu1 %vm236_vm0, %v745_v46  ;;  %v713_v48 = vadd.f32 %v1731_v51, %v674_v47 }
 0x17d   : > { %v636_v36 = vmul.f32 %v1284_v50, %v1694_v6  ;;  %1016 = vmatprep.mubr.bf16.mxu1 %v1299_v45  ;;  %v728_v49 = vadd.f32 %v1731_v51, %v689_v37 }
 0x17e   : > { %v738_v54 = vpack.c.bf16 %v713_v48, %v712_v17  ;;  %v690_v55 = vmul.f32 %v1723_v31, %v651_v34 }
 0x17f   : > { %v1286_v26 = vpop.eup %1285  ;;  %v675_v43 = vmul.f32 %v1723_v31, %v636_v36 }
 0x180   : > { %v1288_v38 = vpop.eup %1287  ;;  %v637_v8 = vmul.f32 %v1286_v26, %v1697_v53  ;;  %1185 = vmatmul.mubr.msk.bf16.gmra.mrb[24].mxu0 %vm236_vm0, %v738_v54  ;;  %v729_v62 = vadd.f32 %v1731_v51, %v690_v55 }
 0x181   : > { %v652_v63 = vmul.f32 %v1288_v38, %v1706_v0  ;;  %946 = vmatprep.mubr.bf16.mxu0 %v1299_v45  ;;  %v714_v53 = vadd.f32 %v1731_v51, %v675_v43 }
 0x182   : > { %v746_v6 = vpack.c.bf16 %v729_v62, %v728_v49  ;;  %v676_v3 = vmul.f32 %v1723_v31, %v637_v8 }
 0x183   : > { %v1290_v11 = vpop.eup %1289  ;;  %v691_v4 = vmul.f32 %v1723_v31, %v652_v63 }
 0x184   : > { %v653_v39 = vmul.f32 %v1290_v11, %v1709_v57  ;;  %1193 = vmatmul.mubr.msk.bf16.gmra.mrb[24].mxu1 %vm236_vm0, %v746_v6  ;;  %v715_v9 = vadd.f32 %v1731_v51, %v676_v3 }
 0x185   : > { %1026 = vmatprep.mubr.bf16.mxu1 %v1299_v45  ;;  %v730_v21 = vadd.f32 %v1731_v51, %v691_v4 }
 0x186   : > { %v739_v0 = vpack.c.bf16 %v715_v9, %v714_v53  ;;  %v692_v52 = vmul.f32 %v1723_v31, %v653_v39 }
 0x188   : > { %1186 = vmatmul.mubr.msk.bf16.gmra.mrb[28].mxu0 %vm236_vm0, %v739_v0  ;;  %v731_v12 = vadd.f32 %v1731_v51, %v692_v52 }
 0x18a   : > { %v747_v57 = vpack.c.bf16 %v731_v12, %v730_v21 }
 0x18c   : > { %1194 = vmatmul.mubr.msk.bf16.gmra.mrb[28].mxu1 %vm236_vm0, %v747_v57 }
 0x223   : > { %v878_v45 = vpop.f32.mrb[0].mxu0 }
 0x224   : > { %1037 = vst [vmem:[%s1859_s21] sm:$0xff] %v878_v45  ;;  %v880_v31 = vpop.f32.mrb[1].mxu0 }
 0x225   : > { %1038 = vst [vmem:[%s1859_s21 + $0x8] sm:$0xff] %v880_v31  ;;  %v882_v51 = vpop.f32.mrb[2].mxu0 }
 0x226   : > { %1039 = vst [vmem:[%s1859_s21 + $0x10] sm:$0xff] %v882_v51  ;;  %v884_v40 = vpop.f32.mrb[3].mxu0 }
 0x227   : > { %1040 = vst [vmem:[%s1859_s21 + $0x18] sm:$0xff] %v884_v40  ;;  %v958_v41 = vpop.f32.mrb[0].mxu1 }
 0x228   : > { %1069 = vst [vmem:[%s1859_s21 + $0x100] sm:$0xff] %v958_v41  ;;  %v960_v58 = vpop.f32.mrb[1].mxu1 }
 0x229   : > { %1070 = vst [vmem:[%s1859_s21 + $0x108] sm:$0xff] %v960_v58  ;;  %v962_v14 = vpop.f32.mrb[2].mxu1 }
 0x22a   : > { %1071 = vst [vmem:[%s1859_s21 + $0x110] sm:$0xff] %v962_v14  ;;  %v964_v28 = vpop.f32.mrb[3].mxu1 }
 0x22b   : > { %1072 = vst [vmem:[%s1859_s21 + $0x118] sm:$0xff] %v964_v28  ;;  %v888_v7 = vpop.f32.mrb[4].mxu0 }
 0x22c   : > { %1041 = vst [vmem:[%s1859_s21 + $0x20] sm:$0xff] %v888_v7  ;;  %v890_v22 = vpop.f32.mrb[5].mxu0 }
 0x22d   : > { %1042 = vst [vmem:[%s1859_s21 + $0x28] sm:$0xff] %v890_v22  ;;  %v892_v59 = vpop.f32.mrb[6].mxu0 }
 0x22e   : > { %1043 = vst [vmem:[%s1859_s21 + $0x30] sm:$0xff] %v892_v59  ;;  %v894_v23 = vpop.f32.mrb[7].mxu0 }
 0x22f   : > { %1044 = vst [vmem:[%s1859_s21 + $0x38] sm:$0xff] %v894_v23  ;;  %v968_v24 = vpop.f32.mrb[4].mxu1 }
 0x230   : > { %1073 = vst [vmem:[%s1859_s21 + $0x120] sm:$0xff] %v968_v24  ;;  %v970_v27 = vpop.f32.mrb[5].mxu1 }
 0x231   : > { %1074 = vst [vmem:[%s1859_s21 + $0x128] sm:$0xff] %v970_v27  ;;  %v972_v56 = vpop.f32.mrb[6].mxu1 }
 0x232   : > { %1075 = vst [vmem:[%s1859_s21 + $0x130] sm:$0xff] %v972_v56  ;;  %v974_v16 = vpop.f32.mrb[7].mxu1 }
 0x233   : > { %1076 = vst [vmem:[%s1859_s21 + $0x138] sm:$0xff] %v974_v16  ;;  %v898_v30 = vpop.f32.mrb[8].mxu0 }
 0x234   : > { %1045 = vst [vmem:[%s1859_s21 + $0x40] sm:$0xff] %v898_v30  ;;  %v900_v13 = vpop.f32.mrb[9].mxu0 }
 0x235   : > { %1046 = vst [vmem:[%s1859_s21 + $0x48] sm:$0xff] %v900_v13  ;;  %v902_v25 = vpop.f32.mrb[10].mxu0 }
 0x236   : > { %1047 = vst [vmem:[%s1859_s21 + $0x50] sm:$0xff] %v902_v25  ;;  %v904_v29 = vpop.f32.mrb[11].mxu0 }
 0x237   : > { %1048 = vst [vmem:[%s1859_s21 + $0x58] sm:$0xff] %v904_v29  ;;  %v978_v32 = vpop.f32.mrb[8].mxu1 }
 0x238   : > { %1077 = vst [vmem:[%s1859_s21 + $0x140] sm:$0xff] %v978_v32  ;;  %v980_v44 = vpop.f32.mrb[9].mxu1 }
 0x239   : > { %1078 = vst [vmem:[%s1859_s21 + $0x148] sm:$0xff] %v980_v44  ;;  %v982_v2 = vpop.f32.mrb[10].mxu1 }
 0x23a   : > { %1079 = vst [vmem:[%s1859_s21 + $0x150] sm:$0xff] %v982_v2  ;;  %v984_v60 = vpop.f32.mrb[11].mxu1 }
 0x23b   : > { %1080 = vst [vmem:[%s1859_s21 + $0x158] sm:$0xff] %v984_v60  ;;  %v908_v61 = vpop.f32.mrb[12].mxu0 }
 0x23c   : > { %1049 = vst [vmem:[%s1859_s21 + $0x60] sm:$0xff] %v908_v61  ;;  %v910_v35 = vpop.f32.mrb[13].mxu0 }
 0x23d   : > { %1050 = vst [vmem:[%s1859_s21 + $0x68] sm:$0xff] %v910_v35  ;;  %v912_v15 = vpop.f32.mrb[14].mxu0 }
 0x23e   : > { %1051 = vst [vmem:[%s1859_s21 + $0x70] sm:$0xff] %v912_v15  ;;  %v914_v42 = vpop.f32.mrb[15].mxu0 }
 0x23f   : > { %1052 = vst [vmem:[%s1859_s21 + $0x78] sm:$0xff] %v914_v42  ;;  %v988_v18 = vpop.f32.mrb[12].mxu1 }
 0x240   : > { %1081 = vst [vmem:[%s1859_s21 + $0x160] sm:$0xff] %v988_v18  ;;  %v990_v1 = vpop.f32.mrb[13].mxu1 }
 0x241   : > { %1082 = vst [vmem:[%s1859_s21 + $0x168] sm:$0xff] %v990_v1  ;;  %v992_v20 = vpop.f32.mrb[14].mxu1 }
 0x242   : > { %1083 = vst [vmem:[%s1859_s21 + $0x170] sm:$0xff] %v992_v20  ;;  %v994_v5 = vpop.f32.mrb[15].mxu1 }
 0x243   : > { %1084 = vst [vmem:[%s1859_s21 + $0x178] sm:$0xff] %v994_v5  ;;  %v918_v33 = vpop.f32.mrb[16].mxu0 }
 0x244   : > { %1053 = vst [vmem:[%s1859_s21 + $0x80] sm:$0xff] %v918_v33  ;;  %v920_v10 = vpop.f32.mrb[17].mxu0 }
 0x245   : > { %1054 = vst [vmem:[%s1859_s21 + $0x88] sm:$0xff] %v920_v10  ;;  %v922_v46 = vpop.f32.mrb[18].mxu0 }
 0x246   : > { %1055 = vst [vmem:[%s1859_s21 + $0x90] sm:$0xff] %v922_v46  ;;  %v924_v47 = vpop.f32.mrb[19].mxu0 }
 0x247   : > { %1056 = vst [vmem:[%s1859_s21 + $0x98] sm:$0xff] %v924_v47  ;;  %v998_v19 = vpop.f32.mrb[16].mxu1 }
 0x248   : > { %1085 = vst [vmem:[%s1859_s21 + $0x180] sm:$0xff] %v998_v19  ;;  %v1000_v50 = vpop.f32.mrb[17].mxu1 }
 0x249   : > { %1086 = vst [vmem:[%s1859_s21 + $0x188] sm:$0xff] %v1000_v50  ;;  %v1002_v34 = vpop.f32.mrb[18].mxu1 }
 0x24a   : > { %1087 = vst [vmem:[%s1859_s21 + $0x190] sm:$0xff] %v1002_v34  ;;  %v1004_v17 = vpop.f32.mrb[19].mxu1 }
 0x24b   : > { %1088 = vst [vmem:[%s1859_s21 + $0x198] sm:$0xff] %v1004_v17  ;;  %v928_v48 = vpop.f32.mrb[20].mxu0 }
 0x24c   : > { %1057 = vst [vmem:[%s1859_s21 + $0xa0] sm:$0xff] %v928_v48  ;;  %v930_v37 = vpop.f32.mrb[21].mxu0 }
 0x24d   : > { %1058 = vst [vmem:[%s1859_s21 + $0xa8] sm:$0xff] %v930_v37  ;;  %v932_v36 = vpop.f32.mrb[22].mxu0 }
 0x24e   : > { %1059 = vst [vmem:[%s1859_s21 + $0xb0] sm:$0xff] %v932_v36  ;;  %v934_v54 = vpop.f32.mrb[23].mxu0 }
 0x24f   : > { %1060 = vst [vmem:[%s1859_s21 + $0xb8] sm:$0xff] %v934_v54  ;;  %v1008_v55 = vpop.f32.mrb[20].mxu1 }
 0x250   : > { %1089 = vst [vmem:[%s1859_s21 + $0x1a0] sm:$0xff] %v1008_v55  ;;  %v1010_v26 = vpop.f32.mrb[21].mxu1 }
 0x251   : > { %1090 = vst [vmem:[%s1859_s21 + $0x1a8] sm:$0xff] %v1010_v26  ;;  %v1012_v38 = vpop.f32.mrb[22].mxu1 }
 0x252   : > { %1091 = vst [vmem:[%s1859_s21 + $0x1b0] sm:$0xff] %v1012_v38  ;;  %v1014_v8 = vpop.f32.mrb[23].mxu1 }
 0x253   : > { %1092 = vst [vmem:[%s1859_s21 + $0x1b8] sm:$0xff] %v1014_v8  ;;  %v938_v49 = vpop.f32.mrb[24].mxu0 }
 0x254   : > { %1061 = vst [vmem:[%s1859_s21 + $0xc0] sm:$0xff] %v938_v49  ;;  %v940_v62 = vpop.f32.mrb[25].mxu0 }
 0x255   : > { %1062 = vst [vmem:[%s1859_s21 + $0xc8] sm:$0xff] %v940_v62  ;;  %v942_v43 = vpop.f32.mrb[26].mxu0 }
 0x256   : > { %1063 = vst [vmem:[%s1859_s21 + $0xd0] sm:$0xff] %v942_v43  ;;  %v944_v63 = vpop.f32.mrb[27].mxu0 }
 0x257   : > { %1064 = vst [vmem:[%s1859_s21 + $0xd8] sm:$0xff] %v944_v63  ;;  %v1018_v6 = vpop.f32.mrb[24].mxu1 }
 0x258   : > { %1093 = vst [vmem:[%s1859_s21 + $0x1c0] sm:$0xff] %v1018_v6  ;;  %v1020_v3 = vpop.f32.mrb[25].mxu1 }
 0x259   : > { %1094 = vst [vmem:[%s1859_s21 + $0x1c8] sm:$0xff] %v1020_v3  ;;  %v1022_v11 = vpop.f32.mrb[26].mxu1 }
 0x25a   : > { %1095 = vst [vmem:[%s1859_s21 + $0x1d0] sm:$0xff] %v1022_v11  ;;  %v1024_v39 = vpop.f32.mrb[27].mxu1 }
 0x25b   : > { %1096 = vst [vmem:[%s1859_s21 + $0x1d8] sm:$0xff] %v1024_v39  ;;  %v948_v53 = vpop.f32.mrb[28].mxu0 }
 0x25c   : > { %1065 = vst [vmem:[%s1859_s21 + $0xe0] sm:$0xff] %v948_v53  ;;  %v950_v9 = vpop.f32.mrb[29].mxu0 }
 0x25d   : > { %1066 = vst [vmem:[%s1859_s21 + $0xe8] sm:$0xff] %v950_v9  ;;  %v952_v4 = vpop.f32.mrb[30].mxu0 }
 0x25e   : > { %1067 = vst [vmem:[%s1859_s21 + $0xf0] sm:$0xff] %v952_v4  ;;  %v954_v0 = vpop.f32.mrb[31].mxu0 }
 0x25f   : > { %1068 = vst [vmem:[%s1859_s21 + $0xf8] sm:$0xff] %v954_v0  ;;  %v1028_v52 = vpop.f32.mrb[28].mxu1 }
 0x260   : > { %1097 = vst [vmem:[%s1859_s21 + $0x1e0] sm:$0xff] %v1028_v52  ;;  %v1030_v21 = vpop.f32.mrb[29].mxu1 }
 0x261   : > { %1098 = vst [vmem:[%s1859_s21 + $0x1e8] sm:$0xff] %v1030_v21  ;;  %v1032_v12 = vpop.f32.mrb[30].mxu1 }
 0x262   : > { %1099 = vst [vmem:[%s1859_s21 + $0x1f0] sm:$0xff] %v1032_v12  ;;  %v1034_v57 = vpop.f32.mrb[31].mxu1 }
 0x263   : > { %1100 = vst [vmem:[%s1859_s21 + $0x1f8] sm:$0xff] %v1034_v57 }
 0x264 PF: > { %s14_s15 = sadd.s32 1, %s1297_s15  }
 0x265   : > { %p11_p4 = scmp.ge.s32.totalorder %s14_s15, 4  }
 0x267   :  { %13 = sbr.rel (!%p11_p4) target bundleno = 1 (0x1), region = 66 }

// kernel: _lambda_.39
= control target key start
LH: loop header
LB: loop body
LE: loop exit
PB: predicated region body
PF: predicated region fallthrough
CT: control target
= control target key end

     0   :  { %s782_s21 = smov 0   ;;  %s885_s0 = inlined_call_operand.vmem [shape: f32[2,256,128], index: 0, kind: input, shape index: {}]   ;;  %s886_s1 = inlined_call_operand.vmem [shape: f32[2,256,128], index: 1, kind: input, shape index: {}]   ;;  %s887_s2 = inlined_call_operand.vmem [shape: f32[2,256,128], index: 2, kind: input, shape index: {}]   ;;  %s888_s3 = inlined_call_operand.vmem [shape: f32[2,256,32], index: 3, kind: input, shape index: {}]   ;;  %s889_s4 = inlined_call_operand.vmem [shape: f32[16,128], index: 4, kind: input, shape index: {}]   ;;  %s890_s5 = inlined_call_operand.vmem [shape: f32[1,128], index: 5, kind: input, shape index: {}]   ;;  %s891_s6 = inlined_call_operand.vmem [shape: f32[2,256,128], index: 6, kind: output, shape index: {}]  }
   0x1 LB: > { %s641_s22 = sadd.s32 4294967295, %s736_s21   ;;  %p645_p0 = scmp.ge.s32.totalorder %s736_s21, 1  ;;  %s736_s21 = sphi %s782_s21, %s16_s21  }
   0x2   : > { %p242_p1 = scmp.lt.s32.totalorder %s736_s21, 3 }
   0x4   : > { %p243_p2 = pnand %p645_p0, %p242_p1 }
   0x5   : > { %p287_p3 = scmp.lt.s32.totalorder (!%p243_p2), %s641_s22, 1  ;;  %v317_v0 = vlaneseq (!%p243_p2)  ;;  %v793_v1 = vld [vmem:[%s889_s4] sm:$0xff] (!%p243_p2)  ;;  %v798_v2 = vld [vmem:[%s889_s4 + $0x8] sm:$0xff] (!%p243_p2)  ;;  %v742_v4 = vmov (!%p243_p2), 0.0  }
   0x6   : > { %246 = sbr.rel (%p243_p2) target bundleno = 468 (0x1d4), region = 44  ;;  %v803_v3 = vld [vmem:[%s890_s5] sm:$0x1] (!%p243_p2)  ;;  %312 = vst [vmem:[#allocation2] sm:$0xff] (!%p243_p2), %v742_v4  ;;  %313 = vst [vmem:[#allocation2 + $0x8] sm:$0xff] (!%p243_p2), %v742_v4 }
   0x7   : > { %v805_v5 = vshrl.u32 (!%p243_p2), %v317_v0, 7  ;;  %v321_v6 = vand.u32 (!%p243_p2), 127, %v317_v0 }
   0x9   : > { %v319_v7 = vadd.s32 (!%p243_p2), 8, %v805_v5  ;;  %vm322_vm0 = vcmp.eq.s32.totalorder (!%p243_p2), %v805_v5, %v321_v6 }
   0xa   : > { %v819_v8 = vsel (!%p243_p2), %vm322_vm0, 1.0, %v742_v4 }
   0xb   : > { %vm323_vm1 = vcmp.eq.s32.totalorder (!%p243_p2), %v319_v7, %v321_v6 }
   0xc   : > { %v833_v9 = vsel (!%p243_p2), %vm323_vm1, 1.0, %v742_v4 }
   0xd   : > { %s893_s22 = smov (!%p287_p3, %s641_s22), 1 }
   0xe   : > { %s807_s29 = sshll.u32 %s893_s22, 8  ;;  %s835_s22 = smov 0  }
   0xf   : > { %s291_s8 = scalar_lea.vmem %s885_s0, %s807_s29  ;;  %s296_s11 = scalar_lea.vmem %s886_s1, %s807_s29 }
  0x10   : > { %s301_s14 = scalar_lea.vmem %s887_s2, %s807_s29  ;;  %s306_s17 = scalar_lea.vmem %s888_s3, %s807_s29 }
  0x11   : > { %s311_s20 = scalar_lea.vmem %s891_s6, %s807_s29 }
  0x12 LB: >> { %s334_s25 = scalar_lea.vmem %s291_s8, %s740_s22  ;;  %s336_s28 = scalar_lea.vmem %s296_s11, %s740_s22  ;;  %v344_v10 = vsub.s32 0, %v805_v5  ;;  %vm363_vm2 = vcmask 130048   ;;  %v744_v20 = vmov 0.0|0.0   ;;  %vm745_vm3 = vmmov 0   ;;  %v446_v27 = vld [vmem:[#allocation2 + $0x8] sm:$0xff]  ;;  %v445_v29 = vld [vmem:[#allocation2] sm:$0xff]  ;;  %s740_s22 = sphi %s835_s22, %s333_s22  }
  0x13   : >> { %v335_v11 = vld [vmem:[%s334_s25] sm:$0x1]  ;;  %s340_s9 = scalar_lea.vmem %s306_s17, %s740_s22  ;;  %s743_s10 = smov 112   ;;  %694 = vmatprep.subr.bf16.mxu1 %v744_v20  ;;  %v746_v21 = vmov 0.0  }
  0x14   : >> { %v337_v12 = vld [vmem:[%s336_s28] sm:$0x1]  ;;  %v345_v13 = vrot.slane %v335_v11, %v344_v10  ;;  %687 = vmatprep.mubr.msk.f32.mxu1 %vm745_vm3, %v746_v21  ;;  %s338_s15 = scalar_lea.vmem %s301_s14, %s740_s22  ;;  %s538_s19 = scalar_lea.vmem %s311_s20, %s740_s22 }
  0x15   : >> { %v352_v14 = vmul.f32 %v337_v12, %v335_v11  ;;  %v658_v15 = vld [vmem:[%s340_s9] ss:$0 sm:$0xff]  ;;  %v535_v44 = vmul.f32 %v337_v12, %v803_v3  ;;  %s333_s22 = sadd.s32 1, %s740_s22  }
  0x16   : >> { %v357_v16 = vmul.f32 %v658_v15, %v819_v8  ;;  %454 = vrot.lane.b32.xlu0 %v658_v15, %s743_s10  ;;  %v358_v19 = vmul.f32 %v658_v15, %v833_v9  ;;  %v347_v22 = vmul.f32 %v345_v13, %v798_v2  ;;  %v346_v23 = vmul.f32 %v345_v13, %v793_v1  ;;  %v339_v38 = vld [vmem:[%s338_s15] sm:$0x1]  ;;  %p330_p4 = scmp.ge.s32.totalorder %s333_s22, 256  }
  0x17   : >> { %v362_v17 = vrot.slane %v352_v14, %v344_v10  ;;  %v528_v39 = vsub.f32 0.0, %v339_v38 }
  0x18   : >> { %680 = vmatprep.mubr.msk.f32.mxu0 %vm363_vm2, %v357_v16  ;;  %v350_v24 = vmul.f32 1.442695, %v347_v22  ;;  %v348_v25 = vmul.f32 1.442695, %v346_v23 }
  0x19   : >> { %v690_v18 = vpack.c.bf16 %v362_v17, %v362_v17  ;;  %v529_v40 = vmul.f32 1.442695, %v528_v39 }
  0x1a   : >> { %718 = vpow2.f32 %v350_v24 }
  0x1b   : >> { %691 = vmatprep.subr.bf16.mxu0 %v690_v18  ;;  %720 = vpow2.f32 %v348_v25 }
  0x1c   : >> { %693 = vmatpush3.bf16.msra.mxu0 %v690_v18  ;;  %722 = vpow2.f32 %v529_v40 }
  0x1f   : >> { %681 = vmatmul.mubr.msk.f32.vlgmr.msra.gmra.mrb[0].mxu0 %vm363_vm2, %v358_v19 }
  0x24   : >> { %v719_v26 = vpop.eup %718 }
  0x25   : >> { %v721_v28 = vpop.eup %720  ;;  %v448_v30 = vmul.f32 %v719_v26, %v446_v27 }
  0x26   : >> { %v447_v31 = vmul.f32 %v721_v28, %v445_v29  ;;  %v723_v41 = vpop.eup %722 }
  0x27   : >> { %v531_v42 = vadd.f32 1.0, %v723_v41 }
  0x29   : >> { %724 = vrcp.f32 %v531_v42 }
  0x33   : >> { %v725_v43 = vpop.eup %724 }
  0x34   : >> { %v534_v45 = vmul.f32 %v725_v43, %v339_v38 }
  0x88   : >> { %v455_v37 = vpop.permute.xlu0 %454 }
  0xf2   : >> { %v682_v32 = vpop.f32.mrb[0].mxu0 }
  0xf3   : >> { %v450_v33 = vadd.f32 %v682_v32, %v448_v30  ;;  %v436_v34 = vpop.f32.mrb[1].mxu0 }
  0xf4   : >> { %v449_v35 = vadd.f32 %v447_v31, %v436_v34 }
  0xf5   : >> { %452 = vst [vmem:[#allocation2 + $0x8] sm:$0xff] %v450_v33 }
  0xf6   : >> { %451 = vst [vmem:[#allocation2] sm:$0xff] %v449_v35  ;;  %v695_v36 = vpack.c.bf16 %v450_v33, %v449_v35 }
  0xf8   : >> { %696 = vmatpush3.bf16.msra.mxu1 %v695_v36 }
  0xfb   : >> { %688 = vmatmul.mubr.msk.f32.vlgmr.msra.gmra.mrb[0].mxu1 %vm363_vm2, %v455_v37 }
 0x1cd   : > { %332 = sbr.rel (!%p330_p4) target bundleno = 18 (0x12), region = 95 }
 0x1ce   : >> { %v524_v46 = vpop.f32.mrb[0].mxu1 }
 0x1cf   : >> { %v536_v47 = vadd.f32 %v535_v44, %v524_v46  ;;  %v689_v48 = vpop.f32.mrb[1].mxu1 }
 0x1d1   : >> { %v537_v49 = vmul.f32 %v536_v47, %v534_v45 }
 0x1d3   : >> { %539 = vst [vmem:[%s538_s19] sm:$0x1] %v537_v49 }
 0x1d4 PF: > { %s16_s21 = sadd.s32 1, %s736_s21  }
 0x1d5   : > { %p13_p5 = scmp.ge.s32.totalorder %s16_s21, 4  }
 0x1d7   :  { %15 = sbr.rel (!%p13_p5) target bundleno = 1 (0x1), region = 106 }

// kernel: _lambda_.38
= control target key start
LH: loop header
LB: loop body
LE: loop exit
PB: predicated region body
PF: predicated region fallthrough
CT: control target
= control target key end

     0   :  { %s1215_s15 = smov 0   ;;  %s1608_s0 = inlined_call_operand.vmem [shape: f32[512,128], index: 0, kind: input, shape index: {}]   ;;  %s1609_s1 = inlined_call_operand.vmem [shape: bf16[128,128], index: 1, kind: input, shape index: {}]   ;;  %s1610_s2 = inlined_call_operand.vmem [shape: f32[1,128], index: 2, kind: input, shape index: {}]   ;;  %s1611_s3 = inlined_call_operand.vmem [shape: f32[1,128], index: 3, kind: input, shape index: {}]   ;;  %s1612_s4 = inlined_call_operand.vmem [shape: f32[512,128], index: 4, kind: output, shape index: {}]  }
   0x1 LB: > { %s929_s16 = sadd.s32 4294967295, %s1188_s15   ;;  %p933_p0 = scmp.ge.s32.totalorder %s1188_s15, 1  ;;  %s1188_s15 = sphi %s1215_s15, %s14_s15  }
   0x2   : > { %p163_p1 = scmp.lt.s32.totalorder %s1188_s15, 3 }
   0x4   : > { %p164_p2 = pnand %p933_p0, %p163_p1 }
   0x5   : > { %v1046_v0 = vld [vmem:[%s1609_s1] sm:$0xff] (!%p164_p2)   ;;  %s934_s19 = sshll.u32 (!%p164_p2), %s929_s16, 5  ;;  %v1047_v1 = vld [vmem:[%s1609_s1 + $0x8] sm:$0xff] (!%p164_p2)   ;;  %v1048_v2 = vld [vmem:[%s1609_s1 + $0x10] sm:$0xff] (!%p164_p2)  }
   0x6   : > { %167 = sbr.rel (%p164_p2) target bundleno = 364 (0x16c), region = 36  ;;  %p190_p3 = scmp.lt.s32.totalorder (!%p164_p2), %s934_s19, 63  ;;  %974 = vmatprep.subr.bf16.mxu0 (!%p164_p2), %v1046_v0  ;;  %1022 = vmatprep.subr.bf16.mxu1 (!%p164_p2), %v1046_v0  ;;  %v1049_v3 = vld [vmem:[%s1609_s1 + $0x18] sm:$0xff] (!%p164_p2)   ;;  %v1050_v10 = vld [vmem:[%s1609_s1 + $0x20] sm:$0xff] (!%p164_p2)   ;;  %v1051_v11 = vld [vmem:[%s1609_s1 + $0x28] sm:$0xff] (!%p164_p2)  }
   0x7   : > { %975 = vmatpush3.bf16.msra.mxu0 (!%p164_p2), %v1046_v0  ;;  %1030 = vmatpush3.bf16.msra.mxu1 (!%p164_p2), %v1046_v0  ;;  %v1052_v12 = vld [vmem:[%s1609_s1 + $0x30] sm:$0xff] (!%p164_p2)   ;;  %v1053_v13 = vld [vmem:[%s1609_s1 + $0x38] sm:$0xff] (!%p164_p2)   ;;  %v1292_v56 = vld [vmem:[%s1610_s2] ss:$0 sm:$0xff] (!%p164_p2) }
   0x8   : > { %976 = vmatprep.subr.bf16.mxu0 (!%p164_p2), %v1047_v1  ;;  %1023 = vmatprep.subr.bf16.mxu1 (!%p164_p2), %v1047_v1  ;;  %v1297_v58 = vld [vmem:[%s1611_s3] ss:$0 sm:$0xff] (!%p164_p2) }
   0xb   : > { %977 = vmatpush3.bf16.msra.mxu0 (!%p164_p2), %v1047_v1  ;;  %1031 = vmatpush3.bf16.msra.mxu1 (!%p164_p2), %v1047_v1 }
   0xc   : > { %978 = vmatprep.subr.bf16.mxu0 (!%p164_p2), %v1048_v2  ;;  %1024 = vmatprep.subr.bf16.mxu1 (!%p164_p2), %v1048_v2 }
   0xd   : > { %s1614_s19 = smov (!%p190_p3, %s934_s19), 63 }
   0xe   : > { %s935_s24 = sshll.u32 %s1614_s19, 3 }
   0xf   : > { %s1240_s27 = scalar_lea.vmem %s1608_s0, %s935_s24  ;;  %979 = vmatpush3.bf16.msra.mxu0 %v1048_v2  ;;  %1032 = vmatpush3.bf16.msra.mxu1 %v1048_v2  ;;  %s1444_s20 = scalar_lea.vmem %s1612_s4, %s935_s24 }
  0x10   : > { %v202_v4 = vld [vmem:[%s1240_s27] sm:$0xff]  ;;  %v203_v5 = vld [vmem:[%s1240_s27 + $0x8] sm:$0xff]  ;;  %980 = vmatprep.subr.bf16.mxu0 %v1049_v3  ;;  %1025 = vmatprep.subr.bf16.mxu1 %v1049_v3  ;;  %v204_v14 = vld [vmem:[%s1240_s27 + $0x10] sm:$0xff] }
  0x11   : > { %v218_v6 = vld [vmem:[%s1240_s27 + $0x80] sm:$0xff]  ;;  %v234_v7 = vpack.c.bf16 %v203_v5, %v202_v4  ;;  %v219_v8 = vld [vmem:[%s1240_s27 + $0x88] sm:$0xff]  ;;  %v205_v15 = vld [vmem:[%s1240_s27 + $0x18] sm:$0xff] }
  0x12   : > { %v242_v9 = vpack.c.bf16 %v219_v8, %v218_v6  ;;  %v220_v16 = vld [vmem:[%s1240_s27 + $0x90] sm:$0xff]  ;;  %v221_v17 = vld [vmem:[%s1240_s27 + $0x98] sm:$0xff]  ;;  %v206_v18 = vld [vmem:[%s1240_s27 + $0x20] sm:$0xff]  ;;  %v235_v22 = vpack.c.bf16 %v205_v15, %v204_v14 }
  0x13   : > { %990 = vmatprep.mubr.bf16.mxu0 %v234_v7  ;;  %981 = vmatpush3.bf16.msra.mxu0 %v1049_v3  ;;  %v207_v19 = vld [vmem:[%s1240_s27 + $0x28] sm:$0xff]  ;;  %v222_v20 = vld [vmem:[%s1240_s27 + $0xa0] sm:$0xff]  ;;  %v243_v23 = vpack.c.bf16 %v221_v17, %v220_v16  ;;  %v208_v26 = vld [vmem:[%s1240_s27 + $0x30] sm:$0xff] }
  0x14   : > { %1006 = vmatprep.mubr.bf16.mxu1 %v242_v9  ;;  %1033 = vmatpush3.bf16.msra.mxu1 %v1049_v3  ;;  %v223_v21 = vld [vmem:[%s1240_s27 + $0xa8] sm:$0xff]  ;;  %v236_v24 = vpack.c.bf16 %v207_v19, %v206_v18  ;;  %v209_v27 = vld [vmem:[%s1240_s27 + $0x38] sm:$0xff]  ;;  %v224_v28 = vld [vmem:[%s1240_s27 + $0xb0] sm:$0xff] }
  0x15   : > { %982 = vmatprep.subr.bf16.mxu0 %v1050_v10  ;;  %1026 = vmatprep.subr.bf16.mxu1 %v1050_v10  ;;  %v244_v25 = vpack.c.bf16 %v223_v21, %v222_v20  ;;  %v225_v29 = vld [vmem:[%s1240_s27 + $0xb8] sm:$0xff]  ;;  %v210_v30 = vld [vmem:[%s1240_s27 + $0x40] sm:$0xff]  ;;  %v211_v31 = vld [vmem:[%s1240_s27 + $0x48] sm:$0xff]  ;;  %v237_v34 = vpack.c.bf16 %v209_v27, %v208_v26 }
  0x16   : > { %v226_v32 = vld [vmem:[%s1240_s27 + $0xc0] sm:$0xff]  ;;  %v227_v33 = vld [vmem:[%s1240_s27 + $0xc8] sm:$0xff]  ;;  %v245_v35 = vpack.c.bf16 %v225_v29, %v224_v28  ;;  %v238_v36 = vpack.c.bf16 %v211_v31, %v210_v30  ;;  %v212_v38 = vld [vmem:[%s1240_s27 + $0x50] sm:$0xff] }
  0x17   : > { %983 = vmatpush3.bf16.msra.mxu0 %v1050_v10  ;;  %v246_v37 = vpack.c.bf16 %v227_v33, %v226_v32  ;;  %v213_v39 = vld [vmem:[%s1240_s27 + $0x58] sm:$0xff]  ;;  %v228_v40 = vld [vmem:[%s1240_s27 + $0xd0] sm:$0xff]  ;;  %v214_v42 = vld [vmem:[%s1240_s27 + $0x60] sm:$0xff] }
  0x18   : > { %1034 = vmatpush3.bf16.msra.mxu1 %v1050_v10  ;;  %984 = vmatprep.subr.bf16.mxu0 %v1051_v11  ;;  %v229_v41 = vld [vmem:[%s1240_s27 + $0xd8] sm:$0xff]  ;;  %v215_v43 = vld [vmem:[%s1240_s27 + $0x68] sm:$0xff]  ;;  %v230_v44 = vld [vmem:[%s1240_s27 + $0xe0] sm:$0xff]  ;;  %v239_v46 = vpack.c.bf16 %v213_v39, %v212_v38 }
  0x19   : > { %1027 = vmatprep.subr.bf16.mxu1 %v1051_v11  ;;  %v231_v45 = vld [vmem:[%s1240_s27 + $0xe8] sm:$0xff]  ;;  %v247_v47 = vpack.c.bf16 %v229_v41, %v228_v40  ;;  %v240_v48 = vpack.c.bf16 %v215_v43, %v214_v42  ;;  %v216_v50 = vld [vmem:[%s1240_s27 + $0x70] sm:$0xff]  ;;  %v217_v51 = vld [vmem:[%s1240_s27 + $0x78] sm:$0xff] }
  0x1a   : > { %v248_v49 = vpack.c.bf16 %v231_v45, %v230_v44  ;;  %v232_v52 = vld [vmem:[%s1240_s27 + $0xf0] sm:$0xff]  ;;  %v233_v53 = vld [vmem:[%s1240_s27 + $0xf8] sm:$0xff]  ;;  %v241_v54 = vpack.c.bf16 %v217_v51, %v216_v50 }
  0x1b   : > { %985 = vmatpush3.bf16.msra.mxu0 %v1051_v11  ;;  %v249_v55 = vpack.c.bf16 %v233_v53, %v232_v52 }
  0x1c   : > { %1035 = vmatpush3.bf16.msra.mxu1 %v1051_v11  ;;  %986 = vmatprep.subr.bf16.mxu0 %v1052_v12 }
  0x1d   : > { %1028 = vmatprep.subr.bf16.mxu1 %v1052_v12 }
  0x1f   : > { %987 = vmatpush3.bf16.msra.mxu0 %v1052_v12 }
  0x20   : > { %1036 = vmatpush3.bf16.msra.mxu1 %v1052_v12  ;;  %988 = vmatprep.subr.bf16.mxu0 %v1053_v13 }
  0x21   : > { %1029 = vmatprep.subr.bf16.mxu1 %v1053_v13 }
  0x23   : > { %989 = vmatpush3.bf16.msra.mxu0 %v1053_v13 }
  0x24   : > { %1037 = vmatpush3.bf16.msra.mxu1 %v1053_v13 }
  0x26   : > { %991 = vmatmul.mubr.bf16.vlgmr.msra.gmra.mrb[0].mxu0 %v235_v22 }
  0x27   : > { %1007 = vmatmul.mubr.bf16.vlgmr.msra.gmra.mrb[0].mxu1 %v243_v23  ;;  %994 = vmatprep.mubr.bf16.mxu0 %v236_v24 }
  0x28   : > { %1010 = vmatprep.mubr.bf16.mxu1 %v244_v25 }
  0x2e   : > { %995 = vmatmul.mubr.bf16.gmra.mrb[4].mxu0 %v237_v34 }
  0x2f   : > { %1011 = vmatmul.mubr.bf16.gmra.mrb[4].mxu1 %v245_v35  ;;  %998 = vmatprep.mubr.bf16.mxu0 %v238_v36 }
  0x30   : > { %1014 = vmatprep.mubr.bf16.mxu1 %v246_v37 }
  0x36   : > { %999 = vmatmul.mubr.bf16.gmra.mrb[8].mxu0 %v239_v46 }
  0x37   : > { %1015 = vmatmul.mubr.bf16.gmra.mrb[8].mxu1 %v247_v47  ;;  %1002 = vmatprep.mubr.bf16.mxu0 %v240_v48 }
  0x38   : > { %1018 = vmatprep.mubr.bf16.mxu1 %v248_v49 }
  0x3e   : > { %1003 = vmatmul.mubr.bf16.gmra.mrb[12].mxu0 %v241_v54 }
  0x3f   : > { %1019 = vmatmul.mubr.bf16.gmra.mrb[12].mxu1 %v249_v55 }
  0xf9   : > { %v992_v57 = vpop.f32.mrb[0].mxu0 }
  0xfa   : > { %v1008_v59 = vpop.f32.mrb[0].mxu1  ;;  %v484_v60 = vmul.f32 %v992_v57, %v1292_v56  ;;  %v348_v62 = vpop.f32.mrb[1].mxu0 }
  0xfb   : > { %v500_v61 = vmul.f32 %v1008_v59, %v1292_v56  ;;  %v412_v63 = vpop.f32.mrb[1].mxu1  ;;  %v482_v0 = vmul.f32 %v1292_v56, %v348_v62  ;;  %v993_v2 = vpop.f32.mrb[2].mxu0 }
  0xfc   : > { %v498_v1 = vmul.f32 %v1292_v56, %v412_v63  ;;  %v1009_v3 = vpop.f32.mrb[2].mxu1  ;;  %v1304_v4 = vadd.f32 %v1297_v58, %v484_v60  ;;  %v485_v6 = vmul.f32 %v993_v2, %v1292_v56  ;;  %v351_v8 = vpop.f32.mrb[3].mxu0 }
  0xfd   : > { %v1307_v5 = vadd.f32 %v1297_v58, %v500_v61  ;;  %v501_v7 = vmul.f32 %v1009_v3, %v1292_v56  ;;  %v415_v9 = vpop.f32.mrb[3].mxu1  ;;  %v1312_v10 = vadd.f32 %v1297_v58, %v482_v0  ;;  %v483_v12 = vmul.f32 %v1292_v56, %v351_v8 }
  0xfe   : > { %v1315_v11 = vadd.f32 %v1297_v58, %v498_v1  ;;  %v499_v13 = vmul.f32 %v1292_v56, %v415_v9  ;;  %v587_v14 = vand.u32 2147483647, %v1304_v4  ;;  %v1324_v20 = vadd.f32 %v1297_v58, %v485_v6 }
  0xff   : > { %v603_v15 = vand.u32 2147483647, %v1307_v5  ;;  %v585_v16 = vand.u32 2147483647, %v1312_v10  ;;  %v1327_v21 = vadd.f32 %v1297_v58, %v501_v7  ;;  %v1330_v24 = vadd.f32 %v1297_v58, %v483_v12 }
 0x100   : > { %v601_v17 = vand.u32 2147483647, %v1315_v11  ;;  %v619_v18 = vsub.f32 0.0, %v587_v14  ;;  %v1333_v25 = vadd.f32 %v1297_v58, %v499_v13  ;;  %v588_v32 = vand.u32 2147483647, %v1324_v20 }
 0x101   : > { %v635_v19 = vsub.f32 0.0, %v603_v15  ;;  %v617_v22 = vsub.f32 0.0, %v585_v16  ;;  %v996_v26 = vpop.f32.mrb[4].mxu0  ;;  %v604_v34 = vand.u32 2147483647, %v1327_v21  ;;  %v555_v50 = vmax.f32 %v1304_v4, 0.0 }
 0x102   : > { %v633_v23 = vsub.f32 0.0, %v601_v17  ;;  %v1012_v27 = vpop.f32.mrb[4].mxu1  ;;  %v653_v28 = vmul.f32 1.442695, %v619_v18  ;;  %v488_v33 = vmul.f32 %v996_v26, %v1292_v56  ;;  %v586_v35 = vand.u32 2147483647, %v1330_v24 }
 0x103   : > { %v685_v29 = vmul.f32 1.442695, %v635_v19  ;;  %v649_v30 = vmul.f32 1.442695, %v617_v22  ;;  %v364_v36 = vpop.f32.mrb[5].mxu0  ;;  %v620_v37 = vsub.f32 0.0, %v588_v32  ;;  %v504_v48 = vmul.f32 %v1012_v27, %v1292_v56 }
 0x104   : > { %v681_v31 = vmul.f32 1.442695, %v633_v23  ;;  %1054 = vpow2.f32 %v653_v28  ;;  %v602_v38 = vand.u32 2147483647, %v1333_v25  ;;  %v428_v39 = vpop.f32.mrb[5].mxu1  ;;  %v997_v40 = vpop.f32.mrb[6].mxu0  ;;  %v1341_v43 = vadd.f32 %v1297_v58, %v488_v33 }
 0x105   : > { %1056 = vpow2.f32 %v685_v29  ;;  %v636_v41 = vsub.f32 0.0, %v604_v34  ;;  %v618_v42 = vsub.f32 0.0, %v586_v35  ;;  %v1013_v44 = vpop.f32.mrb[6].mxu1  ;;  %v367_v45 = vpop.f32.mrb[7].mxu0  ;;  %v655_v46 = vmul.f32 1.442695, %v620_v37 }
 0x106   : > { %1058 = vpow2.f32 %v649_v30  ;;  %v634_v47 = vsub.f32 0.0, %v602_v38  ;;  %v1344_v49 = vpop.f32.mrb[7].mxu1  ;;  %v486_v53 = vmul.f32 %v1292_v56, %v364_v36  ;;  %v591_v55 = vand.u32 2147483647, %v1341_v43 }
 0x107   : > { %1060 = vpow2.f32 %v681_v31  ;;  %v687_v51 = vmul.f32 1.442695, %v636_v41  ;;  %v651_v52 = vmul.f32 1.442695, %v618_v42  ;;  %v1350_v57 = vadd.f32 %v1297_v58, %v504_v48 }
 0x108   : > { %1062 = vpow2.f32 %v655_v46  ;;  %v683_v54 = vmul.f32 1.442695, %v634_v47  ;;  %v1357_v61 = vadd.f32 %v1297_v58, %v486_v53  ;;  %v502_v62 = vmul.f32 %v1292_v56, %v428_v39 }
 0x109   : > { %v1352_v59 = vpop.f32.mrb[8].mxu0  ;;  %1064 = vpow2.f32 %v687_v51  ;;  %v489_v63 = vmul.f32 %v997_v40, %v1292_v56  ;;  %v571_v2 = vmax.f32 %v1307_v5, 0.0  ;;  %v623_v3 = vsub.f32 0.0, %v591_v55 }
 0x10a   : > { %v1354_v60 = vpop.f32.mrb[8].mxu1  ;;  %v1361_v0 = vpop.f32.mrb[9].mxu0  ;;  %1066 = vpow2.f32 %v651_v52  ;;  %v607_v6 = vand.u32 2147483647, %v1350_v57  ;;  %v553_v9 = vmax.f32 %v1312_v10, 0.0  ;;  %v1374_v13 = vadd.f32 %v1297_v58, %v502_v62 }
 0x10b   : > { %v1363_v1 = vpop.f32.mrb[9].mxu1  ;;  %v1367_v7 = vpop.f32.mrb[10].mxu0  ;;  %1068 = vpow2.f32 %v683_v54  ;;  %v589_v12 = vand.u32 2147483647, %v1357_v61  ;;  %v661_v16 = vmul.f32 1.442695, %v623_v3  ;;  %v1381_v18 = vadd.f32 %v1297_v58, %v489_v63 }
 0x10c   : > { %v1369_v8 = vpop.f32.mrb[10].mxu1  ;;  %v1376_v14 = vpop.f32.mrb[11].mxu0  ;;  %v639_v17 = vsub.f32 0.0, %v607_v6  ;;  %v505_v19 = vmul.f32 %v1013_v44, %v1292_v56  ;;  %v569_v23 = vmax.f32 %v1315_v11, 0.0  ;;  %v556_v26 = vmax.f32 %v1324_v20, 0.0 }
 0x10d   : > { %v1378_v15 = vpop.f32.mrb[11].mxu1  ;;  %v605_v27 = vand.u32 2147483647, %v1374_v13  ;;  %v487_v28 = vmul.f32 %v1292_v56, %v367_v45  ;;  %v572_v31 = vmax.f32 %v1327_v21, 0.0  ;;  %1070 = vpow2.f32 %v661_v16 }
 0x10e   : > { %v1055_v22 = vpop.eup %1054  ;;  %v621_v32 = vsub.f32 0.0, %v589_v12  ;;  %v693_v35 = vmul.f32 1.442695, %v639_v17  ;;  %v592_v37 = vand.u32 2147483647, %v1381_v18  ;;  %v1391_v40 = vadd.f32 %v1297_v58, %v505_v19 }
 0x10f   : > { %v1057_v29 = vpop.eup %1056  ;;  %v715_v30 = vadd.f32 1.0, %v1055_v22  ;;  %v637_v36 = vsub.f32 0.0, %v605_v27  ;;  %v1394_v41 = vadd.f32 %v1297_v58, %v487_v28  ;;  %v554_v46 = vmax.f32 %v1330_v24, 0.0 }
 0x110   : > { %v1059_v33 = vpop.eup %1058  ;;  %v731_v34 = vadd.f32 1.0, %v1057_v29  ;;  %v570_v47 = vmax.f32 %v1333_v25, 0.0  ;;  %v657_v53 = vmul.f32 1.442695, %v621_v32  ;;  %v608_v54 = vand.u32 2147483647, %v1391_v40 }
 0x111   : > { %v1061_v38 = vpop.eup %1060  ;;  %1072 = vlog2.f32 %v715_v30  ;;  %v713_v39 = vadd.f32 1.0, %v1059_v33  ;;  %v1396_v42 = vpop.f32.mrb[12].mxu0  ;;  %v689_v6 = vmul.f32 1.442695, %v637_v36  ;;  %v590_v12 = vand.u32 2147483647, %v1394_v41 }
 0x112   : > { %v1398_v44 = vpop.f32.mrb[12].mxu1  ;;  %1074 = vlog2.f32 %v731_v34  ;;  %v729_v45 = vadd.f32 1.0, %v1061_v38  ;;  %v1402_v48 = vpop.f32.mrb[13].mxu0  ;;  %v624_v22 = vsub.f32 0.0, %v592_v37  ;;  %v503_v27 = vmul.f32 %v1292_v56, %v1344_v49 }
 0x113   : > { %v1404_v51 = vpop.f32.mrb[13].mxu1  ;;  %v1063_v52 = vpop.eup %1062  ;;  %1076 = vlog2.f32 %v713_v39  ;;  %v640_v32 = vsub.f32 0.0, %v608_v54  ;;  %v492_v33 = vmul.f32 %v1352_v59, %v1292_v56  ;;  %v622_v36 = vsub.f32 0.0, %v590_v12 }
 0x114   : > { %v1407_v55 = vpop.f32.mrb[14].mxu0  ;;  %v1409_v62 = vpop.f32.mrb[14].mxu1  ;;  %1078 = vlog2.f32 %v729_v45  ;;  %v716_v3 = vadd.f32 1.0, %v1063_v52  ;;  %v1421_v38 = vadd.f32 %v1297_v58, %v503_v27  ;;  %v508_v37 = vmul.f32 %v1354_v60, %v1292_v56 }
 0x115   : > { %v1065_v63 = vpop.eup %1064  ;;  %v1412_v16 = vpop.f32.mrb[15].mxu0  ;;  %1080 = vpow2.f32 %v693_v35  ;;  %v559_v35 = vmax.f32 %v1341_v43, 0.0  ;;  %v1425_v49 = vadd.f32 %v1297_v58, %v492_v33  ;;  %v663_v45 = vmul.f32 1.442695, %v624_v22 }
 0x116   : > { %v1067_v17 = vpop.eup %1066  ;;  %v732_v19 = vadd.f32 1.0, %v1065_v63  ;;  %v1416_v28 = vpop.f32.mrb[15].mxu1  ;;  %1082 = vlog2.f32 %v716_v3  ;;  %v606_v59 = vand.u32 2147483647, %v1421_v38  ;;  %v490_v52 = vmul.f32 %v1292_v56, %v1361_v0 }
 0x117   : > { %v1069_v29 = vpop.eup %1068  ;;  %v714_v30 = vadd.f32 1.0, %v1067_v17  ;;  %v695_v63 = vmul.f32 1.442695, %v640_v32  ;;  %v595_v3 = vand.u32 2147483647, %v1425_v49  ;;  %v1434_v60 = vadd.f32 %v1297_v58, %v508_v37 }
 0x118   : > { %1084 = vlog2.f32 %v732_v19  ;;  %v730_v34 = vadd.f32 1.0, %v1069_v29  ;;  %v1071_v39 = vpop.eup %1070  ;;  %v659_v17 = vmul.f32 1.442695, %v622_v36  ;;  %v638_v19 = vsub.f32 0.0, %v606_v59 }
 0x119   : > { %1086 = vlog2.f32 %v714_v30  ;;  %v719_v54 = vadd.f32 1.0, %v1071_v39  ;;  %v627_v29 = vsub.f32 0.0, %v595_v3  ;;  %v1437_v30 = vadd.f32 %v1297_v58, %v490_v52 }
 0x11a   : > { %1088 = vlog2.f32 %v730_v34  ;;  %v506_v32 = vmul.f32 %v1292_v56, %v1363_v1  ;;  %v575_v4 = vmax.f32 %v1350_v57, 0.0  ;;  %v507_v43 = vmul.f32 %v1292_v56, %v1378_v15 }
 0x11b   : > { %1090 = vpow2.f32 %v657_v53  ;;  %v1073_v12 = vpop.eup %1072  ;;  %v669_v37 = vmul.f32 1.442695, %v627_v29  ;;  %v593_v10 = vand.u32 2147483647, %v1437_v30  ;;  %v496_v15 = vmul.f32 %v1396_v42, %v1292_v56 }
 0x11c   : > { %1092 = vpow2.f32 %v689_v6  ;;  %v1075_v27 = vpop.eup %1074  ;;  %v750_v22 = vmul.f32 0.6931472, %v1073_v12  ;;  %v691_v6 = vmul.f32 1.442695, %v638_v19  ;;  %v574_v42 = vmax.f32 %v1421_v38, 0.0 }
 0x11d   : > { %1094 = vlog2.f32 %v719_v54  ;;  %v1077_v0 = vpop.eup %1076  ;;  %v782_v53 = vmul.f32 0.6931472, %v1075_v27  ;;  %v1520_v57 = vadd.f32 %v1297_v58, %v496_v15  ;;  %v494_v38 = vmul.f32 %v1292_v56, %v1402_v48 }
 0x11e   : > { %1096 = vpow2.f32 %v663_v45  ;;  %v1079_v33 = vpop.eup %1078  ;;  %v811_v34 = vadd.f32 %v750_v22, %v555_v50  ;;  %v746_v36 = vmul.f32 0.6931472, %v1077_v0  ;;  %v611_v45 = vand.u32 2147483647, %v1434_v60 }
 0x11f   : > { %1098 = vpow2.f32 %v695_v63  ;;  %v1081_v39 = vpop.eup %1080  ;;  %v827_v59 = vadd.f32 %v782_v53, %v571_v2  ;;  %v778_v52 = vmul.f32 0.6931472, %v1079_v33  ;;  %v493_v22 = vmul.f32 %v1367_v7, %v1292_v56 }
 0x120   : > { %1100 = vpow2.f32 %v659_v17  ;;  %v1083_v54 = vpop.eup %1082  ;;  %843 = vst [vmem:[%s1444_s20 + $0x10] sm:$0xff] %v811_v34  ;;  %v809_v1 = vadd.f32 %v746_v36, %v553_v9  ;;  %v735_v50 = vadd.f32 1.0, %v1081_v39  ;;  %v643_v3 = vsub.f32 0.0, %v611_v45 }
 0x121   : > { %1102 = vpow2.f32 %v691_v6  ;;  %859 = vst [vmem:[%s1444_s20 + $0x90] sm:$0xff] %v827_v59  ;;  %v825_v5 = vadd.f32 %v778_v52, %v569_v23  ;;  %v752_v2 = vmul.f32 0.6931472, %v1083_v54  ;;  %v1463_v9 = vadd.f32 %v1297_v58, %v506_v32 }
 0x122   : > { %v1085_v63 = vpop.eup %1084  ;;  %1104 = vpow2.f32 %v669_v37  ;;  %841 = vst [vmem:[%s1444_s20] sm:$0xff] %v809_v1  ;;  %v701_v23 = vmul.f32 1.442695, %v643_v3  ;;  %v557_v6 = vmax.f32 %v1357_v61, 0.0  ;;  %v625_v32 = vsub.f32 0.0, %v593_v10 }
 0x123   : > { %v1087_v12 = vpop.eup %1086  ;;  %v784_v17 = vmul.f32 0.6931472, %v1085_v63  ;;  %1106 = vlog2.f32 %v735_v50  ;;  %857 = vst [vmem:[%s1444_s20 + $0x80] sm:$0xff] %v825_v5  ;;  %v812_v27 = vadd.f32 %v752_v2, %v556_v26  ;;  %v609_v34 = vand.u32 2147483647, %v1463_v9 }
 0x124   : > { %v1089_v19 = vpop.eup %1088  ;;  %v748_v11 = vmul.f32 0.6931472, %v1087_v12  ;;  %1108 = vpow2.f32 %v701_v23  ;;  %v665_v36 = vmul.f32 1.442695, %v625_v32  ;;  %v1481_v37 = vadd.f32 %v1297_v58, %v493_v22 }
 0x125   : > { %v1091_v29 = vpop.eup %1090  ;;  %v828_v0 = vadd.f32 %v784_v17, %v572_v31  ;;  %v780_v53 = vmul.f32 0.6931472, %v1089_v19  ;;  %844 = vst [vmem:[%s1444_s20 + $0x18] sm:$0xff] %v812_v27  ;;  %v641_v24 = vsub.f32 0.0, %v609_v34  ;;  %v573_v45 = vmax.f32 %v1374_v13, 0.0 }
 0x126   : > { %v1093_v33 = vpop.eup %1092  ;;  %v810_v20 = vadd.f32 %v748_v11, %v554_v46  ;;  %v717_v26 = vadd.f32 1.0, %v1091_v29  ;;  %v509_v46 = vmul.f32 %v1369_v8, %v1292_v56  ;;  %v491_v10 = vmul.f32 %v1292_v56, %v1376_v14 }
 0x127   : > { %v1095_v7 = vpop.eup %1094  ;;  %860 = vst [vmem:[%s1444_s20 + $0x98] sm:$0xff] %v828_v0  ;;  %v826_v21 = vadd.f32 %v780_v53, %v570_v47  ;;  %v733_v31 = vadd.f32 1.0, %v1093_v33  ;;  %v596_v47 = vand.u32 2147483647, %v1481_v37  ;;  %v697_v63 = vmul.f32 1.442695, %v641_v24 }
 0x128   : > { %v1097_v39 = vpop.eup %1096  ;;  %842 = vst [vmem:[%s1444_s20 + $0x8] sm:$0xff] %v810_v20  ;;  %v758_v59 = vmul.f32 0.6931472, %v1095_v7  ;;  %1110 = vlog2.f32 %v717_v26  ;;  %v1492_v3 = vadd.f32 %v1297_v58, %v509_v46  ;;  %v560_v19 = vmax.f32 %v1381_v18, 0.0 }
 0x129   : > { %v1099_v52 = vpop.eup %1098  ;;  %858 = vst [vmem:[%s1444_s20 + $0x88] sm:$0xff] %v826_v21  ;;  %1112 = vlog2.f32 %v733_v31  ;;  %v720_v25 = vadd.f32 1.0, %v1097_v39  ;;  %v628_v8 = vsub.f32 0.0, %v596_v47  ;;  %v1502_v29 = vadd.f32 %v1297_v58, %v491_v10 }
 0x12a   : > { %v1101_v54 = vpop.eup %1100  ;;  %v815_v1 = vadd.f32 %v758_v59, %v559_v35  ;;  %v736_v50 = vadd.f32 1.0, %v1099_v52  ;;  %1114 = vpow2.f32 %v665_v36  ;;  %v612_v22 = vand.u32 2147483647, %v1492_v3 }
 0x12b   : > { %v1103_v5 = vpop.eup %1102  ;;  %1116 = vlog2.f32 %v720_v25  ;;  %v718_v2 = vadd.f32 1.0, %v1101_v54  ;;  %v671_v11 = vmul.f32 1.442695, %v628_v8  ;;  %v1505_v14 = vadd.f32 %v1297_v58, %v507_v43 }
 0x12c   : > { %v1105_v12 = vpop.eup %1104  ;;  %847 = vst [vmem:[%s1444_s20 + $0x30] sm:$0xff] %v815_v1  ;;  %1118 = vlog2.f32 %v736_v50  ;;  %v734_v17 = vadd.f32 1.0, %v1103_v5  ;;  %v512_v18 = vmul.f32 %v1398_v44, %v1292_v56  ;;  %v576_v32 = vmax.f32 %v1391_v40, 0.0 }
 0x12d   : > { %v1107_v35 = vpop.eup %1106  ;;  %1120 = vlog2.f32 %v718_v2  ;;  %v723_v27 = vadd.f32 1.0, %v1105_v12  ;;  %v644_v33 = vsub.f32 0.0, %v612_v22  ;;  %v558_v20 = vmax.f32 %v1394_v41, 0.0 }
 0x12e   : > { %v790_v23 = vmul.f32 0.6931472, %v1107_v35  ;;  %1122 = vlog2.f32 %v734_v17  ;;  %v1109_v0 = vpop.eup %1108  ;;  %v594_v34 = vand.u32 2147483647, %v1502_v29  ;;  %v610_v44 = vand.u32 2147483647, %v1505_v14 }
 0x12f   : > { %1124 = vlog2.f32 %v723_v27  ;;  %v739_v26 = vadd.f32 1.0, %v1109_v0  ;;  %v703_v21 = vmul.f32 1.442695, %v644_v33  ;;  %v1523_v41 = vadd.f32 %v1297_v58, %v512_v18 }
 0x130   : > { %v831_v53 = vadd.f32 %v790_v23, %v575_v4  ;;  %1126 = vpow2.f32 %v697_v63  ;;  %v626_v31 = vsub.f32 0.0, %v594_v34  ;;  %v642_v59 = vsub.f32 0.0, %v610_v44 }
 0x131   : > { %1128 = vpow2.f32 %v671_v11  ;;  %v599_v47 = vand.u32 2147483647, %v1520_v57  ;;  %v563_v63 = vmax.f32 %v1425_v49, 0.0  ;;  %v1537_v13 = vadd.f32 %v1297_v58, %v494_v38 }
 0x132   : > { %v1111_v7 = vpop.eup %1110  ;;  %863 = vst [vmem:[%s1444_s20 + $0xb0] sm:$0xff] %v831_v53  ;;  %1130 = vlog2.f32 %v739_v26  ;;  %v667_v25 = vmul.f32 1.442695, %v626_v31  ;;  %v699_v5 = vmul.f32 1.442695, %v642_v59  ;;  %v579_v23 = vmax.f32 %v1434_v60, 0.0 }
 0x133   : > { %v1113_v4 = vpop.eup %1112  ;;  %v754_v40 = vmul.f32 0.6931472, %v1111_v7  ;;  %1132 = vpow2.f32 %v703_v21  ;;  %v631_v61 = vsub.f32 0.0, %v599_v47  ;;  %v597_v0 = vand.u32 2147483647, %v1537_v13 }
 0x134   : > { %v1115_v36 = vpop.eup %1114  ;;  %v786_v39 = vmul.f32 0.6931472, %v1113_v4  ;;  %v497_v34 = vmul.f32 %v1407_v55, %v1292_v56  ;;  %v513_v7 = vmul.f32 %v1409_v62, %v1292_v56 }
 0x135   : > { %v1117_v24 = vpop.eup %1116  ;;  %v813_v46 = vadd.f32 %v754_v40, %v557_v6  ;;  %v721_v52 = vadd.f32 1.0, %v1115_v36  ;;  %v615_v6 = vand.u32 2147483647, %v1523_v41  ;;  %v677_v43 = vmul.f32 1.442695, %v631_v61 }
 0x136   : > { %v1119_v54 = vpop.eup %1118  ;;  %v829_v1 = vadd.f32 %v786_v39, %v573_v45  ;;  %v760_v50 = vmul.f32 0.6931472, %v1117_v24  ;;  %v629_v60 = vsub.f32 0.0, %v597_v0  ;;  %v1558_v31 = vadd.f32 %v1297_v58, %v497_v34 }
 0x137   : > { %v1121_v2 = vpop.eup %1120  ;;  %845 = vst [vmem:[%s1444_s20 + $0x20] sm:$0xff] %v813_v46  ;;  %v792_v48 = vmul.f32 0.6931472, %v1119_v54  ;;  %1134 = vlog2.f32 %v721_v52  ;;  %v1562_v36 = vadd.f32 %v1297_v58, %v513_v7  ;;  %v561_v24 = vmax.f32 %v1437_v30, 0.0 }
 0x138   : > { %v1123_v8 = vpop.eup %1122  ;;  %861 = vst [vmem:[%s1444_s20 + $0xa0] sm:$0xff] %v829_v1  ;;  %v816_v12 = vadd.f32 %v760_v50, %v560_v19  ;;  %v756_v17 = vmul.f32 0.6931472, %v1121_v2  ;;  %1136 = vpow2.f32 %v667_v25  ;;  %v647_v19 = vsub.f32 0.0, %v615_v6 }
 0x139   : > { %v1125_v45 = vpop.eup %1124  ;;  %v832_v49 = vadd.f32 %v792_v48, %v576_v32  ;;  %v788_v10 = vmul.f32 0.6931472, %v1123_v8  ;;  %1138 = vpow2.f32 %v699_v5  ;;  %v673_v40 = vmul.f32 1.442695, %v629_v60 }
 0x13a   : > { %v1127_v35 = vpop.eup %1126  ;;  %848 = vst [vmem:[%s1444_s20 + $0x38] sm:$0xff] %v816_v12  ;;  %v814_v27 = vadd.f32 %v756_v17, %v558_v20  ;;  %v766_v11 = vmul.f32 0.6931472, %v1125_v45  ;;  %1140 = vpow2.f32 %v677_v43  ;;  %v709_v33 = vmul.f32 1.442695, %v647_v19 }
 0x13b   : > { %v1129_v22 = vpop.eup %1128  ;;  %864 = vst [vmem:[%s1444_s20 + $0xb8] sm:$0xff] %v832_v49  ;;  %v830_v15 = vadd.f32 %v788_v10, %v574_v42  ;;  %v737_v18 = vadd.f32 1.0, %v1127_v35  ;;  %v510_v20 = vmul.f32 %v1292_v56, %v1404_v51  ;;  %v495_v51 = vmul.f32 %v1292_v56, %v1412_v16 }
 0x13c   : > { %846 = vst [vmem:[%s1444_s20 + $0x28] sm:$0xff] %v814_v27  ;;  %v819_v53 = vadd.f32 %v766_v11, %v563_v63  ;;  %v724_v32 = vadd.f32 1.0, %v1129_v22  ;;  %v1131_v26 = vpop.eup %1130  ;;  %v600_v59 = vand.u32 2147483647, %v1558_v31  ;;  %v616_v1 = vand.u32 2147483647, %v1562_v36 }
 0x13d   : > { %862 = vst [vmem:[%s1444_s20 + $0xa8] sm:$0xff] %v830_v15  ;;  %1142 = vlog2.f32 %v737_v18  ;;  %v1133_v42 = vpop.eup %1132  ;;  %v798_v21 = vmul.f32 0.6931472, %v1131_v26  ;;  %v1553_v44 = vadd.f32 %v1297_v58, %v510_v20  ;;  %v1566_v38 = vadd.f32 %v1297_v58, %v495_v51 }
 0x13e   : > { %851 = vst [vmem:[%s1444_s20 + $0x50] sm:$0xff] %v819_v53  ;;  %1144 = vlog2.f32 %v724_v32  ;;  %v740_v4 = vadd.f32 1.0, %v1133_v42  ;;  %v632_v54 = vsub.f32 0.0, %v600_v59  ;;  %v648_v6 = vsub.f32 0.0, %v616_v1 }
 0x13f   : > { %1146 = vpow2.f32 %v709_v33  ;;  %v835_v55 = vadd.f32 %v798_v21, %v579_v23  ;;  %v613_v62 = vand.u32 2147483647, %v1553_v44  ;;  %v598_v2 = vand.u32 2147483647, %v1566_v38 }
 0x140   : > { %1148 = vlog2.f32 %v740_v4  ;;  %v679_v61 = vmul.f32 1.442695, %v632_v54  ;;  %v511_v30 = vmul.f32 %v1292_v56, %v1416_v28  ;;  %v711_v45 = vmul.f32 1.442695, %v648_v6 }
 0x141   : > { %v1135_v39 = vpop.eup %1134  ;;  %867 = vst [vmem:[%s1444_s20 + $0xd0] sm:$0xff] %v835_v55  ;;  %1150 = vpow2.f32 %v673_v40  ;;  %v645_v52 = vsub.f32 0.0, %v613_v62  ;;  %v630_v12 = vsub.f32 0.0, %v598_v2  ;;  %v577_v43 = vmax.f32 %v1463_v9, 0.0 }
 0x142   : > { %v1137_v16 = vpop.eup %1136  ;;  %v762_v46 = vmul.f32 0.6931472, %v1135_v39  ;;  %v1576_v49 = vadd.f32 %v1297_v58, %v511_v30  ;;  %v564_v56 = vmax.f32 %v1481_v37, 0.0  ;;  %v580_v0 = vmax.f32 %v1492_v3, 0.0 }
 0x143   : > { %v1139_v25 = vpop.eup %1138  ;;  %v722_v47 = vadd.f32 1.0, %v1137_v16  ;;  %v705_v5 = vmul.f32 1.442695, %v645_v52  ;;  %v675_v27 = vmul.f32 1.442695, %v630_v12  ;;  %v562_v60 = vmax.f32 %v1502_v29, 0.0 }
 0x144   : > { %v817_v50 = vadd.f32 %v762_v46, %v561_v24  ;;  %v738_v63 = vadd.f32 1.0, %v1139_v25  ;;  %v1141_v48 = vpop.eup %1140  ;;  %v614_v23 = vand.u32 2147483647, %v1576_v49  ;;  %v578_v42 = vmax.f32 %v1505_v14, 0.0 }
 0x145   : > { %1152 = vlog2.f32 %v722_v47  ;;  %v727_v8 = vadd.f32 1.0, %v1141_v48  ;;  %v567_v62 = vmax.f32 %v1520_v57, 0.0  ;;  %v583_v25 = vmax.f32 %v1523_v41, 0.0 }
 0x146   : > { %849 = vst [vmem:[%s1444_s20 + $0x40] sm:$0xff] %v817_v50  ;;  %1154 = vlog2.f32 %v738_v63  ;;  %v646_v9 = vsub.f32 0.0, %v614_v23  ;;  %v565_v50 = vmax.f32 %v1537_v13, 0.0  ;;  %v568_v12 = vmax.f32 %v1558_v31, 0.0 }
 0x147   : > { %v1143_v17 = vpop.eup %1142  ;;  %1156 = vpow2.f32 %v705_v5 }
 0x148   : > { %v1145_v10 = vpop.eup %1144  ;;  %v794_v35 = vmul.f32 0.6931472, %v1143_v17  ;;  %1158 = vlog2.f32 %v727_v8  ;;  %v707_v32 = vmul.f32 1.442695, %v646_v9 }
 0x149   : > { %v1147_v11 = vpop.eup %1146  ;;  %v768_v28 = vmul.f32 0.6931472, %v1145_v10  ;;  %1160 = vpow2.f32 %v679_v61  ;;  %v581_v61 = vmax.f32 %v1553_v44, 0.0 }
 0x14a   : > { %v833_v19 = vadd.f32 %v794_v35, %v577_v43  ;;  %v743_v22 = vadd.f32 1.0, %v1147_v11  ;;  %1162 = vpow2.f32 %v711_v45  ;;  %v1149_v58 = vpop.eup %1148  ;;  %v584_v45 = vmax.f32 %v1562_v36, 0.0 }
 0x14b   : > { %v820_v15 = vadd.f32 %v768_v28, %v564_v56  ;;  %1164 = vpow2.f32 %v675_v27  ;;  %v1151_v18 = vpop.eup %1150  ;;  %v800_v53 = vmul.f32 0.6931472, %v1149_v58  ;;  %v566_v35 = vmax.f32 %v1566_v38, 0.0 }
 0x14c   : > { %865 = vst [vmem:[%s1444_s20 + $0xc0] sm:$0xff] %v833_v19  ;;  %1166 = vlog2.f32 %v743_v22  ;;  %v725_v37 = vadd.f32 1.0, %v1151_v18  ;;  %v582_v28 = vmax.f32 %v1576_v49, 0.0 }
 0x14d   : > { %852 = vst [vmem:[%s1444_s20 + $0x58] sm:$0xff] %v820_v15  ;;  %v836_v33 = vadd.f32 %v800_v53, %v580_v0 }
 0x14e   : > { %1168 = vlog2.f32 %v725_v37 }
 0x14f   : > { %v1153_v20 = vpop.eup %1152  ;;  %868 = vst [vmem:[%s1444_s20 + $0xd8] sm:$0xff] %v836_v33  ;;  %1170 = vpow2.f32 %v707_v32 }
 0x150   : > { %v1155_v26 = vpop.eup %1154  ;;  %v764_v34 = vmul.f32 0.6931472, %v1153_v20 }
 0x151   : > { %v1157_v7 = vpop.eup %1156  ;;  %v796_v3 = vmul.f32 0.6931472, %v1155_v26 }
 0x152   : > { %v1159_v21 = vpop.eup %1158  ;;  %v818_v51 = vadd.f32 %v764_v34, %v562_v60  ;;  %v741_v4 = vadd.f32 1.0, %v1157_v7 }
 0x153   : > { %v1161_v40 = vpop.eup %1160  ;;  %v834_v55 = vadd.f32 %v796_v3, %v578_v42  ;;  %v774_v39 = vmul.f32 0.6931472, %v1159_v21 }
 0x154   : > { %v1163_v59 = vpop.eup %1162  ;;  %850 = vst [vmem:[%s1444_s20 + $0x48] sm:$0xff] %v818_v51  ;;  %1172 = vlog2.f32 %v741_v4  ;;  %v728_v29 = vadd.f32 1.0, %v1161_v40 }
 0x155   : > { %v1165_v16 = vpop.eup %1164  ;;  %866 = vst [vmem:[%s1444_s20 + $0xc8] sm:$0xff] %v834_v55  ;;  %v823_v24 = vadd.f32 %v774_v39, %v567_v62  ;;  %v744_v46 = vadd.f32 1.0, %v1163_v59 }
 0x156   : > { %v1167_v14 = vpop.eup %1166  ;;  %1174 = vlog2.f32 %v728_v29  ;;  %v726_v52 = vadd.f32 1.0, %v1165_v16 }
 0x157   : > { %855 = vst [vmem:[%s1444_s20 + $0x70] sm:$0xff] %v823_v24  ;;  %v806_v47 = vmul.f32 0.6931472, %v1167_v14  ;;  %1176 = vlog2.f32 %v744_v46 }
 0x158   : > { %1178 = vlog2.f32 %v726_v52  ;;  %v1169_v57 = vpop.eup %1168 }
 0x159   : > { %v839_v54 = vadd.f32 %v806_v47, %v583_v25  ;;  %v1171_v1 = vpop.eup %1170  ;;  %v770_v63 = vmul.f32 0.6931472, %v1169_v57 }
 0x15a   : > { %v742_v5 = vadd.f32 1.0, %v1171_v1 }
 0x15b   : > { %871 = vst [vmem:[%s1444_s20 + $0xf0] sm:$0xff] %v839_v54  ;;  %v821_v2 = vadd.f32 %v770_v63, %v565_v50 }
 0x15c   : > { %1180 = vlog2.f32 %v742_v5 }
 0x15d   : > { %853 = vst [vmem:[%s1444_s20 + $0x60] sm:$0xff] %v821_v2 }
 0x15e   : > { %v1173_v48 = vpop.eup %1172 }
 0x15f   : > { %v802_v41 = vmul.f32 0.6931472, %v1173_v48 }
 0x160   : > { %v1175_v6 = vpop.eup %1174 }
 0x161   : > { %v1177_v30 = vpop.eup %1176  ;;  %v837_v8 = vadd.f32 %v802_v41, %v581_v61  ;;  %v776_v13 = vmul.f32 0.6931472, %v1175_v6 }
 0x162   : > { %v1179_v17 = vpop.eup %1178  ;;  %v808_v10 = vmul.f32 0.6931472, %v1177_v30 }
 0x163   : > { %869 = vst [vmem:[%s1444_s20 + $0xe0] sm:$0xff] %v837_v8  ;;  %v824_v43 = vadd.f32 %v776_v13, %v568_v12  ;;  %v772_v27 = vmul.f32 0.6931472, %v1179_v17 }
 0x164   : > { %v840_v44 = vadd.f32 %v808_v10, %v584_v45 }
 0x165   : > { %856 = vst [vmem:[%s1444_s20 + $0x78] sm:$0xff] %v824_v43  ;;  %v822_v11 = vadd.f32 %v772_v27, %v566_v35 }
 0x166   : > { %872 = vst [vmem:[%s1444_s20 + $0xf8] sm:$0xff] %v840_v44  ;;  %v1181_v56 = vpop.eup %1180 }
 0x167   : > { %854 = vst [vmem:[%s1444_s20 + $0x68] sm:$0xff] %v822_v11  ;;  %v804_v31 = vmul.f32 0.6931472, %v1181_v56 }
 0x169   : > { %v838_v23 = vadd.f32 %v804_v31, %v582_v28 }
 0x16b   : > { %870 = vst [vmem:[%s1444_s20 + $0xe8] sm:$0xff] %v838_v23 }
 0x16c PF: > { %s14_s15 = sadd.s32 1, %s1188_s15  }
 0x16d   : > { %p11_p4 = scmp.ge.s32.totalorder %s14_s15, 4  }
 0x16f   :  { %13 = sbr.rel (!%p11_p4) target bundleno = 1 (0x1), region = 66 }

// kernel: _lambda_.36
= control target key start
LH: loop header
LB: loop body
LE: loop exit
PB: predicated region body
PF: predicated region fallthrough
CT: control target
= control target key end

     0   :  { %s1412_s12 = smov 0   ;;  %s1927_s0 = inlined_call_operand.vmem [shape: f32[2,259,128], index: 0, kind: input, shape index: {}]   ;;  %s1928_s1 = inlined_call_operand.vmem [shape: f32[4,128], index: 1, kind: input, shape index: {}]   ;;  %s1929_s2 = inlined_call_operand.vmem [shape: f32[1,128], index: 2, kind: input, shape index: {}]   ;;  %s1930_s3 = inlined_call_operand.vmem [shape: f32[2,256,128], index: 3, kind: output, shape index: {}]  }
   0x1 LB: > { %s1226_s13 = sadd.s32 4294967295, %s1390_s12   ;;  %p1230_p0 = scmp.ge.s32.totalorder %s1390_s12, 1  ;;  %s1390_s12 = sphi %s1412_s12, %s13_s12  }
   0x2   : > { %p137_p1 = scmp.lt.s32.totalorder %s1390_s12, 3 }
   0x4   : > { %p138_p2 = pnand %p1230_p0, %p137_p1 }
   0x5   : > { %p161_p3 = scmp.lt.s32.totalorder (!%p138_p2), %s1226_s13, 1  ;;  %v1426_v0 = vld [vmem:[%s1928_s1] ss:$0 sm:$0xff] (!%p138_p2)  ;;  %v1431_v1 = vld [vmem:[%s1928_s1 + $0x1] ss:$0 sm:$0xff] (!%p138_p2)  ;;  %vm344_vm0 = vcmask (!%p138_p2), 1046528  }
   0x6   : > { %141 = sbr.rel (%p138_p2) target bundleno = 211 (0xd3), region = 32  ;;  %v1436_v2 = vld [vmem:[%s1928_s1 + $0x2] ss:$0 sm:$0xff] (!%p138_p2)  ;;  %v1446_v3 = vld [vmem:[%s1928_s1 + $0x3] ss:$0 sm:$0xff] (!%p138_p2)  ;;  %vm545_vm1 = vcmask (!%p138_p2), 1045504  }
   0x7   : > { %vm746_vm2 = vcmask (!%p138_p2), 1044480   ;;  %v1476_v41 = vld [vmem:[%s1929_s2] ss:$0 sm:$0xff] (!%p138_p2) }
   0xd   : > { %s1932_s13 = smov (!%p161_p3, %s1226_s13), 1 }
   0xe   : > { %s1242_s14 = smul.u32 264, %s1932_s13  ;;  %s1241_s28 = sshll.u32 %s1932_s13, 8 }
   0xf   : > { %s1569_s4 = scalar_lea.vmem %s1930_s3, %s1241_s28 }
  0x10   : > { %s1441_s23 = scalar_lea.vmem %s1927_s0, %s1242_s14 }
  0x11   : > { %v171_v4 = vld [vmem:[%s1441_s23] sm:$0xff]  ;;  %v172_v5 = vld [vmem:[%s1441_s23 + $0x8] sm:$0xff]  ;;  %v173_v6 = vld [vmem:[%s1441_s23 + $0x10] sm:$0xff] }
  0x12   : > { %v209_v7 = vmul.f32 %v1426_v0, %v171_v4  ;;  %v278_v8 = vmul.f32 %v1431_v1, %v171_v4  ;;  %v279_v9 = vmul.f32 %v1431_v1, %v172_v5  ;;  %v479_v10 = vmul.f32 %v1436_v2, %v171_v4  ;;  %v174_v23 = vld [vmem:[%s1441_s23 + $0x18] sm:$0xff]  ;;  %v175_v36 = vld [vmem:[%s1441_s23 + $0x20] sm:$0xff]  ;;  %v176_v54 = vld [vmem:[%s1441_s23 + $0x28] sm:$0xff] }
  0x13   : > { %v480_v11 = vmul.f32 %v1436_v2, %v172_v5  ;;  %v680_v12 = vmul.f32 %v1446_v3, %v171_v4  ;;  %v681_v13 = vmul.f32 %v1446_v3, %v172_v5  ;;  %v210_v14 = vmul.f32 %v1426_v0, %v172_v5 }
  0x14   : > { %v345_v15 = vrot.slane %v278_v8, 1  ;;  %v346_v16 = vrot.slane %v279_v9, 1  ;;  %v546_v17 = vrot.slane %v479_v10, 2  ;;  %v280_v18 = vmul.f32 %v1431_v1, %v173_v6 }
  0x15   : > { %v547_v19 = vrot.slane %v480_v11, 2  ;;  %v747_v20 = vrot.slane %v680_v12, 3  ;;  %v748_v21 = vrot.slane %v681_v13, 3  ;;  %v481_v22 = vmul.f32 %v1436_v2, %v173_v6 }
  0x16   : > { %v347_v24 = vsel %vm344_vm0, %v345_v15, %v346_v16  ;;  %v348_v25 = vrot.slane %v280_v18, 1  ;;  %v682_v26 = vmul.f32 %v1446_v3, %v173_v6  ;;  %v211_v27 = vmul.f32 %v1426_v0, %v173_v6  ;;  %v177_v15 = vld [vmem:[%s1441_s23 + $0x30] sm:$0xff] }
  0x17   : > { %v442_v28 = vadd.f32 %v347_v24, %v209_v7  ;;  %v548_v29 = vsel %vm545_vm1, %v546_v17, %v547_v19  ;;  %v749_v30 = vsel %vm746_vm2, %v747_v20, %v748_v21  ;;  %v549_v31 = vrot.slane %v481_v22, 2 }
  0x18   : > { %v349_v32 = vsel %vm344_vm0, %v346_v16, %v348_v25  ;;  %v750_v33 = vrot.slane %v682_v26, 3  ;;  %v281_v34 = vmul.f32 %v1431_v1, %v174_v23  ;;  %v482_v35 = vmul.f32 %v1436_v2, %v174_v23 }
  0x19   : > { %v643_v37 = vadd.f32 %v548_v29, %v442_v28  ;;  %v443_v38 = vadd.f32 %v349_v32, %v210_v14  ;;  %v550_v39 = vsel %vm545_vm1, %v547_v19, %v549_v31  ;;  %v683_v40 = vmul.f32 %v1446_v3, %v174_v23 }
  0x1a   : > { %v751_v42 = vsel %vm746_vm2, %v748_v21, %v750_v33  ;;  %v350_v43 = vrot.slane %v281_v34, 1  ;;  %v551_v44 = vrot.slane %v482_v35, 2  ;;  %v212_v45 = vmul.f32 %v1426_v0, %v174_v23 }
  0x1b   : > { %v844_v46 = vadd.f32 %v749_v30, %v643_v37  ;;  %v644_v47 = vadd.f32 %v550_v39, %v443_v38  ;;  %v752_v48 = vrot.slane %v683_v40, 3  ;;  %v282_v49 = vmul.f32 %v1431_v1, %v175_v36  ;;  %v178_v30 = vld [vmem:[%s1441_s23 + $0x38] sm:$0xff] }
  0x1c   : > { %v351_v50 = vsel %vm344_vm0, %v348_v25, %v350_v43  ;;  %v552_v51 = vsel %vm545_vm1, %v549_v31, %v551_v44  ;;  %v483_v52 = vmul.f32 %v1436_v2, %v175_v36  ;;  %v684_v53 = vmul.f32 %v1446_v3, %v175_v36 }
  0x1d   : > { %v1487_v55 = vadd.f32 %v1476_v41, %v844_v46  ;;  %v845_v56 = vadd.f32 %v751_v42, %v644_v47  ;;  %v444_v57 = vadd.f32 %v351_v50, %v211_v27  ;;  %v753_v58 = vsel %vm746_vm2, %v750_v33, %v752_v48  ;;  %v179_v47 = vld [vmem:[%s1441_s23 + $0x40] sm:$0xff] }
  0x1e   : > { %v352_v59 = vrot.slane %v282_v49, 1  ;;  %v553_v60 = vrot.slane %v483_v52, 2  ;;  %v754_v61 = vrot.slane %v684_v53, 3  ;;  %v213_v62 = vmul.f32 %v1426_v0, %v175_v36 }
  0x1f   : > { %v915_v63 = vsub.f32 0.0, %v1487_v55  ;;  %v1493_v4 = vadd.f32 %v1476_v41, %v845_v56  ;;  %v645_v5 = vadd.f32 %v552_v51, %v444_v57  ;;  %v283_v6 = vmul.f32 %v1431_v1, %v176_v54 }
  0x20   : > { %v353_v7 = vsel %vm344_vm0, %v350_v43, %v352_v59  ;;  %v554_v8 = vsel %vm545_vm1, %v551_v44, %v553_v60  ;;  %v755_v9 = vsel %vm746_vm2, %v752_v48, %v754_v61  ;;  %v484_v10 = vmul.f32 %v1436_v2, %v176_v54 }
  0x21   : > { %v947_v11 = vmul.f32 1.442695, %v915_v63  ;;  %v916_v12 = vsub.f32 0.0, %v1493_v4  ;;  %v846_v13 = vadd.f32 %v753_v58, %v645_v5  ;;  %v445_v14 = vadd.f32 %v353_v7, %v212_v45 }
  0x22   : > { %v354_v16 = vrot.slane %v283_v6, 1  ;;  %v555_v17 = vrot.slane %v484_v10, 2  ;;  %v685_v18 = vmul.f32 %v1446_v3, %v176_v54  ;;  %v214_v19 = vmul.f32 %v1426_v0, %v176_v54 }
  0x23   : > { %1251 = vpow2.f32 %v947_v11  ;;  %v949_v20 = vmul.f32 1.442695, %v916_v12  ;;  %v1505_v21 = vadd.f32 %v1476_v41, %v846_v13  ;;  %v646_v22 = vadd.f32 %v554_v8, %v445_v14 }
  0x24   : > { %v355_v23 = vsel %vm344_vm0, %v352_v59, %v354_v16  ;;  %v556_v24 = vsel %vm545_vm1, %v553_v60, %v555_v17  ;;  %v756_v25 = vrot.slane %v685_v18, 3  ;;  %v284_v26 = vmul.f32 %v1431_v1, %v177_v15  ;;  %v180_v18 = vld [vmem:[%s1441_s23 + $0x48] sm:$0xff] }
  0x25   : > { %1253 = vpow2.f32 %v949_v20  ;;  %v917_v27 = vsub.f32 0.0, %v1505_v21  ;;  %v847_v28 = vadd.f32 %v755_v9, %v646_v22  ;;  %v446_v29 = vadd.f32 %v355_v23, %v213_v62 }
  0x26   : > { %v757_v31 = vsel %vm746_vm2, %v754_v61, %v756_v25  ;;  %v356_v32 = vrot.slane %v284_v26, 1  ;;  %v485_v33 = vmul.f32 %v1436_v2, %v177_v15  ;;  %v686_v34 = vmul.f32 %v1446_v3, %v177_v15 }
  0x27   : > { %v951_v35 = vmul.f32 1.442695, %v917_v27  ;;  %v1516_v36 = vadd.f32 %v1476_v41, %v847_v28  ;;  %v647_v37 = vadd.f32 %v556_v24, %v446_v29  ;;  %v215_v38 = vmul.f32 %v1426_v0, %v177_v15 }
  0x28   : > { %v357_v39 = vsel %vm344_vm0, %v354_v16, %v356_v32  ;;  %v557_v40 = vrot.slane %v485_v33, 2  ;;  %v758_v42 = vrot.slane %v686_v34, 3  ;;  %v285_v43 = vmul.f32 %v1431_v1, %v178_v30 }
  0x29   : > { %1255 = vpow2.f32 %v951_v35  ;;  %v918_v44 = vsub.f32 0.0, %v1516_v36  ;;  %v848_v45 = vadd.f32 %v757_v31, %v647_v37  ;;  %v447_v46 = vadd.f32 %v357_v39, %v214_v19 }
  0x2a   : > { %v558_v48 = vsel %vm545_vm1, %v555_v17, %v557_v40  ;;  %v759_v49 = vsel %vm746_vm2, %v756_v25, %v758_v42  ;;  %v358_v50 = vrot.slane %v285_v43, 1  ;;  %v486_v51 = vmul.f32 %v1436_v2, %v178_v30  ;;  %v181_v43 = vld [vmem:[%s1441_s23 + $0x50] sm:$0xff] }
  0x2b   : > { %v953_v52 = vmul.f32 1.442695, %v918_v44  ;;  %v1527_v53 = vadd.f32 %v1476_v41, %v848_v45  ;;  %v648_v54 = vadd.f32 %v558_v48, %v447_v46  ;;  %v687_v56 = vmul.f32 %v1446_v3, %v178_v30 }
  0x2c   : > { %v359_v57 = vsel %vm344_vm0, %v356_v32, %v358_v50  ;;  %v559_v58 = vrot.slane %v486_v51, 2  ;;  %v216_v59 = vmul.f32 %v1426_v0, %v178_v30  ;;  %v286_v60 = vmul.f32 %v1431_v1, %v179_v47 }
  0x2d   : > { %v1252_v61 = vpop.eup %1251  ;;  %1257 = vpow2.f32 %v953_v52  ;;  %v919_v62 = vsub.f32 0.0, %v1527_v53  ;;  %v849_v63 = vadd.f32 %v759_v49, %v648_v54  ;;  %v448_v5 = vadd.f32 %v359_v57, %v215_v38 }
  0x2e   : > { %v1011_v6 = vadd.f32 1.0, %v1252_v61  ;;  %v560_v7 = vsel %vm545_vm1, %v557_v40, %v559_v58  ;;  %v760_v8 = vrot.slane %v687_v56, 3  ;;  %v360_v9 = vrot.slane %v286_v60, 1 }
  0x2f   : > { %v1254_v10 = vpop.eup %1253  ;;  %v955_v11 = vmul.f32 1.442695, %v919_v62  ;;  %v1536_v12 = vadd.f32 %v1476_v41, %v849_v63  ;;  %v649_v13 = vadd.f32 %v560_v7, %v448_v5  ;;  %v487_v14 = vmul.f32 %v1436_v2, %v179_v47 }
  0x30   : > { %1259 = vrcp.f32 %v1011_v6  ;;  %v1012_v15 = vadd.f32 1.0, %v1254_v10  ;;  %v761_v16 = vsel %vm746_vm2, %v758_v42, %v760_v8  ;;  %v361_v17 = vsel %vm344_vm0, %v358_v50, %v360_v9 }
  0x31   : > { %1261 = vpow2.f32 %v955_v11  ;;  %v920_v19 = vsub.f32 0.0, %v1536_v12  ;;  %v850_v20 = vadd.f32 %v761_v16, %v649_v13  ;;  %v449_v22 = vadd.f32 %v361_v17, %v216_v59 }
  0x32   : > { %1263 = vrcp.f32 %v1012_v15  ;;  %v561_v23 = vrot.slane %v487_v14, 2  ;;  %v688_v24 = vmul.f32 %v1446_v3, %v179_v47  ;;  %v217_v25 = vmul.f32 %v1426_v0, %v179_v47 }
  0x33   : > { %v1256_v26 = vpop.eup %1255  ;;  %v957_v27 = vmul.f32 1.442695, %v920_v19  ;;  %v1546_v28 = vadd.f32 %v1476_v41, %v850_v20  ;;  %v287_v29 = vmul.f32 %v1431_v1, %v180_v18  ;;  %v488_v30 = vmul.f32 %v1436_v2, %v180_v18 }
  0x34   : > { %v1013_v31 = vadd.f32 1.0, %v1256_v26  ;;  %v562_v32 = vsel %vm545_vm1, %v559_v58, %v561_v23  ;;  %v762_v33 = vrot.slane %v688_v24, 3  ;;  %v689_v34 = vmul.f32 %v1446_v3, %v180_v18  ;;  %v182_v58 = vld [vmem:[%s1441_s23 + $0x58] sm:$0xff] }
  0x35   : > { %1265 = vpow2.f32 %v957_v27  ;;  %v921_v35 = vsub.f32 0.0, %v1546_v28  ;;  %v650_v37 = vadd.f32 %v562_v32, %v449_v22  ;;  %v362_v38 = vrot.slane %v287_v29, 1 }
  0x36   : > { %1267 = vrcp.f32 %v1013_v31  ;;  %v763_v39 = vsel %vm746_vm2, %v760_v8, %v762_v33  ;;  %v563_v40 = vrot.slane %v488_v30, 2  ;;  %v764_v42 = vrot.slane %v689_v34, 3  ;;  %v183_v30 = vld [vmem:[%s1441_s23 + $0x60] sm:$0xff] }
  0x37   : > { %v1258_v44 = vpop.eup %1257  ;;  %v959_v45 = vmul.f32 1.442695, %v921_v35  ;;  %v851_v46 = vadd.f32 %v763_v39, %v650_v37  ;;  %v363_v47 = vsel %vm344_vm0, %v360_v9, %v362_v38  ;;  %v218_v48 = vmul.f32 %v1426_v0, %v180_v18 }
  0x38   : > { %v1014_v49 = vadd.f32 1.0, %v1258_v44  ;;  %v450_v50 = vadd.f32 %v363_v47, %v217_v25  ;;  %v564_v51 = vsel %vm545_vm1, %v561_v23, %v563_v40  ;;  %v765_v52 = vsel %vm746_vm2, %v762_v33, %v764_v42 }
  0x39   : > { %1269 = vpow2.f32 %v959_v45  ;;  %v1561_v54 = vadd.f32 %v1476_v41, %v851_v46  ;;  %v288_v56 = vmul.f32 %v1431_v1, %v181_v43  ;;  %v489_v57 = vmul.f32 %v1436_v2, %v181_v43 }
  0x3a   : > { %v1260_v59 = vpop.eup %1259  ;;  %1271 = vrcp.f32 %v1014_v49  ;;  %v651_v60 = vadd.f32 %v564_v51, %v450_v50  ;;  %v690_v61 = vmul.f32 %v1446_v3, %v181_v43  ;;  %v219_v62 = vmul.f32 %v1426_v0, %v181_v43  ;;  %v184_v49 = vld [vmem:[%s1441_s23 + $0x68] sm:$0xff] }
  0x3b   : > { %v1262_v63 = vpop.eup %1261  ;;  %v1107_v5 = vmul.f32 %v1260_v59, %v1487_v55  ;;  %v922_v6 = vsub.f32 0.0, %v1561_v54  ;;  %v364_v7 = vrot.slane %v288_v56, 1  ;;  %v565_v8 = vrot.slane %v489_v57, 2 }
  0x3c   : > { %v1264_v9 = vpop.eup %1263  ;;  %v1015_v10 = vadd.f32 1.0, %v1262_v63  ;;  %v852_v11 = vadd.f32 %v765_v52, %v651_v60  ;;  %v766_v13 = vrot.slane %v690_v61, 3  ;;  %v289_v14 = vmul.f32 %v1431_v1, %v182_v58 }
  0x3d   : > { %1139 = vst [vmem:[%s1569_s4] sm:$0xff] %v1107_v5  ;;  %v1108_v15 = vmul.f32 %v1264_v9, %v1493_v4  ;;  %v961_v16 = vmul.f32 1.442695, %v922_v6  ;;  %v365_v17 = vsel %vm344_vm0, %v362_v38, %v364_v7  ;;  %v566_v55 = vsel %vm545_vm1, %v563_v40, %v565_v8 }
  0x3e   : > { %1273 = vrcp.f32 %v1015_v10  ;;  %v1581_v18 = vadd.f32 %v1476_v41, %v852_v11  ;;  %v451_v19 = vadd.f32 %v365_v17, %v218_v48  ;;  %v767_v20 = vsel %vm746_vm2, %v764_v42, %v766_v13 }
  0x3f   : > { %v1266_v22 = vpop.eup %1265  ;;  %1140 = vst [vmem:[%s1569_s4 + $0x8] sm:$0xff] %v1108_v15  ;;  %1275 = vpow2.f32 %v961_v16  ;;  %v366_v23 = vrot.slane %v289_v14, 1  ;;  %v490_v24 = vmul.f32 %v1436_v2, %v182_v58  ;;  %v691_v4 = vmul.f32 %v1446_v3, %v182_v58 }
  0x40   : > { %v1268_v25 = vpop.eup %1267  ;;  %v1016_v26 = vadd.f32 1.0, %v1266_v22  ;;  %v923_v27 = vsub.f32 0.0, %v1581_v18  ;;  %v652_v29 = vadd.f32 %v566_v55, %v451_v19  ;;  %v220_v31 = vmul.f32 %v1426_v0, %v182_v58  ;;  %v185_v55 = vld [vmem:[%s1441_s23 + $0x70] sm:$0xff] }
  0x41   : > { %v1109_v32 = vmul.f32 %v1268_v25, %v1505_v21  ;;  %v367_v33 = vsel %vm344_vm0, %v364_v7, %v366_v23  ;;  %v567_v34 = vrot.slane %v490_v24, 2  ;;  %v768_v35 = vrot.slane %v691_v4, 3 }
  0x42   : > { %1277 = vrcp.f32 %v1016_v26  ;;  %v963_v37 = vmul.f32 1.442695, %v923_v27  ;;  %v853_v38 = vadd.f32 %v767_v20, %v652_v29  ;;  %v452_v39 = vadd.f32 %v367_v33, %v219_v62 }
  0x43   : > { %v1270_v40 = vpop.eup %1269  ;;  %1141 = vst [vmem:[%s1569_s4 + $0x10] sm:$0xff] %v1109_v32  ;;  %v568_v42 = vsel %vm545_vm1, %v565_v8, %v567_v34  ;;  %v769_v43 = vsel %vm746_vm2, %v766_v13, %v768_v35  ;;  %v290_v44 = vmul.f32 %v1431_v1, %v183_v30  ;;  %v491_v21 = vmul.f32 %v1436_v2, %v183_v30 }
  0x44   : > { %v1272_v45 = vpop.eup %1271  ;;  %v1017_v46 = vadd.f32 1.0, %v1270_v40  ;;  %1279 = vpow2.f32 %v963_v37  ;;  %v1598_v47 = vadd.f32 %v1476_v41, %v853_v38  ;;  %v653_v48 = vadd.f32 %v568_v42, %v452_v39 }
  0x45   : > { %v1110_v50 = vmul.f32 %v1272_v45, %v1516_v36  ;;  %v368_v51 = vrot.slane %v290_v44, 1  ;;  %v569_v52 = vrot.slane %v491_v21, 2  ;;  %v692_v56 = vmul.f32 %v1446_v3, %v183_v30 }
  0x46   : > { %1281 = vrcp.f32 %v1017_v46  ;;  %v924_v57 = vsub.f32 0.0, %v1598_v47  ;;  %v854_v58 = vadd.f32 %v769_v43, %v653_v48  ;;  %v221_v59 = vmul.f32 %v1426_v0, %v183_v30 }
  0x47   : > { %1142 = vst [vmem:[%s1569_s4 + $0x18] sm:$0xff] %v1110_v50  ;;  %v369_v60 = vsel %vm344_vm0, %v366_v23, %v368_v51  ;;  %v570_v61 = vsel %vm545_vm1, %v567_v34, %v569_v52  ;;  %v770_v62 = vrot.slane %v692_v56, 3  ;;  %v291_v63 = vmul.f32 %v1431_v1, %v184_v49 }
  0x48   : > { %v1274_v36 = vpop.eup %1273  ;;  %v965_v5 = vmul.f32 1.442695, %v924_v57  ;;  %v1610_v6 = vadd.f32 %v1476_v41, %v854_v58  ;;  %v453_v7 = vadd.f32 %v369_v60, %v220_v31  ;;  %v492_v8 = vmul.f32 %v1436_v2, %v184_v49  ;;  %v186_v31 = vld [vmem:[%s1441_s23 + $0x78] sm:$0xff] }
  0x49   : > { %v1276_v9 = vpop.eup %1275  ;;  %v1111_v10 = vmul.f32 %v1274_v36, %v1527_v53  ;;  %v771_v11 = vsel %vm746_vm2, %v768_v35, %v770_v62  ;;  %v370_v13 = vrot.slane %v291_v63, 1  ;;  %v693_v14 = vmul.f32 %v1446_v3, %v184_v49 }
  0x4a   : > { %v1018_v15 = vadd.f32 1.0, %v1276_v9  ;;  %1283 = vpow2.f32 %v965_v5  ;;  %v925_v16 = vsub.f32 0.0, %v1610_v6  ;;  %v654_v17 = vadd.f32 %v570_v61, %v453_v7 }
  0x4b   : > { %1143 = vst [vmem:[%s1569_s4 + $0x20] sm:$0xff] %v1111_v10  ;;  %v371_v19 = vsel %vm344_vm0, %v368_v51, %v370_v13  ;;  %v571_v20 = vrot.slane %v492_v8, 2  ;;  %v772_v22 = vrot.slane %v693_v14, 3  ;;  %v222_v23 = vmul.f32 %v1426_v0, %v184_v49 }
  0x4c   : > { %v1278_v53 = vpop.eup %1277  ;;  %1285 = vrcp.f32 %v1018_v15  ;;  %v967_v24 = vmul.f32 1.442695, %v925_v16  ;;  %v855_v4 = vadd.f32 %v771_v11, %v654_v17  ;;  %v454_v25 = vadd.f32 %v371_v19, %v221_v59 }
  0x4d   : > { %v1112_v26 = vmul.f32 %v1278_v53, %v1536_v12  ;;  %v572_v27 = vsel %vm545_vm1, %v569_v52, %v571_v20  ;;  %v773_v29 = vsel %vm746_vm2, %v770_v62, %v772_v22  ;;  %v292_v30 = vmul.f32 %v1431_v1, %v185_v55 }
  0x4e   : > { %v1280_v32 = vpop.eup %1279  ;;  %1287 = vpow2.f32 %v967_v24  ;;  %v1627_v33 = vadd.f32 %v1476_v41, %v855_v4  ;;  %v655_v34 = vadd.f32 %v572_v27, %v454_v25  ;;  %v493_v35 = vmul.f32 %v1436_v2, %v185_v55 }
  0x4f   : > { %1144 = vst [vmem:[%s1569_s4 + $0x28] sm:$0xff] %v1112_v26  ;;  %v1019_v37 = vadd.f32 1.0, %v1280_v32  ;;  %v372_v38 = vrot.slane %v292_v30, 1  ;;  %v694_v12 = vmul.f32 %v1446_v3, %v185_v55  ;;  %v223_v39 = vmul.f32 %v1426_v0, %v185_v55  ;;  %v188_v55 = vld [vmem:[%s1441_s23 + $0x88] sm:$0xff] }
  0x50   : > { %v1282_v40 = vpop.eup %1281  ;;  %v926_v42 = vsub.f32 0.0, %v1627_v33  ;;  %v856_v43 = vadd.f32 %v773_v29, %v655_v34  ;;  %v573_v44 = vrot.slane %v493_v35, 2  ;;  %v293_v21 = vmul.f32 %v1431_v1, %v186_v31 }
  0x51   : > { %v1113_v45 = vmul.f32 %v1282_v40, %v1546_v28  ;;  %1289 = vrcp.f32 %v1019_v37  ;;  %v373_v46 = vsel %vm344_vm0, %v370_v13, %v372_v38  ;;  %v774_v48 = vrot.slane %v694_v12, 3  ;;  %v187_v28 = vld [vmem:[%s1441_s23 + $0x80] sm:$0xff] }
  0x52   : > { %v969_v49 = vmul.f32 1.442695, %v926_v42  ;;  %v1638_v50 = vadd.f32 %v1476_v41, %v856_v43  ;;  %v455_v51 = vadd.f32 %v373_v46, %v222_v23  ;;  %v574_v52 = vsel %vm545_vm1, %v571_v20, %v573_v44 }
  0x53   : > { %1145 = vst [vmem:[%s1569_s4 + $0x30] sm:$0xff] %v1113_v45  ;;  %v775_v56 = vsel %vm746_vm2, %v772_v22, %v774_v48  ;;  %v374_v57 = vrot.slane %v293_v21, 1  ;;  %v494_v58 = vmul.f32 %v1436_v2, %v186_v31  ;;  %v695_v59 = vmul.f32 %v1446_v3, %v186_v31 }
  0x54   : > { %v1284_v60 = vpop.eup %1283  ;;  %1291 = vpow2.f32 %v969_v49  ;;  %v927_v61 = vsub.f32 0.0, %v1638_v50  ;;  %v656_v62 = vadd.f32 %v574_v52, %v455_v51  ;;  %v224_v63 = vmul.f32 %v1426_v0, %v186_v31 }
  0x55   : > { %v1020_v36 = vadd.f32 1.0, %v1284_v60  ;;  %v375_v5 = vsel %vm344_vm0, %v372_v38, %v374_v57  ;;  %v575_v7 = vrot.slane %v494_v58, 2  ;;  %v776_v8 = vrot.slane %v695_v59, 3 }
  0x56   : > { %v1286_v9 = vpop.eup %1285  ;;  %v971_v10 = vmul.f32 1.442695, %v927_v61  ;;  %v857_v11 = vadd.f32 %v775_v56, %v656_v62  ;;  %v456_v13 = vadd.f32 %v375_v5, %v223_v39  ;;  %v294_v14 = vmul.f32 %v1431_v1, %v187_v28 }
  0x57   : > { %v1114_v15 = vmul.f32 %v1286_v9, %v1561_v54  ;;  %1293 = vrcp.f32 %v1020_v36  ;;  %v576_v16 = vsel %vm545_vm1, %v573_v44, %v575_v7  ;;  %v777_v17 = vsel %vm746_vm2, %v774_v48, %v776_v8  ;;  %v189_v44 = vld [vmem:[%s1441_s23 + $0x90] sm:$0xff] }
  0x58   : > { %v1288_v19 = vpop.eup %1287  ;;  %1295 = vpow2.f32 %v971_v10  ;;  %v1655_v20 = vadd.f32 %v1476_v41, %v857_v11  ;;  %v657_v22 = vadd.f32 %v576_v16, %v456_v13  ;;  %v376_v23 = vrot.slane %v294_v14, 1 }
  0x59   : > { %1146 = vst [vmem:[%s1569_s4 + $0x38] sm:$0xff] %v1114_v15  ;;  %v1021_v53 = vadd.f32 1.0, %v1288_v19  ;;  %v495_v24 = vmul.f32 %v1436_v2, %v187_v28  ;;  %v696_v4 = vmul.f32 %v1446_v3, %v187_v28  ;;  %v225_v54 = vmul.f32 %v1426_v0, %v187_v28 }
  0x5a   : > { %v928_v25 = vsub.f32 0.0, %v1655_v20  ;;  %v858_v26 = vadd.f32 %v777_v17, %v657_v22  ;;  %v377_v27 = vsel %vm344_vm0, %v374_v57, %v376_v23  ;;  %v295_v29 = vmul.f32 %v1431_v1, %v188_v55 }
  0x5b   : > { %v1290_v30 = vpop.eup %1289  ;;  %1297 = vrcp.f32 %v1021_v53  ;;  %v457_v31 = vadd.f32 %v377_v27, %v224_v63  ;;  %v577_v32 = vrot.slane %v495_v24, 2  ;;  %v778_v34 = vrot.slane %v696_v4, 3  ;;  %v190_v63 = vld [vmem:[%s1441_s23 + $0x98] sm:$0xff] }
  0x5c   : > { %v1115_v35 = vmul.f32 %v1290_v30, %v1581_v18  ;;  %v973_v37 = vmul.f32 1.442695, %v928_v25  ;;  %v1666_v38 = vadd.f32 %v1476_v41, %v858_v26  ;;  %v378_v12 = vrot.slane %v295_v29, 1  ;;  %v191_v29 = vld [vmem:[%s1441_s23 + $0xa0] sm:$0xff] }
  0x5d   : > { %v578_v39 = vsel %vm545_vm1, %v575_v7, %v577_v32  ;;  %v779_v40 = vsel %vm746_vm2, %v776_v8, %v778_v34  ;;  %v496_v42 = vmul.f32 %v1436_v2, %v188_v55  ;;  %v697_v43 = vmul.f32 %v1446_v3, %v188_v55 }
  0x5e   : > { %v1292_v21 = vpop.eup %1291  ;;  %1147 = vst [vmem:[%s1569_s4 + $0x40] sm:$0xff] %v1115_v35  ;;  %1299 = vpow2.f32 %v973_v37  ;;  %v929_v45 = vsub.f32 0.0, %v1666_v38  ;;  %v658_v18 = vadd.f32 %v578_v39, %v457_v31  ;;  %v379_v46 = vsel %vm344_vm0, %v376_v23, %v378_v12 }
  0x5f   : > { %v1022_v48 = vadd.f32 1.0, %v1292_v21  ;;  %v458_v49 = vadd.f32 %v379_v46, %v225_v54  ;;  %v579_v51 = vrot.slane %v496_v42, 2  ;;  %v780_v52 = vrot.slane %v697_v43, 3  ;;  %v192_v46 = vld [vmem:[%s1441_s23 + $0xa8] sm:$0xff] }
  0x60   : > { %v975_v56 = vmul.f32 1.442695, %v929_v45  ;;  %v859_v57 = vadd.f32 %v779_v40, %v658_v18  ;;  %v226_v58 = vmul.f32 %v1426_v0, %v188_v55  ;;  %v296_v59 = vmul.f32 %v1431_v1, %v189_v44 }
  0x61   : > { %v1294_v28 = vpop.eup %1293  ;;  %1301 = vrcp.f32 %v1022_v48  ;;  %v580_v60 = vsel %vm545_vm1, %v577_v32, %v579_v51  ;;  %v781_v61 = vsel %vm746_vm2, %v778_v34, %v780_v52  ;;  %v497_v62 = vmul.f32 %v1436_v2, %v189_v44 }
  0x62   : > { %v1296_v36 = vpop.eup %1295  ;;  %v1116_v5 = vmul.f32 %v1294_v28, %v1598_v47  ;;  %1303 = vpow2.f32 %v975_v56  ;;  %v1684_v7 = vadd.f32 %v1476_v41, %v859_v57  ;;  %v659_v8 = vadd.f32 %v580_v60, %v458_v49 }
  0x63   : > { %v1023_v9 = vadd.f32 1.0, %v1296_v36  ;;  %v380_v10 = vrot.slane %v296_v59, 1  ;;  %v581_v11 = vrot.slane %v497_v62, 2  ;;  %v698_v13 = vmul.f32 %v1446_v3, %v189_v44 }
  0x64   : > { %1148 = vst [vmem:[%s1569_s4 + $0x48] sm:$0xff] %v1116_v5  ;;  %v930_v14 = vsub.f32 0.0, %v1684_v7  ;;  %v860_v15 = vadd.f32 %v781_v61, %v659_v8  ;;  %v227_v16 = vmul.f32 %v1426_v0, %v189_v44  ;;  %v297_v17 = vmul.f32 %v1431_v1, %v190_v63 }
  0x65   : > { %v1298_v47 = vpop.eup %1297  ;;  %1305 = vrcp.f32 %v1023_v9  ;;  %v381_v55 = vsel %vm344_vm0, %v378_v12, %v380_v10  ;;  %v582_v19 = vsel %vm545_vm1, %v579_v51, %v581_v11  ;;  %v782_v22 = vrot.slane %v698_v13, 3 }
  0x66   : > { %v1117_v23 = vmul.f32 %v1298_v47, %v1610_v6  ;;  %v977_v53 = vmul.f32 1.442695, %v930_v14  ;;  %v1695_v24 = vadd.f32 %v1476_v41, %v860_v15  ;;  %v459_v4 = vadd.f32 %v381_v55, %v226_v58 }
  0x67   : > { %v783_v54 = vsel %vm746_vm2, %v780_v52, %v782_v22  ;;  %v382_v25 = vrot.slane %v297_v17, 1  ;;  %v498_v26 = vmul.f32 %v1436_v2, %v190_v63  ;;  %v699_v27 = vmul.f32 %v1446_v3, %v190_v63  ;;  %v193_v17 = vld [vmem:[%s1441_s23 + $0xb0] sm:$0xff] }
  0x68   : > { %v1300_v30 = vpop.eup %1299  ;;  %1149 = vst [vmem:[%s1569_s4 + $0x50] sm:$0xff] %v1117_v23  ;;  %1307 = vpow2.f32 %v977_v53  ;;  %v931_v31 = vsub.f32 0.0, %v1695_v24  ;;  %v660_v6 = vadd.f32 %v582_v19, %v459_v4  ;;  %v228_v32 = vmul.f32 %v1426_v0, %v190_v63 }
  0x69   : > { %v1024_v34 = vadd.f32 1.0, %v1300_v30  ;;  %v383_v35 = vsel %vm344_vm0, %v380_v10, %v382_v25  ;;  %v583_v37 = vrot.slane %v498_v26, 2  ;;  %v784_v12 = vrot.slane %v699_v27, 3 }
  0x6a   : > { %v979_v39 = vmul.f32 1.442695, %v931_v31  ;;  %v861_v40 = vadd.f32 %v783_v54, %v660_v6  ;;  %v460_v42 = vadd.f32 %v383_v35, %v227_v16  ;;  %v298_v43 = vmul.f32 %v1431_v1, %v191_v29 }
  0x6b   : > { %v1302_v44 = vpop.eup %1301  ;;  %1309 = vrcp.f32 %v1024_v34  ;;  %v584_v21 = vsel %vm545_vm1, %v581_v11, %v583_v37  ;;  %v785_v45 = vsel %vm746_vm2, %v782_v22, %v784_v12  ;;  %v499_v18 = vmul.f32 %v1436_v2, %v191_v29 }
  0x6c   : > { %v1304_v48 = vpop.eup %1303  ;;  %v1118_v49 = vmul.f32 %v1302_v44, %v1627_v33  ;;  %1311 = vpow2.f32 %v979_v39  ;;  %v1712_v51 = vadd.f32 %v1476_v41, %v861_v40  ;;  %v661_v52 = vadd.f32 %v584_v21, %v460_v42 }
  0x6d   : > { %v1025_v56 = vadd.f32 1.0, %v1304_v48  ;;  %v384_v57 = vrot.slane %v298_v43, 1  ;;  %v585_v58 = vrot.slane %v499_v18, 2  ;;  %v700_v59 = vmul.f32 %v1446_v3, %v191_v29 }
  0x6e   : > { %1150 = vst [vmem:[%s1569_s4 + $0x58] sm:$0xff] %v1118_v49  ;;  %v932_v28 = vsub.f32 0.0, %v1712_v51  ;;  %v862_v60 = vadd.f32 %v785_v45, %v661_v52  ;;  %v229_v61 = vmul.f32 %v1426_v0, %v191_v29  ;;  %v299_v62 = vmul.f32 %v1431_v1, %v192_v46 }
  0x6f   : > { %v1306_v33 = vpop.eup %1305  ;;  %1313 = vrcp.f32 %v1025_v56  ;;  %v385_v63 = vsel %vm344_vm0, %v382_v25, %v384_v57  ;;  %v586_v36 = vsel %vm545_vm1, %v583_v37, %v585_v58  ;;  %v786_v5 = vrot.slane %v700_v59, 3 }
  0x70   : > { %v1119_v8 = vmul.f32 %v1306_v33, %v1638_v50  ;;  %v981_v9 = vmul.f32 1.442695, %v932_v28  ;;  %v1723_v10 = vadd.f32 %v1476_v41, %v862_v60  ;;  %v461_v11 = vadd.f32 %v385_v63, %v228_v32  ;;  %v194_v32 = vld [vmem:[%s1441_s23 + $0xb8] sm:$0xff] }
  0x71   : > { %v787_v13 = vsel %vm746_vm2, %v784_v12, %v786_v5  ;;  %v386_v14 = vrot.slane %v299_v62, 1  ;;  %v500_v15 = vmul.f32 %v1436_v2, %v192_v46  ;;  %v701_v16 = vmul.f32 %v1446_v3, %v192_v46 }
  0x72   : > { %v1308_v47 = vpop.eup %1307  ;;  %1151 = vst [vmem:[%s1569_s4 + $0x60] sm:$0xff] %v1119_v8  ;;  %1315 = vpow2.f32 %v981_v9  ;;  %v933_v55 = vsub.f32 0.0, %v1723_v10  ;;  %v662_v50 = vadd.f32 %v586_v36, %v461_v11  ;;  %v230_v19 = vmul.f32 %v1426_v0, %v192_v46 }
  0x73   : > { %v1026_v22 = vadd.f32 1.0, %v1308_v47  ;;  %v387_v23 = vsel %vm344_vm0, %v384_v57, %v386_v14  ;;  %v587_v53 = vrot.slane %v500_v15, 2  ;;  %v788_v4 = vrot.slane %v701_v16, 3 }
  0x74   : > { %v983_v54 = vmul.f32 1.442695, %v933_v55  ;;  %v863_v25 = vadd.f32 %v787_v13, %v662_v50  ;;  %v462_v26 = vadd.f32 %v387_v23, %v229_v61  ;;  %v300_v27 = vmul.f32 %v1431_v1, %v193_v17  ;;  %v195_v61 = vld [vmem:[%s1441_s23 + $0xc0] sm:$0xff]  ;;  %v196_v55 = vld [vmem:[%s1441_s23 + $0xc8] sm:$0xff] }
  0x75   : > { %v1310_v29 = vpop.eup %1309  ;;  %1317 = vrcp.f32 %v1026_v22  ;;  %v588_v30 = vsel %vm545_vm1, %v585_v58, %v587_v53  ;;  %v789_v31 = vsel %vm746_vm2, %v786_v5, %v788_v4  ;;  %v501_v6 = vmul.f32 %v1436_v2, %v193_v17 }
  0x76   : > { %v1312_v34 = vpop.eup %1311  ;;  %v1120_v35 = vmul.f32 %v1310_v29, %v1655_v20  ;;  %1319 = vpow2.f32 %v983_v54  ;;  %v1740_v37 = vadd.f32 %v1476_v41, %v863_v25  ;;  %v663_v12 = vadd.f32 %v588_v30, %v462_v26  ;;  %v1783_v25 = vld [vmem:[%s1928_s1 + $0x3] ss:$0 sm:$0xff] }
  0x77   : > { %v1027_v39 = vadd.f32 1.0, %v1312_v34  ;;  %v388_v40 = vrot.slane %v300_v27, 1  ;;  %v589_v42 = vrot.slane %v501_v6, 2  ;;  %v702_v43 = vmul.f32 %v1446_v3, %v193_v17 }
  0x78   : > { %1152 = vst [vmem:[%s1569_s4 + $0x68] sm:$0xff] %v1120_v35  ;;  %v934_v44 = vsub.f32 0.0, %v1740_v37  ;;  %v864_v21 = vadd.f32 %v789_v31, %v663_v12  ;;  %v231_v45 = vmul.f32 %v1426_v0, %v193_v17  ;;  %v301_v18 = vmul.f32 %v1431_v1, %v194_v32  ;;  %v1772_v17 = vld [vmem:[%s1928_s1 + $0x2] ss:$0 sm:$0xff] }
  0x79   : > { %v1314_v20 = vpop.eup %1313  ;;  %1321 = vrcp.f32 %v1027_v39  ;;  %v389_v46 = vsel %vm344_vm0, %v386_v14, %v388_v40  ;;  %v590_v48 = vsel %vm545_vm1, %v587_v53, %v589_v42  ;;  %v790_v49 = vrot.slane %v702_v43, 3 }
  0x7a   : > { %v1121_v52 = vmul.f32 %v1314_v20, %v1666_v38  ;;  %v985_v56 = vmul.f32 1.442695, %v934_v44  ;;  %v1751_v57 = vadd.f32 %v1476_v41, %v864_v21  ;;  %v463_v58 = vadd.f32 %v389_v46, %v230_v19 }
  0x7b   : > { %v791_v59 = vsel %vm746_vm2, %v788_v4, %v790_v49  ;;  %v390_v28 = vrot.slane %v301_v18, 1  ;;  %v502_v1 = vmul.f32 %v1436_v2, %v194_v32  ;;  %v703_v60 = vmul.f32 %v1446_v3, %v194_v32  ;;  %v1764_v3 = vld [vmem:[%s1928_s1 + $0x1] ss:$0 sm:$0xff]  ;;  %v197_v18 = vld [vmem:[%s1441_s23 + $0xd0] sm:$0xff] }
  0x7c   : > { %v1316_v62 = vpop.eup %1315  ;;  %1153 = vst [vmem:[%s1569_s4 + $0x70] sm:$0xff] %v1121_v52  ;;  %1323 = vpow2.f32 %v985_v56  ;;  %v935_v33 = vsub.f32 0.0, %v1751_v57  ;;  %v664_v63 = vadd.f32 %v590_v48, %v463_v58  ;;  %v232_v38 = vmul.f32 %v1426_v0, %v194_v32 }
  0x7d   : > { %v1028_v36 = vadd.f32 1.0, %v1316_v62  ;;  %v391_v5 = vsel %vm344_vm0, %v388_v40, %v390_v28  ;;  %v591_v8 = vrot.slane %v502_v1, 2  ;;  %v792_v9 = vrot.slane %v703_v60, 3 }
  0x7e   : > { %v987_v11 = vmul.f32 1.442695, %v935_v33  ;;  %v865_v13 = vadd.f32 %v791_v59, %v664_v63  ;;  %v464_v2 = vadd.f32 %v391_v5, %v231_v45  ;;  %v302_v14 = vmul.f32 %v1764_v3, %v195_v61  ;;  %v198_v63 = vld [vmem:[%s1441_s23 + $0xd8] sm:$0xff]  ;;  %v1818_v5 = vld [vmem:[%s1929_s2] ss:$0 sm:$0xff] }
  0x7f   : > { %v1318_v15 = vpop.eup %1317  ;;  %1325 = vrcp.f32 %v1028_v36  ;;  %v592_v0 = vsel %vm545_vm1, %v589_v42, %v591_v8  ;;  %v793_v16 = vsel %vm746_vm2, %v790_v49, %v792_v9  ;;  %v503_v47 = vmul.f32 %v1772_v17, %v195_v61 }
  0x80   : > { %v1320_v50 = vpop.eup %1319  ;;  %v1122_v19 = vmul.f32 %v1318_v15, %v1684_v7  ;;  %1327 = vpow2.f32 %v987_v11  ;;  %v1778_v22 = vadd.f32 %v1476_v41, %v865_v13  ;;  %v665_v23 = vadd.f32 %v592_v0, %v464_v2  ;;  %v1791_v7 = vld [vmem:[%s1928_s1] ss:$0 sm:$0xff] }
  0x81   : > { %v1029_v53 = vadd.f32 1.0, %v1320_v50  ;;  %v392_v4 = vrot.slane %v302_v14, 1  ;;  %v593_v54 = vrot.slane %v503_v47, 2  ;;  %v704_v26 = vmul.f32 %v1783_v25, %v195_v61 }
  0x82   : > { %1154 = vst [vmem:[%s1569_s4 + $0x78] sm:$0xff] %v1122_v19  ;;  %v936_v27 = vsub.f32 0.0, %v1778_v22  ;;  %v866_v29 = vadd.f32 %v793_v16, %v665_v23  ;;  %v233_v30 = vmul.f32 %v1791_v7, %v195_v61  ;;  %v303_v31 = vmul.f32 %v1764_v3, %v196_v55 }
  0x83   : > { %v1322_v6 = vpop.eup %1321  ;;  %1329 = vrcp.f32 %v1029_v53  ;;  %v393_v32 = vsel %vm344_vm0, %v390_v28, %v392_v4  ;;  %v594_v34 = vsel %vm545_vm1, %v591_v8, %v593_v54  ;;  %v794_v35 = vrot.slane %v704_v26, 3 }
  0x84   : > { %v1123_v12 = vmul.f32 %v1322_v6, %v1695_v24  ;;  %v989_v39 = vmul.f32 1.442695, %v936_v27  ;;  %v1799_v40 = vadd.f32 %v1476_v41, %v866_v29  ;;  %v465_v42 = vadd.f32 %v393_v32, %v232_v38 }
  0x85   : > { %v795_v43 = vsel %vm746_vm2, %v792_v9, %v794_v35  ;;  %v394_v44 = vrot.slane %v303_v31, 1  ;;  %v504_v21 = vmul.f32 %v1772_v17, %v196_v55  ;;  %v705_v45 = vmul.f32 %v1783_v25, %v196_v55  ;;  %v199_v31 = vld [vmem:[%s1441_s23 + $0xe0] sm:$0xff] }
  0x86   : > { %v1324_v20 = vpop.eup %1323  ;;  %1155 = vst [vmem:[%s1569_s4 + $0x80] sm:$0xff] %v1123_v12  ;;  %1331 = vpow2.f32 %v989_v39  ;;  %v937_v46 = vsub.f32 0.0, %v1799_v40  ;;  %v666_v24 = vadd.f32 %v594_v34, %v465_v42  ;;  %v234_v48 = vmul.f32 %v1791_v7, %v196_v55 }
  0x87   : > { %v1030_v41 = vadd.f32 1.0, %v1324_v20  ;;  %v395_v49 = vsel %vm344_vm0, %v392_v4, %v394_v44  ;;  %v595_v52 = vrot.slane %v504_v21, 2  ;;  %v796_v56 = vrot.slane %v705_v45, 3 }
  0x88   : > { %v991_v58 = vmul.f32 1.442695, %v937_v46  ;;  %v867_v59 = vadd.f32 %v795_v43, %v666_v24  ;;  %v466_v28 = vadd.f32 %v395_v49, %v233_v30  ;;  %v304_v1 = vmul.f32 %v1764_v3, %v197_v18 }
  0x89   : > { %v1326_v60 = vpop.eup %1325  ;;  %1333 = vrcp.f32 %v1030_v41  ;;  %v596_v61 = vsel %vm545_vm1, %v593_v54, %v595_v52  ;;  %v797_v62 = vsel %vm746_vm2, %v794_v35, %v796_v56  ;;  %v505_v33 = vmul.f32 %v1772_v17, %v197_v18 }
  0x8a   : > { %v1328_v38 = vpop.eup %1327  ;;  %v1124_v36 = vmul.f32 %v1326_v60, %v1712_v51  ;;  %1335 = vpow2.f32 %v991_v58  ;;  %v1821_v8 = vadd.f32 %v1818_v5, %v867_v59  ;;  %v667_v9 = vadd.f32 %v596_v61, %v466_v28 }
  0x8b   : > { %v1031_v11 = vadd.f32 1.0, %v1328_v38  ;;  %v396_v13 = vrot.slane %v304_v1, 1  ;;  %v597_v2 = vrot.slane %v505_v33, 2  ;;  %v706_v14 = vmul.f32 %v1783_v25, %v197_v18 }
  0x8c   : > { %1156 = vst [vmem:[%s1569_s4 + $0x88] sm:$0xff] %v1124_v36  ;;  %v938_v15 = vsub.f32 0.0, %v1821_v8  ;;  %v868_v0 = vadd.f32 %v797_v62, %v667_v9  ;;  %v235_v51 = vmul.f32 %v1791_v7, %v197_v18  ;;  %v305_v16 = vmul.f32 %v1764_v3, %v198_v63 }
  0x8d   : > { %v1330_v47 = vpop.eup %1329  ;;  %1337 = vrcp.f32 %v1031_v11  ;;  %v397_v55 = vsel %vm344_vm0, %v394_v44, %v396_v13  ;;  %v598_v50 = vsel %vm545_vm1, %v595_v52, %v597_v2  ;;  %v798_v19 = vrot.slane %v706_v14, 3 }
  0x8e   : > { %v1125_v23 = vmul.f32 %v1330_v47, %v1723_v10  ;;  %v993_v53 = vmul.f32 1.442695, %v938_v15  ;;  %v1832_v4 = vadd.f32 %v1818_v5, %v868_v0  ;;  %v467_v54 = vadd.f32 %v397_v55, %v234_v48  ;;  %v200_v48 = vld [vmem:[%s1441_s23 + $0xe8] sm:$0xff] }
  0x8f   : > { %v799_v26 = vsel %vm746_vm2, %v796_v56, %v798_v19  ;;  %v398_v27 = vrot.slane %v305_v16, 1  ;;  %v506_v29 = vmul.f32 %v1772_v17, %v198_v63  ;;  %v707_v30 = vmul.f32 %v1783_v25, %v198_v63  ;;  %v201_v16 = vld [vmem:[%s1441_s23 + $0xf0] sm:$0xff] }
  0x90   : > { %v1332_v6 = vpop.eup %1331  ;;  %1157 = vst [vmem:[%s1569_s4 + $0x90] sm:$0xff] %v1125_v23  ;;  %1339 = vpow2.f32 %v993_v53  ;;  %v939_v32 = vsub.f32 0.0, %v1832_v4  ;;  %v668_v10 = vadd.f32 %v598_v50, %v467_v54  ;;  %v236_v34 = vmul.f32 %v1791_v7, %v198_v63 }
  0x91   : > { %v1032_v35 = vadd.f32 1.0, %v1332_v6  ;;  %v399_v12 = vsel %vm344_vm0, %v396_v13, %v398_v27  ;;  %v599_v39 = vrot.slane %v506_v29, 2  ;;  %v800_v42 = vrot.slane %v707_v30, 3 }
  0x92   : > { %v995_v43 = vmul.f32 1.442695, %v939_v32  ;;  %v869_v44 = vadd.f32 %v799_v26, %v668_v10  ;;  %v468_v21 = vadd.f32 %v399_v12, %v235_v51  ;;  %v306_v45 = vmul.f32 %v1764_v3, %v199_v31 }
  0x93   : > { %v1334_v18 = vpop.eup %1333  ;;  %1341 = vrcp.f32 %v1032_v35  ;;  %v600_v20 = vsel %vm545_vm1, %v597_v2, %v599_v39  ;;  %v801_v46 = vsel %vm746_vm2, %v798_v19, %v800_v42  ;;  %v507_v24 = vmul.f32 %v1772_v17, %v199_v31 }
  0x94   : > { %v1336_v41 = vpop.eup %1335  ;;  %v1126_v49 = vmul.f32 %v1334_v18, %v1740_v37  ;;  %1343 = vpow2.f32 %v995_v43  ;;  %v1849_v52 = vadd.f32 %v1818_v5, %v869_v44  ;;  %v669_v56 = vadd.f32 %v600_v20, %v468_v21 }
  0x95   : > { %v1033_v58 = vadd.f32 1.0, %v1336_v41  ;;  %v400_v59 = vrot.slane %v306_v45, 1  ;;  %v601_v28 = vrot.slane %v507_v24, 2  ;;  %v708_v1 = vmul.f32 %v1783_v25, %v199_v31 }
  0x96   : > { %1158 = vst [vmem:[%s1569_s4 + $0x98] sm:$0xff] %v1126_v49  ;;  %v940_v60 = vsub.f32 0.0, %v1849_v52  ;;  %v870_v61 = vadd.f32 %v801_v46, %v669_v56  ;;  %v237_v62 = vmul.f32 %v1791_v7, %v199_v31  ;;  %v307_v33 = vmul.f32 %v1764_v3, %v200_v48 }
  0x97   : > { %v1338_v37 = vpop.eup %1337  ;;  %1345 = vrcp.f32 %v1033_v58  ;;  %v401_v63 = vsel %vm344_vm0, %v398_v27, %v400_v59  ;;  %v602_v38 = vsel %vm545_vm1, %v599_v39, %v601_v28  ;;  %v802_v36 = vrot.slane %v708_v1, 3 }
  0x98   : > { %v1127_v9 = vmul.f32 %v1338_v37, %v1751_v57  ;;  %v997_v11 = vmul.f32 1.442695, %v940_v60  ;;  %v1860_v13 = vadd.f32 %v1818_v5, %v870_v61  ;;  %v469_v2 = vadd.f32 %v401_v63, %v236_v34  ;;  %v202_v34 = vld [vmem:[%s1441_s23 + $0xf8] sm:$0xff] }
  0x99   : > { %v803_v14 = vsel %vm746_vm2, %v800_v42, %v802_v36  ;;  %v402_v15 = vrot.slane %v307_v33, 1  ;;  %v508_v0 = vmul.f32 %v1772_v17, %v200_v48  ;;  %v709_v51 = vmul.f32 %v1783_v25, %v200_v48  ;;  %v203_v33 = vld [vmem:[%s1441_s23 + $0x100] sm:$0x7] }
  0x9a   : > { %v1340_v47 = vpop.eup %1339  ;;  %1159 = vst [vmem:[%s1569_s4 + $0xa0] sm:$0xff] %v1127_v9  ;;  %1347 = vpow2.f32 %v997_v11  ;;  %v941_v55 = vsub.f32 0.0, %v1860_v13  ;;  %v670_v57 = vadd.f32 %v602_v38, %v469_v2  ;;  %v238_v50 = vmul.f32 %v1791_v7, %v200_v48 }
  0x9b   : > { %v1034_v19 = vadd.f32 1.0, %v1340_v47  ;;  %v403_v23 = vsel %vm344_vm0, %v400_v59, %v402_v15  ;;  %v603_v53 = vrot.slane %v508_v0, 2  ;;  %v804_v54 = vrot.slane %v709_v51, 3 }
  0x9c   : > { %v999_v26 = vmul.f32 1.442695, %v941_v55  ;;  %v871_v27 = vadd.f32 %v803_v14, %v670_v57  ;;  %v470_v29 = vadd.f32 %v403_v23, %v237_v62  ;;  %v308_v30 = vmul.f32 %v1764_v3, %v201_v16 }
  0x9d   : > { %v1342_v31 = vpop.eup %1341  ;;  %1349 = vrcp.f32 %v1034_v19  ;;  %v604_v6 = vsel %vm545_vm1, %v601_v28, %v603_v53  ;;  %v805_v32 = vsel %vm746_vm2, %v802_v36, %v804_v54  ;;  %v509_v10 = vmul.f32 %v1772_v17, %v201_v16 }
  0x9e   : > { %v1344_v35 = vpop.eup %1343  ;;  %v1128_v12 = vmul.f32 %v1342_v31, %v1778_v22  ;;  %1351 = vpow2.f32 %v999_v26  ;;  %v1877_v39 = vadd.f32 %v1818_v5, %v871_v27  ;;  %v671_v42 = vadd.f32 %v604_v6, %v470_v29 }
  0x9f   : > { %v1035_v43 = vadd.f32 1.0, %v1344_v35  ;;  %v404_v44 = vrot.slane %v308_v30, 1  ;;  %v605_v21 = vrot.slane %v509_v10, 2  ;;  %v710_v45 = vmul.f32 %v1783_v25, %v201_v16 }
  0xa0   : > { %1160 = vst [vmem:[%s1569_s4 + $0xa8] sm:$0xff] %v1128_v12  ;;  %v942_v18 = vsub.f32 0.0, %v1877_v39  ;;  %v872_v20 = vadd.f32 %v805_v32, %v671_v42  ;;  %v239_v46 = vmul.f32 %v1791_v7, %v201_v16  ;;  %v309_v24 = vmul.f32 %v1764_v3, %v202_v34 }
  0xa1   : > { %v1346_v22 = vpop.eup %1345  ;;  %1353 = vrcp.f32 %v1035_v43  ;;  %v405_v48 = vsel %vm344_vm0, %v402_v15, %v404_v44  ;;  %v606_v41 = vsel %vm545_vm1, %v603_v53, %v605_v21  ;;  %v806_v49 = vrot.slane %v710_v45, 3 }
  0xa2   : > { %v1129_v56 = vmul.f32 %v1346_v22, %v1799_v40  ;;  %v1001_v58 = vmul.f32 1.442695, %v942_v18  ;;  %v1888_v59 = vadd.f32 %v1818_v5, %v872_v20  ;;  %v471_v28 = vadd.f32 %v405_v48, %v238_v50 }
  0xa3   : > { %v807_v1 = vsel %vm746_vm2, %v804_v54, %v806_v49  ;;  %v406_v60 = vrot.slane %v309_v24, 1  ;;  %v510_v61 = vmul.f32 %v1772_v17, %v202_v34  ;;  %v711_v62 = vmul.f32 %v1783_v25, %v202_v34 }
  0xa4   : > { %v1348_v37 = vpop.eup %1347  ;;  %1161 = vst [vmem:[%s1569_s4 + $0xb0] sm:$0xff] %v1129_v56  ;;  %1355 = vpow2.f32 %v1001_v58  ;;  %v943_v63 = vsub.f32 0.0, %v1888_v59  ;;  %v672_v38 = vadd.f32 %v606_v41, %v471_v28  ;;  %v240_v40 = vmul.f32 %v1791_v7, %v202_v34 }
  0xa5   : > { %v1036_v36 = vadd.f32 1.0, %v1348_v37  ;;  %v407_v9 = vsel %vm344_vm0, %v404_v44, %v406_v60  ;;  %v607_v11 = vrot.slane %v510_v61, 2  ;;  %v808_v2 = vrot.slane %v711_v62, 3 }
  0xa6   : > { %v1003_v14 = vmul.f32 1.442695, %v943_v63  ;;  %v873_v15 = vadd.f32 %v807_v1, %v672_v38  ;;  %v472_v0 = vadd.f32 %v407_v9, %v239_v46  ;;  %v310_v51 = vmul.f32 %v1764_v3, %v203_v33 }
  0xa7   : > { %v1350_v16 = vpop.eup %1349  ;;  %1357 = vrcp.f32 %v1036_v36  ;;  %v608_v47 = vsel %vm545_vm1, %v605_v21, %v607_v11  ;;  %v809_v55 = vsel %vm746_vm2, %v806_v49, %v808_v2  ;;  %v511_v57 = vmul.f32 %v1772_v17, %v203_v33 }
  0xa8   : > { %v1352_v7 = vpop.eup %1351  ;;  %v1130_v50 = vmul.f32 %v1350_v16, %v1821_v8  ;;  %1359 = vpow2.f32 %v1003_v14  ;;  %v912_v19 = vadd.f32 %v1818_v5, %v873_v15  ;;  %v673_v23 = vadd.f32 %v608_v47, %v472_v0 }
  0xa9   : > { %v1037_v53 = vadd.f32 1.0, %v1352_v7  ;;  %v408_v54 = vrot.slane %v310_v51, 1  ;;  %v609_v26 = vrot.slane %v511_v57, 2  ;;  %v712_v3 = vmul.f32 %v1783_v25, %v203_v33 }
  0xaa   : > { %1162 = vst [vmem:[%s1569_s4 + $0xb8] sm:$0xff] %v1130_v50  ;;  %v944_v27 = vsub.f32 0.0, %v912_v19  ;;  %v874_v29 = vadd.f32 %v809_v55, %v673_v23 }
  0xab   : > { %v1354_v30 = vpop.eup %1353  ;;  %1361 = vrcp.f32 %v1037_v53  ;;  %v409_v17 = vsel %vm344_vm0, %v406_v60, %v408_v54  ;;  %v610_v31 = vsel %vm545_vm1, %v607_v11, %v609_v26  ;;  %v810_v8 = vrot.slane %v712_v3, 3 }
  0xac   : > { %v1131_v6 = vmul.f32 %v1354_v30, %v1832_v4  ;;  %v1005_v32 = vmul.f32 1.442695, %v944_v27  ;;  %v913_v10 = vadd.f32 %v1818_v5, %v874_v29  ;;  %v473_v34 = vadd.f32 %v409_v17, %v240_v40 }
  0xad   : > { %v811_v35 = vsel %vm746_vm2, %v808_v2, %v810_v8 }
  0xae   : > { %v1356_v25 = vpop.eup %1355  ;;  %1163 = vst [vmem:[%s1569_s4 + $0xc0] sm:$0xff] %v1131_v6  ;;  %1363 = vpow2.f32 %v1005_v32  ;;  %v945_v12 = vsub.f32 0.0, %v913_v10  ;;  %v674_v42 = vadd.f32 %v610_v31, %v473_v34 }
  0xaf   : > { %v1038_v43 = vadd.f32 1.0, %v1356_v25 }
  0xb0   : > { %v1007_v44 = vmul.f32 1.442695, %v945_v12  ;;  %v875_v21 = vadd.f32 %v811_v35, %v674_v42 }
  0xb1   : > { %v1358_v45 = vpop.eup %1357  ;;  %1365 = vrcp.f32 %v1038_v43 }
  0xb2   : > { %v1360_v18 = vpop.eup %1359  ;;  %v1132_v4 = vmul.f32 %v1358_v45, %v1849_v52  ;;  %1367 = vpow2.f32 %v1007_v44  ;;  %v914_v20 = vadd.f32 %v1818_v5, %v875_v21 }
  0xb3   : > { %v1039_v46 = vadd.f32 1.0, %v1360_v18 }
  0xb4   : > { %1164 = vst [vmem:[%s1569_s4 + $0xc8] sm:$0xff] %v1132_v4  ;;  %v946_v24 = vsub.f32 0.0, %v914_v20 }
  0xb5   : > { %v1362_v22 = vpop.eup %1361  ;;  %1369 = vrcp.f32 %v1039_v46 }
  0xb6   : > { %v1133_v48 = vmul.f32 %v1362_v22, %v1860_v13  ;;  %v1009_v41 = vmul.f32 1.442695, %v946_v24 }
  0xb8   : > { %v1364_v49 = vpop.eup %1363  ;;  %1165 = vst [vmem:[%s1569_s4 + $0xd0] sm:$0xff] %v1133_v48  ;;  %1371 = vpow2.f32 %v1009_v41 }
  0xb9   : > { %v1040_v56 = vadd.f32 1.0, %v1364_v49 }
  0xbb   : > { %v1366_v58 = vpop.eup %1365  ;;  %1373 = vrcp.f32 %v1040_v56 }
  0xbc   : > { %v1368_v52 = vpop.eup %1367  ;;  %v1134_v5 = vmul.f32 %v1366_v58, %v1877_v39 }
  0xbd   : > { %v1041_v28 = vadd.f32 1.0, %v1368_v52 }
  0xbe   : > { %1166 = vst [vmem:[%s1569_s4 + $0xd8] sm:$0xff] %v1134_v5 }
  0xbf   : > { %v1370_v1 = vpop.eup %1369  ;;  %1375 = vrcp.f32 %v1041_v28 }
  0xc0   : > { %v1135_v13 = vmul.f32 %v1370_v1, %v1888_v59 }
  0xc2   : > { %v1372_v60 = vpop.eup %1371  ;;  %1167 = vst [vmem:[%s1569_s4 + $0xe0] sm:$0xff] %v1135_v13 }
  0xc3   : > { %v1042_v61 = vadd.f32 1.0, %v1372_v60 }
  0xc5   : > { %v1374_v62 = vpop.eup %1373  ;;  %1377 = vrcp.f32 %v1042_v61 }
  0xc6   : > { %v1136_v33 = vmul.f32 %v1374_v62, %v912_v19 }
  0xc8   : > { %1168 = vst [vmem:[%s1569_s4 + $0xe8] sm:$0xff] %v1136_v33 }
  0xc9   : > { %v1376_v37 = vpop.eup %1375 }
  0xca   : > { %v1137_v63 = vmul.f32 %v1376_v37, %v913_v10 }
  0xcc   : > { %1169 = vst [vmem:[%s1569_s4 + $0xf0] sm:$0xff] %v1137_v63 }
  0xcf   : > { %v1378_v38 = vpop.eup %1377 }
  0xd0   : > { %v1138_v40 = vmul.f32 %v1378_v38, %v914_v20 }
  0xd2   : > { %1170 = vst [vmem:[%s1569_s4 + $0xf8] sm:$0xff] %v1138_v40 }
  0xd3 PF: > { %s13_s12 = sadd.s32 1, %s1390_s12  }
  0xd4   : > { %p10_p4 = scmp.ge.s32.totalorder %s13_s12, 4  }
  0xd6   :  { %12 = sbr.rel (!%p10_p4) target bundleno = 1 (0x1), region = 62 }

// kernel: _lambda_.41
= control target key start
LH: loop header
LB: loop body
LE: loop exit
PB: predicated region body
PF: predicated region fallthrough
CT: control target
= control target key end

     0   :  { %9 = vsyncpa [#allocation3], 0  ;;  %s1364_s0 = inlined_call_operand.vmem [shape: f32[512,192], index: 0, kind: input, shape index: {}]   ;;  %s1365_s1 = inlined_call_operand.vmem [shape: bf16[192,128], index: 1, kind: input, shape index: {}]   ;;  %s1366_s2 = inlined_call_operand.vmem [shape: f32[1,128], index: 2, kind: input, shape index: {}]   ;;  %s1367_s3 = inlined_call_operand.vmem [shape: f32[1,128], index: 3, kind: input, shape index: {}]   ;;  %s1368_s4 = inlined_call_operand.hbm [shape: f32[512,128], index: 4, kind: output, shape index: {}]  }
   0x1   :  { %11 = vsyncpa [#allocation3 + $0x1], 0  ;;  %s1007_s15 = smov 0   ;;  %s1009_s16 = smov 0  }
   0x2   :  { %s1011_s17 = smov 0   ;;  %s1013_s18 = smov 0  }
   0x3 LB: > { %s1028_s19 = sadd.s32 4294967295, %s976_s18   ;;  %s791_s20 = sadd.s32 4294967294, %s976_s18   ;;  %s976_s18 = sphi %s1013_s18, %s1374_s18   ;;  %s972_s17 = sphi %s1011_s17, %s1373_s17   ;;  %s968_s16 = sphi %s1009_s16, %s1372_s16   ;;  %s964_s15 = sphi %s1007_s15, %s1371_s15  }
   0x4   : > { %s1032_s21 = sadd.s32 1, %s976_s18   ;;  %s113_s22 = sadd.s32 1, %s972_s17 }
   0x5   : > { %s110_s23 = ssub.s32 %s976_s18, %s1032_s21  ;;  %p123_p0 = scmp.ne.s32.totalorder %s972_s17, %s968_s16 }
   0x6   : > { %p111_p1 = scmp.eq.s32.totalorder %s110_s23, 0  ;;  %p124_p2 = scmp.eq.s32.totalorder %s1028_s19, 1 }
   0x7   : > { %p129_p3 = scmp.ne.s32.totalorder %s968_s16, %s964_s15  ;;  %p130_p4 = scmp.eq.s32.totalorder %s791_s20, 1 }
   0x8   : > { %s1043_s24 = scalar_select %p111_p1, %s972_s17, %s113_s22  }
   0x9   : > { %p1045_p5 = por %p124_p2, %p123_p0  ;;  %p1049_p6 = por %p130_p4, %p129_p3 }
   0xa   : > { %p794_p7 = scmp.ge.s32.totalorder %s976_s18, 1  ;;  %p167_p8 = scmp.lt.s32.totalorder %s976_s18, 3 }
   0xc   : > { %p168_p9 = pnand %p794_p7, %p167_p8 }
   0xd   : > { %v902_v0 = vld [vmem:[%s1365_s1] sm:$0xff] (!%p168_p9)   ;;  %v978_v1 = vmov (!%p168_p9), 0   ;;  %s796_s29 = sshll.u32 (!%p168_p9), %s1028_s19, 5  ;;  %v903_v2 = vld [vmem:[%s1365_s1 + $0x8] sm:$0xff] (!%p168_p9)   ;;  %v904_v3 = vld [vmem:[%s1365_s1 + $0x10] sm:$0xff] (!%p168_p9)   ;;  %vm395_vm0 = vcmask (!%p168_p9), 523264  }
   0xe   : > { %171 = sbr.rel (%p168_p9) target bundleno = 351 (0x15f), region = 36  ;;  %444 = vmatprep.subr.bf16.mxu0 (!%p168_p9), %v978_v1  ;;  %836 = vmatprep.subr.bf16.mxu1 (!%p168_p9), %v978_v1  ;;  %p195_p10 = scmp.lt.s32.totalorder (!%p168_p9), %s796_s29, 63  ;;  %v905_v4 = vld [vmem:[%s1365_s1 + $0x18] sm:$0xff] (!%p168_p9)   ;;  %v906_v10 = vld [vmem:[%s1365_s1 + $0x20] sm:$0xff] (!%p168_p9)   ;;  %v907_v12 = vld [vmem:[%s1365_s1 + $0x28] sm:$0xff] (!%p168_p9)  }
   0xf   : > { %445 = vmatpush1.bf16.msra.mxu0 (!%p168_p9), %v902_v0  ;;  %848 = vmatpush1.bf16.msra.mxu1 (!%p168_p9), %v902_v0  ;;  %v908_v13 = vld [vmem:[%s1365_s1 + $0x30] sm:$0xff] (!%p168_p9)   ;;  %v909_v14 = vld [vmem:[%s1365_s1 + $0x38] sm:$0xff] (!%p168_p9)   ;;  %v910_v15 = vld [vmem:[%s1365_s1 + $0x40] sm:$0xff] (!%p168_p9)   ;;  %s191_s14 = sand.u32 (!%p168_p9), 1, %s968_s16   ;;  %s979_s9 = smov (!%p168_p9), [#allocation2]  }
  0x10   : > { %446 = vmatprep.subr.bf16.mxu0 (!%p168_p9), %v978_v1  ;;  %837 = vmatprep.subr.bf16.mxu1 (!%p168_p9), %v978_v1  ;;  %v911_v16 = vld [vmem:[%s1365_s1 + $0x48] sm:$0xff] (!%p168_p9)   ;;  %v912_v17 = vld [vmem:[%s1365_s1 + $0x50] sm:$0xff] (!%p168_p9)   ;;  %v913_v18 = vld [vmem:[%s1365_s1 + $0x58] sm:$0xff] (!%p168_p9)   ;;  %s795_s23 = sshll.u32 (!%p168_p9), %s191_s14, 8  ;;  %s1323_s7 = scalar_lea.sflag (!%p168_p9), [#allocation3], %s191_s14 }
  0x11   : > { %s918_s10 = sshll.u32 (!%p168_p9), %s979_s9, 4  ;;  %s919_s10 = int_to_ptr.vmem [resolvable:$false] %s918_s10 }
  0x12   : > { %s920_s12 = scalar_lea.vmem (!%p168_p9), %s919_s10, 8192 }
  0x13   : > { %447 = vmatpush1.bf16.msra.mxu0 (!%p168_p9), %v903_v2  ;;  %849 = vmatpush1.bf16.msra.mxu1 (!%p168_p9), %v903_v2 }
  0x14   : > { %448 = vmatprep.subr.bf16.mxu0 (!%p168_p9), %v978_v1  ;;  %838 = vmatprep.subr.bf16.mxu1 (!%p168_p9), %v978_v1 }
  0x15   : > { %s1376_s29 = smov (!%p195_p10, %s796_s29), 63 }
  0x16   : > { %s834_s8 = sshll.u32 %s1376_s29, 4  ;;  %s835_s29 = sshll.u32 %s1028_s19, 12 }
  0x17   : > { %s1074_s11 = scalar_lea.vmem %s1364_s0, %s834_s8  ;;  %449 = vmatpush1.bf16.msra.mxu0 %v904_v3  ;;  %850 = vmatpush1.bf16.msra.mxu1 %v904_v3  ;;  %s1311_s19 = scalar_lea.hbm %s1368_s4, %s835_s29 }
  0x18   : > { %450 = vmatprep.subr.bf16.mxu0 %v978_v1  ;;  %839 = vmatprep.subr.bf16.mxu1 %v978_v1  ;;  %v204_v5 = vld [vmem:[%s1074_s11 + $0x8] sm:$0xff]  ;;  %v206_v6 = vld [vmem:[%s1074_s11 + $0x18] sm:$0xff]  ;;  %v203_v19 = vld [vmem:[%s1074_s11] sm:$0xff] }
  0x19   : > { %v236_v7 = vld [vmem:[%s1074_s11 + $0x108] sm:$0xff]  ;;  %v268_v8 = vpack.c.bf16 %v206_v6, %v204_v5  ;;  %v238_v9 = vld [vmem:[%s1074_s11 + $0x118] sm:$0xff]  ;;  %v205_v20 = vld [vmem:[%s1074_s11 + $0x10] sm:$0xff] }
  0x1a   : > { %v284_v11 = vpack.c.bf16 %v238_v9, %v236_v7  ;;  %v235_v21 = vld [vmem:[%s1074_s11 + $0x100] sm:$0xff]  ;;  %v237_v22 = vld [vmem:[%s1074_s11 + $0x110] sm:$0xff]  ;;  %v208_v23 = vld [vmem:[%s1074_s11 + $0x28] sm:$0xff]  ;;  %v267_v27 = vpack.c.bf16 %v205_v20, %v203_v19 }
  0x1b   : > { %451 = vmatpush1.bf16.msra.mxu0 %v905_v4  ;;  %851 = vmatpush1.bf16.msra.mxu1 %v905_v4  ;;  %v210_v24 = vld [vmem:[%s1074_s11 + $0x38] sm:$0xff]  ;;  %v240_v25 = vld [vmem:[%s1074_s11 + $0x128] sm:$0xff]  ;;  %v283_v28 = vpack.c.bf16 %v237_v22, %v235_v21  ;;  %v207_v31 = vld [vmem:[%s1074_s11 + $0x20] sm:$0xff] }
  0x1c   : > { %452 = vmatprep.subr.bf16.mxu0 %v978_v1  ;;  %840 = vmatprep.subr.bf16.mxu1 %v978_v1  ;;  %v242_v26 = vld [vmem:[%s1074_s11 + $0x138] sm:$0xff]  ;;  %v270_v29 = vpack.c.bf16 %v210_v24, %v208_v23  ;;  %v209_v32 = vld [vmem:[%s1074_s11 + $0x30] sm:$0xff]  ;;  %v239_v33 = vld [vmem:[%s1074_s11 + $0x120] sm:$0xff] }
  0x1d   : > { %811 = vmatprep.mubr.msk.bf16.mxu0 %vm395_vm0, %v268_v8  ;;  %819 = vmatprep.mubr.msk.bf16.mxu1 %vm395_vm0, %v284_v11  ;;  %v286_v30 = vpack.c.bf16 %v242_v26, %v240_v25  ;;  %v241_v34 = vld [vmem:[%s1074_s11 + $0x130] sm:$0xff]  ;;  %v212_v35 = vld [vmem:[%s1074_s11 + $0x48] sm:$0xff]  ;;  %v214_v36 = vld [vmem:[%s1074_s11 + $0x58] sm:$0xff]  ;;  %v269_v39 = vpack.c.bf16 %v209_v32, %v207_v31 }
  0x1e   : > { %v244_v37 = vld [vmem:[%s1074_s11 + $0x148] sm:$0xff]  ;;  %v246_v38 = vld [vmem:[%s1074_s11 + $0x158] sm:$0xff]  ;;  %v285_v40 = vpack.c.bf16 %v241_v34, %v239_v33  ;;  %v272_v41 = vpack.c.bf16 %v214_v36, %v212_v35  ;;  %v211_v43 = vld [vmem:[%s1074_s11 + $0x40] sm:$0xff] }
  0x1f   : > { %453 = vmatpush1.bf16.msra.mxu0 %v906_v10  ;;  %852 = vmatpush1.bf16.msra.mxu1 %v906_v10  ;;  %v288_v42 = vpack.c.bf16 %v246_v38, %v244_v37  ;;  %v213_v44 = vld [vmem:[%s1074_s11 + $0x50] sm:$0xff]  ;;  %v243_v45 = vld [vmem:[%s1074_s11 + $0x140] sm:$0xff]  ;;  %v216_v47 = vld [vmem:[%s1074_s11 + $0x68] sm:$0xff] }
  0x20   : > { %454 = vmatprep.subr.bf16.mxu0 %v978_v1  ;;  %841 = vmatprep.subr.bf16.mxu1 %v978_v1  ;;  %v245_v46 = vld [vmem:[%s1074_s11 + $0x150] sm:$0xff]  ;;  %v218_v48 = vld [vmem:[%s1074_s11 + $0x78] sm:$0xff]  ;;  %v248_v49 = vld [vmem:[%s1074_s11 + $0x168] sm:$0xff]  ;;  %v271_v51 = vpack.c.bf16 %v213_v44, %v211_v43 }
  0x21   : > { %v250_v50 = vld [vmem:[%s1074_s11 + $0x178] sm:$0xff]  ;;  %v287_v52 = vpack.c.bf16 %v245_v46, %v243_v45  ;;  %v274_v53 = vpack.c.bf16 %v218_v48, %v216_v47  ;;  %v215_v55 = vld [vmem:[%s1074_s11 + $0x60] sm:$0xff]  ;;  %v217_v56 = vld [vmem:[%s1074_s11 + $0x70] sm:$0xff] }
  0x22   : > { %v290_v54 = vpack.c.bf16 %v250_v50, %v248_v49  ;;  %v247_v57 = vld [vmem:[%s1074_s11 + $0x160] sm:$0xff]  ;;  %v249_v58 = vld [vmem:[%s1074_s11 + $0x170] sm:$0xff]  ;;  %v220_v59 = vld [vmem:[%s1074_s11 + $0x88] sm:$0xff]  ;;  %v273_v63 = vpack.c.bf16 %v217_v56, %v215_v55 }
  0x23   : > { %455 = vmatpush1.bf16.msra.mxu0 %v907_v12  ;;  %853 = vmatpush1.bf16.msra.mxu1 %v907_v12  ;;  %v222_v60 = vld [vmem:[%s1074_s11 + $0x98] sm:$0xff]  ;;  %v252_v61 = vld [vmem:[%s1074_s11 + $0x188] sm:$0xff]  ;;  %v289_v0 = vpack.c.bf16 %v249_v58, %v247_v57  ;;  %v219_v3 = vld [vmem:[%s1074_s11 + $0x80] sm:$0xff] }
  0x24   : > { %456 = vmatprep.subr.bf16.mxu0 %v978_v1  ;;  %842 = vmatprep.subr.bf16.mxu1 %v978_v1  ;;  %v254_v62 = vld [vmem:[%s1074_s11 + $0x198] sm:$0xff]  ;;  %v221_v4 = vld [vmem:[%s1074_s11 + $0x90] sm:$0xff]  ;;  %v251_v5 = vld [vmem:[%s1074_s11 + $0x180] sm:$0xff] }
  0x25   : > { %v292_v2 = vpack.c.bf16 %v254_v62, %v252_v61  ;;  %v253_v6 = vld [vmem:[%s1074_s11 + $0x190] sm:$0xff]  ;;  %v224_v7 = vld [vmem:[%s1074_s11 + $0xa8] sm:$0xff]  ;;  %v226_v8 = vld [vmem:[%s1074_s11 + $0xb8] sm:$0xff]  ;;  %v275_v11 = vpack.c.bf16 %v221_v4, %v219_v3 }
  0x26   : > { %v256_v9 = vld [vmem:[%s1074_s11 + $0x1a8] sm:$0xff]  ;;  %v258_v10 = vld [vmem:[%s1074_s11 + $0x1b8] sm:$0xff]  ;;  %v291_v12 = vpack.c.bf16 %v253_v6, %v251_v5  ;;  %v1205_v45 = vld [vmem:[%s1366_s2] ss:$0 sm:$0xff] }
  0x27   : > { %457 = vmatpush1.bf16.msra.mxu0 %v908_v13  ;;  %854 = vmatpush1.bf16.msra.mxu1 %v908_v13  ;;  %v278_v13 = vpack.c.bf16 %v226_v8, %v224_v7  ;;  %v228_v19 = vld [vmem:[%s1074_s11 + $0xc8] sm:$0xff]  ;;  %v230_v20 = vld [vmem:[%s1074_s11 + $0xd8] sm:$0xff]  ;;  %v1212_v47 = vld [vmem:[%s1367_s3] ss:$0 sm:$0xff] }
  0x28   : > { %458 = vmatprep.subr.bf16.mxu0 %v978_v1  ;;  %843 = vmatprep.subr.bf16.mxu1 %v978_v1  ;;  %v260_v21 = vld [vmem:[%s1074_s11 + $0x1c8] sm:$0xff]  ;;  %v262_v22 = vld [vmem:[%s1074_s11 + $0x1d8] sm:$0xff]  ;;  %v280_v25 = vpack.c.bf16 %v230_v20, %v228_v19 }
  0x29   : > { %v296_v26 = vpack.c.bf16 %v262_v22, %v260_v21  ;;  %v232_v31 = vld [vmem:[%s1074_s11 + $0xe8] sm:$0xff]  ;;  %v234_v32 = vld [vmem:[%s1074_s11 + $0xf8] sm:$0xff] }
  0x2a   : > { %v264_v33 = vld [vmem:[%s1074_s11 + $0x1e8] sm:$0xff]  ;;  %v266_v34 = vld [vmem:[%s1074_s11 + $0x1f8] sm:$0xff]  ;;  %v282_v37 = vpack.c.bf16 %v234_v32, %v232_v31 }
  0x2b   : > { %459 = vmatpush1.bf16.msra.mxu0 %v909_v14  ;;  %855 = vmatpush1.bf16.msra.mxu1 %v909_v14  ;;  %v294_v14 = vpack.c.bf16 %v258_v10, %v256_v9  ;;  %v298_v38 = vpack.c.bf16 %v266_v34, %v264_v33 }
  0x2c   : > { %460 = vmatprep.subr.bf16.mxu0 %v978_v1  ;;  %844 = vmatprep.subr.bf16.mxu1 %v978_v1 }
  0x2f   : > { %461 = vmatpush1.bf16.msra.mxu0 %v910_v15  ;;  %856 = vmatpush1.bf16.msra.mxu1 %v910_v15  ;;  %v223_v15 = vld [vmem:[%s1074_s11 + $0xa0] sm:$0xff] }
  0x30   : > { %462 = vmatprep.subr.bf16.mxu0 %v978_v1  ;;  %845 = vmatprep.subr.bf16.mxu1 %v978_v1 }
  0x33   : > { %463 = vmatpush1.bf16.msra.mxu0 %v911_v16  ;;  %857 = vmatpush1.bf16.msra.mxu1 %v911_v16  ;;  %v225_v16 = vld [vmem:[%s1074_s11 + $0xb0] sm:$0xff] }
  0x34   : > { %464 = vmatprep.subr.bf16.mxu0 %v978_v1  ;;  %846 = vmatprep.subr.bf16.mxu1 %v978_v1  ;;  %v277_v23 = vpack.c.bf16 %v225_v16, %v223_v15 }
  0x37   : > { %465 = vmatpush1.bf16.msra.mxu0 %v912_v17  ;;  %858 = vmatpush1.bf16.msra.mxu1 %v912_v17  ;;  %v255_v17 = vld [vmem:[%s1074_s11 + $0x1a0] sm:$0xff] }
  0x38   : > { %466 = vmatprep.subr.bf16.mxu0 %v978_v1  ;;  %847 = vmatprep.subr.bf16.mxu1 %v978_v1  ;;  %v276_v1 = vpack.c.bf16 %v222_v60, %v220_v59 }
  0x3b   : > { %467 = vmatpush1.bf16.msra.mxu0 %v913_v18  ;;  %859 = vmatpush1.bf16.msra.mxu1 %v913_v18  ;;  %v257_v18 = vld [vmem:[%s1074_s11 + $0x1b0] sm:$0xff] }
  0x3c   : > { %v293_v24 = vpack.c.bf16 %v257_v18, %v255_v17 }
  0x3e   : > { %477 = vmatmul.mubr.bf16.vlgmr.msra.gmra.mrb[0].mxu0 %v267_v27  ;;  %541 = vmatmul.mubr.bf16.vlgmr.msra.gmra.mrb[0].mxu1 %v283_v28  ;;  %v227_v27 = vld [vmem:[%s1074_s11 + $0xc0] sm:$0xff]  ;;  %v229_v28 = vld [vmem:[%s1074_s11 + $0xd0] sm:$0xff] }
  0x3f   : > { %812 = vmatprep.mubr.msk.bf16.mxu0 %vm395_vm0, %v270_v29  ;;  %820 = vmatprep.mubr.msk.bf16.mxu1 %vm395_vm0, %v286_v30  ;;  %v259_v29 = vld [vmem:[%s1074_s11 + $0x1c0] sm:$0xff]  ;;  %v261_v30 = vld [vmem:[%s1074_s11 + $0x1d0] sm:$0xff]  ;;  %v279_v35 = vpack.c.bf16 %v229_v28, %v227_v27 }
  0x40   : > { %v295_v36 = vpack.c.bf16 %v261_v30, %v259_v29 }
  0x46   : > { %485 = vmatmul.mubr.bf16.gmra.mrb[4].mxu0 %v269_v39  ;;  %549 = vmatmul.mubr.bf16.gmra.mrb[4].mxu1 %v285_v40  ;;  %v231_v39 = vld [vmem:[%s1074_s11 + $0xe0] sm:$0xff]  ;;  %v233_v40 = vld [vmem:[%s1074_s11 + $0xf0] sm:$0xff] }
  0x47   : > { %813 = vmatprep.mubr.msk.bf16.mxu0 %vm395_vm0, %v272_v41  ;;  %821 = vmatprep.mubr.msk.bf16.mxu1 %vm395_vm0, %v288_v42  ;;  %v263_v41 = vld [vmem:[%s1074_s11 + $0x1e0] sm:$0xff]  ;;  %v265_v42 = vld [vmem:[%s1074_s11 + $0x1f0] sm:$0xff]  ;;  %v281_v43 = vpack.c.bf16 %v233_v40, %v231_v39  ;;  %s1220_s11 = scalar_lea.vmem [#allocation2], %s795_s23 }
  0x48   : > { %v297_v44 = vpack.c.bf16 %v265_v42, %v263_v41  ;;  %s729_s30 = sshll.u32 %s1220_s11, 4  ;;  %s1313_s30 = int_to_ptr.vmem [resolvable:$true] %s729_s30 }
  0x49   : > { %s914_s8 = scalar_lea.vmem %s1313_s30, 4096  ;;  %p921_p0 = scmp.lt.s32.totalorder %s1313_s30, %s919_s10 }
  0x4a   : > { %p915_p11 = scmp.ne.s32.totalorder %s1313_s30, %s914_s8  ;;  %p922_p1 = scmp.lt.s32.totalorder %s920_s12, %s914_s8 }
  0x4c   : > { %p916_p12 = pnand %p915_p11, %p1045_p5  ;;  %p923_p2 = por %p922_p1, %p921_p0 }
  0x4e   : > { %493 = vmatmul.mubr.bf16.gmra.mrb[8].mxu0 %v271_v51  ;;  %557 = vmatmul.mubr.bf16.gmra.mrb[8].mxu1 %v287_v52  ;;  %p917_p13 = pneg %p916_p12 }
  0x4f   : > { %814 = vmatprep.mubr.msk.bf16.mxu0 %vm395_vm0, %v274_v53  ;;  %822 = vmatprep.mubr.msk.bf16.mxu1 %vm395_vm0, %v290_v54 }
  0x50   : > { %p924_p3 = pnand %p923_p2, %p917_p13 }
  0x56   : > { %501 = vmatmul.mubr.bf16.gmra.mrb[12].mxu0 %v273_v63  ;;  %565 = vmatmul.mubr.bf16.gmra.mrb[12].mxu1 %v289_v0 }
  0x57   : > { %815 = vmatprep.mubr.msk.bf16.mxu0 %vm395_vm0, %v276_v1  ;;  %823 = vmatprep.mubr.msk.bf16.mxu1 %vm395_vm0, %v292_v2 }
  0x5e   : > { %509 = vmatmul.mubr.bf16.gmra.mrb[16].mxu0 %v275_v11  ;;  %573 = vmatmul.mubr.bf16.gmra.mrb[16].mxu1 %v291_v12 }
  0x5f   : > { %816 = vmatprep.mubr.msk.bf16.mxu0 %vm395_vm0, %v278_v13  ;;  %824 = vmatprep.mubr.msk.bf16.mxu1 %vm395_vm0, %v294_v14 }
  0x66   : > { %517 = vmatmul.mubr.bf16.gmra.mrb[20].mxu0 %v277_v23  ;;  %581 = vmatmul.mubr.bf16.gmra.mrb[20].mxu1 %v293_v24 }
  0x67   : > { %817 = vmatprep.mubr.msk.bf16.mxu0 %vm395_vm0, %v280_v25  ;;  %825 = vmatprep.mubr.msk.bf16.mxu1 %vm395_vm0, %v296_v26 }
  0x6e   : > { %525 = vmatmul.mubr.bf16.gmra.mrb[24].mxu0 %v279_v35  ;;  %589 = vmatmul.mubr.bf16.gmra.mrb[24].mxu1 %v295_v36 }
  0x6f   : > { %818 = vmatprep.mubr.msk.bf16.mxu0 %vm395_vm0, %v282_v37  ;;  %826 = vmatprep.mubr.msk.bf16.mxu1 %vm395_vm0, %v298_v38 }
  0x76   : > { %533 = vmatmul.mubr.bf16.gmra.mrb[28].mxu0 %v281_v43  ;;  %597 = vmatmul.mubr.bf16.gmra.mrb[28].mxu1 %v297_v44 }
 0x111   : > { %v478_v46 = vpop.f32.mrb[0].mxu0  ;;  %v542_v48 = vpop.f32.mrb[0].mxu1 }
 0x112   : > { %v612_v49 = vmul.f32 %v1205_v45, %v478_v46  ;;  %v628_v50 = vmul.f32 %v1205_v45, %v542_v48  ;;  %v480_v51 = vpop.f32.mrb[1].mxu0  ;;  %v544_v52 = vpop.f32.mrb[1].mxu1 }
 0x113   : > { %v481_v53 = vpop.f32.mrb[2].mxu0  ;;  %v545_v54 = vpop.f32.mrb[2].mxu1 }
 0x114   : > { %v651_v55 = vadd.f32 %v1212_v47, %v612_v49  ;;  %v667_v56 = vadd.f32 %v1212_v47, %v628_v50  ;;  %v613_v57 = vmul.f32 %v1205_v45, %v481_v53  ;;  %v629_v58 = vmul.f32 %v1205_v45, %v545_v54  ;;  %v483_v59 = vpop.f32.mrb[3].mxu0  ;;  %v547_v60 = vpop.f32.mrb[3].mxu1 }
 0x116   : > { %683 = vst [vmem:[%s1220_s11] sm:$0xff] %v651_v55  ;;  %699 = vst [vmem:[%s1220_s11 + $0x80] sm:$0xff] %v667_v56  ;;  %v652_v61 = vadd.f32 %v1212_v47, %v613_v57  ;;  %v668_v62 = vadd.f32 %v1212_v47, %v629_v58 }
 0x118   : > { %684 = vst [vmem:[%s1220_s11 + $0x8] sm:$0xff] %v652_v61  ;;  %700 = vst [vmem:[%s1220_s11 + $0x88] sm:$0xff] %v668_v62 }
 0x119   : > { %v486_v63 = vpop.f32.mrb[4].mxu0  ;;  %v550_v0 = vpop.f32.mrb[4].mxu1 }
 0x11a   : > { %v614_v1 = vmul.f32 %v1205_v45, %v486_v63  ;;  %v630_v2 = vmul.f32 %v1205_v45, %v550_v0  ;;  %v488_v3 = vpop.f32.mrb[5].mxu0  ;;  %v552_v4 = vpop.f32.mrb[5].mxu1 }
 0x11b   : > { %v489_v5 = vpop.f32.mrb[6].mxu0  ;;  %v553_v6 = vpop.f32.mrb[6].mxu1 }
 0x11c   : > { %v653_v7 = vadd.f32 %v1212_v47, %v614_v1  ;;  %v669_v8 = vadd.f32 %v1212_v47, %v630_v2  ;;  %v615_v9 = vmul.f32 %v1205_v45, %v489_v5  ;;  %v631_v10 = vmul.f32 %v1205_v45, %v553_v6  ;;  %v491_v11 = vpop.f32.mrb[7].mxu0  ;;  %v555_v12 = vpop.f32.mrb[7].mxu1 }
 0x11e   : > { %685 = vst [vmem:[%s1220_s11 + $0x10] sm:$0xff] %v653_v7  ;;  %701 = vst [vmem:[%s1220_s11 + $0x90] sm:$0xff] %v669_v8  ;;  %v654_v13 = vadd.f32 %v1212_v47, %v615_v9  ;;  %v670_v14 = vadd.f32 %v1212_v47, %v631_v10 }
 0x120   : > { %686 = vst [vmem:[%s1220_s11 + $0x18] sm:$0xff] %v654_v13  ;;  %702 = vst [vmem:[%s1220_s11 + $0x98] sm:$0xff] %v670_v14 }
 0x121   : > { %v494_v15 = vpop.f32.mrb[8].mxu0  ;;  %v558_v16 = vpop.f32.mrb[8].mxu1 }
 0x122   : > { %v616_v17 = vmul.f32 %v1205_v45, %v494_v15  ;;  %v632_v18 = vmul.f32 %v1205_v45, %v558_v16  ;;  %v496_v19 = vpop.f32.mrb[9].mxu0  ;;  %v560_v20 = vpop.f32.mrb[9].mxu1 }
 0x123   : > { %v497_v21 = vpop.f32.mrb[10].mxu0  ;;  %v561_v22 = vpop.f32.mrb[10].mxu1 }
 0x124   : > { %v655_v23 = vadd.f32 %v1212_v47, %v616_v17  ;;  %v671_v24 = vadd.f32 %v1212_v47, %v632_v18  ;;  %v617_v25 = vmul.f32 %v1205_v45, %v497_v21  ;;  %v633_v26 = vmul.f32 %v1205_v45, %v561_v22  ;;  %v499_v27 = vpop.f32.mrb[11].mxu0  ;;  %v563_v28 = vpop.f32.mrb[11].mxu1 }
 0x126   : > { %687 = vst [vmem:[%s1220_s11 + $0x20] sm:$0xff] %v655_v23  ;;  %703 = vst [vmem:[%s1220_s11 + $0xa0] sm:$0xff] %v671_v24  ;;  %v656_v29 = vadd.f32 %v1212_v47, %v617_v25  ;;  %v672_v30 = vadd.f32 %v1212_v47, %v633_v26 }
 0x128   : > { %688 = vst [vmem:[%s1220_s11 + $0x28] sm:$0xff] %v656_v29  ;;  %704 = vst [vmem:[%s1220_s11 + $0xa8] sm:$0xff] %v672_v30 }
 0x129   : > { %v502_v31 = vpop.f32.mrb[12].mxu0  ;;  %v566_v32 = vpop.f32.mrb[12].mxu1 }
 0x12a   : > { %v618_v33 = vmul.f32 %v1205_v45, %v502_v31  ;;  %v634_v34 = vmul.f32 %v1205_v45, %v566_v32  ;;  %v504_v35 = vpop.f32.mrb[13].mxu0  ;;  %v568_v36 = vpop.f32.mrb[13].mxu1 }
 0x12b   : > { %v505_v37 = vpop.f32.mrb[14].mxu0  ;;  %v569_v38 = vpop.f32.mrb[14].mxu1 }
 0x12c   : > { %v657_v39 = vadd.f32 %v1212_v47, %v618_v33  ;;  %v673_v40 = vadd.f32 %v1212_v47, %v634_v34  ;;  %v619_v41 = vmul.f32 %v1205_v45, %v505_v37  ;;  %v635_v42 = vmul.f32 %v1205_v45, %v569_v38  ;;  %v507_v43 = vpop.f32.mrb[15].mxu0  ;;  %v571_v44 = vpop.f32.mrb[15].mxu1 }
 0x12e   : > { %689 = vst [vmem:[%s1220_s11 + $0x30] sm:$0xff] %v657_v39  ;;  %705 = vst [vmem:[%s1220_s11 + $0xb0] sm:$0xff] %v673_v40  ;;  %v658_v46 = vadd.f32 %v1212_v47, %v619_v41  ;;  %v674_v48 = vadd.f32 %v1212_v47, %v635_v42 }
 0x130   : > { %690 = vst [vmem:[%s1220_s11 + $0x38] sm:$0xff] %v658_v46  ;;  %706 = vst [vmem:[%s1220_s11 + $0xb8] sm:$0xff] %v674_v48 }
 0x131   : > { %v510_v49 = vpop.f32.mrb[16].mxu0  ;;  %v574_v50 = vpop.f32.mrb[16].mxu1 }
 0x132   : > { %v620_v51 = vmul.f32 %v1205_v45, %v510_v49  ;;  %v636_v52 = vmul.f32 %v1205_v45, %v574_v50  ;;  %v512_v53 = vpop.f32.mrb[17].mxu0  ;;  %v576_v54 = vpop.f32.mrb[17].mxu1 }
 0x133   : > { %v513_v55 = vpop.f32.mrb[18].mxu0  ;;  %v577_v56 = vpop.f32.mrb[18].mxu1 }
 0x134   : > { %v659_v57 = vadd.f32 %v1212_v47, %v620_v51  ;;  %v675_v58 = vadd.f32 %v1212_v47, %v636_v52  ;;  %v621_v59 = vmul.f32 %v1205_v45, %v513_v55  ;;  %v637_v60 = vmul.f32 %v1205_v45, %v577_v56  ;;  %v515_v61 = vpop.f32.mrb[19].mxu0  ;;  %v579_v62 = vpop.f32.mrb[19].mxu1 }
 0x136   : > { %691 = vst [vmem:[%s1220_s11 + $0x40] sm:$0xff] %v659_v57  ;;  %707 = vst [vmem:[%s1220_s11 + $0xc0] sm:$0xff] %v675_v58  ;;  %v660_v63 = vadd.f32 %v1212_v47, %v621_v59  ;;  %v676_v0 = vadd.f32 %v1212_v47, %v637_v60 }
 0x138   : > { %692 = vst [vmem:[%s1220_s11 + $0x48] sm:$0xff] %v660_v63  ;;  %708 = vst [vmem:[%s1220_s11 + $0xc8] sm:$0xff] %v676_v0 }
 0x139   : > { %v518_v1 = vpop.f32.mrb[20].mxu0  ;;  %v582_v2 = vpop.f32.mrb[20].mxu1 }
 0x13a   : > { %v622_v3 = vmul.f32 %v1205_v45, %v518_v1  ;;  %v638_v4 = vmul.f32 %v1205_v45, %v582_v2  ;;  %v520_v5 = vpop.f32.mrb[21].mxu0  ;;  %v584_v6 = vpop.f32.mrb[21].mxu1 }
 0x13b   : > { %v521_v7 = vpop.f32.mrb[22].mxu0  ;;  %v585_v8 = vpop.f32.mrb[22].mxu1 }
 0x13c   : > { %v661_v9 = vadd.f32 %v1212_v47, %v622_v3  ;;  %v677_v10 = vadd.f32 %v1212_v47, %v638_v4  ;;  %v623_v11 = vmul.f32 %v1205_v45, %v521_v7  ;;  %v639_v12 = vmul.f32 %v1205_v45, %v585_v8  ;;  %v523_v13 = vpop.f32.mrb[23].mxu0  ;;  %v587_v14 = vpop.f32.mrb[23].mxu1 }
 0x13e   : > { %693 = vst [vmem:[%s1220_s11 + $0x50] sm:$0xff] %v661_v9  ;;  %709 = vst [vmem:[%s1220_s11 + $0xd0] sm:$0xff] %v677_v10  ;;  %v662_v15 = vadd.f32 %v1212_v47, %v623_v11  ;;  %v678_v16 = vadd.f32 %v1212_v47, %v639_v12 }
 0x140   : > { %694 = vst [vmem:[%s1220_s11 + $0x58] sm:$0xff] %v662_v15  ;;  %710 = vst [vmem:[%s1220_s11 + $0xd8] sm:$0xff] %v678_v16 }
 0x141   : > { %v526_v17 = vpop.f32.mrb[24].mxu0  ;;  %v590_v18 = vpop.f32.mrb[24].mxu1 }
 0x142   : > { %v624_v19 = vmul.f32 %v1205_v45, %v526_v17  ;;  %v640_v20 = vmul.f32 %v1205_v45, %v590_v18  ;;  %v528_v21 = vpop.f32.mrb[25].mxu0  ;;  %v592_v22 = vpop.f32.mrb[25].mxu1 }
 0x143   : > { %v529_v23 = vpop.f32.mrb[26].mxu0  ;;  %v593_v24 = vpop.f32.mrb[26].mxu1 }
 0x144   : > { %v663_v25 = vadd.f32 %v1212_v47, %v624_v19  ;;  %v679_v26 = vadd.f32 %v1212_v47, %v640_v20  ;;  %v625_v27 = vmul.f32 %v1205_v45, %v529_v23  ;;  %v641_v28 = vmul.f32 %v1205_v45, %v593_v24  ;;  %v531_v29 = vpop.f32.mrb[27].mxu0  ;;  %v595_v30 = vpop.f32.mrb[27].mxu1 }
 0x146   : > { %695 = vst [vmem:[%s1220_s11 + $0x60] sm:$0xff] %v663_v25  ;;  %711 = vst [vmem:[%s1220_s11 + $0xe0] sm:$0xff] %v679_v26  ;;  %v664_v31 = vadd.f32 %v1212_v47, %v625_v27  ;;  %v680_v32 = vadd.f32 %v1212_v47, %v641_v28 }
 0x148   : > { %696 = vst [vmem:[%s1220_s11 + $0x68] sm:$0xff] %v664_v31  ;;  %712 = vst [vmem:[%s1220_s11 + $0xe8] sm:$0xff] %v680_v32 }
 0x149   : > { %v534_v33 = vpop.f32.mrb[28].mxu0  ;;  %v598_v34 = vpop.f32.mrb[28].mxu1 }
 0x14a   : > { %v626_v35 = vmul.f32 %v1205_v45, %v534_v33  ;;  %v642_v36 = vmul.f32 %v1205_v45, %v598_v34  ;;  %v536_v37 = vpop.f32.mrb[29].mxu0  ;;  %v600_v38 = vpop.f32.mrb[29].mxu1 }
 0x14b   : > { %v537_v39 = vpop.f32.mrb[30].mxu0  ;;  %v601_v40 = vpop.f32.mrb[30].mxu1 }
 0x14c   : > { %v665_v41 = vadd.f32 %v1212_v47, %v626_v35  ;;  %v681_v42 = vadd.f32 %v1212_v47, %v642_v36  ;;  %v627_v43 = vmul.f32 %v1205_v45, %v537_v39  ;;  %v643_v44 = vmul.f32 %v1205_v45, %v601_v40  ;;  %v539_v46 = vpop.f32.mrb[31].mxu0  ;;  %v603_v48 = vpop.f32.mrb[31].mxu1 }
 0x14e   : > { %697 = vst [vmem:[%s1220_s11 + $0x70] sm:$0xff] %v665_v41  ;;  %713 = vst [vmem:[%s1220_s11 + $0xf0] sm:$0xff] %v681_v42  ;;  %v666_v49 = vadd.f32 %v1212_v47, %v627_v43  ;;  %v682_v50 = vadd.f32 %v1212_v47, %v643_v44 }
 0x150   : > { %698 = vst [vmem:[%s1220_s11 + $0x78] sm:$0xff] %v666_v49  ;;  %714 = vst [vmem:[%s1220_s11 + $0xf8] sm:$0xff] %v682_v50 }
 0x151   : > { %927 = shalt.err (!%p924_p3)
}
 0x152   : > { %s928_s13 = scalar_lea.hbm %s1311_s19, 4096  ;;  %s932_s22 = scalar_lea.hbm %s1368_s4, 8192 }
 0x153   : > { %p929_p4 = scmp.ne.s32.totalorder %s1311_s19, %s928_s13  ;;  %p933_p9 = scmp.lt.u32.totalorder %s1311_s19, %s1368_s4 }
 0x154   : > { %p934_p10 = scmp.lt.u32.totalorder %s932_s22, %s928_s13  ;;  %p936_p12 = scmp.lt.u32.totalorder %s928_s13, %s1311_s19 }
 0x155   : > { %p930_p7 = pnand %p929_p4, %p1045_p5 }
 0x156   : > { %p935_p11 = por %p934_p10, %p933_p9 }
 0x157   : > { %p931_p8 = pneg %p930_p7 }
 0x158   : > { %p937_p13 = por %p936_p12, %p935_p11 }
 0x15a   : > { %p938_p0 = pnand %p937_p13, %p931_p8 }
 0x15c   : > { %941 = shalt.err (!%p938_p0)
}
 0x15d   : > { %s980_s28 = smov 128   ;;  %s981_s11 = smov 8  }
 0x15e   : > { %860 = dma.vmem_to_hbm [thread:$0]  (%p1045_p5), %s1313_s30, 4096, %s1311_s19, %s1323_s7, %s980_s28, %s980_s28, %s981_s11  }
 0x15f PF: > { %p866_p1 = scmp.ge.s32.totalorder %s976_s18, 2  ;;  %s744_s29 = sand.u32 1, %s964_s15  }
 0x160   : > { %s745_s5 = scalar_lea.sflag [#allocation3], %s744_s29 }
 0x161   : > { %p863_p2 = pnand %p866_p1, %p1049_p6 }
 0x163   : > { %959 = dma.done.wait (!%p863_p2), %s745_s5, 4096  }
 0x164   : > { %961 = vsyncadd (!%p863_p2), %s745_s5, 4294963200  ;;  %p14_p3 = scmp.ge.s32.totalorder %s1032_s21, 4   ;;  %s1371_s15 = smov %s968_s16 }
 0x165   : > { %s1372_s16 = smov %s972_s17  ;;  %s1373_s17 = smov %s1043_s24 }
 0x166   : > { %s1374_s18 = smov %s1032_s21  ;;  %16 = sbr.rel (!%p14_p3) target bundleno = 3 (0x3), region = 71 }
 0x16d   :  { %750 = vsyncpa [#allocation3], 1 }
 0x16e   :  { %752 = vsyncpa [#allocation3 + $0x1], 1 }

</bundles_post_ra>
